<compile_context>
chip_gen: v5e
topology: v5e:2x2
jax: 0.10.0
libtpu: 0.0.40
codegen_flags: <defaults>
</compile_context>

<pallas_src>
import functools

import jax
import jax.numpy as jnp
from jax.experimental import pallas as pl
from jax.experimental.pallas import tpu as pltpu


def _round_up(v, m):
    return (v + m - 1) // m * m


def _residual_block_kernel(x_ref, w1_ref, w2_ref, out_ref, xpad_s, hpad_s, *,
                           H, W, Wp):
    """Fused conv3x3 -> ReLU -> conv3x3 -> residual add (NHWC, lane-dense Cp).

    x_ref   : (NB, H, W, Cp) f32   input block (also the aligned residual)
    w1_ref  : (9*Cp, Cp)     bf16  conv1 weights, rows ordered [dy, dx, cin]
    w2_ref  : (9*Cp, Cp)     bf16  conv2 weights, same ordering
    out_ref : (NB, H, W, Cp) f32
    xpad_s  : VMEM (NB, H+2, Wp, Cp) f32   spatially padded conv1 input
    hpad_s  : VMEM (NB, H+2, Wp, Cp) f32   spatially padded conv2 input
    """
    NB, _, _, Cp = x_ref.shape
    M = NB * H * W

    # Zero only the 1-pixel halo ring of the padded scratches (interior is
    # fully overwritten below; columns >= W+2 are never read).  Done every
    # step: scratch memory is uninitialized and the grid axis is "parallel"
    # (megacore), so a run-once flag cannot be trusted; the 8 thin strips are
    # cheap.
    zrow = jnp.zeros((NB, 1, Wp, Cp), jnp.float32)
    zcol = jnp.zeros((NB, H + 2, 1, Cp), jnp.float32)
    for pad_ref in (xpad_s, hpad_s):
        pad_ref[:, 0:1, :, :] = zrow
        pad_ref[:, H + 1:H + 2, :, :] = zrow
        pad_ref[:, :, 0:1, :] = zcol
        pad_ref[:, :, W + 1:W + 2, :] = zcol

    def conv3x3(pad_ref, w_ref):
        # Per-dy accumulation: three K = 3*Cp bf16 MXU matmuls into one f32
        # accumulator (replaces the old (M, 9*Cp) im2col slab).
        acc = jnp.zeros((M, Cp), jnp.float32)
        for dy in range(3):
            cols = [pad_ref[:, dy:dy + H, dx:dx + W, :].reshape(M, Cp)
                    for dx in range(3)]
            grp = jnp.concatenate(cols, axis=1).astype(jnp.bfloat16)  # (M, 3*Cp)
            w_dy = w_ref[dy * 3 * Cp:(dy + 1) * 3 * Cp, :]            # bf16, aligned
            acc = acc + jnp.dot(grp, w_dy,
                                preferred_element_type=jnp.float32)
        return acc
    # TODO(synk): the dx=1/2 tap slices above are sublane-misaligned; pltpu.roll
    # (XLU) based shifts would remove the per-tap relayout copies.

    # ---- conv1 + ReLU (bf16 matmul inputs, f32 accumulation / activation) ----
    xpad_s[:, 1:H + 1, 1:W + 1, :] = x_ref[...]
    h = jnp.maximum(conv3x3(xpad_s, w1_ref), 0.0)                     # (M, Cp) f32

    # ---- conv2 ----
    hpad_s[:, 1:H + 1, 1:W + 1, :] = h.reshape(NB, H, W, Cp)
    y = conv3x3(hpad_s, w2_ref)                                       # (M, Cp) f32

    # ---- residual add in f32 (re-read x_ref; the f32 input is not kept live
    # across the two convs) ----
    out_ref[...] = (x_ref[...] + y.reshape(NB, H, W, Cp)).astype(out_ref.dtype)

    # TODO(synk): F.dropout with dropRate=0.0 is a no-op; training-mode dropout
    # would use pltpu.prng_seed + pltpu.stateful_bernoulli here.


def _vmem_capacity_bytes():
    """Per-core VMEM capacity; conservative fallback if the query is unavailable."""
    try:
        return int(pltpu.get_tpu_info().vmem_capacity_bytes)
    except Exception:
        return 64 * 1024 * 1024          # v7x per-TensorCore VMEM (smallest gen)


def _pick_images_per_step(N, H, W, Cp, Wp, budget_bytes):
    """Largest divisor of N (capped at N//2 so >=2 grid steps exist for v7x's
    two TensorCores) whose per-step working set fits the VMEM budget."""
    def per_image_bytes():
        io = 2 * 2 * H * W * Cp * 4          # in + out blocks, double-buffered, f32
        scr = 2 * (H + 2) * Wp * Cp * 4      # two padded f32 scratches
        slab = 2 * H * W * 3 * Cp * 4        # per-dy group slab (f32 + bf16 copy, headroom)
        f32tmp = 2 * H * W * Cp * 4          # live f32 acc / h / y values
        return io + scr + slab + f32tmp

    fixed = 2 * 2 * 9 * Cp * Cp * 2          # two bf16 weight mats, double-buffered
    fixed += 2 * 1024 * 1024                 # compiler-internal scratch headroom
    avail = budget_bytes - fixed

    cap = max(1, N // 2)                     # leave >=2 grid steps when N >= 2
    nb = 1
    for d in range(1, cap + 1):
        if N % d == 0 and d * per_image_bytes() <= avail:
            nb = d
    return nb
    # TODO(synk): if even one image exceeds the budget, H-tiling (2-row halo)
    # is required; not needed for the shapes exercised here.


def residual_block_nchw(x_nchw, w1, w2):
    """Matches PyTorch ResidualBlock.forward (NCHW in / NCHW out), dropRate=0."""
    N, C, H, W = x_nchw.shape
    assert w1.shape == (C, C, 3, 3) and w2.shape == (C, C, 3, 3), \
        "ResidualBlock assumes Cin == Cout == in_planes"

    Cp = _round_up(C, 128)                   # lane-dense channel dim
    Wp = _round_up(W + 2, 8)                 # sublane-aligned padded width

    # NCHW -> NHWC; zero-pad channels.  Padded lanes stay exactly zero through
    # both convs and the residual, so slicing them off at the end is exact.
    x = jnp.transpose(x_nchw, (0, 2, 3, 1)).astype(jnp.float32)
    if Cp != C:
        x = jnp.pad(x, ((0, 0), (0, 0), (0, 0), (0, Cp - C)))

    def to_w2d(w):
        # (Cout, Cin, kh, kw) -> (kh, kw, Cin, Cout) -> pad channels -> (9*Cp, Cp) bf16
        wt = jnp.transpose(w, (2, 3, 1, 0)).astype(jnp.float32)
        wt = jnp.pad(wt, ((0, 0), (0, 0), (0, Cp - C), (0, Cp - C)))
        return wt.reshape(9 * Cp, Cp).astype(jnp.bfloat16)

    w1_2d, w2_2d = to_w2d(w1), to_w2d(w2)

    capacity = _vmem_capacity_bytes()
    vmem_limit = min(int(0.75 * capacity), 100 * 1024 * 1024)
    budget = int(0.9 * vmem_limit)

    NB = _pick_images_per_step(N, H, W, Cp, Wp, budget)
    grid = (N // NB,)

    kernel = functools.partial(_residual_block_kernel, H=H, W=W, Wp=Wp)

    def build(single_buffer_weights):
        if single_buffer_weights:
            # Grid-invariant weights: constant index_map already avoids re-fetch;
            # Buffered(1) also drops the second (wasted) VMEM buffer.
            w_spec = pl.BlockSpec((9 * Cp, Cp), lambda n: (0, 0),
                                  pipeline_mode=pl.Buffered(1))
        else:
            w_spec = pl.BlockSpec((9 * Cp, Cp), lambda n: (0, 0))
        return pl.pallas_call(
            kernel,
            out_shape=jax.ShapeDtypeStruct((N, H, W, Cp), jnp.float32),
            grid_spec=pltpu.PrefetchScalarGridSpec(
                num_scalar_prefetch=0,
                grid=grid,
                in_specs=[
                    pl.BlockSpec((NB, H, W, Cp), lambda n: (n, 0, 0, 0)),
                    w_spec,
                    w_spec,
                ],
                out_specs=pl.BlockSpec((NB, H, W, Cp), lambda n: (n, 0, 0, 0)),
                scratch_shapes=[
                    pltpu.VMEM((NB, H + 2, Wp, Cp), jnp.float32),
                    pltpu.VMEM((NB, H + 2, Wp, Cp), jnp.float32),
                ],
            ),
            compiler_params=pltpu.CompilerParams(
                dimension_semantics=("parallel",),
                vmem_limit_bytes=vmem_limit,
            ),
        )

    try:
        out = build(True)(x, w1_2d, w2_2d)
    except Exception:
        # Fallback if pipeline_mode=pl.Buffered(1) is not supported by this
        # JAX version: default double-buffered weights (still fetched once).
        out = build(False)(x, w1_2d, w2_2d)

    out = out[..., :C]                                   # drop channel padding
    return jnp.transpose(out, (0, 3, 1, 2)).astype(x_nchw.dtype)


def _reference_nchw(x_nchw, w1, w2):
    dn = jax.lax.conv_dimension_numbers(x_nchw.shape, w1.shape,
                                        ("NCHW", "OIHW", "NCHW"))
    c1 = jax.lax.conv_general_dilated(x_nchw, w1, (1, 1), ((1, 1), (1, 1)),
                                      dimension_numbers=dn)
    h = jnp.maximum(c1, 0.0)
    c2 = jax.lax.conv_general_dilated(h, w2, (1, 1), ((1, 1), (1, 1)),
                                      dimension_numbers=dn)
    return x_nchw + c2


if __name__ == "__main__":
    key = jax.random.PRNGKey(0)
    kx, k1, k2 = jax.random.split(key, 3)

    N, C, H, W = 2, 4, 16, 16
    x = jax.random.normal(kx, (N, C, H, W), dtype=jnp.float32)
    # deterministic conv weights, PyTorch-style (Cout, Cin, kh, kw), bias=False
    w1 = jax.random.normal(k1, (C, C, 3, 3), dtype=jnp.float32) * 0.1
    w2 = jax.random.normal(k2, (C, C, 3, 3), dtype=jnp.float32) * 0.1

    out = residual_block_nchw(x, w1, w2)
    out = jax.block_until_ready(out)

    ref = _reference_nchw(x, w1, w2)
    assert out.shape == (N, C, H, W)
    # bf16 matmul inputs with f32 accumulation -> slightly looser tolerance
    # than the pure-f32 reference.
    assert jnp.allclose(out, ref, atol=3e-2, rtol=3e-2), "mismatch vs reference"

    print("KERNEL_OK")
</pallas_src>

<mosaic_0001>
module attributes {stable_mosaic.version = 11 : i64} {
  func.func @_residual_block_kernel(%arg0: i32, %arg1: memref<1x16x16x128xf32, #tpu.memory_space<vmem>>, %arg2: memref<1152x128xbf16, #tpu.memory_space<vmem>>, %arg3: memref<1152x128xbf16, #tpu.memory_space<vmem>>, %arg4: memref<1x16x16x128xf32, #tpu.memory_space<vmem>>, %arg5: memref<1x18x24x128xf32, #tpu.memory_space<vmem>>, %arg6: memref<1x18x24x128xf32, #tpu.memory_space<vmem>>) attributes {dimension_semantics = [#tpu.dimension_semantics<parallel>], iteration_bounds = array<i64: 2>, scalar_prefetch = 0 : i64, scratch_operands = 2 : i64, tpu.core_type = #tpu.core_type<tc>, window_params = [{transform_indices = @transform_0, window_bounds = array<i64: 1, 16, 16, 128>}, {pipeline_mode = #tpu.pipeline_mode<synchronous>, transform_indices = @transform_1, window_bounds = array<i64: 1152, 128>}, {pipeline_mode = #tpu.pipeline_mode<synchronous>, transform_indices = @transform_2, window_bounds = array<i64: 1152, 128>}, {transform_indices = @transform_3, window_bounds = array<i64: 1, 16, 16, 128>}]} {
    %cst = arith.constant 0.000000e+00 : f32
    %0 = vector.broadcast %cst : f32 to vector<1x1x24x128xf32>
    %cst_0 = arith.constant 0.000000e+00 : f32
    %1 = vector.broadcast %cst_0 : f32 to vector<1x18x1x128xf32>
    %c0 = arith.constant 0 : index
    %c0_1 = arith.constant 0 : index
    %c0_2 = arith.constant 0 : index
    %c0_3 = arith.constant 0 : index
    %2 = vector.load %arg5[%c0, %c0_1, %c0_2, %c0_3] : memref<1x18x24x128xf32, #tpu.memory_space<vmem>>, vector<1x1x24x128xf32>
    tpu.vector_store %arg5[%c0, %c0_1, %c0_2, %c0_3], %0 {strides = array<i32>} : memref<1x18x24x128xf32, #tpu.memory_space<vmem>>, vector<1x1x24x128xf32>,
    %c0_4 = arith.constant 0 : index
    %c17 = arith.constant 17 : index
    %c0_5 = arith.constant 0 : index
    %c0_6 = arith.constant 0 : index
    %3 = vector.load %arg5[%c0_4, %c17, %c0_5, %c0_6] : memref<1x18x24x128xf32, #tpu.memory_space<vmem>>, vector<1x1x24x128xf32>
    tpu.vector_store %arg5[%c0_4, %c17, %c0_5, %c0_6], %0 {strides = array<i32>} : memref<1x18x24x128xf32, #tpu.memory_space<vmem>>, vector<1x1x24x128xf32>,
    %c0_7 = arith.constant 0 : index
    %c0_8 = arith.constant 0 : index
    %c0_9 = arith.constant 0 : index
    %c0_10 = arith.constant 0 : index
    %4 = vector.load %arg5[%c0_7, %c0_8, %c0_9, %c0_10] : memref<1x18x24x128xf32, #tpu.memory_space<vmem>>, vector<1x18x1x128xf32>
    tpu.vector_store %arg5[%c0_7, %c0_8, %c0_9, %c0_10], %1 {strides = array<i32>} : memref<1x18x24x128xf32, #tpu.memory_space<vmem>>, vector<1x18x1x128xf32>,
    %c0_11 = arith.constant 0 : index
    %c0_12 = arith.constant 0 : index
    %c17_13 = arith.constant 17 : index
    %c0_14 = arith.constant 0 : index
    %5 = vector.load %arg5[%c0_11, %c0_12, %c17_13, %c0_14] : memref<1x18x24x128xf32, #tpu.memory_space<vmem>>, vector<1x18x1x128xf32>
    tpu.vector_store %arg5[%c0_11, %c0_12, %c17_13, %c0_14], %1 {strides = array<i32>} : memref<1x18x24x128xf32, #tpu.memory_space<vmem>>, vector<1x18x1x128xf32>,
    %c0_15 = arith.constant 0 : index
    %c0_16 = arith.constant 0 : index
    %c0_17 = arith.constant 0 : index
    %c0_18 = arith.constant 0 : index
    %6 = vector.load %arg6[%c0_15, %c0_16, %c0_17, %c0_18] : memref<1x18x24x128xf32, #tpu.memory_space<vmem>>, vector<1x1x24x128xf32>
    tpu.vector_store %arg6[%c0_15, %c0_16, %c0_17, %c0_18], %0 {strides = array<i32>} : memref<1x18x24x128xf32, #tpu.memory_space<vmem>>, vector<1x1x24x128xf32>,
    %c0_19 = arith.constant 0 : index
    %c17_20 = arith.constant 17 : index
    %c0_21 = arith.constant 0 : index
    %c0_22 = arith.constant 0 : index
    %7 = vector.load %arg6[%c0_19, %c17_20, %c0_21, %c0_22] : memref<1x18x24x128xf32, #tpu.memory_space<vmem>>, vector<1x1x24x128xf32>
    tpu.vector_store %arg6[%c0_19, %c17_20, %c0_21, %c0_22], %0 {strides = array<i32>} : memref<1x18x24x128xf32, #tpu.memory_space<vmem>>, vector<1x1x24x128xf32>,
    %c0_23 = arith.constant 0 : index
    %c0_24 = arith.constant 0 : index
    %c0_25 = arith.constant 0 : index
    %c0_26 = arith.constant 0 : index
    %8 = vector.load %arg6[%c0_23, %c0_24, %c0_25, %c0_26] : memref<1x18x24x128xf32, #tpu.memory_space<vmem>>, vector<1x18x1x128xf32>
    tpu.vector_store %arg6[%c0_23, %c0_24, %c0_25, %c0_26], %1 {strides = array<i32>} : memref<1x18x24x128xf32, #tpu.memory_space<vmem>>, vector<1x18x1x128xf32>,
    %c0_27 = arith.constant 0 : index
    %c0_28 = arith.constant 0 : index
    %c17_29 = arith.constant 17 : index
    %c0_30 = arith.constant 0 : index
    %9 = vector.load %arg6[%c0_27, %c0_28, %c17_29, %c0_30] : memref<1x18x24x128xf32, #tpu.memory_space<vmem>>, vector<1x18x1x128xf32>
    tpu.vector_store %arg6[%c0_27, %c0_28, %c17_29, %c0_30], %1 {strides = array<i32>} : memref<1x18x24x128xf32, #tpu.memory_space<vmem>>, vector<1x18x1x128xf32>,
    %c0_31 = arith.constant 0 : index
    %c0_32 = arith.constant 0 : index
    %c0_33 = arith.constant 0 : index
    %c0_34 = arith.constant 0 : index
    %10 = vector.load %arg1[%c0_31, %c0_32, %c0_33, %c0_34] : memref<1x16x16x128xf32, #tpu.memory_space<vmem>>, vector<1x16x16x128xf32>
    %c0_35 = arith.constant 0 : index
    %c1 = arith.constant 1 : index
    %c1_36 = arith.constant 1 : index
    %c0_37 = arith.constant 0 : index
    %11 = vector.load %arg5[%c0_35, %c1, %c1_36, %c0_37] : memref<1x18x24x128xf32, #tpu.memory_space<vmem>>, vector<1x16x16x128xf32>
    tpu.vector_store %arg5[%c0_35, %c1, %c1_36, %c0_37], %10 {strides = array<i32>} : memref<1x18x24x128xf32, #tpu.memory_space<vmem>>, vector<1x16x16x128xf32>,
    %cst_38 = arith.constant 0.000000e+00 : f32
    %12 = vector.broadcast %cst_38 : f32 to vector<256x128xf32>
    %c0_39 = arith.constant 0 : index
    %c0_40 = arith.constant 0 : index
    %c0_41 = arith.constant 0 : index
    %c0_42 = arith.constant 0 : index
    %13 = vector.load %arg5[%c0_39, %c0_40, %c0_41, %c0_42] : memref<1x18x24x128xf32, #tpu.memory_space<vmem>>, vector<1x16x16x128xf32>
    %14 = vector.shape_cast %13 : vector<1x16x16x128xf32> to vector<256x128xf32>
    %c0_43 = arith.constant 0 : index
    %c0_44 = arith.constant 0 : index
    %c1_45 = arith.constant 1 : index
    %c0_46 = arith.constant 0 : index
    %15 = vector.load %arg5[%c0_43, %c0_44, %c1_45, %c0_46] : memref<1x18x24x128xf32, #tpu.memory_space<vmem>>, vector<1x16x16x128xf32>
    %16 = vector.shape_cast %15 : vector<1x16x16x128xf32> to vector<256x128xf32>
    %c0_47 = arith.constant 0 : index
    %c0_48 = arith.constant 0 : index
    %c2 = arith.constant 2 : index
    %c0_49 = arith.constant 0 : index
    %17 = vector.load %arg5[%c0_47, %c0_48, %c2, %c0_49] : memref<1x18x24x128xf32, #tpu.memory_space<vmem>>, vector<1x16x16x128xf32>
    %18 = vector.shape_cast %17 : vector<1x16x16x128xf32> to vector<256x128xf32>
    %19 = tpu.concatenate %14, %16, %18 in 1 : vector<256x128xf32>, vector<256x128xf32>, vector<256x128xf32> -> vector<256x384xf32>
    %20 = arith.truncf %19 : vector<256x384xf32> to vector<256x384xbf16>
    %c0_50 = arith.constant 0 : index
    %c0_51 = arith.constant 0 : index
    %21 = vector.load %arg2[%c0_50, %c0_51] : memref<1152x128xbf16, #tpu.memory_space<vmem>>, vector<384x128xbf16>
    %cst_52 = arith.constant dense<0.000000e+00> : vector<256x128xf32>
    %22 = tpu.matmul %20, %21, %cst_52 {dimension_numbers = #tpu.dot_dimension_numbers<[1], [0], [0], [1], [0, 0, 1, 1], [], []>} : vector<256x384xbf16>, vector<384x128xbf16>, vector<256x128xf32> -> vector<256x128xf32>
    %23 = arith.addf %12, %22 : vector<256x128xf32>
    %c0_53 = arith.constant 0 : index
    %c1_54 = arith.constant 1 : index
    %c0_55 = arith.constant 0 : index
    %c0_56 = arith.constant 0 : index
    %24 = vector.load %arg5[%c0_53, %c1_54, %c0_55, %c0_56] : memref<1x18x24x128xf32, #tpu.memory_space<vmem>>, vector<1x16x16x128xf32>
    %25 = vector.shape_cast %24 : vector<1x16x16x128xf32> to vector<256x128xf32>
    %c0_57 = arith.constant 0 : index
    %c1_58 = arith.constant 1 : index
    %c1_59 = arith.constant 1 : index
    %c0_60 = arith.constant 0 : index
    %26 = vector.load %arg5[%c0_57, %c1_58, %c1_59, %c0_60] : memref<1x18x24x128xf32, #tpu.memory_space<vmem>>, vector<1x16x16x128xf32>
    %27 = vector.shape_cast %26 : vector<1x16x16x128xf32> to vector<256x128xf32>
    %c0_61 = arith.constant 0 : index
    %c1_62 = arith.constant 1 : index
    %c2_63 = arith.constant 2 : index
    %c0_64 = arith.constant 0 : index
    %28 = vector.load %arg5[%c0_61, %c1_62, %c2_63, %c0_64] : memref<1x18x24x128xf32, #tpu.memory_space<vmem>>, vector<1x16x16x128xf32>
    %29 = vector.shape_cast %28 : vector<1x16x16x128xf32> to vector<256x128xf32>
    %30 = tpu.concatenate %25, %27, %29 in 1 : vector<256x128xf32>, vector<256x128xf32>, vector<256x128xf32> -> vector<256x384xf32>
    %31 = arith.truncf %30 : vector<256x384xf32> to vector<256x384xbf16>
    %c384 = arith.constant 384 : index
    %c0_65 = arith.constant 0 : index
    %32 = vector.load %arg2[%c384, %c0_65] : memref<1152x128xbf16, #tpu.memory_space<vmem>>, vector<384x128xbf16>
    %cst_66 = arith.constant dense<0.000000e+00> : vector<256x128xf32>
    %33 = tpu.matmul %31, %32, %cst_66 {dimension_numbers = #tpu.dot_dimension_numbers<[1], [0], [0], [1], [0, 0, 1, 1], [], []>} : vector<256x384xbf16>, vector<384x128xbf16>, vector<256x128xf32> -> vector<256x128xf32>
    %34 = arith.addf %23, %33 : vector<256x128xf32>
    %c0_67 = arith.constant 0 : index
    %c2_68 = arith.constant 2 : index
    %c0_69 = arith.constant 0 : index
    %c0_70 = arith.constant 0 : index
    %35 = vector.load %arg5[%c0_67, %c2_68, %c0_69, %c0_70] : memref<1x18x24x128xf32, #tpu.memory_space<vmem>>, vector<1x16x16x128xf32>
    %36 = vector.shape_cast %35 : vector<1x16x16x128xf32> to vector<256x128xf32>
    %c0_71 = arith.constant 0 : index
    %c2_72 = arith.constant 2 : index
    %c1_73 = arith.constant 1 : index
    %c0_74 = arith.constant 0 : index
    %37 = vector.load %arg5[%c0_71, %c2_72, %c1_73, %c0_74] : memref<1x18x24x128xf32, #tpu.memory_space<vmem>>, vector<1x16x16x128xf32>
    %38 = vector.shape_cast %37 : vector<1x16x16x128xf32> to vector<256x128xf32>
    %c0_75 = arith.constant 0 : index
    %c2_76 = arith.constant 2 : index
    %c2_77 = arith.constant 2 : index
    %c0_78 = arith.constant 0 : index
    %39 = vector.load %arg5[%c0_75, %c2_76, %c2_77, %c0_78] : memref<1x18x24x128xf32, #tpu.memory_space<vmem>>, vector<1x16x16x128xf32>
    %40 = vector.shape_cast %39 : vector<1x16x16x128xf32> to vector<256x128xf32>
    %41 = tpu.concatenate %36, %38, %40 in 1 : vector<256x128xf32>, vector<256x128xf32>, vector<256x128xf32> -> vector<256x384xf32>
    %42 = arith.truncf %41 : vector<256x384xf32> to vector<256x384xbf16>
    %c768 = arith.constant 768 : index
    %c0_79 = arith.constant 0 : index
    %43 = vector.load %arg2[%c768, %c0_79] : memref<1152x128xbf16, #tpu.memory_space<vmem>>, vector<384x128xbf16>
    %cst_80 = arith.constant dense<0.000000e+00> : vector<256x128xf32>
    %44 = tpu.matmul %42, %43, %cst_80 {dimension_numbers = #tpu.dot_dimension_numbers<[1], [0], [0], [1], [0, 0, 1, 1], [], []>} : vector<256x384xbf16>, vector<384x128xbf16>, vector<256x128xf32> -> vector<256x128xf32>
    %45 = arith.addf %34, %44 : vector<256x128xf32>
    %cst_81 = arith.constant 0.000000e+00 : f32
    %46 = vector.broadcast %cst_81 : f32 to vector<256x128xf32>
    %47 = arith.maximumf %45, %46 : vector<256x128xf32>
    %48 = vector.shape_cast %47 : vector<256x128xf32> to vector<1x16x16x128xf32>
    %c0_82 = arith.constant 0 : index
    %c1_83 = arith.constant 1 : index
    %c1_84 = arith.constant 1 : index
    %c0_85 = arith.constant 0 : index
    %49 = vector.load %arg6[%c0_82, %c1_83, %c1_84, %c0_85] : memref<1x18x24x128xf32, #tpu.memory_space<vmem>>, vector<1x16x16x128xf32>
    tpu.vector_store %arg6[%c0_82, %c1_83, %c1_84, %c0_85], %48 {strides = array<i32>} : memref<1x18x24x128xf32, #tpu.memory_space<vmem>>, vector<1x16x16x128xf32>,
    %cst_86 = arith.constant 0.000000e+00 : f32
    %50 = vector.broadcast %cst_86 : f32 to vector<256x128xf32>
    %c0_87 = arith.constant 0 : index
    %c0_88 = arith.constant 0 : index
    %c0_89 = arith.constant 0 : index
    %c0_90 = arith.constant 0 : index
    %51 = vector.load %arg6[%c0_87, %c0_88, %c0_89, %c0_90] : memref<1x18x24x128xf32, #tpu.memory_space<vmem>>, vector<1x16x16x128xf32>
    %52 = vector.shape_cast %51 : vector<1x16x16x128xf32> to vector<256x128xf32>
    %c0_91 = arith.constant 0 : index
    %c0_92 = arith.constant 0 : index
    %c1_93 = arith.constant 1 : index
    %c0_94 = arith.constant 0 : index
    %53 = vector.load %arg6[%c0_91, %c0_92, %c1_93, %c0_94] : memref<1x18x24x128xf32, #tpu.memory_space<vmem>>, vector<1x16x16x128xf32>
    %54 = vector.shape_cast %53 : vector<1x16x16x128xf32> to vector<256x128xf32>
    %c0_95 = arith.constant 0 : index
    %c0_96 = arith.constant 0 : index
    %c2_97 = arith.constant 2 : index
    %c0_98 = arith.constant 0 : index
    %55 = vector.load %arg6[%c0_95, %c0_96, %c2_97, %c0_98] : memref<1x18x24x128xf32, #tpu.memory_space<vmem>>, vector<1x16x16x128xf32>
    %56 = vector.shape_cast %55 : vector<1x16x16x128xf32> to vector<256x128xf32>
    %57 = tpu.concatenate %52, %54, %56 in 1 : vector<256x128xf32>, vector<256x128xf32>, vector<256x128xf32> -> vector<256x384xf32>
    %58 = arith.truncf %57 : vector<256x384xf32> to vector<256x384xbf16>
    %c0_99 = arith.constant 0 : index
    %c0_100 = arith.constant 0 : index
    %59 = vector.load %arg3[%c0_99, %c0_100] : memref<1152x128xbf16, #tpu.memory_space<vmem>>, vector<384x128xbf16>
    %cst_101 = arith.constant dense<0.000000e+00> : vector<256x128xf32>
    %60 = tpu.matmul %58, %59, %cst_101 {dimension_numbers = #tpu.dot_dimension_numbers<[1], [0], [0], [1], [0, 0, 1, 1], [], []>} : vector<256x384xbf16>, vector<384x128xbf16>, vector<256x128xf32> -> vector<256x128xf32>
    %61 = arith.addf %50, %60 : vector<256x128xf32>
    %c0_102 = arith.constant 0 : index
    %c1_103 = arith.constant 1 : index
    %c0_104 = arith.constant 0 : index
    %c0_105 = arith.constant 0 : index
    %62 = vector.load %arg6[%c0_102, %c1_103, %c0_104, %c0_105] : memref<1x18x24x128xf32, #tpu.memory_space<vmem>>, vector<1x16x16x128xf32>
    %63 = vector.shape_cast %62 : vector<1x16x16x128xf32> to vector<256x128xf32>
    %c0_106 = arith.constant 0 : index
    %c1_107 = arith.constant 1 : index
    %c1_108 = arith.constant 1 : index
    %c0_109 = arith.constant 0 : index
    %64 = vector.load %arg6[%c0_106, %c1_107, %c1_108, %c0_109] : memref<1x18x24x128xf32, #tpu.memory_space<vmem>>, vector<1x16x16x128xf32>
    %65 = vector.shape_cast %64 : vector<1x16x16x128xf32> to vector<256x128xf32>
    %c0_110 = arith.constant 0 : index
    %c1_111 = arith.constant 1 : index
    %c2_112 = arith.constant 2 : index
    %c0_113 = arith.constant 0 : index
    %66 = vector.load %arg6[%c0_110, %c1_111, %c2_112, %c0_113] : memref<1x18x24x128xf32, #tpu.memory_space<vmem>>, vector<1x16x16x128xf32>
    %67 = vector.shape_cast %66 : vector<1x16x16x128xf32> to vector<256x128xf32>
    %68 = tpu.concatenate %63, %65, %67 in 1 : vector<256x128xf32>, vector<256x128xf32>, vector<256x128xf32> -> vector<256x384xf32>
    %69 = arith.truncf %68 : vector<256x384xf32> to vector<256x384xbf16>
    %c384_114 = arith.constant 384 : index
    %c0_115 = arith.constant 0 : index
    %70 = vector.load %arg3[%c384_114, %c0_115] : memref<1152x128xbf16, #tpu.memory_space<vmem>>, vector<384x128xbf16>
    %cst_116 = arith.constant dense<0.000000e+00> : vector<256x128xf32>
    %71 = tpu.matmul %69, %70, %cst_116 {dimension_numbers = #tpu.dot_dimension_numbers<[1], [0], [0], [1], [0, 0, 1, 1], [], []>} : vector<256x384xbf16>, vector<384x128xbf16>, vector<256x128xf32> -> vector<256x128xf32>
    %72 = arith.addf %61, %71 : vector<256x128xf32>
    %c0_117 = arith.constant 0 : index
    %c2_118 = arith.constant 2 : index
    %c0_119 = arith.constant 0 : index
    %c0_120 = arith.constant 0 : index
    %73 = vector.load %arg6[%c0_117, %c2_118, %c0_119, %c0_120] : memref<1x18x24x128xf32, #tpu.memory_space<vmem>>, vector<1x16x16x128xf32>
    %74 = vector.shape_cast %73 : vector<1x16x16x128xf32> to vector<256x128xf32>
    %c0_121 = arith.constant 0 : index
    %c2_122 = arith.constant 2 : index
    %c1_123 = arith.constant 1 : index
    %c0_124 = arith.constant 0 : index
    %75 = vector.load %arg6[%c0_121, %c2_122, %c1_123, %c0_124] : memref<1x18x24x128xf32, #tpu.memory_space<vmem>>, vector<1x16x16x128xf32>
    %76 = vector.shape_cast %75 : vector<1x16x16x128xf32> to vector<256x128xf32>
    %c0_125 = arith.constant 0 : index
    %c2_126 = arith.constant 2 : index
    %c2_127 = arith.constant 2 : index
    %c0_128 = arith.constant 0 : index
    %77 = vector.load %arg6[%c0_125, %c2_126, %c2_127, %c0_128] : memref<1x18x24x128xf32, #tpu.memory_space<vmem>>, vector<1x16x16x128xf32>
    %78 = vector.shape_cast %77 : vector<1x16x16x128xf32> to vector<256x128xf32>
    %79 = tpu.concatenate %74, %76, %78 in 1 : vector<256x128xf32>, vector<256x128xf32>, vector<256x128xf32> -> vector<256x384xf32>
    %80 = arith.truncf %79 : vector<256x384xf32> to vector<256x384xbf16>
    %c768_129 = arith.constant 768 : index
    %c0_130 = arith.constant 0 : index
    %81 = vector.load %arg3[%c768_129, %c0_130] : memref<1152x128xbf16, #tpu.memory_space<vmem>>, vector<384x128xbf16>
    %cst_131 = arith.constant dense<0.000000e+00> : vector<256x128xf32>
    %82 = tpu.matmul %80, %81, %cst_131 {dimension_numbers = #tpu.dot_dimension_numbers<[1], [0], [0], [1], [0, 0, 1, 1], [], []>} : vector<256x384xbf16>, vector<384x128xbf16>, vector<256x128xf32> -> vector<256x128xf32>
    %83 = arith.addf %72, %82 : vector<256x128xf32>
    %c0_132 = arith.constant 0 : index
    %c0_133 = arith.constant 0 : index
    %c0_134 = arith.constant 0 : index
    %c0_135 = arith.constant 0 : index
    %84 = vector.load %arg1[%c0_132, %c0_133, %c0_134, %c0_135] : memref<1x16x16x128xf32, #tpu.memory_space<vmem>>, vector<1x16x16x128xf32>
    %85 = vector.shape_cast %83 : vector<256x128xf32> to vector<1x16x16x128xf32>
    %86 = arith.addf %84, %85 : vector<1x16x16x128xf32>
    %c0_136 = arith.constant 0 : index
    %c0_137 = arith.constant 0 : index
    %c0_138 = arith.constant 0 : index
    %c0_139 = arith.constant 0 : index
    %87 = vector.load %arg4[%c0_136, %c0_137, %c0_138, %c0_139] : memref<1x16x16x128xf32, #tpu.memory_space<vmem>>, vector<1x16x16x128xf32>
    tpu.vector_store %arg4[%c0_136, %c0_137, %c0_138, %c0_139], %86 {strides = array<i32>} : memref<1x16x16x128xf32, #tpu.memory_space<vmem>>, vector<1x16x16x128xf32>,
    return
  }
  func.func @transform_0(%arg0: i32) -> (i32, i32, i32, i32) {
    %c0_i32 = arith.constant 0 : i32
    %c0_i32_0 = arith.constant 0 : i32
    %c0_i32_1 = arith.constant 0 : i32
    %c0_i32_2 = arith.constant 0 : i32
    return %arg0, %c0_i32, %c0_i32_0, %c0_i32_1 : i32, i32, i32, i32
  }
  func.func @transform_1(%arg0: i32) -> (i32, i32) {
    %c0_i32 = arith.constant 0 : i32
    %c0_i32_0 = arith.constant 0 : i32
    %c0_i32_1 = arith.constant 0 : i32
    return %c0_i32, %c0_i32_0 : i32, i32
  }
  func.func @transform_2(%arg0: i32) -> (i32, i32) {
    %c0_i32 = arith.constant 0 : i32
    %c0_i32_0 = arith.constant 0 : i32
    %c0_i32_1 = arith.constant 0 : i32
    return %c0_i32, %c0_i32_0 : i32, i32
  }
  func.func @transform_3(%arg0: i32) -> (i32, i32, i32, i32) {
    %c0_i32 = arith.constant 0 : i32
    %c0_i32_0 = arith.constant 0 : i32
    %c0_i32_1 = arith.constant 0 : i32
    %c0_i32_2 = arith.constant 0 : i32
    return %arg0, %c0_i32, %c0_i32_0, %c0_i32_1 : i32, i32, i32, i32
  }
}

module attributes {stable_mosaic.version = 11 : i64} {
  func.func @_residual_block_kernel(%arg0: i32, %arg1: memref<1x16x16x128xf32, #tpu.memory_space<vmem>>, %arg2: memref<1152x128xbf16, #tpu.memory_space<vmem>>, %arg3: memref<1152x128xbf16, #tpu.memory_space<vmem>>, %arg4: memref<1x16x16x128xf32, #tpu.memory_space<vmem>>, %arg5: memref<1x18x24x128xf32, #tpu.memory_space<vmem>>, %arg6: memref<1x18x24x128xf32, #tpu.memory_space<vmem>>) attributes {dimension_semantics = [#tpu.dimension_semantics<parallel>], iteration_bounds = array<i64: 2>, scalar_prefetch = 0 : i64, scratch_operands = 2 : i64, tpu.core_type = #tpu.core_type<tc>, window_params = [{transform_indices = @transform_0, window_bounds = array<i64: 1, 16, 16, 128>}, {pipeline_mode = #tpu.pipeline_mode<synchronous>, transform_indices = @transform_1, window_bounds = array<i64: 1152, 128>}, {pipeline_mode = #tpu.pipeline_mode<synchronous>, transform_indices = @transform_2, window_bounds = array<i64: 1152, 128>}, {transform_indices = @transform_3, window_bounds = array<i64: 1, 16, 16, 128>}]} {
    %cst = arith.constant 0.000000e+00 : f32
    %0 = vector.broadcast %cst : f32 to vector<1x1x24x128xf32>
    %cst_0 = arith.constant 0.000000e+00 : f32
    %1 = vector.broadcast %cst_0 : f32 to vector<1x18x1x128xf32>
    %c0 = arith.constant 0 : index
    %c0_1 = arith.constant 0 : index
    %c0_2 = arith.constant 0 : index
    %c0_3 = arith.constant 0 : index
    %2 = vector.load %arg5[%c0, %c0_1, %c0_2, %c0_3] : memref<1x18x24x128xf32, #tpu.memory_space<vmem>>, vector<1x1x24x128xf32>
    tpu.vector_store %arg5[%c0, %c0_1, %c0_2, %c0_3], %0 {strides = array<i32>} : memref<1x18x24x128xf32, #tpu.memory_space<vmem>>, vector<1x1x24x128xf32>,
    %c0_4 = arith.constant 0 : index
    %c17 = arith.constant 17 : index
    %c0_5 = arith.constant 0 : index
    %c0_6 = arith.constant 0 : index
    %3 = vector.load %arg5[%c0_4, %c17, %c0_5, %c0_6] : memref<1x18x24x128xf32, #tpu.memory_space<vmem>>, vector<1x1x24x128xf32>
    tpu.vector_store %arg5[%c0_4, %c17, %c0_5, %c0_6], %0 {strides = array<i32>} : memref<1x18x24x128xf32, #tpu.memory_space<vmem>>, vector<1x1x24x128xf32>,
    %c0_7 = arith.constant 0 : index
    %c0_8 = arith.constant 0 : index
    %c0_9 = arith.constant 0 : index
    %c0_10 = arith.constant 0 : index
    %4 = vector.load %arg5[%c0_7, %c0_8, %c0_9, %c0_10] : memref<1x18x24x128xf32, #tpu.memory_space<vmem>>, vector<1x18x1x128xf32>
    tpu.vector_store %arg5[%c0_7, %c0_8, %c0_9, %c0_10], %1 {strides = array<i32>} : memref<1x18x24x128xf32, #tpu.memory_space<vmem>>, vector<1x18x1x128xf32>,
    %c0_11 = arith.constant 0 : index
    %c0_12 = arith.constant 0 : index
    %c17_13 = arith.constant 17 : index
    %c0_14 = arith.constant 0 : index
    %5 = vector.load %arg5[%c0_11, %c0_12, %c17_13, %c0_14] : memref<1x18x24x128xf32, #tpu.memory_space<vmem>>, vector<1x18x1x128xf32>
    tpu.vector_store %arg5[%c0_11, %c0_12, %c17_13, %c0_14], %1 {strides = array<i32>} : memref<1x18x24x128xf32, #tpu.memory_space<vmem>>, vector<1x18x1x128xf32>,
    %c0_15 = arith.constant 0 : index
    %c0_16 = arith.constant 0 : index
    %c0_17 = arith.constant 0 : index
    %c0_18 = arith.constant 0 : index
    %6 = vector.load %arg6[%c0_15, %c0_16, %c0_17, %c0_18] : memref<1x18x24x128xf32, #tpu.memory_space<vmem>>, vector<1x1x24x128xf32>
    tpu.vector_store %arg6[%c0_15, %c0_16, %c0_17, %c0_18], %0 {strides = array<i32>} : memref<1x18x24x128xf32, #tpu.memory_space<vmem>>, vector<1x1x24x128xf32>,
    %c0_19 = arith.constant 0 : index
    %c17_20 = arith.constant 17 : index
    %c0_21 = arith.constant 0 : index
    %c0_22 = arith.constant 0 : index
    %7 = vector.load %arg6[%c0_19, %c17_20, %c0_21, %c0_22] : memref<1x18x24x128xf32, #tpu.memory_space<vmem>>, vector<1x1x24x128xf32>
    tpu.vector_store %arg6[%c0_19, %c17_20, %c0_21, %c0_22], %0 {strides = array<i32>} : memref<1x18x24x128xf32, #tpu.memory_space<vmem>>, vector<1x1x24x128xf32>,
    %c0_23 = arith.constant 0 : index
    %c0_24 = arith.constant 0 : index
    %c0_25 = arith.constant 0 : index
    %c0_26 = arith.constant 0 : index
    %8 = vector.load %arg6[%c0_23, %c0_24, %c0_25, %c0_26] : memref<1x18x24x128xf32, #tpu.memory_space<vmem>>, vector<1x18x1x128xf32>
    tpu.vector_store %arg6[%c0_23, %c0_24, %c0_25, %c0_26], %1 {strides = array<i32>} : memref<1x18x24x128xf32, #tpu.memory_space<vmem>>, vector<1x18x1x128xf32>,
    %c0_27 = arith.constant 0 : index
    %c0_28 = arith.constant 0 : index
    %c17_29 = arith.constant 17 : index
    %c0_30 = arith.constant 0 : index
    %9 = vector.load %arg6[%c0_27, %c0_28, %c17_29, %c0_30] : memref<1x18x24x128xf32, #tpu.memory_space<vmem>>, vector<1x18x1x128xf32>
    tpu.vector_store %arg6[%c0_27, %c0_28, %c17_29, %c0_30], %1 {strides = array<i32>} : memref<1x18x24x128xf32, #tpu.memory_space<vmem>>, vector<1x18x1x128xf32>,
    %c0_31 = arith.constant 0 : index
    %c0_32 = arith.constant 0 : index
    %c0_33 = arith.constant 0 : index
    %c0_34 = arith.constant 0 : index
    %10 = vector.load %arg1[%c0_31, %c0_32, %c0_33, %c0_34] : memref<1x16x16x128xf32, #tpu.memory_space<vmem>>, vector<1x16x16x128xf32>
    %c0_35 = arith.constant 0 : index
    %c1 = arith.constant 1 : index
    %c1_36 = arith.constant 1 : index
    %c0_37 = arith.constant 0 : index
    %11 = vector.load %arg5[%c0_35, %c1, %c1_36, %c0_37] : memref<1x18x24x128xf32, #tpu.memory_space<vmem>>, vector<1x16x16x128xf32>
    tpu.vector_store %arg5[%c0_35, %c1, %c1_36, %c0_37], %10 {strides = array<i32>} : memref<1x18x24x128xf32, #tpu.memory_space<vmem>>, vector<1x16x16x128xf32>,
    %cst_38 = arith.constant 0.000000e+00 : f32
    %12 = vector.broadcast %cst_38 : f32 to vector<256x128xf32>
    %c0_39 = arith.constant 0 : index
    %c0_40 = arith.constant 0 : index
    %c0_41 = arith.constant 0 : index
    %c0_42 = arith.constant 0 : index
    %13 = vector.load %arg5[%c0_39, %c0_40, %c0_41, %c0_42] : memref<1x18x24x128xf32, #tpu.memory_space<vmem>>, vector<1x16x16x128xf32>
    %14 = vector.shape_cast %13 : vector<1x16x16x128xf32> to vector<256x128xf32>
    %c0_43 = arith.constant 0 : index
    %c0_44 = arith.constant 0 : index
    %c1_45 = arith.constant 1 : index
    %c0_46 = arith.constant 0 : index
    %15 = vector.load %arg5[%c0_43, %c0_44, %c1_45, %c0_46] : memref<1x18x24x128xf32, #tpu.memory_space<vmem>>, vector<1x16x16x128xf32>
    %16 = vector.shape_cast %15 : vector<1x16x16x128xf32> to vector<256x128xf32>
    %c0_47 = arith.constant 0 : index
    %c0_48 = arith.constant 0 : index
    %c2 = arith.constant 2 : index
    %c0_49 = arith.constant 0 : index
    %17 = vector.load %arg5[%c0_47, %c0_48, %c2, %c0_49] : memref<1x18x24x128xf32, #tpu.memory_space<vmem>>, vector<1x16x16x128xf32>
    %18 = vector.shape_cast %17 : vector<1x16x16x128xf32> to vector<256x128xf32>
    %19 = tpu.concatenate %14, %16, %18 in 1 : vector<256x128xf32>, vector<256x128xf32>, vector<256x128xf32> -> vector<256x384xf32>
    %20 = arith.truncf %19 : vector<256x384xf32> to vector<256x384xbf16>
    %c0_50 = arith.constant 0 : index
    %c0_51 = arith.constant 0 : index
    %21 = vector.load %arg2[%c0_50, %c0_51] : memref<1152x128xbf16, #tpu.memory_space<vmem>>, vector<384x128xbf16>
    %cst_52 = arith.constant dense<0.000000e+00> : vector<256x128xf32>
    %22 = tpu.matmul %20, %21, %cst_52 {dimension_numbers = #tpu.dot_dimension_numbers<[1], [0], [0], [1], [0, 0, 1, 1], [], []>} : vector<256x384xbf16>, vector<384x128xbf16>, vector<256x128xf32> -> vector<256x128xf32>
    %23 = arith.addf %12, %22 : vector<256x128xf32>
    %c0_53 = arith.constant 0 : index
    %c1_54 = arith.constant 1 : index
    %c0_55 = arith.constant 0 : index
    %c0_56 = arith.constant 0 : index
    %24 = vector.load %arg5[%c0_53, %c1_54, %c0_55, %c0_56] : memref<1x18x24x128xf32, #tpu.memory_space<vmem>>, vector<1x16x16x128xf32>
    %25 = vector.shape_cast %24 : vector<1x16x16x128xf32> to vector<256x128xf32>
    %c0_57 = arith.constant 0 : index
    %c1_58 = arith.constant 1 : index
    %c1_59 = arith.constant 1 : index
    %c0_60 = arith.constant 0 : index
    %26 = vector.load %arg5[%c0_57, %c1_58, %c1_59, %c0_60] : memref<1x18x24x128xf32, #tpu.memory_space<vmem>>, vector<1x16x16x128xf32>
    %27 = vector.shape_cast %26 : vector<1x16x16x128xf32> to vector<256x128xf32>
    %c0_61 = arith.constant 0 : index
    %c1_62 = arith.constant 1 : index
    %c2_63 = arith.constant 2 : index
    %c0_64 = arith.constant 0 : index
    %28 = vector.load %arg5[%c0_61, %c1_62, %c2_63, %c0_64] : memref<1x18x24x128xf32, #tpu.memory_space<vmem>>, vector<1x16x16x128xf32>
    %29 = vector.shape_cast %28 : vector<1x16x16x128xf32> to vector<256x128xf32>
    %30 = tpu.concatenate %25, %27, %29 in 1 : vector<256x128xf32>, vector<256x128xf32>, vector<256x128xf32> -> vector<256x384xf32>
    %31 = arith.truncf %30 : vector<256x384xf32> to vector<256x384xbf16>
    %c384 = arith.constant 384 : index
    %c0_65 = arith.constant 0 : index
    %32 = vector.load %arg2[%c384, %c0_65] : memref<1152x128xbf16, #tpu.memory_space<vmem>>, vector<384x128xbf16>
    %cst_66 = arith.constant dense<0.000000e+00> : vector<256x128xf32>
    %33 = tpu.matmul %31, %32, %cst_66 {dimension_numbers = #tpu.dot_dimension_numbers<[1], [0], [0], [1], [0, 0, 1, 1], [], []>} : vector<256x384xbf16>, vector<384x128xbf16>, vector<256x128xf32> -> vector<256x128xf32>
    %34 = arith.addf %23, %33 : vector<256x128xf32>
    %c0_67 = arith.constant 0 : index
    %c2_68 = arith.constant 2 : index
    %c0_69 = arith.constant 0 : index
    %c0_70 = arith.constant 0 : index
    %35 = vector.load %arg5[%c0_67, %c2_68, %c0_69, %c0_70] : memref<1x18x24x128xf32, #tpu.memory_space<vmem>>, vector<1x16x16x128xf32>
    %36 = vector.shape_cast %35 : vector<1x16x16x128xf32> to vector<256x128xf32>
    %c0_71 = arith.constant 0 : index
    %c2_72 = arith.constant 2 : index
    %c1_73 = arith.constant 1 : index
    %c0_74 = arith.constant 0 : index
    %37 = vector.load %arg5[%c0_71, %c2_72, %c1_73, %c0_74] : memref<1x18x24x128xf32, #tpu.memory_space<vmem>>, vector<1x16x16x128xf32>
    %38 = vector.shape_cast %37 : vector<1x16x16x128xf32> to vector<256x128xf32>
    %c0_75 = arith.constant 0 : index
    %c2_76 = arith.constant 2 : index
    %c2_77 = arith.constant 2 : index
    %c0_78 = arith.constant 0 : index
    %39 = vector.load %arg5[%c0_75, %c2_76, %c2_77, %c0_78] : memref<1x18x24x128xf32, #tpu.memory_space<vmem>>, vector<1x16x16x128xf32>
    %40 = vector.shape_cast %39 : vector<1x16x16x128xf32> to vector<256x128xf32>
    %41 = tpu.concatenate %36, %38, %40 in 1 : vector<256x128xf32>, vector<256x128xf32>, vector<256x128xf32> -> vector<256x384xf32>
    %42 = arith.truncf %41 : vector<256x384xf32> to vector<256x384xbf16>
    %c768 = arith.constant 768 : index
    %c0_79 = arith.constant 0 : index
    %43 = vector.load %arg2[%c768, %c0_79] : memref<1152x128xbf16, #tpu.memory_space<vmem>>, vector<384x128xbf16>
    %cst_80 = arith.constant dense<0.000000e+00> : vector<256x128xf32>
    %44 = tpu.matmul %42, %43, %cst_80 {dimension_numbers = #tpu.dot_dimension_numbers<[1], [0], [0], [1], [0, 0, 1, 1], [], []>} : vector<256x384xbf16>, vector<384x128xbf16>, vector<256x128xf32> -> vector<256x128xf32>
    %45 = arith.addf %34, %44 : vector<256x128xf32>
    %cst_81 = arith.constant 0.000000e+00 : f32
    %46 = vector.broadcast %cst_81 : f32 to vector<256x128xf32>
    %47 = arith.maximumf %45, %46 : vector<256x128xf32>
    %48 = vector.shape_cast %47 : vector<256x128xf32> to vector<1x16x16x128xf32>
    %c0_82 = arith.constant 0 : index
    %c1_83 = arith.constant 1 : index
    %c1_84 = arith.constant 1 : index
    %c0_85 = arith.constant 0 : index
    %49 = vector.load %arg6[%c0_82, %c1_83, %c1_84, %c0_85] : memref<1x18x24x128xf32, #tpu.memory_space<vmem>>, vector<1x16x16x128xf32>
    tpu.vector_store %arg6[%c0_82, %c1_83, %c1_84, %c0_85], %48 {strides = array<i32>} : memref<1x18x24x128xf32, #tpu.memory_space<vmem>>, vector<1x16x16x128xf32>,
    %cst_86 = arith.constant 0.000000e+00 : f32
    %50 = vector.broadcast %cst_86 : f32 to vector<256x128xf32>
    %c0_87 = arith.constant 0 : index
    %c0_88 = arith.constant 0 : index
    %c0_89 = arith.constant 0 : index
    %c0_90 = arith.constant 0 : index
    %51 = vector.load %arg6[%c0_87, %c0_88, %c0_89, %c0_90] : memref<1x18x24x128xf32, #tpu.memory_space<vmem>>, vector<1x16x16x128xf32>
    %52 = vector.shape_cast %51 : vector<1x16x16x128xf32> to vector<256x128xf32>
    %c0_91 = arith.constant 0 : index
    %c0_92 = arith.constant 0 : index
    %c1_93 = arith.constant 1 : index
    %c0_94 = arith.constant 0 : index
    %53 = vector.load %arg6[%c0_91, %c0_92, %c1_93, %c0_94] : memref<1x18x24x128xf32, #tpu.memory_space<vmem>>, vector<1x16x16x128xf32>
    %54 = vector.shape_cast %53 : vector<1x16x16x128xf32> to vector<256x128xf32>
    %c0_95 = arith.constant 0 : index
    %c0_96 = arith.constant 0 : index
    %c2_97 = arith.constant 2 : index
    %c0_98 = arith.constant 0 : index
    %55 = vector.load %arg6[%c0_95, %c0_96, %c2_97, %c0_98] : memref<1x18x24x128xf32, #tpu.memory_space<vmem>>, vector<1x16x16x128xf32>
    %56 = vector.shape_cast %55 : vector<1x16x16x128xf32> to vector<256x128xf32>
    %57 = tpu.concatenate %52, %54, %56 in 1 : vector<256x128xf32>, vector<256x128xf32>, vector<256x128xf32> -> vector<256x384xf32>
    %58 = arith.truncf %57 : vector<256x384xf32> to vector<256x384xbf16>
    %c0_99 = arith.constant 0 : index
    %c0_100 = arith.constant 0 : index
    %59 = vector.load %arg3[%c0_99, %c0_100] : memref<1152x128xbf16, #tpu.memory_space<vmem>>, vector<384x128xbf16>
    %cst_101 = arith.constant dense<0.000000e+00> : vector<256x128xf32>
    %60 = tpu.matmul %58, %59, %cst_101 {dimension_numbers = #tpu.dot_dimension_numbers<[1], [0], [0], [1], [0, 0, 1, 1], [], []>} : vector<256x384xbf16>, vector<384x128xbf16>, vector<256x128xf32> -> vector<256x128xf32>
    %61 = arith.addf %50, %60 : vector<256x128xf32>
    %c0_102 = arith.constant 0 : index
    %c1_103 = arith.constant 1 : index
    %c0_104 = arith.constant 0 : index
    %c0_105 = arith.constant 0 : index
    %62 = vector.load %arg6[%c0_102, %c1_103, %c0_104, %c0_105] : memref<1x18x24x128xf32, #tpu.memory_space<vmem>>, vector<1x16x16x128xf32>
    %63 = vector.shape_cast %62 : vector<1x16x16x128xf32> to vector<256x128xf32>
    %c0_106 = arith.constant 0 : index
    %c1_107 = arith.constant 1 : index
    %c1_108 = arith.constant 1 : index
    %c0_109 = arith.constant 0 : index
    %64 = vector.load %arg6[%c0_106, %c1_107, %c1_108, %c0_109] : memref<1x18x24x128xf32, #tpu.memory_space<vmem>>, vector<1x16x16x128xf32>
    %65 = vector.shape_cast %64 : vector<1x16x16x128xf32> to vector<256x128xf32>
    %c0_110 = arith.constant 0 : index
    %c1_111 = arith.constant 1 : index
    %c2_112 = arith.constant 2 : index
    %c0_113 = arith.constant 0 : index
    %66 = vector.load %arg6[%c0_110, %c1_111, %c2_112, %c0_113] : memref<1x18x24x128xf32, #tpu.memory_space<vmem>>, vector<1x16x16x128xf32>
    %67 = vector.shape_cast %66 : vector<1x16x16x128xf32> to vector<256x128xf32>
    %68 = tpu.concatenate %63, %65, %67 in 1 : vector<256x128xf32>, vector<256x128xf32>, vector<256x128xf32> -> vector<256x384xf32>
    %69 = arith.truncf %68 : vector<256x384xf32> to vector<256x384xbf16>
    %c384_114 = arith.constant 384 : index
    %c0_115 = arith.constant 0 : index
    %70 = vector.load %arg3[%c384_114, %c0_115] : memref<1152x128xbf16, #tpu.memory_space<vmem>>, vector<384x128xbf16>
    %cst_116 = arith.constant dense<0.000000e+00> : vector<256x128xf32>
    %71 = tpu.matmul %69, %70, %cst_116 {dimension_numbers = #tpu.dot_dimension_numbers<[1], [0], [0], [1], [0, 0, 1, 1], [], []>} : vector<256x384xbf16>, vector<384x128xbf16>, vector<256x128xf32> -> vector<256x128xf32>
    %72 = arith.addf %61, %71 : vector<256x128xf32>
    %c0_117 = arith.constant 0 : index
    %c2_118 = arith.constant 2 : index
    %c0_119 = arith.constant 0 : index
    %c0_120 = arith.constant 0 : index
    %73 = vector.load %arg6[%c0_117, %c2_118, %c0_119, %c0_120] : memref<1x18x24x128xf32, #tpu.memory_space<vmem>>, vector<1x16x16x128xf32>
    %74 = vector.shape_cast %73 : vector<1x16x16x128xf32> to vector<256x128xf32>
    %c0_121 = arith.constant 0 : index
    %c2_122 = arith.constant 2 : index
    %c1_123 = arith.constant 1 : index
    %c0_124 = arith.constant 0 : index
    %75 = vector.load %arg6[%c0_121, %c2_122, %c1_123, %c0_124] : memref<1x18x24x128xf32, #tpu.memory_space<vmem>>, vector<1x16x16x128xf32>
    %76 = vector.shape_cast %75 : vector<1x16x16x128xf32> to vector<256x128xf32>
    %c0_125 = arith.constant 0 : index
    %c2_126 = arith.constant 2 : index
    %c2_127 = arith.constant 2 : index
    %c0_128 = arith.constant 0 : index
    %77 = vector.load %arg6[%c0_125, %c2_126, %c2_127, %c0_128] : memref<1x18x24x128xf32, #tpu.memory_space<vmem>>, vector<1x16x16x128xf32>
    %78 = vector.shape_cast %77 : vector<1x16x16x128xf32> to vector<256x128xf32>
    %79 = tpu.concatenate %74, %76, %78 in 1 : vector<256x128xf32>, vector<256x128xf32>, vector<256x128xf32> -> vector<256x384xf32>
    %80 = arith.truncf %79 : vector<256x384xf32> to vector<256x384xbf16>
    %c768_129 = arith.constant 768 : index
    %c0_130 = arith.constant 0 : index
    %81 = vector.load %arg3[%c768_129, %c0_130] : memref<1152x128xbf16, #tpu.memory_space<vmem>>, vector<384x128xbf16>
    %cst_131 = arith.constant dense<0.000000e+00> : vector<256x128xf32>
    %82 = tpu.matmul %80, %81, %cst_131 {dimension_numbers = #tpu.dot_dimension_numbers<[1], [0], [0], [1], [0, 0, 1, 1], [], []>} : vector<256x384xbf16>, vector<384x128xbf16>, vector<256x128xf32> -> vector<256x128xf32>
    %83 = arith.addf %72, %82 : vector<256x128xf32>
    %c0_132 = arith.constant 0 : index
    %c0_133 = arith.constant 0 : index
    %c0_134 = arith.constant 0 : index
    %c0_135 = arith.constant 0 : index
    %84 = vector.load %arg1[%c0_132, %c0_133, %c0_134, %c0_135] : memref<1x16x16x128xf32, #tpu.memory_space<vmem>>, vector<1x16x16x128xf32>
    %85 = vector.shape_cast %83 : vector<256x128xf32> to vector<1x16x16x128xf32>
    %86 = arith.addf %84, %85 : vector<1x16x16x128xf32>
    %c0_136 = arith.constant 0 : index
    %c0_137 = arith.constant 0 : index
    %c0_138 = arith.constant 0 : index
    %c0_139 = arith.constant 0 : index
    %87 = vector.load %arg4[%c0_136, %c0_137, %c0_138, %c0_139] : memref<1x16x16x128xf32, #tpu.memory_space<vmem>>, vector<1x16x16x128xf32>
    tpu.vector_store %arg4[%c0_136, %c0_137, %c0_138, %c0_139], %86 {strides = array<i32>} : memref<1x16x16x128xf32, #tpu.memory_space<vmem>>, vector<1x16x16x128xf32>,
    return
  }
  func.func @transform_0(%arg0: i32) -> (i32, i32, i32, i32) {
    %c0_i32 = arith.constant 0 : i32
    %c0_i32_0 = arith.constant 0 : i32
    %c0_i32_1 = arith.constant 0 : i32
    %c0_i32_2 = arith.constant 0 : i32
    return %arg0, %c0_i32, %c0_i32_0, %c0_i32_1 : i32, i32, i32, i32
  }
  func.func @transform_1(%arg0: i32) -> (i32, i32) {
    %c0_i32 = arith.constant 0 : i32
    %c0_i32_0 = arith.constant 0 : i32
    %c0_i32_1 = arith.constant 0 : i32
    return %c0_i32, %c0_i32_0 : i32, i32
  }
  func.func @transform_2(%arg0: i32) -> (i32, i32) {
    %c0_i32 = arith.constant 0 : i32
    %c0_i32_0 = arith.constant 0 : i32
    %c0_i32_1 = arith.constant 0 : i32
    return %c0_i32, %c0_i32_0 : i32, i32
  }
  func.func @transform_3(%arg0: i32) -> (i32, i32, i32, i32) {
    %c0_i32 = arith.constant 0 : i32
    %c0_i32_0 = arith.constant 0 : i32
    %c0_i32_1 = arith.constant 0 : i32
    %c0_i32_2 = arith.constant 0 : i32
    return %arg0, %c0_i32, %c0_i32_0, %c0_i32_1 : i32, i32, i32, i32
  }
}

</mosaic_0001>

<bundles_post_ra>
// kernel: tpu_custom_call.1
= control target key start
LH: loop header
LB: loop body
LE: loop exit
PB: predicated region body
PF: predicated region fallthrough
CT: control target
= control target key end

     0   :  { %8 = vsyncpa [#allocation5], 0  ;;  %s6713_s0 = inlined_call_operand.hbm [shape: f32[2,16,16,128], index: 0, kind: input, shape index: {}]   ;;  %s6714_s1 = inlined_call_operand.hbm [shape: bf16[1152,128], index: 1, kind: input, shape index: {}]   ;;  %s6715_s2 = inlined_call_operand.hbm [shape: bf16[1152,128], index: 2, kind: input, shape index: {}]   ;;  %s6716_s3 = inlined_call_operand.hbm [shape: f32[2,16,16,128], index: 3, kind: output, shape index: {}]  }
   0x1   :  { %10 = vsyncpa [#allocation5 + $0x1], 0 }
   0x2   :  { %11 = vsyncpa [#allocation8], 0 }
   0x3   :  { %12 = vsyncpa [#allocation6], 0 }
   0x4   :  { %14 = vsyncpa [#allocation6 + $0x1], 0  ;;  %s5351_s12 = smov 0   ;;  %s5353_s13 = smov 0  }
   0x5   :  { %s5355_s14 = smov 0   ;;  %s5357_s15 = smov 0  }
   0x6 LB: > { %s5372_s16 = sadd.s32 4294967295, %s5320_s15   ;;  %s4328_s17 = sadd.s32 4294967294, %s5320_s15   ;;  %s5320_s15 = sphi %s5357_s15, %s6762_s15   ;;  %s5316_s14 = sphi %s5355_s14, %s6761_s14   ;;  %s5312_s13 = sphi %s5353_s13, %s6760_s13   ;;  %s5308_s12 = sphi %s5351_s12, %s6759_s12  }
   0x7   : > { %p40_p0 = scmp.ne.s32.totalorder %s5312_s13, %s5308_s12  ;;  %p41_p1 = scmp.eq.s32.totalorder %s5372_s16, 0 }
   0x8   : > { %p106_p2 = scmp.eq.s32.totalorder %s5372_s16, 1  ;;  %p112_p3 = scmp.eq.s32.totalorder %s4328_s17, 1 }
   0x9   : > { %p5381_p4 = por %p41_p1, %p40_p0  ;;  %p4329_p5 = scmp.ge.s32.totalorder %s5320_s15, 1 }
   0xa   : > { %p5386_p6 = por %p112_p3, %p40_p0  ;;  %p119_p7 = scmp.lt.s32.totalorder %s5320_s15, 3 }
   0xb   : > { %s130_s22 = sshll.u32 %s6714_s1, 4  ;;  %s5322_s24 = smov [#allocation7]   ;;  %s131_s22 = int_to_ptr.hbm [resolvable:$true] %s130_s22 }
   0xc   : > { %p5394_p8 = pnand %p4329_p5, %p119_p7  ;;  %s132_s25 = sshll.u32 %s5322_s24, 4  ;;  %s133_s25 = int_to_ptr.vmem [resolvable:$true] %s132_s25 }
   0xd   : > { %s144_s28 = sshll.u32 %s6715_s2, 4  ;;  %s5323_s29 = smov 64   ;;  %s145_s28 = int_to_ptr.hbm [resolvable:$true] %s144_s28 }
   0xe   : > { %p5096_p9 = pneg %p5394_p8  ;;  %s5324_s30 = smov 4  }
   0xf   : > { %s5325_s4 = smov [#allocation9]   ;;  %s5407_s6 = sadd.s32 1, %s5320_s15  }
  0x10   : > { %p5097_p10 = pnand %p5096_p9, %p41_p1  ;;  %s146_s5 = sshll.u32 %s5325_s4, 4  ;;  %s147_s5 = int_to_ptr.vmem [resolvable:$true] %s146_s5 }
  0x11   : > { %s27_s7 = sadd.s32 1, %s5316_s14  ;;  %s24_s8 = ssub.s32 %s5320_s15, %s5407_s6 }
  0x12   : > { %5099 = dma.hbm_to_vmem [thread:$0]  (!%p5097_p10), %s131_s22, 9216, %s133_s25, [#allocation8], %s5323_s29, %s5323_s29, %s5324_s30  }
  0x13   : > { %5102 = dma.hbm_to_vmem [thread:$0]  (!%p5097_p10), %s145_s28, 9216, %s147_s5, [#allocation8], %s5323_s29, %s5323_s29, %s5324_s30  }
  0x14   : > { %p34_p12 = scmp.ne.s32.totalorder %s5316_s14, %s5312_s13  ;;  %p25_p13 = scmp.eq.s32.totalorder %s24_s8, 0 }
  0x15   : > { %p35_p0 = scmp.eq.s32.totalorder %s5320_s15, 0  ;;  %p5113_p5 = scmp.lt.s32.totalorder %s5320_s15, 2 }
  0x16   : > { %p5417_p3 = por %p106_p2, %p34_p12  ;;  %s160_s11 = sand.u32 1, %s5316_s14  }
  0x17   : > { %s5423_s10 = scalar_select %p25_p13, %s5316_s14, %s27_s7  }
  0x18   : > { %p36_p7 = por %p35_p0, %p34_p12  ;;  %s4333_s17 = sshll.u32 %s160_s11, 8 }
  0x19   : > { %s4922_s20 = sshll.u32 %s5320_s15, 8  ;;  %s164_s25 = scalar_lea.vmem [#allocation4], %s4333_s17 }
  0x1a   : > { %s169_s24 = scalar_lea.hbm %s6713_s0, %s4922_s20  ;;  %s172_s26 = sshll.u32 %s164_s25, 4  ;;  %s173_s26 = int_to_ptr.vmem [resolvable:$true] %s172_s26 }
  0x1b   : > { %s170_s27 = sshll.u32 %s169_s24, 4  ;;  %p5430_p2 = pnand %p5113_p5, %p36_p7  ;;  %s171_s27 = int_to_ptr.hbm [resolvable:$true] %s170_s27 }
  0x1c   : > { %s161_s29 = scalar_lea.sflag [#allocation5], %s160_s11  ;;  %s5220_s30 = sshra.s32 %s171_s27, 4  ;;  %s5221_s30 = int_to_ptr.hbm [resolvable:$true] %s5220_s30 }
  0x1d   : > { %s5222_s4 = scalar_lea.hbm %s5221_s30, 256  ;;  %p5224_p10 = pneg %p5430_p2 }
  0x1e   : > { %p5223_p9 = scmp.ne.s32.totalorder %s5221_s30, %s5222_s4  ;;  %s5227_s8 = scalar_lea.hbm %s6713_s0, 512 }
  0x1f   : > { %p5228_p0 = scmp.lt.s32.totalorder %s5221_s30, %s6713_s0  ;;  %p5229_p5 = scmp.lt.s32.totalorder %s5227_s8, %s5222_s4 }
  0x20   : > { %p5225_p12 = pnand %p5224_p10, %p5223_p9 }
  0x21   : > { %p5230_p7 = por %p5229_p5, %p5228_p0 }
  0x22   : > { %p5226_p13 = pneg %p5225_p12 }
  0x24   : > { %p5231_p11 = pnand %p5230_p7, %p5226_p13 }
  0x26   : > { %5234 = shalt.err (!%p5231_p11)
}
  0x27   : > { %s5326_s11 = smov 128   ;;  %s5327_s21 = smov 8  }
  0x28   : > { %5106 = dma.hbm_to_vmem [thread:$0]  (!%p5430_p2), %s171_s27, 4096, %s173_s26, %s161_s29, %s5326_s11, %s5326_s11, %s5327_s21  }
  0x29   : > { %184 = sbr.rel (%p5394_p8) target bundleno = 1580 (0x62c), region = 32 }
  0x2e   : > { %s5447_s22 = sand.u32 1, %s5312_s13  }
  0x2f   : > { %s4337_s24 = sshll.u32 %s5447_s22, 8  ;;  %s187_s25 = scalar_lea.sflag [#allocation5], %s5447_s22 }
  0x30   : > { %s5453_s30 = scalar_lea.vmem [#allocation4], %s4337_s24 }
  0x31   : > { %5295 = dma.done.wait (%p5381_p4), %s187_s25, 4096  }
  0x32   : > { %5297 = vsyncadd (%p5381_p4), %s187_s25, 4294963200 }
  0x33   : > { %5299 = dma.done.wait (%p41_p1), [#allocation8], 18432  }
  0x34   : > { %5301 = vsyncadd (%p41_p1), [#allocation8], 4294948864  ;;  %v5328_v0 = vmov 0.0   ;;  %v4954_v1 = vld [vmem:[#allocation7 + $0xf8] sm:$0xff]  ;;  %v4953_v3 = vld [vmem:[#allocation7 + $0xf0] sm:$0xff]  ;;  %s6552_s18 = scalar_lea.vmem [#allocation10], %s4337_s24 }
  0x35   : > { %232 = vst [vmem:[#allocation2 + $0x18] sm:$0x1] %v5328_v0  ;;  %v4962_v2 = vld [vmem:[#allocation7 + $0x138] sm:$0xff]  ;;  %903 = vmatpush.bf16.msra.mxu0 %v4954_v1  ;;  %5068 = vmatpush.bf16.msra.mxu2 %v4954_v1  ;;  %v4961_v4 = vld [vmem:[#allocation7 + $0x130] sm:$0xff]  ;;  %v5475_v5 = vld [vmem:[%s5453_s30] sm:$0xff]  ;;  %s5067_s23 = sshll.u32 %s5372_s16, 8 }
  0x36   : > { %224 = vst [vmem:[#allocation2] sm:$0xff] %v5328_v0  ;;  %992 = vmatpush.bf16.msra.mxu1 %v4962_v2  ;;  %5076 = vmatpush.bf16.msra.mxu3 %v4962_v2  ;;  %v5478_v6 = vld [vmem:[%s5453_s30 + $0x8] sm:$0xff]  ;;  %v4951_v9 = vld [vmem:[#allocation7 + $0xe0] sm:$0xff]  ;;  %v4950_v11 = vld [vmem:[#allocation7 + $0xd8] sm:$0xff]  ;;  %s4232_s28 = scalar_lea.hbm %s6716_s3, %s5067_s23  ;;  %s4233_s29 = sshll.u32 %s6552_s18, 4  ;;  %s4234_s29 = int_to_ptr.vmem [resolvable:$true] %s4233_s29 }
  0x37   : > { %225 = vst [vmem:[#allocation2 + $0x8] sm:$0xff] %v5328_v0  ;;  %v4952_v7 = vld [vmem:[#allocation7 + $0xe8] sm:$0xff]  ;;  %v4959_v10 = vld [vmem:[#allocation7 + $0x120] sm:$0xff]  ;;  %v4958_v12 = vld [vmem:[#allocation7 + $0x118] sm:$0xff]  ;;  %v5532_v24 = vpack.c.bf16 %v5478_v6, %v5475_v5  ;;  %s4235_s4 = sshll.u32 %s4232_s28, 4  ;;  %s4221_s16 = scalar_lea.sflag [#allocation6], %s5447_s22  ;;  %s4236_s4 = int_to_ptr.hbm [resolvable:$true] %s4235_s4 }
  0x38   : > { %226 = vst [vmem:[#allocation2 + $0x10] sm:$0xff] %v5328_v0  ;;  %v4960_v8 = vld [vmem:[#allocation7 + $0x128] sm:$0xff]  ;;  %v4949_v13 = vld [vmem:[#allocation7 + $0xd0] sm:$0xff]  ;;  %v4947_v17 = vld [vmem:[#allocation7 + $0xc0] sm:$0xff]  ;;  %s5264_s5 = sshra.s32 %s4236_s4, 4  ;;  %s5270_s20 = scalar_lea.hbm %s6716_s3, 512  ;;  %s5265_s5 = int_to_ptr.hbm [resolvable:$true] %s5264_s5 }
  0x39   : > { %228 = vst [vmem:[#allocation2 + $0x198] sm:$0xff] %v5328_v0  ;;  %904 = vmatpush.bf16.msra.mxu0 %v4953_v3  ;;  %5069 = vmatpush.bf16.msra.mxu2 %v4953_v3  ;;  %v4957_v14 = vld [vmem:[#allocation7 + $0x110] sm:$0xff]  ;;  %v4948_v15 = vld [vmem:[#allocation7 + $0xc8] sm:$0xff]  ;;  %v4955_v20 = vld [vmem:[#allocation7 + $0x100] sm:$0xff]  ;;  %s5266_s7 = scalar_lea.hbm %s5265_s5, 256  ;;  %p5271_p11 = scmp.lt.s32.totalorder %s5265_s5, %s6716_s3 }
  0x3a   : > { %229 = vst [vmem:[#allocation2 + $0x1a0] sm:$0xff] %v5328_v0  ;;  %993 = vmatpush.bf16.msra.mxu1 %v4961_v4  ;;  %5077 = vmatpush.bf16.msra.mxu3 %v4961_v4  ;;  %v4956_v16 = vld [vmem:[#allocation7 + $0x108] sm:$0xff]  ;;  %v326_v22 = vld [vmem:[%s5453_s30 + $0x80] sm:$0xff]  ;;  %v4970_v26 = vld [vmem:[#allocation7 + $0x178] sm:$0xff]  ;;  %p5267_p1 = scmp.ne.s32.totalorder %s5265_s5, %s5266_s7  ;;  %p5272_p2 = scmp.lt.s32.totalorder %s5270_s20, %s5266_s7 }
  0x3b   : > { %230 = vst [vmem:[#allocation2 + $0x1a8] sm:$0xff] %v5328_v0  ;;  %v327_v23 = vld [vmem:[%s5453_s30 + $0x88] sm:$0xff]  ;;  %v4930_v27 = vld [vmem:[#allocation7 + $0x38] sm:$0xff]  ;;  %v312_v29 = vld [vmem:[%s5453_s30 + $0x10] sm:$0xff] }
  0x3c   : > { %233 = vst [vmem:[#allocation2 + $0x30] sm:$0x1] %v5328_v0  ;;  %v688_v25 = vpack.c.bf16 %v327_v23, %v326_v22  ;;  %v4938_v28 = vld [vmem:[#allocation7 + $0x78] sm:$0xff]  ;;  %v328_v31 = vld [vmem:[%s5453_s30 + $0x90] sm:$0xff]  ;;  %v314_v39 = vld [vmem:[%s5453_s30 + $0x20] sm:$0xff]  ;;  %p5268_p4 = pnand %p5267_p1, %p5417_p3  ;;  %p5273_p9 = por %p5272_p2, %p5271_p11 }
  0x3d   : > { %234 = vst [vmem:[#allocation2 + $0x48] sm:$0x1] %v5328_v0  ;;  %905 = vmatpush.bf16.msra.mxu0 %v4952_v7  ;;  %5070 = vmatpush.bf16.msra.mxu2 %v4952_v7  ;;  %v313_v30 = vld [vmem:[%s5453_s30 + $0x18] sm:$0xff]  ;;  %v4969_v35 = vld [vmem:[#allocation7 + $0x170] sm:$0xff]  ;;  %v315_v40 = vld [vmem:[%s5453_s30 + $0x28] sm:$0xff] }
  0x3e   : > { %235 = vst [vmem:[#allocation2 + $0x60] sm:$0x1] %v5328_v0  ;;  %994 = vmatpush.bf16.msra.mxu1 %v4960_v8  ;;  %5078 = vmatpush.bf16.msra.mxu3 %v4960_v8  ;;  %v329_v32 = vld [vmem:[%s5453_s30 + $0x98] sm:$0xff]  ;;  %v5555_v33 = vpack.c.bf16 %v313_v30, %v312_v29  ;;  %v4929_v36 = vld [vmem:[#allocation7 + $0x30] sm:$0xff]  ;;  %v330_v42 = vld [vmem:[%s5453_s30 + $0xa0] sm:$0xff]  ;;  %v5576_v45 = vpack.c.bf16 %v315_v40, %v314_v39  ;;  %p5269_p8 = pneg %p5268_p4 }
  0x3f   : > { %236 = vst [vmem:[#allocation2 + $0x78] sm:$0x1] %v5328_v0  ;;  %v691_v34 = vpack.c.bf16 %v329_v32, %v328_v31  ;;  %v4937_v37 = vld [vmem:[#allocation7 + $0x70] sm:$0xff]  ;;  %v331_v43 = vld [vmem:[%s5453_s30 + $0xa8] sm:$0xff]  ;;  %v317_v51 = vld [vmem:[%s5453_s30 + $0x38] sm:$0xff] }
  0x40   : > { %237 = vst [vmem:[#allocation2 + $0x90] sm:$0x1] %v5328_v0  ;;  %v694_v46 = vpack.c.bf16 %v331_v43, %v330_v42  ;;  %v4968_v47 = vld [vmem:[#allocation7 + $0x168] sm:$0xff]  ;;  %v316_v50 = vld [vmem:[%s5453_s30 + $0x30] sm:$0xff]  ;;  %v333_v55 = vld [vmem:[%s5453_s30 + $0xb8] sm:$0xff]  ;;  %p5274_p10 = pnand %p5273_p9, %p5269_p8 }
  0x41   : > { %343 = vst [vmem:[#allocation2 + $0x19] sm:$0xff] %v5475_v5  ;;  %906 = vmatpush.bf16.msra.mxu0 %v4951_v9  ;;  %5071 = vmatpush.bf16.msra.mxu2 %v4951_v9  ;;  %v4928_v48 = vld [vmem:[#allocation7 + $0x28] sm:$0xff]  ;;  %v332_v53 = vld [vmem:[%s5453_s30 + $0xb0] sm:$0xff]  ;;  %v5586_v60 = vpack.c.bf16 %v317_v51, %v316_v50  ;;  %v4967_v62 = vld [vmem:[#allocation7 + $0x160] sm:$0xff] }
  0x42   : > { %344 = vst [vmem:[#allocation2 + $0x21] sm:$0xff] %v5478_v6  ;;  %995 = vmatpush.bf16.msra.mxu1 %v4959_v10  ;;  %5079 = vmatpush.bf16.msra.mxu3 %v4959_v10  ;;  %v4936_v49 = vld [vmem:[#allocation7 + $0x68] sm:$0xff]  ;;  %v697_v61 = vpack.c.bf16 %v333_v55, %v332_v53  ;;  %v4927_v63 = vld [vmem:[#allocation7 + $0x20] sm:$0xff] }
  0x43   : > { %238 = vst [vmem:[#allocation2 + $0xa8] sm:$0x1] %v5328_v0  ;;  %v318_v1 = vld [vmem:[%s5453_s30 + $0x40] sm:$0xff]  ;;  %v319_v2 = vld [vmem:[%s5453_s30 + $0x48] sm:$0xff] }
  0x44   : > { %239 = vst [vmem:[#allocation2 + $0xc0] sm:$0x1] %v5328_v0  ;;  %v334_v5 = vld [vmem:[%s5453_s30 + $0xc0] sm:$0xff]  ;;  %v335_v6 = vld [vmem:[%s5453_s30 + $0xc8] sm:$0xff] }
  0x45   : > { %240 = vst [vmem:[#allocation2 + $0xd8] sm:$0x1] %v5328_v0  ;;  %907 = vmatpush.bf16.msra.mxu0 %v4950_v11  ;;  %5072 = vmatpush.bf16.msra.mxu2 %v4950_v11  ;;  %v5596_v11 = vpack.c.bf16 %v319_v2, %v318_v1 }
  0x46   : > { %241 = vst [vmem:[#allocation2 + $0xf0] sm:$0x1] %v5328_v0  ;;  %996 = vmatpush.bf16.msra.mxu1 %v4958_v12  ;;  %5080 = vmatpush.bf16.msra.mxu3 %v4958_v12  ;;  %v700_v12 = vpack.c.bf16 %v335_v6, %v334_v5 }
  0x47   : > { %242 = vst [vmem:[#allocation2 + $0x108] sm:$0x1] %v5328_v0 }
  0x48   : > { %243 = vst [vmem:[#allocation2 + $0x120] sm:$0x1] %v5328_v0  ;;  %v567_v18 = vld [vmem:[#allocation2 + $0x18] sm:$0xff] }
  0x49   : > { %244 = vst [vmem:[#allocation2 + $0x138] sm:$0x1] %v5328_v0  ;;  %908 = vmatpush.bf16.msra.mxu0 %v4949_v13  ;;  %5073 = vmatpush.bf16.msra.mxu2 %v4949_v13  ;;  %v568_v19 = vld [vmem:[#allocation2 + $0x20] sm:$0xff]  ;;  %v4966_v13 = vld [vmem:[#allocation7 + $0x158] sm:$0xff] }
  0x4a   : > { %245 = vst [vmem:[#allocation2 + $0x150] sm:$0x1] %v5328_v0  ;;  %997 = vmatpush.bf16.msra.mxu1 %v4957_v14  ;;  %5081 = vmatpush.bf16.msra.mxu3 %v4957_v14  ;;  %v5504_v21 = vpack.c.bf16 %v568_v19, %v567_v18  ;;  %v4926_v14 = vld [vmem:[#allocation7 + $0x18] sm:$0xff] }
  0x4b   : > { %246 = vst [vmem:[#allocation2 + $0x168] sm:$0x1] %v5328_v0 }
  0x4c   : > { %247 = vst [vmem:[#allocation2 + $0x180] sm:$0x1] %v5328_v0 }
  0x4d   : > { %250 = vst [vmem:[#allocation2 + $0x29] sm:$0x1] %v5328_v0  ;;  %909 = vmatpush.bf16.msra.mxu0 %v4948_v15  ;;  %5074 = vmatpush.bf16.msra.mxu2 %v4948_v15  ;;  %v4934_v15 = vld [vmem:[#allocation7 + $0x58] sm:$0xff] }
  0x4e   : > { %251 = vst [vmem:[#allocation2 + $0x41] sm:$0x1] %v5328_v0  ;;  %998 = vmatpush.bf16.msra.mxu1 %v4956_v16  ;;  %5082 = vmatpush.bf16.msra.mxu3 %v4956_v16  ;;  %v320_v16 = vld [vmem:[%s5453_s30 + $0x50] sm:$0xff] }
  0x4f   : > { %252 = vst [vmem:[#allocation2 + $0x59] sm:$0x1] %v5328_v0 }
  0x50   : > { %253 = vst [vmem:[#allocation2 + $0x71] sm:$0x1] %v5328_v0 }
  0x51   : > { %254 = vst [vmem:[#allocation2 + $0x89] sm:$0x1] %v5328_v0  ;;  %910 = vmatpush.bf16.msra.mxu0 %v4947_v17  ;;  %5075 = vmatpush.bf16.msra.mxu2 %v4947_v17  ;;  %v321_v17 = vld [vmem:[%s5453_s30 + $0x58] sm:$0xff] }
  0x52   : > { %255 = vst [vmem:[#allocation2 + $0xa1] sm:$0x1] %v5328_v0  ;;  %999 = vmatpush.bf16.msra.mxu1 %v4955_v20  ;;  %5083 = vmatpush.bf16.msra.mxu3 %v4955_v20  ;;  %v336_v20 = vld [vmem:[%s5453_s30 + $0xd0] sm:$0xff] }
  0x53   : > { %256 = vst [vmem:[#allocation2 + $0xb9] sm:$0x1] %v5328_v0 }
  0x54   : > { %257 = vst [vmem:[#allocation2 + $0xd1] sm:$0x1] %v5328_v0  ;;  %911 = vmatmul.bf16.vlgmr.msra.gmra.mxu0 %v5504_v21 }
  0x55   : > { %258 = vst [vmem:[#allocation2 + $0xe9] sm:$0x1] %v5328_v0  ;;  %1000 = vmatmul.bf16.vlgmr.msra.gmra.mxu1 %v5532_v24  ;;  %1040 = vmatmul.bf16.vlgmr.msra.gmra.mxu3 %v688_v25 }
  0x56   : > { %259 = vst [vmem:[#allocation2 + $0x101] sm:$0x1] %v5328_v0  ;;  %1081 = vmatpush.bf16.msrb.mxu2 %v4970_v26  ;;  %1314 = vmatpush.bf16.msrb.mxu3 %v4930_v27 }
  0x57   : > { %260 = vst [vmem:[#allocation2 + $0x119] sm:$0x1] %v5328_v0  ;;  %1403 = vmatpush.bf16.msrb.mxu0 %v4938_v28  ;;  %v5606_v28 = vpack.c.bf16 %v321_v17, %v320_v16 }
  0x58   : > { %261 = vst [vmem:[#allocation2 + $0x131] sm:$0x1] %v5328_v0 }
  0x59   : > { %262 = vst [vmem:[#allocation2 + $0x149] sm:$0x1] %v5328_v0 }
  0x5a   : > { %263 = vst [vmem:[#allocation2 + $0x161] sm:$0x1] %v5328_v0  ;;  %1082 = vmatpush.bf16.msrb.mxu2 %v4969_v35  ;;  %1315 = vmatpush.bf16.msrb.mxu3 %v4929_v36  ;;  %v323_v35 = vld [vmem:[%s5453_s30 + $0x68] sm:$0xff] }
  0x5b   : > { %264 = vst [vmem:[#allocation2 + $0x179] sm:$0x1] %v5328_v0  ;;  %1404 = vmatpush.bf16.msrb.mxu0 %v4937_v37 }
  0x5c   : > { %265 = vst [vmem:[#allocation2 + $0x191] sm:$0x1] %v5328_v0 }
  0x5d   : > { %267 = vst [vmem:[#allocation3] sm:$0xff] %v5328_v0 }
  0x5e   : > { %268 = vst [vmem:[#allocation3 + $0x8] sm:$0xff] %v5328_v0  ;;  %1083 = vmatpush.bf16.msrb.mxu2 %v4968_v47  ;;  %1316 = vmatpush.bf16.msrb.mxu3 %v4928_v48  ;;  %v4964_v47 = vld [vmem:[#allocation7 + $0x148] sm:$0xff] }
  0x5f   : > { %269 = vst [vmem:[#allocation3 + $0x10] sm:$0xff] %v5328_v0  ;;  %1405 = vmatpush.bf16.msrb.mxu0 %v4936_v49  ;;  %v4924_v48 = vld [vmem:[#allocation7 + $0x8] sm:$0xff] }
  0x60   : > { %271 = vst [vmem:[#allocation3 + $0x198] sm:$0xff] %v5328_v0  ;;  %v4932_v49 = vld [vmem:[#allocation7 + $0x48] sm:$0xff] }
  0x61   : > { %272 = vst [vmem:[#allocation3 + $0x1a0] sm:$0xff] %v5328_v0 }
  0x62   : > { %273 = vst [vmem:[#allocation3 + $0x1a8] sm:$0xff] %v5328_v0  ;;  %1084 = vmatpush.bf16.msrb.mxu2 %v4967_v62  ;;  %1317 = vmatpush.bf16.msrb.mxu3 %v4927_v63 }
  0x63   : > { %275 = vst [vmem:[#allocation3 + $0x18] sm:$0x1] %v5328_v0 }
  0x64   : > { %276 = vst [vmem:[#allocation3 + $0x30] sm:$0x1] %v5328_v0 }
  0x65   : > { %277 = vst [vmem:[#allocation3 + $0x48] sm:$0x1] %v5328_v0  ;;  %1005 = vmatmul.bf16.gmra.mxu1 %v5555_v33  ;;  %1045 = vmatmul.bf16.gmra.mxu3 %v691_v34  ;;  %v322_v34 = vld [vmem:[%s5453_s30 + $0x60] sm:$0xff] }
  0x66   : > { %278 = vst [vmem:[#allocation3 + $0x60] sm:$0x1] %v5328_v0  ;;  %1085 = vmatpush.bf16.msrb.mxu2 %v4966_v13  ;;  %1318 = vmatpush.bf16.msrb.mxu3 %v4926_v14  ;;  %v4942_v14 = vld [vmem:[#allocation7 + $0x98] sm:$0xff] }
  0x67   : > { %279 = vst [vmem:[#allocation3 + $0x78] sm:$0x1] %v5328_v0 }
  0x68   : > { %280 = vst [vmem:[#allocation3 + $0x90] sm:$0x1] %v5328_v0 }
  0x69   : > { %281 = vst [vmem:[#allocation3 + $0xa8] sm:$0x1] %v5328_v0 }
  0x6a   : > { %282 = vst [vmem:[#allocation3 + $0xc0] sm:$0x1] %v5328_v0 }
  0x6b   : > { %283 = vst [vmem:[#allocation3 + $0xd8] sm:$0x1] %v5328_v0 }
  0x6c   : > { %284 = vst [vmem:[#allocation3 + $0xf0] sm:$0x1] %v5328_v0 }
  0x6d   : > { %285 = vst [vmem:[#allocation3 + $0x108] sm:$0x1] %v5328_v0 }
  0x6e   : > { %286 = vst [vmem:[#allocation3 + $0x120] sm:$0x1] %v5328_v0 }
  0x6f   : > { %287 = vst [vmem:[#allocation3 + $0x138] sm:$0x1] %v5328_v0 }
  0x70   : > { %288 = vst [vmem:[#allocation3 + $0x150] sm:$0x1] %v5328_v0 }
  0x71   : > { %289 = vst [vmem:[#allocation3 + $0x168] sm:$0x1] %v5328_v0 }
  0x72   : > { %290 = vst [vmem:[#allocation3 + $0x180] sm:$0x1] %v5328_v0 }
  0x73   : > { %293 = vst [vmem:[#allocation3 + $0x29] sm:$0x1] %v5328_v0 }
  0x74   : > { %294 = vst [vmem:[#allocation3 + $0x41] sm:$0x1] %v5328_v0 }
  0x75   : > { %295 = vst [vmem:[#allocation3 + $0x59] sm:$0x1] %v5328_v0  ;;  %1010 = vmatmul.bf16.gmra.mxu1 %v5576_v45  ;;  %1050 = vmatmul.bf16.gmra.mxu3 %v694_v46 }
  0x76   : > { %296 = vst [vmem:[#allocation3 + $0x71] sm:$0x1] %v5328_v0 }
  0x77   : > { %297 = vst [vmem:[#allocation3 + $0x89] sm:$0x1] %v5328_v0 }
  0x78   : > { %298 = vst [vmem:[#allocation3 + $0xa1] sm:$0x1] %v5328_v0 }
  0x79   : > { %299 = vst [vmem:[#allocation3 + $0xb9] sm:$0x1] %v5328_v0 }
  0x7a   : > { %300 = vst [vmem:[#allocation3 + $0xd1] sm:$0x1] %v5328_v0 }
  0x7b   : > { %301 = vst [vmem:[#allocation3 + $0xe9] sm:$0x1] %v5328_v0 }
  0x7c   : > { %302 = vst [vmem:[#allocation3 + $0x101] sm:$0x1] %v5328_v0 }
  0x7d   : > { %303 = vst [vmem:[#allocation3 + $0x119] sm:$0x1] %v5328_v0 }
  0x7e   : > { %304 = vst [vmem:[#allocation3 + $0x131] sm:$0x1] %v5328_v0 }
  0x7f   : > { %305 = vst [vmem:[#allocation3 + $0x149] sm:$0x1] %v5328_v0 }
  0x80   : > { %306 = vst [vmem:[#allocation3 + $0x161] sm:$0x1] %v5328_v0 }
  0x81   : > { %307 = vst [vmem:[#allocation3 + $0x179] sm:$0x1] %v5328_v0 }
  0x82   : > { %308 = vst [vmem:[#allocation3 + $0x191] sm:$0x1] %v5328_v0 }
  0x83   : > { %359 = vst [vmem:[#allocation2 + $0xd9] sm:$0xff] %v326_v22  ;;  %v337_v22 = vld [vmem:[%s5453_s30 + $0xd8] sm:$0xff] }
  0x84   : > { %360 = vst [vmem:[#allocation2 + $0xe1] sm:$0xff] %v327_v23 }
  0x85   : > { %231 = vst [vmem:[#allocation2] sm:$0x1] %v5328_v0  ;;  %1015 = vmatmul.bf16.gmra.mxu1 %v5586_v60  ;;  %1055 = vmatmul.bf16.gmra.mxu3 %v697_v61 }
  0x86   : > { %248 = vst [vmem:[#allocation2 + $0x198] sm:$0x1] %v5328_v0 }
  0x87   : > { %249 = vst [vmem:[#allocation2 + $0x11] sm:$0x1] %v5328_v0 }
  0x88   : > { %266 = vst [vmem:[#allocation2 + $0x1a9] sm:$0x1] %v5328_v0 }
  0x89   : > { %274 = vst [vmem:[#allocation3] sm:$0x1] %v5328_v0 }
  0x8a   : > { %v583_v38 = vld [vmem:[#allocation2 + $0xd8] sm:$0xff]  ;;  %291 = vst [vmem:[#allocation3 + $0x198] sm:$0x1] %v5328_v0 }
  0x8b   : > { %v584_v41 = vld [vmem:[#allocation2 + $0xe0] sm:$0xff]  ;;  %292 = vst [vmem:[#allocation3 + $0x11] sm:$0x1] %v5328_v0 }
  0x8c   : > { %v687_v44 = vpack.c.bf16 %v584_v41, %v583_v38  ;;  %309 = vst [vmem:[#allocation3 + $0x1a9] sm:$0x1] %v5328_v0  ;;  %v4935_v0 = vld [vmem:[#allocation7 + $0x60] sm:$0xff] }
  0x8d   : > { %345 = vst [vmem:[#allocation2 + $0x31] sm:$0xff] %v312_v29  ;;  %1406 = vmatpush.bf16.msrb.mxu0 %v4935_v0  ;;  %v703_v29 = vpack.c.bf16 %v337_v22, %v336_v20  ;;  %v338_v38 = vld [vmem:[%s5453_s30 + $0xe0] sm:$0xff] }
  0x8e   : > { %951 = vmatmul.bf16.vlgmr.msra.gmra.mxu2 %v687_v44  ;;  %346 = vst [vmem:[#allocation2 + $0x39] sm:$0xff] %v313_v30  ;;  %v4965_v30 = vld [vmem:[#allocation7 + $0x150] sm:$0xff]  ;;  %v5616_v44 = vpack.c.bf16 %v323_v35, %v322_v34 }
  0x8f   : > { %361 = vst [vmem:[#allocation2 + $0xf1] sm:$0xff] %v328_v31  ;;  %v4925_v31 = vld [vmem:[#allocation7 + $0x10] sm:$0xff]  ;;  %1086 = vmatpush.bf16.msrb.mxu2 %v4965_v30 }
  0x90   : > { %362 = vst [vmem:[#allocation2 + $0xf9] sm:$0xff] %v329_v32  ;;  %v4933_v32 = vld [vmem:[#allocation7 + $0x50] sm:$0xff]  ;;  %1319 = vmatpush.bf16.msrb.mxu3 %v4925_v31  ;;  %v4940_v31 = vld [vmem:[#allocation7 + $0x88] sm:$0xff] }
  0x91   : > { %347 = vst [vmem:[#allocation2 + $0x49] sm:$0xff] %v314_v39  ;;  %1407 = vmatpush.bf16.msrb.mxu0 %v4934_v15  ;;  %v339_v39 = vld [vmem:[%s5453_s30 + $0xe8] sm:$0xff] }
  0x92   : > { %348 = vst [vmem:[#allocation2 + $0x51] sm:$0xff] %v315_v40  ;;  %v706_v46 = vpack.c.bf16 %v339_v39, %v338_v38 }
  0x93   : > { %363 = vst [vmem:[#allocation2 + $0x109] sm:$0xff] %v330_v42  ;;  %1087 = vmatpush.bf16.msrb.mxu2 %v4964_v47 }
  0x94   : > { %v569_v52 = vld [vmem:[#allocation2 + $0x30] sm:$0xff]  ;;  %364 = vst [vmem:[#allocation2 + $0x111] sm:$0xff] %v331_v43  ;;  %1320 = vmatpush.bf16.msrb.mxu3 %v4924_v48  ;;  %v407_v48 = vld [vmem:[#allocation2 + $0x1] sm:$0xff] }
  0x95   : > { %v570_v54 = vld [vmem:[#allocation2 + $0x38] sm:$0xff]  ;;  %349 = vst [vmem:[#allocation2 + $0x61] sm:$0xff] %v316_v50  ;;  %1020 = vmatmul.bf16.gmra.mxu1 %v5596_v11  ;;  %1060 = vmatmul.bf16.gmra.mxu3 %v700_v12 }
  0x96   : > { %v5583_v56 = vpack.c.bf16 %v570_v54, %v569_v52  ;;  %350 = vst [vmem:[#allocation2 + $0x69] sm:$0xff] %v317_v51  ;;  %v585_v57 = vld [vmem:[#allocation2 + $0xf0] sm:$0xff]  ;;  %1408 = vmatpush.bf16.msrb.mxu0 %v4933_v32  ;;  %v4946_v50 = vld [vmem:[#allocation7 + $0xb8] sm:$0xff] }
  0x97   : > { %v586_v58 = vld [vmem:[#allocation2 + $0xf8] sm:$0xff]  ;;  %365 = vst [vmem:[#allocation2 + $0x121] sm:$0xff] %v332_v53  ;;  %v324_v51 = vld [vmem:[%s5453_s30 + $0x70] sm:$0xff]  ;;  %1492 = vmatpush.bf16.msrb.mxu1 %v4946_v50 }
  0x98   : > { %916 = vmatmul.bf16.gmra.mxu0 %v5583_v56  ;;  %366 = vst [vmem:[#allocation2 + $0x129] sm:$0xff] %v333_v55  ;;  %v690_v59 = vpack.c.bf16 %v586_v58, %v585_v57  ;;  %v571_v3 = vld [vmem:[#allocation2 + $0x48] sm:$0xff]  ;;  %v325_v52 = vld [vmem:[%s5453_s30 + $0x78] sm:$0xff]  ;;  %v340_v55 = vld [vmem:[%s5453_s30 + $0xf0] sm:$0xff] }
  0x99   : > { %351 = vst [vmem:[#allocation2 + $0x79] sm:$0xff] %v318_v1  ;;  %v572_v4 = vld [vmem:[#allocation2 + $0x50] sm:$0xff]  ;;  %v341_v57 = vld [vmem:[%s5453_s30 + $0xf8] sm:$0xff]  ;;  %v5626_v63 = vpack.c.bf16 %v325_v52, %v324_v51 }
  0x9a   : > { %352 = vst [vmem:[#allocation2 + $0x81] sm:$0xff] %v319_v2  ;;  %v5593_v7 = vpack.c.bf16 %v572_v4, %v571_v3  ;;  %v587_v8 = vld [vmem:[#allocation2 + $0x108] sm:$0xff]  ;;  %1409 = vmatpush.bf16.msrb.mxu0 %v4932_v49  ;;  %v709_v0 = vpack.c.bf16 %v341_v57, %v340_v55  ;;  %v4945_v1 = vld [vmem:[#allocation7 + $0xb0] sm:$0xff]  ;;  %v4963_v2 = vld [vmem:[#allocation7 + $0x140] sm:$0xff] }
  0x9b   : > { %367 = vst [vmem:[#allocation2 + $0x139] sm:$0xff] %v334_v5  ;;  %v588_v9 = vld [vmem:[#allocation2 + $0x110] sm:$0xff]  ;;  %v4923_v3 = vld [vmem:[#allocation7] sm:$0xff]  ;;  %1493 = vmatpush.bf16.msrb.mxu1 %v4945_v1  ;;  %v4944_v4 = vld [vmem:[#allocation7 + $0xa8] sm:$0xff]  ;;  %1088 = vmatpush.bf16.msrb.mxu2 %v4963_v2 }
  0x9c   : > { %368 = vst [vmem:[#allocation2 + $0x141] sm:$0xff] %v335_v6  ;;  %v693_v10 = vpack.c.bf16 %v588_v9, %v587_v8  ;;  %v573_v18 = vld [vmem:[#allocation2 + $0x60] sm:$0xff]  ;;  %1321 = vmatpush.bf16.msrb.mxu3 %v4923_v3  ;;  %v4994_v32 = vld [vmem:[#allocation7 + $0x238] sm:$0xff]  ;;  %v408_v49 = vld [vmem:[#allocation2 + $0x9] sm:$0xff] }
  0x9d   : > { %353 = vst [vmem:[#allocation2 + $0x91] sm:$0xff] %v320_v16  ;;  %v574_v19 = vld [vmem:[#allocation2 + $0x68] sm:$0xff]  ;;  %v4931_v5 = vld [vmem:[#allocation7 + $0x40] sm:$0xff]  ;;  %v4993_v3 = vld [vmem:[#allocation7 + $0x230] sm:$0xff] }
  0x9e   : > { %956 = vmatmul.bf16.gmra.mxu2 %v690_v59  ;;  %354 = vst [vmem:[#allocation2 + $0x99] sm:$0xff] %v321_v17  ;;  %v5603_v23 = vpack.c.bf16 %v574_v19, %v573_v18  ;;  %v589_v25 = vld [vmem:[#allocation2 + $0x120] sm:$0xff]  ;;  %1410 = vmatpush.bf16.msrb.mxu0 %v4931_v5 }
  0x9f   : > { %369 = vst [vmem:[#allocation2 + $0x151] sm:$0xff] %v336_v20  ;;  %v590_v26 = vld [vmem:[#allocation2 + $0x128] sm:$0xff]  ;;  %1494 = vmatpush.bf16.msrb.mxu1 %v4944_v4  ;;  %v4943_v9 = vld [vmem:[#allocation7 + $0xa0] sm:$0xff] }
  0xa0   : > { %370 = vst [vmem:[#allocation2 + $0x159] sm:$0xff] %v337_v22  ;;  %v696_v27 = vpack.c.bf16 %v590_v26, %v589_v25  ;;  %v575_v36 = vld [vmem:[#allocation2 + $0x78] sm:$0xff]  ;;  %v375_v18 = vld [vmem:[#allocation2] sm:$0xff]  ;;  %v4941_v22 = vld [vmem:[#allocation7 + $0x90] sm:$0xff] }
  0xa1   : > { %355 = vst [vmem:[#allocation2 + $0xa9] sm:$0xff] %v322_v34  ;;  %v576_v37 = vld [vmem:[#allocation2 + $0x80] sm:$0xff]  ;;  %v471_v20 = vpack.c.bf16 0.0, %v375_v18  ;;  %v4978_v25 = vld [vmem:[#allocation7 + $0x1b8] sm:$0xff] }
  0xa2   : > { %356 = vst [vmem:[#allocation2 + $0xb1] sm:$0xff] %v323_v35  ;;  %v5613_v40 = vpack.c.bf16 %v576_v37, %v575_v36  ;;  %v591_v41 = vld [vmem:[#allocation2 + $0x138] sm:$0xff]  ;;  %1918 = vmatpush.bf16.msra.mxu2 %v4978_v25  ;;  %v4939_v35 = vld [vmem:[#allocation7 + $0x80] sm:$0xff]  ;;  %2096 = vmatpush.bf16.msra.mxu0 %v4994_v32 }
  0xa3   : > { %371 = vst [vmem:[#allocation2 + $0x169] sm:$0xff] %v338_v38  ;;  %v592_v42 = vld [vmem:[#allocation2 + $0x140] sm:$0xff]  ;;  %1495 = vmatpush.bf16.msrb.mxu1 %v4943_v9  ;;  %v4986_v26 = vld [vmem:[#allocation7 + $0x1f8] sm:$0xff] }
  0xa4   : > { %372 = vst [vmem:[#allocation2 + $0x171] sm:$0xff] %v339_v39  ;;  %v699_v43 = vpack.c.bf16 %v592_v42, %v591_v41  ;;  %v577_v53 = vld [vmem:[#allocation2 + $0x90] sm:$0xff]  ;;  %2007 = vmatpush.bf16.msra.mxu3 %v4986_v26  ;;  %v439_v39 = vld [vmem:[#allocation2 + $0x2] sm:$0xff] }
  0xa5   : > { %1025 = vmatmul.bf16.gmra.mxu1 %v5606_v28  ;;  %1065 = vmatmul.bf16.gmra.mxu3 %v703_v29  ;;  %357 = vst [vmem:[#allocation2 + $0xc1] sm:$0xff] %v324_v51  ;;  %v578_v54 = vld [vmem:[#allocation2 + $0x98] sm:$0xff]  ;;  %v440_v41 = vld [vmem:[#allocation2 + $0xa] sm:$0xff] }
  0xa6   : > { %358 = vst [vmem:[#allocation2 + $0xc9] sm:$0xff] %v325_v52  ;;  %v5623_v58 = vpack.c.bf16 %v578_v54, %v577_v53  ;;  %v593_v59 = vld [vmem:[#allocation2 + $0x150] sm:$0xff]  ;;  %v473_v42 = vpack.c.bf16 %v440_v41, %v439_v39  ;;  %v472_v52 = vpack.c.bf16 %v408_v49, %v407_v48  ;;  %v631_v53 = vld [vmem:[#allocation2 + $0x1a] sm:$0xff]  ;;  %v632_v54 = vld [vmem:[#allocation2 + $0x22] sm:$0xff]  ;;  %2097 = vmatpush.bf16.msra.mxu0 %v4993_v3 }
  0xa7   : > { %373 = vst [vmem:[#allocation2 + $0x181] sm:$0xff] %v340_v55  ;;  %v594_v61 = vld [vmem:[#allocation2 + $0x158] sm:$0xff]  ;;  %1496 = vmatpush.bf16.msrb.mxu1 %v4942_v14  ;;  %v665_v55 = vpack.c.bf16 %v632_v54, %v631_v53  ;;  %v4976_v39 = vld [vmem:[#allocation7 + $0x1a8] sm:$0xff] }
  0xa8   : > { %921 = vmatmul.bf16.gmra.mxu0 %v5593_v7  ;;  %374 = vst [vmem:[#allocation2 + $0x189] sm:$0xff] %v341_v57  ;;  %v702_v62 = vpack.c.bf16 %v594_v61, %v593_v59  ;;  %v579_v6 = vld [vmem:[#allocation2 + $0xa8] sm:$0xff]  ;;  %v639_v3 = vld [vmem:[#allocation2 + $0x7a] sm:$0xff] }
  0xa9   : > { %v580_v8 = vld [vmem:[#allocation2 + $0xb0] sm:$0xff]  ;;  %v4984_v41 = vld [vmem:[#allocation7 + $0x1e8] sm:$0xff] }
  0xaa   : > { %v595_v12 = vld [vmem:[#allocation2 + $0x168] sm:$0xff] }
  0xab   : > { %v596_v13 = vld [vmem:[#allocation2 + $0x170] sm:$0xff]  ;;  %1497 = vmatpush.bf16.msrb.mxu1 %v4941_v22  ;;  %v637_v49 = vld [vmem:[#allocation2 + $0x62] sm:$0xff] }
  0xac   : > { %v705_v15 = vpack.c.bf16 %v596_v13, %v595_v12 }
  0xad   : > { %v582_v29 = vld [vmem:[#allocation2 + $0xc8] sm:$0xff] }
  0xae   : > { %961 = vmatmul.bf16.gmra.mxu2 %v693_v10  ;;  %v5629_v10 = vpack.c.bf16 %v580_v8, %v579_v6  ;;  %v597_v37 = vld [vmem:[#allocation2 + $0x180] sm:$0xff]  ;;  %v633_v6 = vld [vmem:[#allocation2 + $0x32] sm:$0xff] }
  0xaf   : > { %1498 = vmatpush.bf16.msrb.mxu1 %v4940_v31  ;;  %v598_v38 = vld [vmem:[#allocation2 + $0x188] sm:$0xff]  ;;  %v634_v8 = vld [vmem:[#allocation2 + $0x3a] sm:$0xff] }
  0xb0   : > { %v668_v12 = vpack.c.bf16 %v634_v8, %v633_v6 }
  0xb3   : > { %1499 = vmatpush.bf16.msrb.mxu1 %v4939_v35 }
  0xb5   : > { %1030 = vmatmul.bf16.gmra.mxu1 %v5616_v44  ;;  %1070 = vmatmul.bf16.gmra.mxu3 %v706_v46  ;;  %v708_v46 = vpack.c.bf16 %v598_v38, %v597_v37 }
  0xb8   : > { %926 = vmatmul.bf16.gmra.mxu0 %v5603_v23 }
  0xbe   : > { %966 = vmatmul.bf16.gmra.mxu2 %v696_v27  ;;  %v581_v27 = vld [vmem:[#allocation2 + $0xc0] sm:$0xff] }
  0xbf   : > { %v5636_v36 = vpack.c.bf16 %v582_v29, %v581_v27  ;;  %v635_v27 = vld [vmem:[#allocation2 + $0x4a] sm:$0xff] }
  0xc5   : > { %1035 = vmatmul.bf16.gmra.mxu1 %v5626_v63  ;;  %1075 = vmatmul.bf16.gmra.mxu3 %v709_v0  ;;  %v4985_v0 = vld [vmem:[#allocation7 + $0x1f0] sm:$0xff] }
  0xc6   : > { %2008 = vmatpush.bf16.msra.mxu3 %v4985_v0 }
  0xc8   : > { %931 = vmatmul.bf16.gmra.mxu0 %v5613_v40 }
  0xca   : > { %2009 = vmatpush.bf16.msra.mxu3 %v4984_v41 }
  0xce   : > { %971 = vmatmul.bf16.gmra.mxu2 %v699_v43 }
  0xd1   : > { %v912_v16 = vpop.f32.mrf.mxu0 }
  0xd2   : > { %v1001_v17 = vpop.f32.mrf.mxu1 }
  0xd3   : > { %v5632_v19 = vadd.f32 %v1001_v17, %v912_v16 }
  0xd5   : > { %1322 = vmatmul.bf16.vlgmr.msrb.gmra.mxu3 %v471_v20  ;;  %1500 = vmatmul.bf16.vlgmr.msrb.gmra.mxu1 %v473_v42 }
  0xd8   : > { %936 = vmatmul.bf16.gmra.mxu0 %v5623_v58  ;;  %v1041_v30 = vpop.f32.mrf.mxu3 }
  0xd9   : > { %v5640_v59 = vpop.f32.mrf.mxu0 }
  0xda   : > { %v5634_v34 = vpop.f32.mrf.mxu1 }
  0xde   : > { %976 = vmatmul.bf16.gmra.mxu2 %v702_v62  ;;  %v4977_v62 = vld [vmem:[#allocation7 + $0x1b0] sm:$0xff] }
  0xdf   : > { %1919 = vmatpush.bf16.msra.mxu2 %v4977_v62 }
  0xe0   : > { %v1043_v43 = vpop.f32.mrf.mxu3 }
  0xe2   : > { %v1006_v47 = vpop.f32.mrf.mxu1 }
  0xe3   : > { %1920 = vmatpush.bf16.msra.mxu2 %v4976_v39 }
  0xe5   : > { %1327 = vmatmul.bf16.gmra.mxu3 %v5504_v21  ;;  %1505 = vmatmul.bf16.gmra.mxu1 %v665_v55 }
  0xe8   : > { %941 = vmatmul.bf16.gmra.mxu0 %v5629_v10  ;;  %v1046_v50 = vpop.f32.mrf.mxu3 }
  0xea   : > { %v1008_v51 = vpop.f32.mrf.mxu1 }
  0xee   : > { %981 = vmatmul.bf16.gmra.mxu2 %v705_v15 }
  0xf0   : > { %v1048_v57 = vpop.f32.mrf.mxu3 }
  0xf2   : > { %v1011_v61 = vpop.f32.mrf.mxu1 }
  0xf5   : > { %1332 = vmatmul.bf16.gmra.mxu3 %v5583_v56  ;;  %1510 = vmatmul.bf16.gmra.mxu1 %v668_v12 }
  0xf8   : > { %946 = vmatmul.bf16.gmra.mxu0 %v5636_v36  ;;  %v1051_v2 = vpop.f32.mrf.mxu3 }
  0xfa   : > { %v1013_v4 = vpop.f32.mrf.mxu1 }
  0xfe   : > { %986 = vmatmul.bf16.gmra.mxu2 %v708_v46  ;;  %v4992_v46 = vld [vmem:[#allocation7 + $0x228] sm:$0xff] }
  0xff   : > { %2098 = vmatpush.bf16.msra.mxu0 %v4992_v46 }
 0x100   : > { %v1053_v56 = vpop.f32.mrf.mxu3 }
 0x102   : > { %v1016_v15 = vpop.f32.mrf.mxu1 }
 0x105   : > { %1337 = vmatmul.bf16.gmra.mxu3 %v5593_v7 }
 0x108   : > { %1411 = vmatmul.bf16.vlgmr.msrb.gmra.mxu0 %v472_v52  ;;  %v1056_v22 = vpop.f32.mrf.mxu3 }
 0x10a   : > { %v1018_v25 = vpop.f32.mrf.mxu1 }
 0x10e   : > { %1089 = vmatmul.bf16.vlgmr.msrb.gmra.mxu2 %v665_v55 }
 0x110   : > { %v1058_v35 = vpop.f32.mrf.mxu3 }
 0x111   : > { %v952_v21 = vpop.f32.mrf.mxu2 }
 0x112   : > { %v5643_v1 = vadd.f32 %v1041_v30, %v952_v21  ;;  %v1021_v37 = vpop.f32.mrf.mxu1 }
 0x115   : > { %v917_v5 = vpop.f32.mrf.mxu0  ;;  %1342 = vmatmul.bf16.gmra.mxu3 %v5603_v23 }
 0x116   : > { %v5645_v9 = vadd.f32 %v1006_v47, %v917_v5 }
 0x118   : > { %1416 = vmatmul.bf16.gmra.mxu0 %v5532_v24  ;;  %v636_v24 = vld [vmem:[#allocation2 + $0x52] sm:$0xff] }
 0x119   : > { %v954_v13 = vpop.f32.mrf.mxu2  ;;  %v671_v30 = vpack.c.bf16 %v636_v24, %v635_v27  ;;  %v641_v24 = vld [vmem:[#allocation2 + $0x92] sm:$0xff] }
 0x11a   : > { %v5648_v14 = vadd.f32 %v1043_v43, %v954_v13  ;;  %v1023_v47 = vpop.f32.mrf.mxu1 }
 0x11b   : > { %1515 = vmatmul.bf16.gmra.mxu1 %v671_v30 }
 0x11d   : > { %v919_v16 = vpop.f32.mrf.mxu0 }
 0x11e   : > { %1094 = vmatmul.bf16.gmra.mxu2 %v668_v12  ;;  %v5650_v17 = vadd.f32 %v1008_v51, %v919_v16  ;;  %v4983_v16 = vld [vmem:[#allocation7 + $0x1e0] sm:$0xff] }
 0x11f   : > { %2010 = vmatpush.bf16.msra.mxu3 %v4983_v16 }
 0x121   : > { %v957_v18 = vpop.f32.mrf.mxu2 }
 0x122   : > { %v5653_v20 = vadd.f32 %v1046_v50, %v957_v18  ;;  %v638_v50 = vld [vmem:[#allocation2 + $0x6a] sm:$0xff] }
 0x123   : > { %v674_v52 = vpack.c.bf16 %v638_v50, %v637_v49  ;;  %v643_v49 = vld [vmem:[#allocation2 + $0xaa] sm:$0xff]  ;;  %v644_v50 = vld [vmem:[#allocation2 + $0xb2] sm:$0xff] }
 0x125   : > { %v922_v26 = vpop.f32.mrf.mxu0  ;;  %1347 = vmatmul.bf16.gmra.mxu3 %v5613_v40 }
 0x126   : > { %v5655_v29 = vadd.f32 %v1011_v61, %v922_v26  ;;  %v4991_v26 = vld [vmem:[#allocation7 + $0x220] sm:$0xff] }
 0x127   : > { %2099 = vmatpush.bf16.msra.mxu0 %v4991_v26 }
 0x128   : > { %1421 = vmatmul.bf16.gmra.mxu0 %v5555_v33  ;;  %v1061_v33 = vpop.f32.mrf.mxu3 }
 0x129   : > { %v959_v31 = vpop.f32.mrf.mxu2 }
 0x12a   : > { %v5658_v32 = vadd.f32 %v1048_v57, %v959_v31  ;;  %v1026_v57 = vpop.f32.mrf.mxu1 }
 0x12b   : > { %1520 = vmatmul.bf16.gmra.mxu1 %v674_v52 }
 0x12d   : > { %v924_v7 = vpop.f32.mrf.mxu0 }
 0x12e   : > { %1099 = vmatmul.bf16.gmra.mxu2 %v671_v30  ;;  %v5660_v38 = vadd.f32 %v1013_v4, %v924_v7  ;;  %v640_v4 = vld [vmem:[#allocation2 + $0x82] sm:$0xff]  ;;  %v642_v30 = vld [vmem:[#allocation2 + $0x9a] sm:$0xff] }
 0x12f   : > { %v677_v6 = vpack.c.bf16 %v640_v4, %v639_v3 }
 0x130   : > { %v1063_v23 = vpop.f32.mrf.mxu3 }
 0x131   : > { %v962_v42 = vpop.f32.mrf.mxu2 }
 0x132   : > { %v5663_v43 = vadd.f32 %v1051_v2, %v962_v42  ;;  %v1028_v5 = vpop.f32.mrf.mxu1 }
 0x135   : > { %v927_v48 = vpop.f32.mrf.mxu0  ;;  %1352 = vmatmul.bf16.gmra.mxu3 %v5623_v58 }
 0x136   : > { %v5665_v51 = vadd.f32 %v1016_v15, %v927_v48  ;;  %v4975_v15 = vld [vmem:[#allocation7 + $0x1a0] sm:$0xff] }
 0x137   : > { %1921 = vmatpush.bf16.msra.mxu2 %v4975_v15 }
 0x138   : > { %1426 = vmatmul.bf16.gmra.mxu0 %v5576_v45  ;;  %v1066_v21 = vpop.f32.mrf.mxu3 }
 0x139   : > { %v964_v53 = vpop.f32.mrf.mxu2 }
 0x13a   : > { %v5668_v54 = vadd.f32 %v1053_v56, %v964_v53  ;;  %v683_v53 = vpack.c.bf16 %v644_v50, %v643_v49 }
 0x13b   : > { %1525 = vmatmul.bf16.gmra.mxu1 %v677_v6 }
 0x13d   : > { %v929_v55 = vpop.f32.mrf.mxu0 }
 0x13e   : > { %1104 = vmatmul.bf16.gmra.mxu2 %v674_v52  ;;  %v5670_v61 = vadd.f32 %v1018_v25, %v929_v55 }
 0x140   : > { %v1068_v13 = vpop.f32.mrf.mxu3 }
 0x141   : > { %v967_v62 = vpop.f32.mrf.mxu2 }
 0x142   : > { %v5673_v0 = vadd.f32 %v1056_v22, %v967_v62  ;;  %v1031_v22 = vpop.f32.mrf.mxu1 }
 0x145   : > { %v932_v2 = vpop.f32.mrf.mxu0  ;;  %1357 = vmatmul.bf16.gmra.mxu3 %v5629_v10 }
 0x146   : > { %v5675_v45 = vadd.f32 %v1021_v37, %v932_v2  ;;  %v4982_v2 = vld [vmem:[#allocation7 + $0x1d8] sm:$0xff] }
 0x147   : > { %2011 = vmatpush.bf16.msra.mxu3 %v4982_v2  ;;  %v396_v2 = vld [vmem:[#allocation2 + $0xf8] sm:$0xff] }
 0x148   : > { %1431 = vmatmul.bf16.gmra.mxu0 %v5586_v60  ;;  %v1071_v60 = vpop.f32.mrf.mxu3 }
 0x149   : > { %v969_v8 = vpop.f32.mrf.mxu2 }
 0x14a   : > { %v5678_v12 = vadd.f32 %v1058_v35, %v969_v8  ;;  %v680_v35 = vpack.c.bf16 %v642_v30, %v641_v24  ;;  %v1033_v39 = vpop.f32.mrf.mxu1 }
 0x14c   : > { %1530 = vmatmul.bf16.gmra.mxu1 %v680_v35 }
 0x14d   : > { %v934_v56 = vpop.f32.mrf.mxu0 }
 0x14e   : > { %1109 = vmatmul.bf16.gmra.mxu2 %v677_v6  ;;  %v5680_v40 = vadd.f32 %v1023_v47, %v934_v56  ;;  %v4990_v6 = vld [vmem:[#allocation7 + $0x218] sm:$0xff]  ;;  %v646_v56 = vld [vmem:[#allocation2 + $0xca] sm:$0xff] }
 0x14f   : > { %2100 = vmatpush.bf16.msra.mxu0 %v4990_v6  ;;  %v4981_v6 = vld [vmem:[#allocation7 + $0x1d0] sm:$0xff] }
 0x150   : > { %v1073_v58 = vpop.f32.mrf.mxu3  ;;  %2012 = vmatpush.bf16.msra.mxu3 %v4981_v6 }
 0x151   : > { %v972_v18 = vpop.f32.mrf.mxu2 }
 0x152   : > { %v5683_v25 = vadd.f32 %v1061_v33, %v972_v18 }
 0x155   : > { %v937_v27 = vpop.f32.mrf.mxu0  ;;  %1362 = vmatmul.bf16.gmra.mxu3 %v5636_v36 }
 0x156   : > { %v5685_v31 = vadd.f32 %v1026_v57, %v937_v27  ;;  %v393_v27 = vld [vmem:[#allocation2 + $0xd8] sm:$0xff] }
 0x158   : > { %1436 = vmatmul.bf16.gmra.mxu0 %v5596_v11  ;;  %v1076_v47 = vpop.f32.mrf.mxu3  ;;  %v1036_v11 = vpop.f32.mrf.mxu1 }
 0x159   : > { %v974_v37 = vpop.f32.mrf.mxu2 }
 0x15a   : > { %v5688_v7 = vadd.f32 %v1063_v23, %v974_v37 }
 0x15c   : > { %1535 = vmatmul.bf16.gmra.mxu1 %v683_v53 }
 0x15d   : > { %v939_v41 = vpop.f32.mrf.mxu0 }
 0x15e   : > { %1114 = vmatmul.bf16.gmra.mxu2 %v680_v35  ;;  %v5690_v42 = vadd.f32 %v1028_v5, %v939_v41 }
 0x160   : > { %v1078_v57 = vpop.f32.mrf.mxu3  ;;  %v1038_v3 = vpop.f32.mrf.mxu1 }
 0x161   : > { %v977_v33 = vpop.f32.mrf.mxu2 }
 0x162   : > { %v5693_v46 = vadd.f32 %v1066_v21, %v977_v33  ;;  %v4974_v21 = vld [vmem:[#allocation7 + $0x198] sm:$0xff] }
 0x163   : > { %1922 = vmatpush.bf16.msra.mxu2 %v4974_v21  ;;  %v5026_v21 = vld [vmem:[#allocation9 + $0xf8] sm:$0xff] }
 0x164   : > { %2810 = vmatpush.bf16.msra.mxu1 %v5026_v21 }
 0x165   : > { %v942_v48 = vpop.f32.mrf.mxu0 }
 0x166   : > { %v5695_v52 = vadd.f32 %v1031_v22, %v942_v48  ;;  %v648_v48 = vld [vmem:[#allocation2 + $0xe2] sm:$0xff] }
 0x168   : > { %1441 = vmatmul.bf16.gmra.mxu0 %v5606_v28  ;;  %v1323_v28 = vpop.f32.mrf.mxu3  ;;  %v1501_v16 = vpop.f32.mrf.mxu1 }
 0x169   : > { %v979_v23 = vpop.f32.mrf.mxu2 }
 0x16a   : > { %v5698_v55 = vadd.f32 %v1068_v13, %v979_v23  ;;  %v645_v13 = vld [vmem:[#allocation2 + $0xc2] sm:$0xff] }
 0x16b   : > { %v686_v18 = vpack.c.bf16 %v646_v56, %v645_v13  ;;  %v426_v13 = vld [vmem:[#allocation2 + $0xe1] sm:$0xff] }
 0x16d   : > { %v944_v62 = vpop.f32.mrf.mxu0  ;;  %1540 = vmatmul.bf16.gmra.mxu1 %v686_v18 }
 0x16e   : > { %1119 = vmatmul.bf16.gmra.mxu2 %v683_v53  ;;  %v5700_v10 = vadd.f32 %v1033_v39, %v944_v62  ;;  %v395_v62 = vld [vmem:[#allocation2 + $0xf0] sm:$0xff] }
 0x170   : > { %v1325_v36 = vpop.f32.mrf.mxu3  ;;  %v1503_v37 = vpop.f32.mrf.mxu1 }
 0x171   : > { %v982_v4 = vpop.f32.mrf.mxu2 }
 0x172   : > { %v5703_v5 = vadd.f32 %v1071_v60, %v982_v4  ;;  %v394_v60 = vld [vmem:[#allocation2 + $0xe0] sm:$0xff]  ;;  %v4973_v4 = vld [vmem:[#allocation7 + $0x190] sm:$0xff] }
 0x173   : > { %v5710_v30 = vpack.c.bf16 %v394_v60, %v393_v27  ;;  %1923 = vmatpush.bf16.msra.mxu2 %v4973_v4  ;;  %v4989_v60 = vld [vmem:[#allocation7 + $0x210] sm:$0xff]  ;;  %v397_v4 = vld [vmem:[#allocation2 + $0x108] sm:$0xff] }
 0x174   : > { %2101 = vmatpush.bf16.msra.mxu0 %v4989_v60 }
 0x175   : > { %v947_v8 = vpop.f32.mrf.mxu0  ;;  %1367 = vmatmul.bf16.gmra.mxu3 %v5710_v30 }
 0x176   : > { %v5705_v15 = vadd.f32 %v1036_v11, %v947_v8 }
 0x178   : > { %1446 = vmatmul.bf16.gmra.mxu0 %v5616_v44  ;;  %v1328_v44 = vpop.f32.mrf.mxu3  ;;  %v5717_v49 = vpop.f32.mrf.mxu1 }
 0x179   : > { %v984_v22 = vpop.f32.mrf.mxu2 }
 0x17a   : > { %v5708_v26 = vadd.f32 %v1073_v58, %v984_v22  ;;  %v647_v58 = vld [vmem:[#allocation2 + $0xda] sm:$0xff] }
 0x17b   : > { %v689_v50 = vpack.c.bf16 %v648_v48, %v647_v58  ;;  %v650_v58 = vld [vmem:[#allocation2 + $0xfa] sm:$0xff] }
 0x17d   : > { %v949_v24 = vpop.f32.mrf.mxu0  ;;  %1545 = vmatmul.bf16.gmra.mxu1 %v689_v50 }
 0x17e   : > { %1124 = vmatmul.bf16.gmra.mxu2 %v686_v18  ;;  %v5712_v35 = vadd.f32 %v1038_v3, %v949_v24  ;;  %v5724_v3 = vpack.c.bf16 %v396_v2, %v395_v62 }
 0x180   : > { %v5722_v23 = vpop.f32.mrf.mxu3  ;;  %v5727_v8 = vpop.f32.mrf.mxu1 }
 0x181   : > { %v987_v39 = vpop.f32.mrf.mxu2 }
 0x182   : > { %v5715_v41 = vadd.f32 %v1076_v47, %v987_v39  ;;  %v649_v39 = vld [vmem:[#allocation2 + $0xf2] sm:$0xff] }
 0x183   : > { %v692_v21 = vpack.c.bf16 %v650_v58, %v649_v39 }
 0x185   : > { %v1412_v33 = vpop.f32.mrf.mxu0  ;;  %1372 = vmatmul.bf16.gmra.mxu3 %v5724_v3 }
 0x188   : > { %1451 = vmatmul.bf16.gmra.mxu0 %v5626_v63  ;;  %v5730_v18 = vpop.f32.mrf.mxu3 }
 0x189   : > { %v989_v11 = vpop.f32.mrf.mxu2 }
 0x18a   : > { %v5720_v53 = vadd.f32 %v1078_v57, %v989_v11  ;;  %v425_v57 = vld [vmem:[#allocation2 + $0xd9] sm:$0xff]  ;;  %v1004_v11 = vadd.f32 %v5634_v34, %v5640_v59 }
 0x18b   : > { %v5732_v27 = vpack.c.bf16 %v426_v13, %v425_v57 }
 0x18d   : > { %v1414_v47 = vpop.f32.mrf.mxu0  ;;  %1550 = vmatmul.bf16.gmra.mxu1 %v692_v21 }
 0x18e   : > { %1129 = vmatmul.bf16.gmra.mxu2 %v689_v50  ;;  %v5734_v50 = vpop.f32.mrf.mxu1 }
 0x190   : > { %v5741_v2 = vpop.f32.mrf.mxu3 }
 0x191   : > { %v1090_v63 = vpop.f32.mrf.mxu2 }
 0x192   : > { %v1091_v56 = vadd.f32 %v1090_v63, %v5632_v19  ;;  %v398_v63 = vld [vmem:[#allocation2 + $0x110] sm:$0xff] }
 0x193   : > { %v5743_v57 = vpack.c.bf16 %v398_v63, %v397_v4 }
 0x194   : > { %v1324_v22 = vadd.f32 %v1323_v28, %v1091_v56  ;;  %v427_v56 = vld [vmem:[#allocation2 + $0xf1] sm:$0xff] }
 0x195   : > { %v1417_v24 = vpop.f32.mrf.mxu0  ;;  %1377 = vmatmul.bf16.gmra.mxu3 %v5743_v57 }
 0x196   : > { %v1413_v48 = vadd.f32 %v1412_v33, %v1324_v22  ;;  %v5746_v34 = vpop.f32.mrf.mxu1  ;;  %v428_v22 = vld [vmem:[#allocation2 + $0xf9] sm:$0xff] }
 0x197   : > { %v5753_v58 = vpack.c.bf16 %v428_v22, %v427_v56  ;;  %v4972_v22 = vld [vmem:[#allocation7 + $0x188] sm:$0xff] }
 0x198   : > { %v5738_v62 = vadd.f32 %v1501_v16, %v1413_v48  ;;  %1456 = vmatmul.bf16.gmra.mxu0 %v5732_v27  ;;  %v5751_v39 = vpop.f32.mrf.mxu3  ;;  %1924 = vmatpush.bf16.msra.mxu2 %v4972_v22 }
 0x199   : > { %v1092_v19 = vpop.f32.mrf.mxu2 }
 0x19a   : > { %v1093_v28 = vadd.f32 %v1092_v19, %v1004_v11  ;;  %v651_v11 = vld [vmem:[#allocation2 + $0x10a] sm:$0xff] }
 0x19c   : > { %v1326_v6 = vadd.f32 %v1325_v36, %v1093_v28 }
 0x19d   : > { %v1419_v33 = vpop.f32.mrf.mxu0 }
 0x19e   : > { %1134 = vmatmul.bf16.gmra.mxu2 %v692_v21  ;;  %v1415_v13 = vadd.f32 %v1414_v47, %v1326_v6  ;;  %v652_v21 = vld [vmem:[#allocation2 + $0x112] sm:$0xff]  ;;  %v5755_v19 = vpop.f32.mrf.mxu1 }
 0x1a0   : > { %v5748_v59 = vadd.f32 %v1503_v37, %v1415_v13  ;;  %v695_v37 = vpack.c.bf16 %v652_v21, %v651_v11  ;;  %v5762_v6 = vpop.f32.mrf.mxu3  ;;  %v5025_v13 = vld [vmem:[#allocation9 + $0xf0] sm:$0xff] }
 0x1a1   : > { %v1095_v16 = vpop.f32.mrf.mxu2  ;;  %2811 = vmatpush.bf16.msra.mxu1 %v5025_v13  ;;  %v429_v11 = vld [vmem:[#allocation2 + $0x109] sm:$0xff]  ;;  %v430_v21 = vld [vmem:[#allocation2 + $0x111] sm:$0xff] }
 0x1a2   : > { %v1096_v60 = vadd.f32 %v1095_v16, %v5645_v9  ;;  %1555 = vmatmul.bf16.gmra.mxu1 %v695_v37  ;;  %v400_v16 = vld [vmem:[#allocation2 + $0x128] sm:$0xff] }
 0x1a3   : > { %v654_v13 = vld [vmem:[#allocation2 + $0x12a] sm:$0xff] }
 0x1a4   : > { %v1329_v36 = vadd.f32 %v1328_v44, %v1096_v60  ;;  %v399_v44 = vld [vmem:[#allocation2 + $0x120] sm:$0xff]  ;;  %v4980_v60 = vld [vmem:[#allocation7 + $0x1c8] sm:$0xff] }
 0x1a5   : > { %v1422_v48 = vpop.f32.mrf.mxu0  ;;  %v5765_v56 = vpack.c.bf16 %v400_v16, %v399_v44  ;;  %2013 = vmatpush.bf16.msra.mxu3 %v4980_v60 }
 0x1a6   : > { %v1418_v47 = vadd.f32 %v1417_v24, %v1329_v36  ;;  %v5768_v36 = vpop.f32.mrf.mxu1 }
 0x1a7   : > { %1382 = vmatmul.bf16.gmra.mxu3 %v5765_v56 }
 0x1a8   : > { %v5758_v28 = vadd.f32 %v5717_v49, %v1418_v47  ;;  %1461 = vmatmul.bf16.gmra.mxu0 %v5753_v58 }
 0x1a9   : > { %v1097_v4 = vpop.f32.mrf.mxu2 }
 0x1aa   : > { %v1098_v9 = vadd.f32 %v1097_v4, %v5650_v17  ;;  %v5774_v4 = vpop.f32.mrf.mxu3 }
 0x1ac   : > { %v1331_v63 = vadd.f32 %v5722_v23, %v1098_v9  ;;  %v4988_v9 = vld [vmem:[#allocation7 + $0x208] sm:$0xff] }
 0x1ad   : > { %v1424_v24 = vpop.f32.mrf.mxu0  ;;  %2102 = vmatpush.bf16.msra.mxu0 %v4988_v9 }
 0x1ae   : > { %1139 = vmatmul.bf16.gmra.mxu2 %v695_v37  ;;  %v1420_v49 = vadd.f32 %v1419_v33, %v1331_v63  ;;  %v5777_v37 = vpack.c.bf16 %v430_v21, %v429_v11  ;;  %v653_v63 = vld [vmem:[#allocation2 + $0x122] sm:$0xff] }
 0x1af   : > { %v698_v22 = vpack.c.bf16 %v654_v13, %v653_v63  ;;  %v402_v21 = vld [vmem:[#allocation2 + $0x140] sm:$0xff]  ;;  %v432_v13 = vld [vmem:[#allocation2 + $0x129] sm:$0xff] }
 0x1b0   : > { %v5771_v17 = vadd.f32 %v5727_v8, %v1420_v49  ;;  %v5779_v8 = vpop.f32.mrf.mxu1  ;;  %v431_v63 = vld [vmem:[#allocation2 + $0x121] sm:$0xff] }
 0x1b1   : > { %v1100_v23 = vpop.f32.mrf.mxu2 }
 0x1b2   : > { %v1101_v47 = vadd.f32 %v1100_v23, %v5655_v29  ;;  %1560 = vmatmul.bf16.gmra.mxu1 %v698_v22  ;;  %v401_v23 = vld [vmem:[#allocation2 + $0x138] sm:$0xff] }
 0x1b4   : > { %v1334_v33 = vadd.f32 %v5730_v18, %v1101_v47  ;;  %v5786_v18 = vpop.f32.mrf.mxu3  ;;  %v5789_v47 = vpack.c.bf16 %v402_v21, %v401_v23  ;;  %v656_v23 = vld [vmem:[#allocation2 + $0x142] sm:$0xff] }
 0x1b5   : > { %v1427_v44 = vpop.f32.mrf.mxu0 }
 0x1b6   : > { %v1423_v16 = vadd.f32 %v1422_v48, %v1334_v33 }
 0x1b7   : > { %1387 = vmatmul.bf16.gmra.mxu3 %v5789_v47 }
 0x1b8   : > { %v5782_v49 = vadd.f32 %v5734_v50, %v1423_v16  ;;  %1466 = vmatmul.bf16.gmra.mxu0 %v5777_v37  ;;  %v5792_v50 = vpop.f32.mrf.mxu1 }
 0x1b9   : > { %v1102_v29 = vpop.f32.mrf.mxu2  ;;  %6724 = vst [vmem:[#allocation14_spill] sm:$0xff] %v5792_v50 }
 0x1ba   : > { %v1103_v60 = vadd.f32 %v1102_v29, %v5660_v38 }
 0x1bc   : > { %v1336_v11 = vadd.f32 %v5741_v2, %v1103_v60  ;;  %v5798_v29 = vpop.f32.mrf.mxu3  ;;  %v5801_v60 = vpack.c.bf16 %v432_v13, %v431_v63  ;;  %v5024_v13 = vld [vmem:[#allocation9 + $0xe8] sm:$0xff] }
 0x1bd   : > { %v1429_v48 = vpop.f32.mrf.mxu0  ;;  %2812 = vmatpush.bf16.msra.mxu1 %v5024_v13 }
 0x1be   : > { %1144 = vmatmul.bf16.gmra.mxu2 %v698_v22  ;;  %v1425_v33 = vadd.f32 %v1424_v24, %v1336_v11  ;;  %v655_v24 = vld [vmem:[#allocation2 + $0x13a] sm:$0xff] }
 0x1c0   : > { %v5795_v9 = vadd.f32 %v5746_v34, %v1425_v33  ;;  %v5803_v21 = vpop.f32.mrf.mxu1  ;;  %v701_v33 = vpack.c.bf16 %v656_v23, %v655_v24  ;;  %v4971_v24 = vld [vmem:[#allocation7 + $0x180] sm:$0xff] }
 0x1c1   : > { %v1105_v38 = vpop.f32.mrf.mxu2  ;;  %v4979_v23 = vld [vmem:[#allocation7 + $0x1c0] sm:$0xff]  ;;  %1925 = vmatpush.bf16.msra.mxu2 %v4971_v24 }
 0x1c2   : > { %v1106_v16 = vadd.f32 %v1105_v38, %v5665_v51  ;;  %1565 = vmatmul.bf16.gmra.mxu1 %v701_v33  ;;  %2014 = vmatpush.bf16.msra.mxu3 %v4979_v23 }
 0x1c4   : > { %v1339_v2 = vadd.f32 %v5751_v39, %v1106_v16  ;;  %v5810_v38 = vpop.f32.mrf.mxu3  ;;  %v403_v39 = vld [vmem:[#allocation2 + $0x150] sm:$0xff]  ;;  %v404_v16 = vld [vmem:[#allocation2 + $0x158] sm:$0xff] }
 0x1c5   : > { %v1432_v22 = vpop.f32.mrf.mxu0 }
 0x1c6   : > { %v1428_v11 = vadd.f32 %v1427_v44, %v1339_v2  ;;  %v5813_v2 = vpack.c.bf16 %v404_v16, %v403_v39 }
 0x1c8   : > { %v5806_v34 = vadd.f32 %v5755_v19, %v1428_v11  ;;  %1471 = vmatmul.bf16.gmra.mxu0 %v5801_v60  ;;  %6726 = vst [vmem:[#allocation16_spill] sm:$0xff] %v5813_v2  ;;  %1392 = vmatmul.bf16.gmra.mxu3 %v5813_v2  ;;  %v5816_v11 = vpop.f32.mrf.mxu1  ;;  %v657_v2 = vld [vmem:[#allocation2 + $0x152] sm:$0xff] }
 0x1c9   : > { %v1107_v50 = vpop.f32.mrf.mxu2  ;;  %6727 = vst [vmem:[#allocation17_spill] sm:$0xff] %v5816_v11 }
 0x1ca   : > { %6725 = vst [vmem:[#allocation15_spill] sm:$0xff] %v5806_v34  ;;  %v1108_v51 = vadd.f32 %v1107_v50, %v5670_v61  ;;  %v433_v50 = vld [vmem:[#allocation2 + $0x139] sm:$0xff] }
 0x1cb   : > { %v658_v34 = vld [vmem:[#allocation2 + $0x15a] sm:$0xff] }
 0x1cc   : > { %v1341_v63 = vadd.f32 %v5762_v6, %v1108_v51  ;;  %v434_v51 = vld [vmem:[#allocation2 + $0x141] sm:$0xff]  ;;  %v1353_v16 = vpop.f32.mrf.mxu3  ;;  %v704_v24 = vpack.c.bf16 %v658_v34, %v657_v2  ;;  %v435_v2 = vld [vmem:[#allocation2 + $0x151] sm:$0xff] }
 0x1cd   : > { %v1434_v44 = vpop.f32.mrf.mxu0 }
 0x1ce   : > { %1149 = vmatmul.bf16.gmra.mxu2 %v701_v33  ;;  %v1430_v19 = vadd.f32 %v1429_v48, %v1341_v63  ;;  %v5823_v33 = vpack.c.bf16 %v434_v51, %v433_v50  ;;  %v4987_v63 = vld [vmem:[#allocation7 + $0x200] sm:$0xff]  ;;  %v406_v51 = vld [vmem:[#allocation2 + $0x170] sm:$0xff] }
 0x1cf   : > { %2103 = vmatpush.bf16.msra.mxu0 %v4987_v63 }
 0x1d0   : > { %v5819_v61 = vadd.f32 %v5768_v36, %v1430_v19  ;;  %v1531_v36 = vpop.f32.mrf.mxu1 }
 0x1d1   : > { %v1110_v6 = vpop.f32.mrf.mxu2 }
 0x1d2   : > { %6728 = vst [vmem:[#allocation18_spill] sm:$0xff] %v5819_v61  ;;  %v1111_v39 = vadd.f32 %v1110_v6, %v5675_v45  ;;  %1570 = vmatmul.bf16.gmra.mxu1 %v704_v24 }
 0x1d4   : > { %v1344_v48 = vadd.f32 %v5774_v4, %v1111_v39  ;;  %v1355_v6 = vpop.f32.mrf.mxu3  ;;  %v405_v4 = vld [vmem:[#allocation2 + $0x168] sm:$0xff] }
 0x1d5   : > { %v1437_v13 = vpop.f32.mrf.mxu0  ;;  %v5831_v61 = vpack.c.bf16 %v406_v51, %v405_v4  ;;  %v660_v4 = vld [vmem:[#allocation2 + $0x172] sm:$0xff] }
 0x1d6   : > { %v1433_v11 = vadd.f32 %v1432_v22, %v1344_v48 }
 0x1d7   : > { %6730 = vst [vmem:[#allocation20_spill] sm:$0xff] %v5831_v61 }
 0x1d8   : > { %v5826_v19 = vadd.f32 %v5779_v8, %v1433_v11  ;;  %1476 = vmatmul.bf16.gmra.mxu0 %v5823_v33  ;;  %1397 = vmatmul.bf16.gmra.mxu3 %v5831_v61  ;;  %v5836_v8 = vpop.f32.mrf.mxu1  ;;  %v436_v11 = vld [vmem:[#allocation2 + $0x159] sm:$0xff] }
 0x1d9   : > { %v1112_v23 = vpop.f32.mrf.mxu2  ;;  %6732 = vst [vmem:[#allocation22_spill] sm:$0xff] %v5836_v8 }
 0x1da   : > { %6729 = vst [vmem:[#allocation19_spill] sm:$0xff] %v5826_v19  ;;  %v1113_v45 = vadd.f32 %v1112_v23, %v5680_v40  ;;  %v661_v19 = vld [vmem:[#allocation2 + $0x182] sm:$0xff] }
 0x1dc   : > { %v1346_v50 = vadd.f32 %v5786_v18, %v1113_v45  ;;  %v1358_v48 = vpop.f32.mrf.mxu3  ;;  %v5840_v18 = vpack.c.bf16 %v436_v11, %v435_v2  ;;  %v659_v45 = vld [vmem:[#allocation2 + $0x16a] sm:$0xff]  ;;  %v5023_v2 = vld [vmem:[#allocation9 + $0xe0] sm:$0xff] }
 0x1dd   : > { %v1439_v39 = vpop.f32.mrf.mxu0  ;;  %v707_v51 = vpack.c.bf16 %v660_v4, %v659_v45  ;;  %v1615_v11 = vld [vmem:[#allocation2 + $0x39] sm:$0xff]  ;;  %2813 = vmatpush.bf16.msra.mxu1 %v5023_v2  ;;  %v437_v45 = vld [vmem:[#allocation2 + $0x169] sm:$0xff]  ;;  %v438_v4 = vld [vmem:[#allocation2 + $0x171] sm:$0xff] }
 0x1de   : > { %1154 = vmatmul.bf16.gmra.mxu2 %v704_v24  ;;  %v5833_v22 = vadd.f32 %v1434_v44, %v1346_v50 }
 0x1e0   : > { %6731 = vst [vmem:[#allocation21_spill] sm:$0xff] %v5833_v22  ;;  %v1536_v44 = vpop.f32.mrf.mxu1 }
 0x1e1   : > { %v1115_v34 = vpop.f32.mrf.mxu2 }
 0x1e2   : > { %v1116_v40 = vadd.f32 %v1115_v34, %v5685_v31  ;;  %1575 = vmatmul.bf16.gmra.mxu1 %v707_v51  ;;  %v1614_v34 = vld [vmem:[#allocation2 + $0x31] sm:$0xff] }
 0x1e3   : > { %v1679_v22 = vpack.c.bf16 %v1615_v11, %v1614_v34  ;;  %v662_v34 = vld [vmem:[#allocation2 + $0x18a] sm:$0xff] }
 0x1e4   : > { %v1349_v63 = vadd.f32 %v5798_v29, %v1116_v40  ;;  %v1360_v31 = vpop.f32.mrf.mxu3  ;;  %v710_v2 = vpack.c.bf16 %v662_v34, %v661_v19 }
 0x1e5   : > { %v1442_v23 = vpop.f32.mrf.mxu0 }
 0x1e6   : > { %v1438_v24 = vadd.f32 %v1437_v13, %v1349_v63 }
 0x1e8   : > { %v5843_v50 = vadd.f32 %v5803_v21, %v1438_v24  ;;  %1481 = vmatmul.bf16.gmra.mxu0 %v5840_v18  ;;  %2015 = vmatmul.bf16.vlgmr.msra.gmra.mxu3 %v1679_v22  ;;  %v5850_v21 = vpop.f32.mrf.mxu1 }
 0x1e9   : > { %v1117_v8 = vpop.f32.mrf.mxu2  ;;  %6735 = vst [vmem:[#allocation25_spill] sm:$0xff] %v5850_v21  ;;  %v1616_v21 = vld [vmem:[#allocation2 + $0x49] sm:$0xff] }
 0x1ea   : > { %6733 = vst [vmem:[#allocation23_spill] sm:$0xff] %v5843_v50  ;;  %v1118_v61 = vadd.f32 %v1117_v8, %v5690_v42  ;;  %v5853_v50 = vpack.c.bf16 %v438_v4, %v437_v45 }
 0x1ec   : > { %v1351_v29 = vadd.f32 %v5810_v38, %v1118_v61  ;;  %v1363_v8 = vpop.f32.mrf.mxu3 }
 0x1ed   : > { %v1444_v40 = vpop.f32.mrf.mxu0 }
 0x1ee   : > { %1159 = vmatmul.bf16.gmra.mxu2 %v707_v51  ;;  %v5848_v13 = vadd.f32 %v1439_v39, %v1351_v29 }
 0x1f0   : > { %6734 = vst [vmem:[#allocation24_spill] sm:$0xff] %v5848_v13  ;;  %v1541_v22 = vpop.f32.mrf.mxu1 }
 0x1f1   : > { %v1120_v63 = vpop.f32.mrf.mxu2 }
 0x1f2   : > { %v1121_v42 = vadd.f32 %v1120_v63, %v5695_v52  ;;  %v1617_v63 = vld [vmem:[#allocation2 + $0x51] sm:$0xff] }
 0x1f3   : > { %v1682_v45 = vpack.c.bf16 %v1617_v63, %v1616_v21  ;;  %v1618_v63 = vld [vmem:[#allocation2 + $0x61] sm:$0xff] }
 0x1f4   : > { %v1354_v24 = vadd.f32 %v1353_v16, %v1121_v42  ;;  %v1365_v11 = vpop.f32.mrf.mxu3  ;;  %v1647_v42 = vld [vmem:[#allocation2 + $0x3a] sm:$0xff] }
 0x1f5   : > { %v1447_v38 = vpop.f32.mrf.mxu0 }
 0x1f6   : > { %v1443_v61 = vadd.f32 %v1442_v23, %v1354_v24 }
 0x1f8   : > { %v5855_v51 = vadd.f32 %v1531_v36, %v1443_v61  ;;  %1486 = vmatmul.bf16.gmra.mxu0 %v5853_v50  ;;  %2020 = vmatmul.bf16.gmra.mxu3 %v1682_v45  ;;  %v1646_v36 = vld [vmem:[#allocation2 + $0x32] sm:$0xff] }
 0x1f9   : > { %v1122_v39 = vpop.f32.mrf.mxu2  ;;  %v1680_v19 = vpack.c.bf16 %v1647_v42, %v1646_v36  ;;  %v1649_v42 = vld [vmem:[#allocation2 + $0x52] sm:$0xff] }
 0x1fa   : > { %6736 = vst [vmem:[#allocation26_spill] sm:$0xff] %v5855_v51  ;;  %v1123_v29 = vadd.f32 %v1122_v39, %v5700_v10  ;;  %v5862_v51 = vpop.f32.mrf.mxu1 }
 0x1fb   : > { %6738 = vst [vmem:[#allocation28_spill] sm:$0xff] %v5862_v51 }
 0x1fc   : > { %v1356_v52 = vadd.f32 %v1355_v6, %v1123_v29  ;;  %v1368_v61 = vpop.f32.mrf.mxu3  ;;  %v1582_v6 = vld [vmem:[#allocation2 + $0x30] sm:$0xff]  ;;  %v1583_v29 = vld [vmem:[#allocation2 + $0x38] sm:$0xff] }
 0x1fd   : > { %v1449_v16 = vpop.f32.mrf.mxu0 }
 0x1fe   : > { %1164 = vmatmul.bf16.gmra.mxu2 %v710_v2  ;;  %v5859_v4 = vadd.f32 %v1444_v40, %v1356_v52  ;;  %v1678_v2 = vpack.c.bf16 %v1583_v29, %v1582_v6  ;;  %v1584_v6 = vld [vmem:[#allocation2 + $0x48] sm:$0xff]  ;;  %v1585_v29 = vld [vmem:[#allocation2 + $0x50] sm:$0xff] }
 0x200   : > { %6737 = vst [vmem:[#allocation27_spill] sm:$0xff] %v5859_v4 }
 0x201   : > { %v1125_v23 = vpop.f32.mrf.mxu2 }
 0x202   : > { %v1126_v24 = vadd.f32 %v1125_v23, %v5705_v15  ;;  %v5022_v15 = vld [vmem:[#allocation9 + $0xd8] sm:$0xff]  ;;  %v1619_v23 = vld [vmem:[#allocation2 + $0x69] sm:$0xff]  ;;  %v1546_v51 = vpop.f32.mrf.mxu1 }
 0x203   : > { %2814 = vmatpush.bf16.msra.mxu1 %v5022_v15  ;;  %v1620_v15 = vld [vmem:[#allocation2 + $0x79] sm:$0xff] }
 0x204   : > { %v1359_v10 = vadd.f32 %v1358_v48, %v1126_v24  ;;  %v1370_v52 = vpop.f32.mrf.mxu3  ;;  %v1685_v48 = vpack.c.bf16 %v1619_v23, %v1618_v63  ;;  %v1681_v63 = vpack.c.bf16 %v1585_v29, %v1584_v6  ;;  %v1586_v29 = vld [vmem:[#allocation2 + $0x60] sm:$0xff] }
 0x205   : > { %v1452_v34 = vpop.f32.mrf.mxu0 }
 0x206   : > { %v1448_v39 = vadd.f32 %v1447_v38, %v1359_v10  ;;  %v1648_v38 = vld [vmem:[#allocation2 + $0x4a] sm:$0xff] }
 0x208   : > { %v5864_v13 = vadd.f32 %v1536_v44, %v1448_v39  ;;  %2104 = vmatmul.bf16.vlgmr.msra.gmra.mxu0 %v1680_v19  ;;  %2025 = vmatmul.bf16.gmra.mxu3 %v1685_v48  ;;  %v1683_v19 = vpack.c.bf16 %v1649_v42, %v1648_v38  ;;  %v1650_v38 = vld [vmem:[#allocation2 + $0x62] sm:$0xff]  ;;  %v1651_v42 = vld [vmem:[#allocation2 + $0x6a] sm:$0xff] }
 0x209   : > { %v1127_v40 = vpop.f32.mrf.mxu2 }
 0x20a   : > { %v1128_v21 = vadd.f32 %v1127_v40, %v5712_v35  ;;  %v5870_v40 = vpop.f32.mrf.mxu1 }
 0x20c   : > { %v1361_v45 = vadd.f32 %v1360_v31, %v1128_v21  ;;  %v1373_v35 = vpop.f32.mrf.mxu3 }
 0x20d   : > { %v1454_v4 = vpop.f32.mrf.mxu0 }
 0x20e   : > { %1926 = vmatmul.bf16.vlgmr.msra.gmra.mxu2 %v1678_v2  ;;  %v5867_v36 = vadd.f32 %v1449_v16, %v1361_v45 }
 0x211   : > { %v1130_v44 = vpop.f32.mrf.mxu2 }
 0x212   : > { %v1131_v24 = vadd.f32 %v1130_v44, %v5643_v1  ;;  %v1621_v1 = vld [vmem:[#allocation2 + $0x81] sm:$0xff] }
 0x214   : > { %v1364_v10 = vadd.f32 %v1363_v8, %v1131_v24  ;;  %v1375_v45 = vpop.f32.mrf.mxu3  ;;  %v1688_v8 = vpack.c.bf16 %v1621_v1, %v1620_v15  ;;  %v1622_v1 = vld [vmem:[#allocation2 + $0x91] sm:$0xff] }
 0x215   : > { %v1457_v39 = vpop.f32.mrf.mxu0 }
 0x216   : > { %v1453_v31 = vadd.f32 %v1452_v34, %v1364_v10 }
 0x218   : > { %v5872_v21 = vadd.f32 %v1541_v22, %v1453_v31  ;;  %2109 = vmatmul.bf16.gmra.mxu0 %v1683_v19  ;;  %2030 = vmatmul.bf16.gmra.mxu3 %v1688_v8  ;;  %v1551_v22 = vpop.f32.mrf.mxu1 }
 0x219   : > { %v1132_v16 = vpop.f32.mrf.mxu2 }
 0x21a   : > { %v1133_v2 = vadd.f32 %v1132_v16, %v5648_v14  ;;  %v1686_v14 = vpack.c.bf16 %v1651_v42, %v1650_v38  ;;  %v1652_v42 = vld [vmem:[#allocation2 + $0x7a] sm:$0xff] }
 0x21c   : > { %v1366_v23 = vadd.f32 %v1365_v11, %v1133_v2  ;;  %v1378_v10 = vpop.f32.mrf.mxu3  ;;  %v1587_v11 = vld [vmem:[#allocation2 + $0x68] sm:$0xff] }
 0x21d   : > { %v1459_v48 = vpop.f32.mrf.mxu0 }
 0x21e   : > { %1931 = vmatmul.bf16.gmra.mxu2 %v1681_v63  ;;  %v5875_v44 = vadd.f32 %v1454_v4, %v1366_v23  ;;  %v1684_v63 = vpack.c.bf16 %v1587_v11, %v1586_v29 }
 0x220   : > { %v5881_v23 = vpop.f32.mrf.mxu1 }
 0x221   : > { %v1135_v34 = vpop.f32.mrf.mxu2  ;;  %6739 = vst [vmem:[#allocation29_spill] sm:$0xff] %v5881_v23 }
 0x222   : > { %v1136_v24 = vadd.f32 %v1135_v34, %v5653_v20  ;;  %v5021_v20 = vld [vmem:[#allocation9 + $0xd0] sm:$0xff]  ;;  %v1623_v34 = vld [vmem:[#allocation2 + $0x99] sm:$0xff] }
 0x223   : > { %v1691_v38 = vpack.c.bf16 %v1623_v34, %v1622_v1  ;;  %2815 = vmatpush.bf16.msra.mxu1 %v5021_v20  ;;  %v1624_v20 = vld [vmem:[#allocation2 + $0xa9] sm:$0xff] }
 0x224   : > { %v1369_v19 = vadd.f32 %v1368_v61, %v1136_v24  ;;  %v1380_v15 = vpop.f32.mrf.mxu3  ;;  %v1653_v24 = vld [vmem:[#allocation2 + $0x82] sm:$0xff] }
 0x225   : > { %v1462_v31 = vpop.f32.mrf.mxu0 }
 0x226   : > { %v1458_v6 = vadd.f32 %v1457_v39, %v1369_v19 }
 0x228   : > { %v5878_v16 = vadd.f32 %v1546_v51, %v1458_v6  ;;  %2114 = vmatmul.bf16.gmra.mxu0 %v1686_v14  ;;  %2035 = vmatmul.bf16.gmra.mxu3 %v1691_v38  ;;  %v1689_v6 = vpack.c.bf16 %v1653_v24, %v1652_v42  ;;  %v1556_v11 = vpop.f32.mrf.mxu1  ;;  %v1625_v38 = vld [vmem:[#allocation2 + $0xb1] sm:$0xff]  ;;  %v1655_v24 = vld [vmem:[#allocation2 + $0x9a] sm:$0xff] }
 0x229   : > { %v1137_v2 = vpop.f32.mrf.mxu2 }
 0x22a   : > { %v1138_v4 = vadd.f32 %v1137_v2, %v5658_v32  ;;  %v1588_v2 = vld [vmem:[#allocation2 + $0x78] sm:$0xff] }
 0x22c   : > { %v1371_v8 = vadd.f32 %v1370_v52, %v1138_v4  ;;  %v1383_v19 = vpop.f32.mrf.mxu3  ;;  %v1589_v4 = vld [vmem:[#allocation2 + $0x80] sm:$0xff] }
 0x22d   : > { %v1464_v61 = vpop.f32.mrf.mxu0  ;;  %v1687_v1 = vpack.c.bf16 %v1589_v4, %v1588_v2  ;;  %v1591_v4 = vld [vmem:[#allocation2 + $0x98] sm:$0xff] }
 0x22e   : > { %1936 = vmatmul.bf16.gmra.mxu2 %v1684_v63  ;;  %v5883_v39 = vadd.f32 %v1459_v48, %v1371_v8 }
 0x230   : > { %v5891_v42 = vpop.f32.mrf.mxu1 }
 0x231   : > { %v1140_v51 = vpop.f32.mrf.mxu2  ;;  %6740 = vst [vmem:[#allocation30_spill] sm:$0xff] %v5891_v42  ;;  %v5020_v42 = vld [vmem:[#allocation9 + $0xc8] sm:$0xff] }
 0x232   : > { %v1141_v32 = vadd.f32 %v1140_v51, %v5663_v43  ;;  %v1694_v51 = vpack.c.bf16 %v1625_v38, %v1624_v20  ;;  %v1626_v38 = vld [vmem:[#allocation2 + $0xc1] sm:$0xff]  ;;  %2816 = vmatpush.bf16.msra.mxu1 %v5020_v42 }
 0x234   : > { %v1374_v14 = vadd.f32 %v1373_v35, %v1141_v32  ;;  %v1385_v8 = vpop.f32.mrf.mxu3 }
 0x235   : > { %v1467_v29 = vpop.f32.mrf.mxu0 }
 0x236   : > { %v1463_v52 = vadd.f32 %v1462_v31, %v1374_v14 }
 0x238   : > { %v5886_v23 = vadd.f32 %v1551_v22, %v1463_v52  ;;  %2119 = vmatmul.bf16.gmra.mxu0 %v1689_v6  ;;  %2040 = vmatmul.bf16.gmra.mxu3 %v1694_v51  ;;  %v1654_v22 = vld [vmem:[#allocation2 + $0x92] sm:$0xff] }
 0x239   : > { %v1142_v48 = vpop.f32.mrf.mxu2  ;;  %v1692_v6 = vpack.c.bf16 %v1655_v24, %v1654_v22  ;;  %v1657_v24 = vld [vmem:[#allocation2 + $0xb2] sm:$0xff] }
 0x23a   : > { %v1143_v63 = vadd.f32 %v1142_v48, %v5668_v54 }
 0x23c   : > { %v1376_v34 = vadd.f32 %v1375_v45, %v1143_v63  ;;  %v1388_v14 = vpop.f32.mrf.mxu3  ;;  %v1590_v45 = vld [vmem:[#allocation2 + $0x90] sm:$0xff]  ;;  %v1561_v63 = vpop.f32.mrf.mxu1 }
 0x23d   : > { %v1469_v43 = vpop.f32.mrf.mxu0  ;;  %v1690_v20 = vpack.c.bf16 %v1591_v4, %v1590_v45  ;;  %v1592_v4 = vld [vmem:[#allocation2 + $0xa8] sm:$0xff] }
 0x23e   : > { %1941 = vmatmul.bf16.gmra.mxu2 %v1687_v1  ;;  %v5889_v35 = vadd.f32 %v1464_v61, %v1376_v34 }
 0x241   : > { %v1145_v31 = vpop.f32.mrf.mxu2 }
 0x242   : > { %v1146_v32 = vadd.f32 %v1145_v31, %v5673_v0  ;;  %v1627_v0 = vld [vmem:[#allocation2 + $0xc9] sm:$0xff] }
 0x244   : > { %v1379_v54 = vadd.f32 %v1378_v10, %v1146_v32  ;;  %v1390_v34 = vpop.f32.mrf.mxu3  ;;  %v1697_v10 = vpack.c.bf16 %v1627_v0, %v1626_v38 }
 0x245   : > { %v1472_v52 = vpop.f32.mrf.mxu0 }
 0x246   : > { %v1468_v2 = vadd.f32 %v1467_v29, %v1379_v54 }
 0x248   : > { %v5894_v48 = vadd.f32 %v1556_v11, %v1468_v2  ;;  %2124 = vmatmul.bf16.gmra.mxu0 %v1692_v6  ;;  %2045 = vmatmul.bf16.gmra.mxu3 %v1697_v10  ;;  %v1656_v11 = vld [vmem:[#allocation2 + $0xaa] sm:$0xff] }
 0x249   : > { %v1147_v61 = vpop.f32.mrf.mxu2  ;;  %v1695_v2 = vpack.c.bf16 %v1657_v24, %v1656_v11 }
 0x24a   : > { %v1148_v1 = vadd.f32 %v1147_v61, %v5678_v12  ;;  %v5900_v12 = vpop.f32.mrf.mxu1  ;;  %v1593_v61 = vld [vmem:[#allocation2 + $0xb0] sm:$0xff] }
 0x24c   : > { %v1381_v51 = vadd.f32 %v1380_v15, %v1148_v1  ;;  %v1393_v54 = vpop.f32.mrf.mxu3 }
 0x24d   : > { %v1474_v31 = vpop.f32.mrf.mxu0 }
 0x24e   : > { %1946 = vmatmul.bf16.gmra.mxu2 %v1690_v20  ;;  %v5897_v22 = vadd.f32 %v1469_v43, %v1381_v51  ;;  %v1693_v20 = vpack.c.bf16 %v1593_v61, %v1592_v4 }
 0x251   : > { %v1150_v29 = vpop.f32.mrf.mxu2 }
 0x252   : > { %v1151_v32 = vadd.f32 %v1150_v29, %v5683_v25  ;;  %v1566_v25 = vpop.f32.mrf.mxu1  ;;  %v1659_v29 = vld [vmem:[#allocation2 + $0xca] sm:$0xff] }
 0x254   : > { %v1384_v6 = vadd.f32 %v1383_v19, %v1151_v32  ;;  %v1395_v38 = vpop.f32.mrf.mxu3 }
 0x255   : > { %v1477_v15 = vpop.f32.mrf.mxu0 }
 0x256   : > { %v1473_v45 = vadd.f32 %v1472_v52, %v1384_v6  ;;  %v1658_v52 = vld [vmem:[#allocation2 + $0xc2] sm:$0xff] }
 0x257   : > { %v1698_v32 = vpack.c.bf16 %v1659_v29, %v1658_v52 }
 0x258   : > { %v5902_v1 = vadd.f32 %v1561_v63, %v1473_v45  ;;  %2129 = vmatmul.bf16.gmra.mxu0 %v1695_v2  ;;  %2050 = vmatmul.bf16.gmra.mxu3 %v5732_v27  ;;  %v1594_v2 = vld [vmem:[#allocation2 + $0xc0] sm:$0xff]  ;;  %v1595_v45 = vld [vmem:[#allocation2 + $0xc8] sm:$0xff] }
 0x259   : > { %v1152_v43 = vpop.f32.mrf.mxu2  ;;  %v1696_v61 = vpack.c.bf16 %v1595_v45, %v1594_v2 }
 0x25a   : > { %v1153_v42 = vadd.f32 %v1152_v43, %v5688_v7 }
 0x25c   : > { %v1386_v51 = vadd.f32 %v1385_v8, %v1153_v42  ;;  %v1398_v11 = vpop.f32.mrf.mxu3  ;;  %v5909_v8 = vpop.f32.mrf.mxu1 }
 0x25d   : > { %v1479_v0 = vpop.f32.mrf.mxu0 }
 0x25e   : > { %1951 = vmatmul.bf16.gmra.mxu2 %v1693_v20  ;;  %v5905_v10 = vadd.f32 %v1474_v31, %v1386_v51  ;;  %v5019_v20 = vld [vmem:[#allocation9 + $0xc0] sm:$0xff] }
 0x25f   : > { %2817 = vmatpush.bf16.msra.mxu1 %v5019_v20 }
 0x261   : > { %v1155_v19 = vpop.f32.mrf.mxu2 }
 0x262   : > { %v1156_v63 = vadd.f32 %v1155_v19, %v5693_v46  ;;  %v1660_v19 = vld [vmem:[#allocation2 + $0xda] sm:$0xff] }
 0x264   : > { %v1389_v24 = vadd.f32 %v1388_v14, %v1156_v63  ;;  %v1400_v43 = vpop.f32.mrf.mxu3  ;;  %v1571_v51 = vpop.f32.mrf.mxu1 }
 0x265   : > { %v1482_v6 = vpop.f32.mrf.mxu0 }
 0x266   : > { %v1478_v7 = vadd.f32 %v1477_v15, %v1389_v24 }
 0x268   : > { %v5911_v4 = vadd.f32 %v1566_v25, %v1478_v7  ;;  %2134 = vmatmul.bf16.gmra.mxu0 %v1698_v32  ;;  %2055 = vmatmul.bf16.gmra.mxu3 %v5753_v58  ;;  %v1661_v25 = vld [vmem:[#allocation2 + $0xe2] sm:$0xff] }
 0x269   : > { %v1157_v31 = vpop.f32.mrf.mxu2 }
 0x26a   : > { %v1158_v27 = vadd.f32 %v1157_v31, %v5698_v55  ;;  %v1701_v55 = vpack.c.bf16 %v1661_v25, %v1660_v19 }
 0x26c   : > { %v1391_v42 = vadd.f32 %v1390_v34, %v1158_v27  ;;  %v2016_v29 = vpop.f32.mrf.mxu3  ;;  %v5921_v45 = vpop.f32.mrf.mxu1 }
 0x26d   : > { %v1484_v46 = vpop.f32.mrf.mxu0 }
 0x26e   : > { %1956 = vmatmul.bf16.gmra.mxu2 %v1696_v61  ;;  %v5914_v14 = vadd.f32 %v1479_v0, %v1391_v42 }
 0x271   : > { %v1160_v15 = vpop.f32.mrf.mxu2 }
 0x272   : > { %v1161_v52 = vadd.f32 %v1160_v15, %v5703_v5 }
 0x274   : > { %v1394_v63 = vadd.f32 %v1393_v54, %v1161_v52  ;;  %v2018_v2 = vpop.f32.mrf.mxu3  ;;  %v1662_v54 = vld [vmem:[#allocation2 + $0xf2] sm:$0xff] }
 0x275   : > { %v1487_v24 = vpop.f32.mrf.mxu0  ;;  %v5034_v52 = vld [vmem:[#allocation9 + $0x138] sm:$0xff] }
 0x276   : > { %v1483_v32 = vadd.f32 %v1482_v6, %v1394_v63  ;;  %v1663_v6 = vld [vmem:[#allocation2 + $0xfa] sm:$0xff]  ;;  %2899 = vmatpush.bf16.msrb.mxu2 %v5034_v52 }
 0x277   : > { %v1704_v15 = vpack.c.bf16 %v1663_v6, %v1662_v54 }
 0x278   : > { %v5918_v34 = vadd.f32 %v1571_v51, %v1483_v32  ;;  %2139 = vmatmul.bf16.gmra.mxu0 %v1701_v55  ;;  %2060 = vmatmul.bf16.gmra.mxu3 %v5777_v37  ;;  %v1665_v32 = vld [vmem:[#allocation2 + $0x112] sm:$0xff] }
 0x279   : > { %v1162_v7 = vpop.f32.mrf.mxu2 }
 0x27a   : > { %v1163_v0 = vadd.f32 %v1162_v7, %v5708_v26  ;;  %v1576_v26 = vpop.f32.mrf.mxu1 }
 0x27c   : > { %v1396_v58 = vadd.f32 %v1395_v38, %v1163_v0  ;;  %v2021_v42 = vpop.f32.mrf.mxu3  ;;  %v5002_v0 = vld [vmem:[#allocation9 + $0x38] sm:$0xff] }
 0x27d   : > { %v1489_v31 = vpop.f32.mrf.mxu0  ;;  %3221 = vmatpush.bf16.msrb.mxu0 %v5002_v0  ;;  %v5033_v0 = vld [vmem:[#allocation9 + $0x130] sm:$0xff] }
 0x27e   : > { %1961 = vmatmul.bf16.gmra.mxu2 %v5710_v30  ;;  %v5924_v27 = vadd.f32 %v1484_v46, %v1396_v58  ;;  %v5042_v46 = vld [vmem:[#allocation9 + $0x178] sm:$0xff] }
 0x27f   : > { %2988 = vmatpush.bf16.msrb.mxu3 %v5042_v46  ;;  %v5010_v58 = vld [vmem:[#allocation9 + $0x78] sm:$0xff]  ;;  %2900 = vmatpush.bf16.msrb.mxu2 %v5033_v0 }
 0x280   : > { %3310 = vmatpush.bf16.msrb.mxu1 %v5010_v58 }
 0x281   : > { %v1165_v5 = vpop.f32.mrf.mxu2 }
 0x282   : > { %v1166_v61 = vadd.f32 %v1165_v5, %v5715_v41 }
 0x284   : > { %v1399_v20 = vadd.f32 %v1398_v11, %v1166_v61  ;;  %v2023_v37 = vpop.f32.mrf.mxu3 }
 0x285   : > { %v2105_v51 = vpop.f32.mrf.mxu0 }
 0x286   : > { %v1488_v19 = vadd.f32 %v1487_v24, %v1399_v20  ;;  %v1664_v24 = vld [vmem:[#allocation2 + $0x10a] sm:$0xff] }
 0x287   : > { %v1707_v54 = vpack.c.bf16 %v1665_v32, %v1664_v24 }
 0x288   : > { %v5928_v25 = vadd.f32 %v1576_v26, %v1488_v19  ;;  %2144 = vmatmul.bf16.gmra.mxu0 %v1704_v15  ;;  %2065 = vmatmul.bf16.gmra.mxu3 %v5801_v60  ;;  %v1666_v19 = vld [vmem:[#allocation2 + $0x122] sm:$0xff] }
 0x289   : > { %v1167_v38 = vpop.f32.mrf.mxu2 }
 0x28a   : > { %v1168_v30 = vadd.f32 %v1167_v38, %v5720_v53  ;;  %v1667_v38 = vld [vmem:[#allocation2 + $0x12a] sm:$0xff] }
 0x28c   : > { %v1401_v63 = vadd.f32 %v1400_v43, %v1168_v30  ;;  %v2026_v53 = vpop.f32.mrf.mxu3 }
 0x28d   : > { %v2107_v55 = vpop.f32.mrf.mxu0 }
 0x28e   : > { %1966 = vmatmul.bf16.gmra.mxu2 %v5724_v3  ;;  %v5932_v41 = vadd.f32 %v1489_v31, %v1401_v63 }
 0x291   : > { %v1927_v11 = vpop.f32.mrf.mxu2 }
 0x292   : > { %v2017_v7 = vadd.f32 %v2016_v29, %v1927_v11 }
 0x294   : > { %v2106_v5 = vadd.f32 %v2105_v51, %v2017_v7  ;;  %v2028_v60 = vpop.f32.mrf.mxu3  ;;  %v5041_v7 = vld [vmem:[#allocation9 + $0x170] sm:$0xff] }
 0x295   : > { %v2110_v43 = vpop.f32.mrf.mxu0  ;;  %2989 = vmatpush.bf16.msrb.mxu3 %v5041_v7 }
 0x296   : > { %v2185_v6 = vadd.f32 %v2106_v5, %v5738_v62 }
 0x298   : > { %v2217_v61 = vmax.f32 %v2185_v6, 0.0  ;;  %2149 = vmatmul.bf16.gmra.mxu0 %v1707_v54  ;;  %2070 = vmatmul.bf16.gmra.mxu3 %v5823_v33  ;;  %v1669_v6 = vld [vmem:[#allocation2 + $0x142] sm:$0xff] }
 0x299   : > { %v1929_v3 = vpop.f32.mrf.mxu2 }
 0x29a   : > { %2250 = vst [vmem:[#allocation3 + $0x19] sm:$0xff] %v2217_v61  ;;  %v2019_v31 = vadd.f32 %v2018_v2, %v1929_v3  ;;  %v1710_v2 = vpack.c.bf16 %v1667_v38, %v1666_v19  ;;  %v5001_v3 = vld [vmem:[#allocation9 + $0x30] sm:$0xff] }
 0x29b   : > { %3222 = vmatpush.bf16.msrb.mxu0 %v5001_v3  ;;  %v1642_v3 = vld [vmem:[#allocation2 + $0x181] sm:$0xff] }
 0x29c   : > { %v2108_v20 = vadd.f32 %v2107_v55, %v2019_v31  ;;  %v2031_v30 = vpop.f32.mrf.mxu3  ;;  %v5009_v31 = vld [vmem:[#allocation9 + $0x70] sm:$0xff] }
 0x29d   : > { %v2112_v15 = vpop.f32.mrf.mxu0  ;;  %3311 = vmatpush.bf16.msrb.mxu1 %v5009_v31 }
 0x29e   : > { %v2186_v29 = vadd.f32 %v2108_v20, %v5748_v59  ;;  %1971 = vmatmul.bf16.gmra.mxu2 %v5743_v57 }
 0x2a0   : > { %v2218_v26 = vmax.f32 %v2186_v29, 0.0 }
 0x2a1   : > { %v1932_v51 = vpop.f32.mrf.mxu2  ;;  %v2474_v57 = vld [vmem:[#allocation3 + $0x18] sm:$0xff] }
 0x2a2   : > { %2251 = vst [vmem:[#allocation3 + $0x21] sm:$0xff] %v2218_v26  ;;  %v2022_v62 = vadd.f32 %v2021_v42, %v1932_v51  ;;  %v5939_v46 = vpack.c.bf16 %v2218_v26, %v2217_v61 }
 0x2a4   : > { %v2111_v52 = vadd.f32 %v2110_v43, %v2022_v62  ;;  %v2033_v42 = vpop.f32.mrf.mxu3 }
 0x2a5   : > { %v2115_v63 = vpop.f32.mrf.mxu0 }
 0x2a6   : > { %v2187_v55 = vadd.f32 %v2111_v52, %v5758_v28 }
 0x2a8   : > { %v2219_v11 = vmax.f32 %v2187_v55, 0.0  ;;  %2154 = vmatmul.bf16.gmra.mxu0 %v1710_v2  ;;  %2075 = vmatmul.bf16.gmra.mxu3 %v5840_v18 }
 0x2a9   : > { %v1934_v59 = vpop.f32.mrf.mxu2  ;;  %v2475_v24 = vld [vmem:[#allocation3 + $0x20] sm:$0xff] }
 0x2aa   : > { %2252 = vst [vmem:[#allocation3 + $0x31] sm:$0xff] %v2219_v11  ;;  %v2024_v33 = vadd.f32 %v2023_v37, %v1934_v59  ;;  %v5942_v32 = vpack.c.bf16 %v2475_v24, %v2474_v57  ;;  %v1668_v37 = vld [vmem:[#allocation2 + $0x13a] sm:$0xff]  ;;  %v1670_v59 = vld [vmem:[#allocation2 + $0x152] sm:$0xff] }
 0x2ab   : > { %v1713_v26 = vpack.c.bf16 %v1669_v6, %v1668_v37  ;;  %v1671_v57 = vld [vmem:[#allocation2 + $0x15a] sm:$0xff]  ;;  %v5040_v6 = vld [vmem:[#allocation9 + $0x168] sm:$0xff] }
 0x2ac   : > { %v2113_v58 = vadd.f32 %v2112_v15, %v2024_v33  ;;  %2818 = vmatmul.bf16.vlgmr.msra.gmra.mxu1 %v5942_v32  ;;  %v2036_v20 = vpop.f32.mrf.mxu3  ;;  %v1716_v0 = vpack.c.bf16 %v1671_v57, %v1670_v59  ;;  %2990 = vmatpush.bf16.msrb.mxu3 %v5040_v6 }
 0x2ad   : > { %v2117_v5 = vpop.f32.mrf.mxu0 }
 0x2ae   : > { %v2188_v28 = vadd.f32 %v2113_v58, %v5771_v17  ;;  %1976 = vmatmul.bf16.gmra.mxu2 %v5765_v56 }
 0x2b0   : > { %v2220_v54 = vmax.f32 %v2188_v28, 0.0 }
 0x2b1   : > { %v1937_v43 = vpop.f32.mrf.mxu2  ;;  %v2476_v19 = vld [vmem:[#allocation3 + $0x30] sm:$0xff] }
 0x2b2   : > { %2253 = vst [vmem:[#allocation3 + $0x39] sm:$0xff] %v2220_v54  ;;  %v2027_v61 = vadd.f32 %v2026_v53, %v1937_v43  ;;  %v5948_v15 = vpack.c.bf16 %v2220_v54, %v2219_v11 }
 0x2b4   : > { %v2116_v29 = vadd.f32 %v2115_v63, %v2027_v61  ;;  %v5953_v52 = vpop.f32.mrf.mxu3 }
 0x2b5   : > { %v2120_v17 = vpop.f32.mrf.mxu0 }
 0x2b6   : > { %v2189_v56 = vadd.f32 %v2116_v29, %v5782_v49  ;;  %v1643_v29 = vld [vmem:[#allocation2 + $0x189] sm:$0xff] }
 0x2b8   : > { %v2221_v51 = vmax.f32 %v2189_v56, 0.0  ;;  %2159 = vmatmul.bf16.gmra.mxu0 %v1713_v26  ;;  %2080 = vmatmul.bf16.gmra.mxu3 %v5853_v50  ;;  %v6742_v56 = vld [vmem:[#allocation18_spill] sm:$0xff] }
 0x2b9   : > { %v1939_v18 = vpop.f32.mrf.mxu2  ;;  %v2477_v38 = vld [vmem:[#allocation3 + $0x38] sm:$0xff] }
 0x2ba   : > { %2254 = vst [vmem:[#allocation3 + $0x49] sm:$0xff] %v2221_v51  ;;  %v2029_v62 = vadd.f32 %v2028_v60, %v1939_v18  ;;  %v5951_v53 = vpack.c.bf16 %v2477_v38, %v2476_v19  ;;  %v6743_v18 = vld [vmem:[#allocation16_spill] sm:$0xff] }
 0x2bb   : > { %v1672_v38 = vld [vmem:[#allocation2 + $0x16a] sm:$0xff] }
 0x2bc   : > { %v2118_v2 = vadd.f32 %v2117_v5, %v2029_v62  ;;  %2823 = vmatmul.bf16.gmra.mxu1 %v5951_v53  ;;  %v5959_v24 = vpop.f32.mrf.mxu3  ;;  %v6741_v5 = vld [vmem:[#allocation15_spill] sm:$0xff]  ;;  %v1673_v62 = vld [vmem:[#allocation2 + $0x172] sm:$0xff] }
 0x2bd   : > { %v2122_v63 = vpop.f32.mrf.mxu0  ;;  %v1719_v57 = vpack.c.bf16 %v1673_v62, %v1672_v38  ;;  %v6747_v62 = vld [vmem:[#allocation20_spill] sm:$0xff] }
 0x2be   : > { %v2190_v55 = vadd.f32 %v2118_v2, %v5795_v9  ;;  %1981 = vmatmul.bf16.gmra.mxu2 %v5789_v47 }
 0x2c0   : > { %v2222_v49 = vmax.f32 %v2190_v55, 0.0  ;;  %v5000_v55 = vld [vmem:[#allocation9 + $0x28] sm:$0xff] }
 0x2c1   : > { %v1942_v11 = vpop.f32.mrf.mxu2  ;;  %v2478_v54 = vld [vmem:[#allocation3 + $0x48] sm:$0xff]  ;;  %3223 = vmatpush.bf16.msrb.mxu0 %v5000_v55  ;;  %v1674_v55 = vld [vmem:[#allocation2 + $0x182] sm:$0xff] }
 0x2c2   : > { %2255 = vst [vmem:[#allocation3 + $0x51] sm:$0xff] %v2222_v49  ;;  %v2032_v60 = vadd.f32 %v2031_v30, %v1942_v11  ;;  %v5961_v33 = vpack.c.bf16 %v2222_v49, %v2221_v51  ;;  %v5032_v30 = vld [vmem:[#allocation9 + $0x128] sm:$0xff] }
 0x2c3   : > { %2901 = vmatpush.bf16.msrb.mxu2 %v5032_v30  ;;  %v1644_v30 = vld [vmem:[#allocation2 + $0x199] sm:$0xff] }
 0x2c4   : > { %v2121_v7 = vadd.f32 %v2120_v17, %v2032_v60  ;;  %v5966_v61 = vpop.f32.mrf.mxu3  ;;  %v1721_v17 = vpack.c.bf16 %v1643_v29, %v1642_v3  ;;  %v1645_v3 = vld [vmem:[#allocation2 + $0x1a1] sm:$0xff] }
 0x2c5   : > { %v2125_v58 = vpop.f32.mrf.mxu0  ;;  %v6746_v29 = vld [vmem:[#allocation14_spill] sm:$0xff] }
 0x2c6   : > { %v2191_v28 = vadd.f32 %v2121_v7, %v6741_v5  ;;  %v6744_v7 = vld [vmem:[#allocation19_spill] sm:$0xff] }
 0x2c8   : > { %v2223_v9 = vmax.f32 %v2191_v28, 0.0  ;;  %2164 = vmatmul.bf16.gmra.mxu0 %v1716_v0  ;;  %2085 = vmatmul.bf16.gmra.mxu3 %v1721_v17 }
 0x2c9   : > { %v1944_v47 = vpop.f32.mrf.mxu2  ;;  %v2479_v50 = vld [vmem:[#allocation3 + $0x50] sm:$0xff] }
 0x2ca   : > { %2256 = vst [vmem:[#allocation3 + $0x61] sm:$0xff] %v2223_v9  ;;  %v2034_v43 = vadd.f32 %v2033_v42, %v1944_v47  ;;  %v5964_v37 = vpack.c.bf16 %v2479_v50, %v2478_v54  ;;  %v5031_v50 = vld [vmem:[#allocation9 + $0x120] sm:$0xff] }
 0x2cb   : > { %2902 = vmatpush.bf16.msrb.mxu2 %v5031_v50 }
 0x2cc   : > { %v2123_v31 = vadd.f32 %v2122_v63, %v2034_v43  ;;  %2828 = vmatmul.bf16.gmra.mxu1 %v5964_v37  ;;  %v5008_v63 = vld [vmem:[#allocation9 + $0x68] sm:$0xff]  ;;  %v5971_v49 = vpop.f32.mrf.mxu3 }
 0x2cd   : > { %v2127_v26 = vpop.f32.mrf.mxu0  ;;  %3312 = vmatpush.bf16.msrb.mxu1 %v5008_v63 }
 0x2ce   : > { %v2192_v51 = vadd.f32 %v2123_v31, %v6742_v56  ;;  %1986 = vmatmul.bf16.gmra.mxu2 %v6743_v18  ;;  %v6745_v31 = vld [vmem:[#allocation21_spill] sm:$0xff] }
 0x2cf   : > { %v1524_v17 = vadd.f32 %v6746_v29, %v6745_v31  ;;  %v1610_v29 = vld [vmem:[#allocation2 + $0x180] sm:$0xff] }
 0x2d0   : > { %v2224_v42 = vmax.f32 %v2192_v51, 0.0  ;;  %v1724_v51 = vpack.c.bf16 %v1645_v3, %v1644_v30  ;;  %v4996_v30 = vld [vmem:[#allocation9 + $0x8] sm:$0xff] }
 0x2d1   : > { %v1947_v19 = vpop.f32.mrf.mxu2  ;;  %v2480_v28 = vld [vmem:[#allocation3 + $0x60] sm:$0xff]  ;;  %v6748_v3 = vld [vmem:[#allocation23_spill] sm:$0xff] }
 0x2d2   : > { %2257 = vst [vmem:[#allocation3 + $0x69] sm:$0xff] %v2224_v42  ;;  %v2037_v2 = vadd.f32 %v2036_v20, %v1947_v19  ;;  %v5973_v11 = vpack.c.bf16 %v2224_v42, %v2223_v9  ;;  %v5039_v20 = vld [vmem:[#allocation9 + $0x160] sm:$0xff]  ;;  %v5030_v42 = vld [vmem:[#allocation9 + $0x118] sm:$0xff] }
 0x2d3   : > { %2991 = vmatpush.bf16.msrb.mxu3 %v5039_v20  ;;  %v4998_v19 = vld [vmem:[#allocation9 + $0x18] sm:$0xff]  ;;  %2903 = vmatpush.bf16.msrb.mxu2 %v5030_v42  ;;  %v5035_v42 = vld [vmem:[#allocation9 + $0x140] sm:$0xff] }
 0x2d4   : > { %v2126_v59 = vadd.f32 %v2125_v58, %v2037_v2  ;;  %v5979_v9 = vpop.f32.mrf.mxu3  ;;  %v4999_v58 = vld [vmem:[#allocation9 + $0x20] sm:$0xff] }
 0x2d5   : > { %v2130_v60 = vpop.f32.mrf.mxu0  ;;  %3224 = vmatpush.bf16.msrb.mxu0 %v4999_v58  ;;  %v5036_v58 = vld [vmem:[#allocation9 + $0x148] sm:$0xff] }
 0x2d6   : > { %v2193_v0 = vadd.f32 %v2126_v59, %v6744_v7  ;;  %v1675_v59 = vld [vmem:[#allocation2 + $0x18a] sm:$0xff] }
 0x2d7   : > { %v1722_v50 = vpack.c.bf16 %v1675_v59, %v1674_v55  ;;  %v2538_v55 = vld [vmem:[#allocation3 + $0x1a] sm:$0xff] }
 0x2d8   : > { %v2225_v5 = vmax.f32 %v2193_v0, 0.0  ;;  %2169 = vmatmul.bf16.gmra.mxu0 %v1719_v57  ;;  %2090 = vmatmul.bf16.gmra.mxu3 %v1724_v51  ;;  %v5037_v57 = vld [vmem:[#allocation9 + $0x150] sm:$0xff] }
 0x2d9   : > { %v1949_v47 = vpop.f32.mrf.mxu2  ;;  %v2481_v54 = vld [vmem:[#allocation3 + $0x68] sm:$0xff]  ;;  %3225 = vmatpush.bf16.msrb.mxu0 %v4998_v19  ;;  %v6749_v59 = vld [vmem:[#allocation24_spill] sm:$0xff] }
 0x2da   : > { %2258 = vst [vmem:[#allocation3 + $0x79] sm:$0xff] %v2225_v5  ;;  %v2039_v43 = vadd.f32 %v5953_v52, %v1949_v47  ;;  %v5977_v6 = vpack.c.bf16 %v2481_v54, %v2480_v28  ;;  %v5038_v52 = vld [vmem:[#allocation9 + $0x158] sm:$0xff]  ;;  %v4997_v28 = vld [vmem:[#allocation9 + $0x10] sm:$0xff] }
 0x2db   : > { %2992 = vmatpush.bf16.msrb.mxu3 %v5038_v52 }
 0x2dc   : > { %v2128_v56 = vadd.f32 %v2127_v26, %v2039_v43  ;;  %2833 = vmatmul.bf16.gmra.mxu1 %v5977_v6  ;;  %v5029_v26 = vld [vmem:[#allocation9 + $0x110] sm:$0xff]  ;;  %v5986_v0 = vpop.f32.mrf.mxu3  ;;  %v5028_v43 = vld [vmem:[#allocation9 + $0x108] sm:$0xff] }
 0x2dd   : > { %v2132_v18 = vpop.f32.mrf.mxu0  ;;  %2904 = vmatpush.bf16.msrb.mxu2 %v5029_v26  ;;  %3226 = vmatpush.bf16.msrb.mxu0 %v4997_v28  ;;  %v6750_v26 = vld [vmem:[#allocation17_spill] sm:$0xff] }
 0x2de   : > { %v2194_v38 = vadd.f32 %v2128_v56, %v1524_v17  ;;  %1991 = vmatmul.bf16.gmra.mxu2 %v6747_v62  ;;  %v1611_v17 = vld [vmem:[#allocation2 + $0x188] sm:$0xff] }
 0x2df   : > { %2993 = vmatpush.bf16.msrb.mxu3 %v5037_v57  ;;  %v1529_v57 = vadd.f32 %v6750_v26, %v6749_v59  ;;  %v5158_v59 = vld [vmem:[#allocation2 + $0x8] sm:$0xff] }
 0x2e0   : > { %v2226_v2 = vmax.f32 %v2194_v38, 0.0  ;;  %v1720_v38 = vpack.c.bf16 %v1611_v17, %v1610_v29 }
 0x2e1   : > { %v1952_v63 = vpop.f32.mrf.mxu2  ;;  %2905 = vmatpush.bf16.msrb.mxu2 %v5028_v43  ;;  %v2482_v56 = vld [vmem:[#allocation3 + $0x78] sm:$0xff]  ;;  %3227 = vmatpush.bf16.msrb.mxu0 %v4996_v30 }
 0x2e2   : > { %2259 = vst [vmem:[#allocation3 + $0x81] sm:$0xff] %v2226_v2  ;;  %v2042_v7 = vadd.f32 %v5959_v24, %v1952_v63  ;;  %v5988_v47 = vpack.c.bf16 %v2226_v2, %v2225_v5  ;;  %v4995_v2 = vld [vmem:[#allocation9] sm:$0xff]  ;;  %v2539_v63 = vld [vmem:[#allocation3 + $0x22] sm:$0xff] }
 0x2e3   : > { %2994 = vmatpush.bf16.msrb.mxu3 %v5036_v58  ;;  %v1676_v58 = vld [vmem:[#allocation2 + $0x19a] sm:$0xff]  ;;  %v1677_v30 = vld [vmem:[#allocation2 + $0x1a2] sm:$0xff] }
 0x2e4   : > { %v2131_v54 = vadd.f32 %v2130_v60, %v2042_v7  ;;  %v5027_v60 = vld [vmem:[#allocation9 + $0x100] sm:$0xff]  ;;  %v5994_v62 = vpop.f32.mrf.mxu3 }
 0x2e5   : > { %v2135_v20 = vpop.f32.mrf.mxu0  ;;  %2906 = vmatpush.bf16.msrb.mxu2 %v5027_v60  ;;  %3228 = vmatpush.bf16.msrb.mxu0 %v4995_v2 }
 0x2e6   : > { %v2195_v31 = vadd.f32 %v2131_v54, %v6748_v3  ;;  %v2572_v54 = vpack.c.bf16 %v2539_v63, %v2538_v55 }
 0x2e7   : > { %2995 = vmatpush.bf16.msrb.mxu3 %v5035_v42  ;;  %v1612_v42 = vld [vmem:[#allocation2 + $0x198] sm:$0xff] }
 0x2e8   : > { %v2227_v24 = vmax.f32 %v2195_v31, 0.0  ;;  %2174 = vmatmul.bf16.gmra.mxu0 %v1722_v50  ;;  %v5007_v31 = vld [vmem:[#allocation9 + $0x60] sm:$0xff] }
 0x2e9   : > { %v1954_v5 = vpop.f32.mrf.mxu2  ;;  %v2483_v51 = vld [vmem:[#allocation3 + $0x80] sm:$0xff]  ;;  %3313 = vmatpush.bf16.msrb.mxu1 %v5007_v31 }
 0x2ea   : > { %2260 = vst [vmem:[#allocation3 + $0x91] sm:$0xff] %v2227_v24  ;;  %v2044_v52 = vadd.f32 %v5966_v61, %v1954_v5  ;;  %v5992_v19 = vpack.c.bf16 %v2483_v51, %v2482_v56  ;;  %2996 = vmatmul.bf16.vlgmr.msrb.gmra.mxu3 %v2572_v54  ;;  %v1725_v56 = vpack.c.bf16 %v1677_v30, %v1676_v58  ;;  %v6751_v51 = vld [vmem:[#allocation26_spill] sm:$0xff]  ;;  %v2282_v31 = vld [vmem:[#allocation3] sm:$0xff] }
 0x2eb   : > { %v6753_v54 = vld [vmem:[#allocation22_spill] sm:$0xff] }
 0x2ec   : > { %v2133_v7 = vadd.f32 %v2132_v18, %v2044_v52  ;;  %2838 = vmatmul.bf16.gmra.mxu1 %v5992_v19  ;;  %v2056_v29 = vpop.f32.mrf.mxu3 }
 0x2ed   : > { %v2137_v28 = vpop.f32.mrf.mxu0 }
 0x2ee   : > { %v2196_v61 = vadd.f32 %v2133_v7, %v1529_v57  ;;  %1996 = vmatmul.bf16.gmra.mxu2 %v1720_v38  ;;  %v2541_v57 = vld [vmem:[#allocation3 + $0x3a] sm:$0xff] }
 0x2ef   : > { %v6752_v7 = vld [vmem:[#allocation27_spill] sm:$0xff] }
 0x2f0   : > { %v2228_v50 = vmax.f32 %v2196_v61, 0.0  ;;  %v1534_v61 = vadd.f32 %v6753_v54, %v6752_v7  ;;  %v2543_v54 = vld [vmem:[#allocation3 + $0x52] sm:$0xff] }
 0x2f1   : > { %v1957_v43 = vpop.f32.mrf.mxu2  ;;  %v2484_v2 = vld [vmem:[#allocation3 + $0x90] sm:$0xff] }
 0x2f2   : > { %2261 = vst [vmem:[#allocation3 + $0x99] sm:$0xff] %v2228_v50  ;;  %v2047_v3 = vadd.f32 %v5971_v49, %v1957_v43  ;;  %v6000_v17 = vpack.c.bf16 %v2228_v50, %v2227_v24  ;;  %v1723_v24 = vpack.c.bf16 %v5158_v59, %v1612_v42  ;;  %v2378_v42 = vpack.c.bf16 %v5158_v59, %v2282_v31 }
 0x2f4   : > { %v2136_v18 = vadd.f32 %v2135_v20, %v2047_v3  ;;  %v2058_v26 = vpop.f32.mrf.mxu3  ;;  %v2540_v20 = vld [vmem:[#allocation3 + $0x32] sm:$0xff] }
 0x2f5   : > { %v2140_v5 = vpop.f32.mrf.mxu0  ;;  %v2575_v58 = vpack.c.bf16 %v2541_v57, %v2540_v20 }
 0x2f6   : > { %v2197_v60 = vadd.f32 %v2136_v18, %v6751_v51 }
 0x2f8   : > { %v2229_v52 = vmax.f32 %v2197_v60, 0.0  ;;  %2179 = vmatmul.bf16.gmra.mxu0 %v1725_v56 }
 0x2f9   : > { %v1959_v38 = vpop.f32.mrf.mxu2  ;;  %v2485_v55 = vld [vmem:[#allocation3 + $0x98] sm:$0xff] }
 0x2fa   : > { %2262 = vst [vmem:[#allocation3 + $0xa9] sm:$0xff] %v2229_v52  ;;  %v2049_v63 = vadd.f32 %v5979_v9, %v1959_v38  ;;  %v6004_v49 = vpack.c.bf16 %v2485_v55, %v2484_v2  ;;  %3001 = vmatmul.bf16.gmra.mxu3 %v2575_v58 }
 0x2fc   : > { %v2138_v50 = vadd.f32 %v2137_v28, %v2049_v63  ;;  %2843 = vmatmul.bf16.gmra.mxu1 %v6004_v49  ;;  %v2061_v56 = vpop.f32.mrf.mxu3 }
 0x2fd   : > { %v2142_v43 = vpop.f32.mrf.mxu0 }
 0x2fe   : > { %v2198_v30 = vadd.f32 %v2138_v50, %v1534_v61  ;;  %2001 = vmatmul.bf16.gmra.mxu2 %v1723_v24 }
 0x300   : > { %v2230_v3 = vmax.f32 %v2198_v30, 0.0 }
 0x301   : > { %v1962_v9 = vpop.f32.mrf.mxu2  ;;  %v2486_v63 = vld [vmem:[#allocation3 + $0xa8] sm:$0xff] }
 0x302   : > { %2263 = vst [vmem:[#allocation3 + $0xb1] sm:$0xff] %v2230_v3  ;;  %v2052_v18 = vadd.f32 %v5986_v0, %v1962_v9  ;;  %v6010_v51 = vpack.c.bf16 %v2230_v3, %v2229_v52  ;;  %v2542_v0 = vld [vmem:[#allocation3 + $0x4a] sm:$0xff] }
 0x303   : > { %v6754_v52 = vld [vmem:[#allocation25_spill] sm:$0xff]  ;;  %v2578_v61 = vpack.c.bf16 %v2543_v54, %v2542_v0 }
 0x304   : > { %v2141_v60 = vadd.f32 %v2140_v5, %v2052_v18  ;;  %v2063_v7 = vpop.f32.mrf.mxu3  ;;  %v1539_v5 = vadd.f32 %v6754_v52, %v5867_v36  ;;  %v5006_v3 = vld [vmem:[#allocation9 + $0x58] sm:$0xff] }
 0x305   : > { %v2145_v38 = vpop.f32.mrf.mxu0  ;;  %3314 = vmatpush.bf16.msrb.mxu1 %v5006_v3 }
 0x306   : > { %v2199_v28 = vadd.f32 %v2141_v60, %v5864_v13 }
 0x308   : > { %v2231_v2 = vmax.f32 %v2199_v28, 0.0  ;;  %3229 = vmatmul.bf16.vlgmr.msrb.gmra.mxu0 %v2378_v42 }
 0x309   : > { %v1964_v55 = vpop.f32.mrf.mxu2  ;;  %v2487_v24 = vld [vmem:[#allocation3 + $0xb0] sm:$0xff] }
 0x30a   : > { %2264 = vst [vmem:[#allocation3 + $0xc1] sm:$0xff] %v2231_v2  ;;  %v2054_v20 = vadd.f32 %v5994_v62, %v1964_v55  ;;  %v6014_v57 = vpack.c.bf16 %v2487_v24, %v2486_v63  ;;  %3006 = vmatmul.bf16.gmra.mxu3 %v2578_v61  ;;  %v2544_v24 = vld [vmem:[#allocation3 + $0x62] sm:$0xff] }
 0x30c   : > { %v2143_v59 = vadd.f32 %v2142_v43, %v2054_v20  ;;  %2848 = vmatmul.bf16.gmra.mxu1 %v6014_v57  ;;  %v2066_v9 = vpop.f32.mrf.mxu3  ;;  %v2545_v20 = vld [vmem:[#allocation3 + $0x6a] sm:$0xff] }
 0x30d   : > { %v2147_v13 = vpop.f32.mrf.mxu0  ;;  %v2581_v54 = vpack.c.bf16 %v2545_v20, %v2544_v24 }
 0x30e   : > { %v2200_v50 = vadd.f32 %v2143_v59, %v1539_v5  ;;  %2907 = vmatmul.bf16.vlgmr.msrb.gmra.mxu2 %v5939_v46  ;;  %v6030_v5 = vpop.f32.mrf.mxu1 }
 0x310   : > { %v2232_v58 = vmax.f32 %v2200_v50, 0.0 }
 0x311   : > { %v1967_v30 = vpop.f32.mrf.mxu2  ;;  %v2488_v28 = vld [vmem:[#allocation3 + $0xc0] sm:$0xff] }
 0x312   : > { %2265 = vst [vmem:[#allocation3 + $0xc9] sm:$0xff] %v2232_v58  ;;  %v2057_v62 = vadd.f32 %v2056_v29, %v1967_v30  ;;  %v6020_v31 = vpack.c.bf16 %v2232_v58, %v2231_v2  ;;  %v6755_v2 = vld [vmem:[#allocation28_spill] sm:$0xff] }
 0x314   : > { %v2146_v18 = vadd.f32 %v2145_v38, %v2057_v62  ;;  %v2068_v29 = vpop.f32.mrf.mxu3  ;;  %v1544_v38 = vadd.f32 %v6755_v2, %v5875_v44 }
 0x315   : > { %v2150_v36 = vpop.f32.mrf.mxu0 }
 0x316   : > { %v2201_v43 = vadd.f32 %v2146_v18, %v5872_v21 }
 0x318   : > { %v2233_v60 = vmax.f32 %v2201_v43, 0.0  ;;  %3234 = vmatmul.bf16.gmra.mxu0 %v5942_v32 }
 0x319   : > { %v1969_v42 = vpop.f32.mrf.mxu2  ;;  %v2489_v46 = vld [vmem:[#allocation3 + $0xc8] sm:$0xff] }
 0x31a   : > { %2266 = vst [vmem:[#allocation3 + $0xd9] sm:$0xff] %v2233_v60  ;;  %v2059_v55 = vadd.f32 %v2058_v26, %v1969_v42  ;;  %v6024_v63 = vpack.c.bf16 %v2489_v46, %v2488_v28  ;;  %3011 = vmatmul.bf16.gmra.mxu3 %v2581_v54  ;;  %v2546_v28 = vld [vmem:[#allocation3 + $0x7a] sm:$0xff] }
 0x31c   : > { %v2148_v0 = vadd.f32 %v2147_v13, %v2059_v55  ;;  %2853 = vmatmul.bf16.gmra.mxu1 %v6024_v63  ;;  %v2071_v61 = vpop.f32.mrf.mxu3 }
 0x31d   : > { %v2152_v21 = vpop.f32.mrf.mxu0 }
 0x31e   : > { %v2202_v52 = vadd.f32 %v2148_v0, %v1544_v38  ;;  %2912 = vmatmul.bf16.gmra.mxu2 %v5948_v15  ;;  %v5005_v38 = vld [vmem:[#allocation9 + $0x50] sm:$0xff] }
 0x31f   : > { %3315 = vmatpush.bf16.msrb.mxu1 %v5005_v38 }
 0x320   : > { %v2234_v32 = vmax.f32 %v2202_v52, 0.0 }
 0x321   : > { %v1972_v26 = vpop.f32.mrf.mxu2  ;;  %v2490_v15 = vld [vmem:[#allocation3 + $0xd8] sm:$0xff] }
 0x322   : > { %2267 = vst [vmem:[#allocation3 + $0xe1] sm:$0xff] %v2234_v32  ;;  %v2062_v59 = vadd.f32 %v2061_v56, %v1972_v26  ;;  %v6032_v50 = vpack.c.bf16 %v2234_v32, %v2233_v60  ;;  %v2547_v60 = vld [vmem:[#allocation3 + $0x82] sm:$0xff] }
 0x324   : > { %v2151_v58 = vadd.f32 %v2150_v36, %v2062_v59  ;;  %v2073_v56 = vpop.f32.mrf.mxu3  ;;  %v1549_v36 = vadd.f32 %v5870_v40, %v5883_v39 }
 0x325   : > { %v2155_v44 = vpop.f32.mrf.mxu0 }
 0x326   : > { %v2203_v13 = vadd.f32 %v2151_v58, %v5878_v16 }
 0x328   : > { %v2235_v30 = vmax.f32 %v2203_v13, 0.0  ;;  %3239 = vmatmul.bf16.gmra.mxu0 %v5951_v53  ;;  %v2584_v53 = vpack.c.bf16 %v2547_v60, %v2546_v28 }
 0x329   : > { %v1974_v62 = vpop.f32.mrf.mxu2  ;;  %v6036_v3 = vpop.f32.mrf.mxu1  ;;  %v2491_v18 = vld [vmem:[#allocation3 + $0xe0] sm:$0xff] }
 0x32a   : > { %2268 = vst [vmem:[#allocation3 + $0xf1] sm:$0xff] %v2235_v30  ;;  %v2064_v43 = vadd.f32 %v2063_v7, %v1974_v62  ;;  %v6038_v42 = vpack.c.bf16 %v2491_v18, %v2490_v15  ;;  %3016 = vmatmul.bf16.gmra.mxu3 %v2584_v53  ;;  %v2549_v62 = vld [vmem:[#allocation3 + $0x9a] sm:$0xff] }
 0x32c   : > { %v2153_v46 = vadd.f32 %v2152_v21, %v2064_v43  ;;  %2858 = vmatmul.bf16.gmra.mxu1 %v6038_v42  ;;  %v2076_v0 = vpop.f32.mrf.mxu3 }
 0x32d   : > { %v2157_v16 = vpop.f32.mrf.mxu0 }
 0x32e   : > { %v2204_v55 = vadd.f32 %v2153_v46, %v1549_v36  ;;  %2917 = vmatmul.bf16.gmra.mxu2 %v5961_v33 }
 0x330   : > { %v2236_v24 = vmax.f32 %v2204_v55, 0.0 }
 0x331   : > { %v1977_v20 = vpop.f32.mrf.mxu2  ;;  %v6044_v7 = vpop.f32.mrf.mxu1  ;;  %v2492_v26 = vld [vmem:[#allocation3 + $0xf0] sm:$0xff] }
 0x332   : > { %2269 = vst [vmem:[#allocation3 + $0xf9] sm:$0xff] %v2236_v24  ;;  %v2067_v2 = vadd.f32 %v2066_v9, %v1977_v20  ;;  %v6046_v54 = vpack.c.bf16 %v2236_v24, %v2235_v30  ;;  %v2548_v30 = vld [vmem:[#allocation3 + $0x92] sm:$0xff] }
 0x334   : > { %v2156_v40 = vadd.f32 %v2155_v44, %v2067_v2  ;;  %v2078_v13 = vpop.f32.mrf.mxu3  ;;  %v6756_v44 = vld [vmem:[#allocation29_spill] sm:$0xff] }
 0x335   : > { %v2160_v39 = vpop.f32.mrf.mxu0  ;;  %v1554_v15 = vadd.f32 %v6756_v44, %v5889_v35 }
 0x336   : > { %v2205_v21 = vadd.f32 %v2156_v40, %v5886_v23 }
 0x338   : > { %v2237_v52 = vmax.f32 %v2205_v21, 0.0  ;;  %3244 = vmatmul.bf16.gmra.mxu0 %v5964_v37  ;;  %v2587_v37 = vpack.c.bf16 %v2549_v62, %v2548_v30 }
 0x339   : > { %v1979_v33 = vpop.f32.mrf.mxu2  ;;  %v6050_v32 = vpop.f32.mrf.mxu1  ;;  %v2493_v59 = vld [vmem:[#allocation3 + $0xf8] sm:$0xff] }
 0x33a   : > { %2270 = vst [vmem:[#allocation3 + $0x109] sm:$0xff] %v2237_v52  ;;  %v2069_v58 = vadd.f32 %v2068_v29, %v1979_v33  ;;  %v6052_v9 = vpack.c.bf16 %v2493_v59, %v2492_v26  ;;  %3021 = vmatmul.bf16.gmra.mxu3 %v2587_v37  ;;  %v2550_v33 = vld [vmem:[#allocation3 + $0xaa] sm:$0xff] }
 0x33c   : > { %v2158_v18 = vadd.f32 %v2157_v16, %v2069_v58  ;;  %2863 = vmatmul.bf16.gmra.mxu1 %v6052_v9  ;;  %v2081_v46 = vpop.f32.mrf.mxu3 }
 0x33d   : > { %v2162_v23 = vpop.f32.mrf.mxu0 }
 0x33e   : > { %v2206_v43 = vadd.f32 %v2158_v18, %v1554_v15  ;;  %2922 = vmatmul.bf16.gmra.mxu2 %v5973_v11  ;;  %v5004_v15 = vld [vmem:[#allocation9 + $0x48] sm:$0xff] }
 0x33f   : > { %3316 = vmatpush.bf16.msrb.mxu1 %v5004_v15 }
 0x340   : > { %v2238_v28 = vmax.f32 %v2206_v43, 0.0 }
 0x341   : > { %v1982_v60 = vpop.f32.mrf.mxu2  ;;  %v6058_v29 = vpop.f32.mrf.mxu1  ;;  %v2494_v11 = vld [vmem:[#allocation3 + $0x108] sm:$0xff] }
 0x342   : > { %2271 = vst [vmem:[#allocation3 + $0x111] sm:$0xff] %v2238_v28  ;;  %v2072_v36 = vadd.f32 %v2071_v61, %v1982_v60  ;;  %v6060_v53 = vpack.c.bf16 %v2238_v28, %v2237_v52  ;;  %v2551_v52 = vld [vmem:[#allocation3 + $0xb2] sm:$0xff] }
 0x344   : > { %v2161_v55 = vadd.f32 %v2160_v39, %v2072_v36  ;;  %v2083_v61 = vpop.f32.mrf.mxu3  ;;  %v6757_v39 = vld [vmem:[#allocation30_spill] sm:$0xff] }
 0x345   : > { %v2165_v35 = vpop.f32.mrf.mxu0  ;;  %v1559_v26 = vadd.f32 %v6757_v39, %v5897_v22 }
 0x346   : > { %v2207_v16 = vadd.f32 %v2161_v55, %v5894_v48 }
 0x348   : > { %v2239_v24 = vmax.f32 %v2207_v16, 0.0  ;;  %3249 = vmatmul.bf16.gmra.mxu0 %v5977_v6  ;;  %v2590_v6 = vpack.c.bf16 %v2551_v52, %v2550_v33 }
 0x349   : > { %v1984_v20 = vpop.f32.mrf.mxu2  ;;  %v6064_v2 = vpop.f32.mrf.mxu1  ;;  %v2495_v38 = vld [vmem:[#allocation3 + $0x110] sm:$0xff] }
 0x34a   : > { %2272 = vst [vmem:[#allocation3 + $0x121] sm:$0xff] %v2239_v24  ;;  %v2074_v40 = vadd.f32 %v2073_v56, %v1984_v20  ;;  %v6066_v21 = vpack.c.bf16 %v2495_v38, %v2494_v11  ;;  %3026 = vmatmul.bf16.gmra.mxu3 %v2590_v6  ;;  %v2553_v11 = vld [vmem:[#allocation3 + $0xca] sm:$0xff] }
 0x34c   : > { %v2163_v59 = vadd.f32 %v2162_v23, %v2074_v40  ;;  %2868 = vmatmul.bf16.gmra.mxu1 %v6066_v21  ;;  %v2086_v18 = vpop.f32.mrf.mxu3 }
 0x34d   : > { %v2167_v48 = vpop.f32.mrf.mxu0 }
 0x34e   : > { %v2208_v58 = vadd.f32 %v2163_v59, %v1559_v26  ;;  %2927 = vmatmul.bf16.gmra.mxu2 %v5988_v47 }
 0x350   : > { %v2240_v30 = vmax.f32 %v2208_v58, 0.0 }
 0x351   : > { %v1987_v62 = vpop.f32.mrf.mxu2  ;;  %v6072_v56 = vpop.f32.mrf.mxu1  ;;  %v2496_v36 = vld [vmem:[#allocation3 + $0x120] sm:$0xff] }
 0x352   : > { %2273 = vst [vmem:[#allocation3 + $0x129] sm:$0xff] %v2240_v30  ;;  %v2077_v44 = vadd.f32 %v2076_v0, %v1987_v62  ;;  %v6074_v37 = vpack.c.bf16 %v2240_v30, %v2239_v24  ;;  %v2552_v24 = vld [vmem:[#allocation3 + $0xc2] sm:$0xff] }
 0x354   : > { %v2166_v22 = vadd.f32 %v2165_v35, %v2077_v44  ;;  %v2088_v20 = vpop.f32.mrf.mxu3  ;;  %v1564_v35 = vadd.f32 %v5900_v12, %v5905_v10 }
 0x355   : > { %v2170_v23 = vpop.f32.mrf.mxu0 }
 0x356   : > { %v2209_v43 = vadd.f32 %v2166_v22, %v5902_v1  ;;  %v2554_v22 = vld [vmem:[#allocation3 + $0xda] sm:$0xff] }
 0x358   : > { %v2241_v28 = vmax.f32 %v2209_v43, 0.0  ;;  %3254 = vmatmul.bf16.gmra.mxu0 %v5992_v19  ;;  %v2593_v19 = vpack.c.bf16 %v2553_v11, %v2552_v24  ;;  %v2555_v43 = vld [vmem:[#allocation3 + $0xe2] sm:$0xff]  ;;  %v5003_v24 = vld [vmem:[#allocation9 + $0x40] sm:$0xff] }
 0x359   : > { %v1989_v47 = vpop.f32.mrf.mxu2  ;;  %v6078_v60 = vpop.f32.mrf.mxu1  ;;  %v2497_v55 = vld [vmem:[#allocation3 + $0x128] sm:$0xff]  ;;  %3317 = vmatpush.bf16.msrb.mxu1 %v5003_v24 }
 0x35a   : > { %2274 = vst [vmem:[#allocation3 + $0x139] sm:$0xff] %v2241_v28  ;;  %v2079_v16 = vadd.f32 %v2078_v13, %v1989_v47  ;;  %v6080_v0 = vpack.c.bf16 %v2497_v55, %v2496_v36  ;;  %3031 = vmatmul.bf16.gmra.mxu3 %v2593_v19 }
 0x35c   : > { %v2168_v38 = vadd.f32 %v2167_v48, %v2079_v16  ;;  %2873 = vmatmul.bf16.gmra.mxu1 %v6080_v0  ;;  %v2091_v26 = vpop.f32.mrf.mxu3 }
 0x35d   : > { %v2172_v1 = vpop.f32.mrf.mxu0 }
 0x35e   : > { %v2210_v40 = vadd.f32 %v2168_v38, %v1564_v35  ;;  %2932 = vmatmul.bf16.gmra.mxu2 %v6000_v17 }
 0x360   : > { %v2242_v33 = vmax.f32 %v2210_v40, 0.0 }
 0x361   : > { %v1992_v52 = vpop.f32.mrf.mxu2  ;;  %v6086_v13 = vpop.f32.mrf.mxu1  ;;  %v2498_v17 = vld [vmem:[#allocation3 + $0x138] sm:$0xff] }
 0x362   : > { %2275 = vst [vmem:[#allocation3 + $0x141] sm:$0xff] %v2242_v33  ;;  %v2082_v39 = vadd.f32 %v2081_v46, %v1992_v52  ;;  %v6088_v59 = vpack.c.bf16 %v2242_v33, %v2241_v28  ;;  %v2596_v28 = vpack.c.bf16 %v2555_v43, %v2554_v22 }
 0x364   : > { %v2171_v6 = vadd.f32 %v2170_v23, %v2082_v39  ;;  %v6096_v46 = vpop.f32.mrf.mxu3  ;;  %v1569_v23 = vadd.f32 %v5909_v8, %v5914_v14 }
 0x365   : > { %v2175_v12 = vpop.f32.mrf.mxu0 }
 0x366   : > { %v2211_v10 = vadd.f32 %v2171_v6, %v5911_v4  ;;  %v2556_v6 = vld [vmem:[#allocation3 + $0xf2] sm:$0xff] }
 0x368   : > { %v2243_v48 = vmax.f32 %v2211_v10, 0.0  ;;  %3259 = vmatmul.bf16.gmra.mxu0 %v6004_v49  ;;  %v1574_v10 = vadd.f32 %v5921_v45, %v5924_v27  ;;  %v5050_v27 = vld [vmem:[#allocation9 + $0x1b8] sm:$0xff] }
 0x369   : > { %v1994_v58 = vpop.f32.mrf.mxu2  ;;  %v6092_v30 = vpop.f32.mrf.mxu1  ;;  %v2499_v62 = vld [vmem:[#allocation3 + $0x140] sm:$0xff]  ;;  %3825 = vmatpush.bf16.msra.mxu3 %v5050_v27  ;;  %v2561_v27 = vld [vmem:[#allocation3 + $0x12a] sm:$0xff] }
 0x36a   : > { %2276 = vst [vmem:[#allocation3 + $0x151] sm:$0xff] %v2243_v48  ;;  %v2084_v44 = vadd.f32 %v2083_v61, %v1994_v58  ;;  %v6094_v15 = vpack.c.bf16 %v2499_v62, %v2498_v17  ;;  %3036 = vmatmul.bf16.gmra.mxu3 %v2596_v28 }
 0x36c   : > { %v2173_v4 = vadd.f32 %v2172_v1, %v2084_v44  ;;  %2878 = vmatmul.bf16.gmra.mxu1 %v6094_v15 }
 0x36d   : > { %v2177_v49 = vpop.f32.mrf.mxu0  ;;  %v6104_v11 = vpop.f32.mrf.mxu3 }
 0x36e   : > { %v2212_v47 = vadd.f32 %v2173_v4, %v1569_v23  ;;  %2937 = vmatmul.bf16.gmra.mxu2 %v6010_v51  ;;  %v5018_v23 = vld [vmem:[#allocation9 + $0xb8] sm:$0xff] }
 0x36f   : > { %3399 = vmatpush.bf16.msra.mxu2 %v5018_v23 }
 0x370   : > { %v2244_v36 = vmax.f32 %v2212_v47, 0.0 }
 0x371   : > { %v1997_v61 = vpop.f32.mrf.mxu2  ;;  %v6102_v55 = vpop.f32.mrf.mxu1  ;;  %v2500_v40 = vld [vmem:[#allocation3 + $0x150] sm:$0xff] }
 0x372   : > { %2277 = vst [vmem:[#allocation3 + $0x159] sm:$0xff] %v2244_v36  ;;  %v2087_v16 = vadd.f32 %v2086_v18, %v1997_v61  ;;  %v6106_v35 = vpack.c.bf16 %v2244_v36, %v2243_v48 }
 0x374   : > { %v2176_v8 = vadd.f32 %v2175_v12, %v2087_v16  ;;  %v2557_v12 = vld [vmem:[#allocation3 + $0xfa] sm:$0xff] }
 0x375   : > { %v2180_v14 = vpop.f32.mrf.mxu0  ;;  %v6114_v39 = vpop.f32.mrf.mxu3  ;;  %v2599_v48 = vpack.c.bf16 %v2557_v12, %v2556_v6 }
 0x376   : > { %v2213_v38 = vadd.f32 %v2176_v8, %v5918_v34  ;;  %v2558_v8 = vld [vmem:[#allocation3 + $0x10a] sm:$0xff] }
 0x378   : > { %v2245_v1 = vmax.f32 %v2213_v38, 0.0  ;;  %3264 = vmatmul.bf16.gmra.mxu0 %v6014_v57 }
 0x379   : > { %v1999_v51 = vpop.f32.mrf.mxu2  ;;  %v6110_v19 = vpop.f32.mrf.mxu1  ;;  %v2501_v33 = vld [vmem:[#allocation3 + $0x158] sm:$0xff] }
 0x37a   : > { %2278 = vst [vmem:[#allocation3 + $0x169] sm:$0xff] %v2245_v1  ;;  %v2089_v18 = vadd.f32 %v2088_v20, %v1999_v51  ;;  %v6112_v52 = vpack.c.bf16 %v2501_v33, %v2500_v40  ;;  %3041 = vmatmul.bf16.gmra.mxu3 %v2599_v48 }
 0x37c   : > { %v2178_v34 = vadd.f32 %v2177_v49, %v2089_v18  ;;  %2883 = vmatmul.bf16.gmra.mxu1 %v6112_v52 }
 0x37d   : > { %v2182_v57 = vpop.f32.mrf.mxu0  ;;  %v6122_v22 = vpop.f32.mrf.mxu3 }
 0x37e   : > { %v2214_v58 = vadd.f32 %v2178_v34, %v1574_v10  ;;  %2942 = vmatmul.bf16.gmra.mxu2 %v6020_v31 }
 0x380   : > { %v2246_v17 = vmax.f32 %v2214_v58, 0.0 }
 0x381   : > { %v2002_v20 = vpop.f32.mrf.mxu2  ;;  %v6120_v62 = vpop.f32.mrf.mxu1  ;;  %v2502_v36 = vld [vmem:[#allocation3 + $0x168] sm:$0xff] }
 0x382   : > { %2279 = vst [vmem:[#allocation3 + $0x171] sm:$0xff] %v2246_v17  ;;  %v2092_v44 = vadd.f32 %v2091_v26, %v2002_v20  ;;  %v6124_v43 = vpack.c.bf16 %v2246_v17, %v2245_v1  ;;  %v5066_v1 = vld [vmem:[#allocation9 + $0x238] sm:$0xff] }
 0x383   : > { %4003 = vmatpush.bf16.msra.mxu1 %v5066_v1 }
 0x384   : > { %v2181_v45 = vadd.f32 %v2180_v14, %v2092_v44  ;;  %v2559_v14 = vld [vmem:[#allocation3 + $0x112] sm:$0xff] }
 0x385   : > { %v3230_v4 = vpop.f32.mrf.mxu0  ;;  %v6133_v24 = vpop.f32.mrf.mxu3  ;;  %v2602_v40 = vpack.c.bf16 %v2559_v14, %v2558_v8  ;;  %v2315_v14 = vld [vmem:[#allocation3 + $0x9] sm:$0xff] }
 0x386   : > { %v2215_v49 = vadd.f32 %v2181_v45, %v5928_v25  ;;  %v1579_v25 = vadd.f32 %v6030_v5, %v5932_v41 }
 0x388   : > { %v2247_v31 = vmax.f32 %v2215_v49, 0.0  ;;  %3269 = vmatmul.bf16.gmra.mxu0 %v6024_v63  ;;  %v5058_v63 = vld [vmem:[#allocation9 + $0x1f8] sm:$0xff] }
 0x389   : > { %v2004_v28 = vpop.f32.mrf.mxu2  ;;  %v6128_v47 = vpop.f32.mrf.mxu1  ;;  %v2503_v26 = vld [vmem:[#allocation3 + $0x170] sm:$0xff]  ;;  %3914 = vmatpush.bf16.msra.mxu0 %v5058_v63 }
 0x38a   : > { %2280 = vst [vmem:[#allocation3 + $0x181] sm:$0xff] %v2247_v31  ;;  %v2094_v61 = vadd.f32 %v6096_v46, %v2004_v28  ;;  %v6131_v16 = vpack.c.bf16 %v2503_v26, %v2502_v36  ;;  %3046 = vmatmul.bf16.gmra.mxu3 %v2602_v40  ;;  %v5049_v26 = vld [vmem:[#allocation9 + $0x1b0] sm:$0xff] }
 0x38b   : > { %3826 = vmatpush.bf16.msra.mxu3 %v5049_v26 }
 0x38c   : > { %v2183_v38 = vadd.f32 %v2182_v57, %v2094_v61  ;;  %2888 = vmatmul.bf16.gmra.mxu1 %v6131_v16  ;;  %v5017_v61 = vld [vmem:[#allocation9 + $0xb0] sm:$0xff] }
 0x38d   : > { %v3232_v51 = vpop.f32.mrf.mxu0  ;;  %v3007_v5 = vpop.f32.mrf.mxu3  ;;  %3400 = vmatpush.bf16.msra.mxu2 %v5017_v61 }
 0x38e   : > { %v2216_v33 = vadd.f32 %v2183_v38, %v1579_v25  ;;  %2947 = vmatmul.bf16.gmra.mxu2 %v6032_v50 }
 0x390   : > { %v2248_v46 = vmax.f32 %v2216_v33, 0.0  ;;  %v5057_v33 = vld [vmem:[#allocation9 + $0x1f0] sm:$0xff] }
 0x391   : > { %v6139_v18 = vpop.f32.mrf.mxu1  ;;  %v2908_v6 = vpop.f32.mrf.mxu2  ;;  %v2504_v58 = vld [vmem:[#allocation3 + $0x180] sm:$0xff]  ;;  %3915 = vmatpush.bf16.msra.mxu0 %v5057_v33  ;;  %v2567_v33 = vld [vmem:[#allocation3 + $0x172] sm:$0xff] }
 0x392   : > { %2281 = vst [vmem:[#allocation3 + $0x189] sm:$0xff] %v2248_v46  ;;  %v2909_v41 = vadd.f32 %v2908_v6, %v6036_v3  ;;  %v6142_v12 = vpack.c.bf16 %v2248_v46, %v2247_v31  ;;  %v2560_v3 = vld [vmem:[#allocation3 + $0x122] sm:$0xff] }
 0x393   : > { %v2605_v49 = vpack.c.bf16 %v2561_v27, %v2560_v3  ;;  %v5065_v46 = vld [vmem:[#allocation9 + $0x230] sm:$0xff] }
 0x394   : > { %v2998_v10 = vadd.f32 %v6104_v11, %v2909_v41  ;;  %4004 = vmatpush.bf16.msra.mxu1 %v5065_v46  ;;  %v2316_v3 = vld [vmem:[#allocation3 + $0x19] sm:$0xff] }
 0x395   : > { %v3235_v34 = vpop.f32.mrf.mxu0  ;;  %v3009_v45 = vpop.f32.mrf.mxu3 }
 0x396   : > { %v6145_v57 = vadd.f32 %v3230_v4, %v2998_v10 }
 0x398   : > { %3274 = vmatmul.bf16.gmra.mxu0 %v6038_v42 }
 0x399   : > { %v6148_v50 = vpop.f32.mrf.mxu1  ;;  %v2910_v48 = vpop.f32.mrf.mxu2  ;;  %v2505_v17 = vld [vmem:[#allocation3 + $0x188] sm:$0xff] }
 0x39a   : > { %v2911_v20 = vadd.f32 %v2910_v48, %v6044_v7  ;;  %v2615_v44 = vpack.c.bf16 %v2505_v17, %v2504_v58  ;;  %3051 = vmatmul.bf16.gmra.mxu3 %v2605_v49  ;;  %v2564_v49 = vld [vmem:[#allocation3 + $0x152] sm:$0xff] }
 0x39c   : > { %v3000_v23 = vadd.f32 %v6114_v39, %v2911_v20  ;;  %2893 = vmatmul.bf16.gmra.mxu1 %v2615_v44  ;;  %v2314_v39 = vld [vmem:[#allocation3 + $0x1] sm:$0xff] }
 0x39d   : > { %v3237_v11 = vpop.f32.mrf.mxu0  ;;  %v3012_v7 = vpop.f32.mrf.mxu3  ;;  %v2317_v20 = vld [vmem:[#allocation3 + $0x21] sm:$0xff] }
 0x39e   : > { %2952 = vmatmul.bf16.gmra.mxu2 %v6046_v54  ;;  %v6153_v4 = vadd.f32 %v3232_v51, %v3000_v23  ;;  %v2379_v54 = vpack.c.bf16 %v2315_v14, %v2314_v39  ;;  %v2562_v51 = vld [vmem:[#allocation3 + $0x13a] sm:$0xff]  ;;  %v2382_v23 = vpack.c.bf16 %v2317_v20, %v2316_v3 }
 0x39f   : > { %v5048_v39 = vld [vmem:[#allocation9 + $0x1a8] sm:$0xff] }
 0x3a0   : > { %v5016_v14 = vld [vmem:[#allocation9 + $0xa8] sm:$0xff]  ;;  %3827 = vmatpush.bf16.msra.mxu3 %v5048_v39 }
 0x3a1   : > { %v6155_v42 = vpop.f32.mrf.mxu1  ;;  %v2913_v31 = vpop.f32.mrf.mxu2  ;;  %3401 = vmatpush.bf16.msra.mxu2 %v5016_v14  ;;  %v5046_v14 = vld [vmem:[#allocation9 + $0x198] sm:$0xff] }
 0x3a2   : > { %v2914_v28 = vadd.f32 %v2913_v31, %v6050_v32  ;;  %v2565_v31 = vld [vmem:[#allocation3 + $0x15a] sm:$0xff] }
 0x3a4   : > { %v3003_v36 = vadd.f32 %v6122_v22, %v2914_v28  ;;  %v2563_v22 = vld [vmem:[#allocation3 + $0x142] sm:$0xff] }
 0x3a5   : > { %v3240_v8 = vpop.f32.mrf.mxu0  ;;  %v3014_v1 = vpop.f32.mrf.mxu3  ;;  %v2608_v41 = vpack.c.bf16 %v2563_v22, %v2562_v51  ;;  %v2318_v51 = vld [vmem:[#allocation3 + $0x31] sm:$0xff] }
 0x3a6   : > { %v6159_v25 = vadd.f32 %v3235_v34, %v3003_v36 }
 0x3a8   : > { %3279 = vmatmul.bf16.gmra.mxu0 %v6052_v9 }
 0x3a9   : > { %v6162_v38 = vpop.f32.mrf.mxu1  ;;  %v2915_v63 = vpop.f32.mrf.mxu2 }
 0x3aa   : > { %v2916_v32 = vadd.f32 %v2915_v63, %v6058_v29  ;;  %3056 = vmatmul.bf16.gmra.mxu3 %v2608_v41  ;;  %v2319_v63 = vld [vmem:[#allocation3 + $0x39] sm:$0xff] }
 0x3ab   : > { %v5064_v41 = vld [vmem:[#allocation9 + $0x228] sm:$0xff] }
 0x3ac   : > { %v3005_v40 = vadd.f32 %v6133_v24, %v2916_v32  ;;  %3318 = vmatmul.bf16.vlgmr.msrb.gmra.mxu1 %v2379_v54 }
 0x3ad   : > { %v3242_v6 = vpop.f32.mrf.mxu0  ;;  %v3017_v48 = vpop.f32.mrf.mxu3  ;;  %4005 = vmatpush.bf16.msra.mxu1 %v5064_v41  ;;  %v5044_v41 = vld [vmem:[#allocation9 + $0x188] sm:$0xff] }
 0x3ae   : > { %2957 = vmatmul.bf16.gmra.mxu2 %v6060_v53  ;;  %v6167_v10 = vadd.f32 %v3237_v11, %v3005_v40 }
 0x3b1   : > { %v6169_v9 = vpop.f32.mrf.mxu1  ;;  %v2918_v29 = vpop.f32.mrf.mxu2 }
 0x3b2   : > { %v2919_v34 = vadd.f32 %v2918_v29, %v6064_v2 }
 0x3b4   : > { %v3008_v58 = vadd.f32 %v3007_v5, %v2919_v34  ;;  %v2611_v5 = vpack.c.bf16 %v2565_v31, %v2564_v49  ;;  %v2320_v49 = vld [vmem:[#allocation3 + $0x49] sm:$0xff] }
 0x3b5   : > { %v3245_v24 = vpop.f32.mrf.mxu0  ;;  %v3019_v11 = vpop.f32.mrf.mxu3 }
 0x3b6   : > { %v6172_v17 = vadd.f32 %v3240_v8, %v3008_v58 }
 0x3b8   : > { %3284 = vmatmul.bf16.gmra.mxu0 %v6066_v21 }
 0x3b9   : > { %v6175_v44 = vpop.f32.mrf.mxu1  ;;  %v2920_v53 = vpop.f32.mrf.mxu2 }
 0x3ba   : > { %v2921_v27 = vadd.f32 %v2920_v53, %v6072_v56  ;;  %3061 = vmatmul.bf16.gmra.mxu3 %v2611_v5  ;;  %v2569_v5 = vld [vmem:[#allocation3 + $0x18a] sm:$0xff] }
 0x3bc   : > { %v3010_v28 = vadd.f32 %v3009_v45, %v2921_v27  ;;  %3323 = vmatmul.bf16.gmra.mxu1 %v2382_v23  ;;  %v2321_v27 = vld [vmem:[#allocation3 + $0x51] sm:$0xff] }
 0x3bd   : > { %v3247_v2 = vpop.f32.mrf.mxu0  ;;  %v6184_v8 = vpop.f32.mrf.mxu3 }
 0x3be   : > { %2962 = vmatmul.bf16.gmra.mxu2 %v6074_v37  ;;  %v6179_v36 = vadd.f32 %v3242_v6, %v3010_v28  ;;  %v5056_v6 = vld [vmem:[#allocation9 + $0x1e8] sm:$0xff]  ;;  %v6211_v28 = vpack.c.bf16 %v2321_v27, %v2320_v49  ;;  %v2322_v27 = vld [vmem:[#allocation3 + $0x61] sm:$0xff] }
 0x3bf   : > { %3916 = vmatpush.bf16.msra.mxu0 %v5056_v6 }
 0x3c1   : > { %v6181_v21 = vpop.f32.mrf.mxu1  ;;  %v2923_v26 = vpop.f32.mrf.mxu2 }
 0x3c2   : > { %v2924_v61 = vadd.f32 %v2923_v26, %v6078_v60  ;;  %v6192_v60 = vpack.c.bf16 %v2319_v63, %v2318_v51  ;;  %v5054_v63 = vld [vmem:[#allocation9 + $0x1d8] sm:$0xff] }
 0x3c4   : > { %v3013_v56 = vadd.f32 %v3012_v7, %v2924_v61  ;;  %v2566_v7 = vld [vmem:[#allocation3 + $0x16a] sm:$0xff] }
 0x3c5   : > { %v3250_v54 = vpop.f32.mrf.mxu0  ;;  %v6194_v40 = vpop.f32.mrf.mxu3  ;;  %v2614_v34 = vpack.c.bf16 %v2567_v33, %v2566_v7  ;;  %v5047_v61 = vld [vmem:[#allocation9 + $0x1a0] sm:$0xff]  ;;  %v5013_v7 = vld [vmem:[#allocation9 + $0x90] sm:$0xff] }
 0x3c6   : > { %v6186_v45 = vadd.f32 %v3245_v24, %v3013_v56  ;;  %v5055_v56 = vld [vmem:[#allocation9 + $0x1e0] sm:$0xff]  ;;  %3828 = vmatpush.bf16.msra.mxu3 %v5047_v61  ;;  %v5045_v33 = vld [vmem:[#allocation9 + $0x190] sm:$0xff] }
 0x3c7   : > { %3917 = vmatpush.bf16.msra.mxu0 %v5055_v56 }
 0x3c8   : > { %3289 = vmatmul.bf16.gmra.mxu0 %v6080_v0 }
 0x3c9   : > { %v6189_v37 = vpop.f32.mrf.mxu1  ;;  %v2925_v32 = vpop.f32.mrf.mxu2 }
 0x3ca   : > { %v2926_v22 = vadd.f32 %v2925_v32, %v6086_v13  ;;  %3066 = vmatmul.bf16.gmra.mxu3 %v2614_v34  ;;  %v2323_v34 = vld [vmem:[#allocation3 + $0x69] sm:$0xff] }
 0x3cb   : > { %3829 = vmatpush.bf16.msra.mxu3 %v5046_v14  ;;  %3918 = vmatpush.bf16.msra.mxu0 %v5054_v63 }
 0x3cc   : > { %v3015_v46 = vadd.f32 %v3014_v1, %v2926_v22  ;;  %3328 = vmatmul.bf16.gmra.mxu1 %v6192_v60 }
 0x3cd   : > { %v3252_v29 = vpop.f32.mrf.mxu0  ;;  %v6203_v20 = vpop.f32.mrf.mxu3 }
 0x3ce   : > { %2967 = vmatmul.bf16.gmra.mxu2 %v6088_v59  ;;  %v6198_v0 = vadd.f32 %v3247_v2, %v3015_v46  ;;  %v5053_v46 = vld [vmem:[#allocation9 + $0x1d0] sm:$0xff] }
 0x3cf   : > { %3830 = vmatpush.bf16.msra.mxu3 %v5045_v33  ;;  %3919 = vmatpush.bf16.msra.mxu0 %v5053_v46 }
 0x3d1   : > { %v6200_v13 = vpop.f32.mrf.mxu1  ;;  %v2928_v58 = vpop.f32.mrf.mxu2 }
 0x3d2   : > { %v2929_v24 = vadd.f32 %v2928_v58, %v6092_v30  ;;  %v2568_v30 = vld [vmem:[#allocation3 + $0x182] sm:$0xff]  ;;  %v5012_v58 = vld [vmem:[#allocation9 + $0x88] sm:$0xff] }
 0x3d3   : > { %3831 = vmatpush.bf16.msra.mxu3 %v5044_v41 }
 0x3d4   : > { %v3018_v1 = vadd.f32 %v3017_v48, %v2929_v24  ;;  %v5015_v48 = vld [vmem:[#allocation9 + $0xa0] sm:$0xff] }
 0x3d5   : > { %v3255_v53 = vpop.f32.mrf.mxu0  ;;  %v6213_v2 = vpop.f32.mrf.mxu3  ;;  %3402 = vmatpush.bf16.msra.mxu2 %v5015_v48  ;;  %v5063_v48 = vld [vmem:[#allocation9 + $0x220] sm:$0xff] }
 0x3d6   : > { %v6205_v3 = vadd.f32 %v3250_v54, %v3018_v1  ;;  %4006 = vmatpush.bf16.msra.mxu1 %v5063_v48 }
 0x3d8   : > { %3294 = vmatmul.bf16.gmra.mxu0 %v6094_v15  ;;  %v2617_v15 = vpack.c.bf16 %v2569_v5, %v2568_v30  ;;  %v5011_v30 = vld [vmem:[#allocation9 + $0x80] sm:$0xff] }
 0x3d9   : > { %v6208_v59 = vpop.f32.mrf.mxu1  ;;  %v2930_v23 = vpop.f32.mrf.mxu2  ;;  %v5043_v5 = vld [vmem:[#allocation9 + $0x180] sm:$0xff] }
 0x3da   : > { %v2931_v31 = vadd.f32 %v2930_v23, %v6102_v55  ;;  %v5014_v55 = vld [vmem:[#allocation9 + $0x98] sm:$0xff]  ;;  %3071 = vmatmul.bf16.gmra.mxu3 %v2617_v15  ;;  %v6231_v23 = vpack.c.bf16 %v2323_v34, %v2322_v27 }
 0x3db   : > { %3403 = vmatpush.bf16.msra.mxu2 %v5014_v55  ;;  %3832 = vmatpush.bf16.msra.mxu3 %v5043_v5  ;;  %v2347_v5 = vld [vmem:[#allocation3 + $0xa] sm:$0xff] }
 0x3dc   : > { %v3020_v26 = vadd.f32 %v3019_v11, %v2931_v31  ;;  %3333 = vmatmul.bf16.gmra.mxu1 %v6211_v28 }
 0x3dd   : > { %v3257_v39 = vpop.f32.mrf.mxu0  ;;  %v6222_v22 = vpop.f32.mrf.mxu3 }
 0x3de   : > { %2972 = vmatmul.bf16.gmra.mxu2 %v6106_v35  ;;  %v6217_v54 = vadd.f32 %v3252_v29, %v3020_v26 }
 0x3df   : > { %3404 = vmatpush.bf16.msra.mxu2 %v5013_v7  ;;  %v2324_v7 = vld [vmem:[#allocation3 + $0x79] sm:$0xff] }
 0x3e1   : > { %v6219_v32 = vpop.f32.mrf.mxu1  ;;  %v2933_v11 = vpop.f32.mrf.mxu2 }
 0x3e2   : > { %v2934_v51 = vadd.f32 %v2933_v11, %v6110_v19  ;;  %v5052_v19 = vld [vmem:[#allocation9 + $0x1c8] sm:$0xff] }
 0x3e3   : > { %3405 = vmatpush.bf16.msra.mxu2 %v5012_v58  ;;  %3920 = vmatpush.bf16.msra.mxu0 %v5052_v19 }
 0x3e4   : > { %v3023_v35 = vadd.f32 %v6184_v8, %v2934_v51 }
 0x3e5   : > { %v3260_v6 = vpop.f32.mrf.mxu0  ;;  %v3034_v49 = vpop.f32.mrf.mxu3 }
 0x3e6   : > { %v6225_v29 = vadd.f32 %v3255_v53, %v3023_v35  ;;  %v3490_v53 = vld [vmem:[#allocation3 + $0x38] sm:$0xff] }
 0x3e7   : > { %3406 = vmatpush.bf16.msra.mxu2 %v5011_v30  ;;  %v2346_v30 = vld [vmem:[#allocation3 + $0x2] sm:$0xff] }
 0x3e8   : > { %3299 = vmatmul.bf16.gmra.mxu0 %v6112_v52  ;;  %v5051_v52 = vld [vmem:[#allocation9 + $0x1c0] sm:$0xff] }
 0x3e9   : > { %v6228_v24 = vpop.f32.mrf.mxu1  ;;  %v2935_v1 = vpop.f32.mrf.mxu2  ;;  %3921 = vmatpush.bf16.msra.mxu0 %v5051_v52 }
 0x3ea   : > { %v2936_v8 = vadd.f32 %v2935_v1, %v6120_v62  ;;  %v3489_v62 = vld [vmem:[#allocation3 + $0x30] sm:$0xff] }
 0x3eb   : > { %v3585_v56 = vpack.c.bf16 %v3490_v53, %v3489_v62 }
 0x3ec   : > { %v3025_v31 = vadd.f32 %v6194_v40, %v2936_v8  ;;  %3338 = vmatmul.bf16.gmra.mxu1 %v6231_v23 }
 0x3ed   : > { %v3262_v26 = vpop.f32.mrf.mxu0  ;;  %3833 = vmatmul.bf16.vlgmr.msra.gmra.mxu3 %v3585_v56  ;;  %v3037_v55 = vpop.f32.mrf.mxu3 }
 0x3ee   : > { %2977 = vmatmul.bf16.gmra.mxu2 %v6124_v43  ;;  %v6236_v61 = vadd.f32 %v3257_v39, %v3025_v31  ;;  %v2325_v43 = vld [vmem:[#allocation3 + $0x81] sm:$0xff]  ;;  %v2327_v31 = vld [vmem:[#allocation3 + $0x99] sm:$0xff] }
 0x3ef   : > { %v6248_v46 = vpack.c.bf16 %v2325_v43, %v2324_v7 }
 0x3f1   : > { %v6238_v15 = vpop.f32.mrf.mxu1  ;;  %v2938_v40 = vpop.f32.mrf.mxu2 }
 0x3f2   : > { %v2939_v14 = vadd.f32 %v2938_v40, %v6128_v47 }
 0x3f4   : > { %v3028_v63 = vadd.f32 %v6203_v20, %v2939_v14  ;;  %v3492_v20 = vld [vmem:[#allocation3 + $0x50] sm:$0xff]  ;;  %v3494_v14 = vld [vmem:[#allocation3 + $0x68] sm:$0xff] }
 0x3f5   : > { %v3265_v11 = vpop.f32.mrf.mxu0  ;;  %v3039_v41 = vpop.f32.mrf.mxu3 }
 0x3f6   : > { %v6242_v51 = vadd.f32 %v3260_v6, %v3028_v63  ;;  %v3491_v6 = vld [vmem:[#allocation3 + $0x48] sm:$0xff] }
 0x3f8   : > { %3304 = vmatmul.bf16.gmra.mxu0 %v6131_v16  ;;  %v3588_v16 = vpack.c.bf16 %v3492_v20, %v3491_v6  ;;  %v2329_v6 = vld [vmem:[#allocation3 + $0xb1] sm:$0xff] }
 0x3f9   : > { %v6245_v39 = vpop.f32.mrf.mxu1  ;;  %v2940_v35 = vpop.f32.mrf.mxu2 }
 0x3fa   : > { %v2941_v33 = vadd.f32 %v2940_v35, %v6139_v18 }
 0x3fc   : > { %v3030_v47 = vadd.f32 %v6213_v2, %v2941_v33  ;;  %3343 = vmatmul.bf16.gmra.mxu1 %v6248_v46 }
 0x3fd   : > { %v3267_v34 = vpop.f32.mrf.mxu0  ;;  %3838 = vmatmul.bf16.gmra.mxu3 %v3588_v16  ;;  %v3042_v27 = vpop.f32.mrf.mxu3 }
 0x3fe   : > { %2982 = vmatmul.bf16.gmra.mxu2 %v6142_v12  ;;  %v6253_v58 = vadd.f32 %v3262_v26, %v3030_v47  ;;  %v2326_v26 = vld [vmem:[#allocation3 + $0x91] sm:$0xff] }
 0x3ff   : > { %v6265_v62 = vpack.c.bf16 %v2327_v31, %v2326_v26  ;;  %v3495_v26 = vld [vmem:[#allocation3 + $0x78] sm:$0xff] }
 0x401   : > { %v6255_v19 = vpop.f32.mrf.mxu1  ;;  %v2943_v1 = vpop.f32.mrf.mxu2 }
 0x402   : > { %v2944_v18 = vadd.f32 %v2943_v1, %v6148_v50  ;;  %v2380_v50 = vpack.c.bf16 %v2347_v5, %v2346_v30 }
 0x404   : > { %v3033_v8 = vadd.f32 %v6222_v22, %v2944_v18  ;;  %v5062_v22 = vld [vmem:[#allocation9 + $0x218] sm:$0xff]  ;;  %v2348_v18 = vld [vmem:[#allocation3 + $0x1a] sm:$0xff] }
 0x405   : > { %v3270_v2 = vpop.f32.mrf.mxu0  ;;  %v3044_v56 = vpop.f32.mrf.mxu3  ;;  %4007 = vmatpush.bf16.msra.mxu1 %v5062_v22 }
 0x406   : > { %v6259_v53 = vadd.f32 %v3265_v11, %v3033_v8  ;;  %v3493_v11 = vld [vmem:[#allocation3 + $0x60] sm:$0xff] }
 0x407   : > { %v3591_v43 = vpack.c.bf16 %v3494_v14, %v3493_v11  ;;  %v2349_v8 = vld [vmem:[#allocation3 + $0x22] sm:$0xff] }
 0x408   : > { %3922 = vmatmul.bf16.vlgmr.msra.gmra.mxu0 %v6192_v60 }
 0x409   : > { %v6262_v12 = vpop.f32.mrf.mxu1  ;;  %v2945_v52 = vpop.f32.mrf.mxu2 }
 0x40a   : > { %v2946_v48 = vadd.f32 %v2945_v52, %v6155_v42 }
 0x40c   : > { %v3035_v40 = vadd.f32 %v3034_v49, %v2946_v48  ;;  %3348 = vmatmul.bf16.gmra.mxu1 %v6265_v62 }
 0x40d   : > { %v3272_v63 = vpop.f32.mrf.mxu0  ;;  %3843 = vmatmul.bf16.gmra.mxu3 %v3591_v43  ;;  %v3047_v33 = vpop.f32.mrf.mxu3  ;;  %v2331_v43 = vld [vmem:[#allocation3 + $0xc9] sm:$0xff] }
 0x40e   : > { %3407 = vmatmul.bf16.vlgmr.msra.gmra.mxu2 %v2380_v50  ;;  %v6268_v60 = vadd.f32 %v3267_v34, %v3035_v40  ;;  %v2328_v34 = vld [vmem:[#allocation3 + $0xa9] sm:$0xff] }
 0x40f   : > { %v6279_v30 = vpack.c.bf16 %v2329_v6, %v2328_v34  ;;  %v2351_v6 = vld [vmem:[#allocation3 + $0x3a] sm:$0xff] }
 0x411   : > { %v6270_v35 = vpop.f32.mrf.mxu1  ;;  %v2948_v7 = vpop.f32.mrf.mxu2 }
 0x412   : > { %v2949_v42 = vadd.f32 %v2948_v7, %v6162_v38 }
 0x414   : > { %v3038_v47 = vadd.f32 %v3037_v55, %v2949_v42  ;;  %v2383_v55 = vpack.c.bf16 %v2349_v8, %v2348_v18  ;;  %v5061_v8 = vld [vmem:[#allocation9 + $0x210] sm:$0xff] }
 0x415   : > { %v3275_v49 = vpop.f32.mrf.mxu0  ;;  %v3049_v5 = vpop.f32.mrf.mxu3  ;;  %4008 = vmatpush.bf16.msra.mxu1 %v5061_v8  ;;  %v3499_v8 = vld [vmem:[#allocation3 + $0xa8] sm:$0xff] }
 0x416   : > { %v6273_v20 = vadd.f32 %v3270_v2, %v3038_v47  ;;  %v3496_v2 = vld [vmem:[#allocation3 + $0x80] sm:$0xff] }
 0x417   : > { %v3594_v48 = vpack.c.bf16 %v3496_v2, %v3495_v26  ;;  %v2330_v47 = vld [vmem:[#allocation3 + $0xc1] sm:$0xff] }
 0x418   : > { %3927 = vmatmul.bf16.gmra.mxu0 %v6211_v28  ;;  %v6294_v18 = vpack.c.bf16 %v2331_v43, %v2330_v47  ;;  %v2333_v43 = vld [vmem:[#allocation3 + $0xe1] sm:$0xff]  ;;  %v2352_v47 = vld [vmem:[#allocation3 + $0x4a] sm:$0xff] }
 0x419   : > { %v6276_v16 = vpop.f32.mrf.mxu1  ;;  %v2950_v1 = vpop.f32.mrf.mxu2 }
 0x41a   : > { %v2951_v31 = vadd.f32 %v2950_v1, %v6169_v9 }
 0x41c   : > { %v3040_v38 = vadd.f32 %v3039_v41, %v2951_v31  ;;  %3353 = vmatmul.bf16.gmra.mxu1 %v6279_v30 }
 0x41d   : > { %v3277_v52 = vpop.f32.mrf.mxu0  ;;  %3848 = vmatmul.bf16.gmra.mxu3 %v3594_v48  ;;  %v3052_v22 = vpop.f32.mrf.mxu3 }
 0x41e   : > { %3412 = vmatmul.bf16.gmra.mxu2 %v2383_v55  ;;  %v6282_v28 = vadd.f32 %v3272_v63, %v3040_v38  ;;  %v2350_v63 = vld [vmem:[#allocation3 + $0x32] sm:$0xff] }
 0x41f   : > { %v3497_v38 = vld [vmem:[#allocation3 + $0x90] sm:$0xff] }
 0x421   : > { %v6284_v50 = vpop.f32.mrf.mxu1  ;;  %v2953_v40 = vpop.f32.mrf.mxu2 }
 0x422   : > { %v2954_v9 = vadd.f32 %v2953_v40, %v6175_v44 }
 0x424   : > { %v3043_v14 = vadd.f32 %v3042_v27, %v2954_v9 }
 0x425   : > { %v3280_v11 = vpop.f32.mrf.mxu0  ;;  %v3054_v44 = vpop.f32.mrf.mxu3 }
 0x426   : > { %v6287_v41 = vadd.f32 %v3275_v49, %v3043_v14  ;;  %v6297_v49 = vpack.c.bf16 %v2351_v6, %v2350_v63  ;;  %v2353_v63 = vld [vmem:[#allocation3 + $0x52] sm:$0xff] }
 0x428   : > { %3932 = vmatmul.bf16.gmra.mxu0 %v6231_v23  ;;  %v3498_v23 = vld [vmem:[#allocation3 + $0x98] sm:$0xff] }
 0x429   : > { %v2955_v7 = vpop.f32.mrf.mxu2  ;;  %v3319_v42 = vpop.f32.mrf.mxu1 }
 0x42a   : > { %v2956_v1 = vadd.f32 %v2955_v7, %v6181_v21  ;;  %v6292_v34 = vadd.f32 %v3319_v42, %v6145_v57  ;;  %v3597_v21 = vpack.c.bf16 %v3498_v23, %v3497_v38  ;;  %v2332_v42 = vld [vmem:[#allocation3 + $0xd9] sm:$0xff] }
 0x42c   : > { %v3045_v27 = vadd.f32 %v3044_v56, %v2956_v1  ;;  %3358 = vmatmul.bf16.gmra.mxu1 %v6294_v18 }
 0x42d   : > { %v3282_v31 = vpop.f32.mrf.mxu0  ;;  %3853 = vmatmul.bf16.gmra.mxu3 %v3597_v21  ;;  %v3057_v48 = vpop.f32.mrf.mxu3 }
 0x42e   : > { %3417 = vmatmul.bf16.gmra.mxu2 %v6297_v49  ;;  %v6300_v55 = vadd.f32 %v3277_v52, %v3045_v27  ;;  %v3500_v27 = vld [vmem:[#allocation3 + $0xb0] sm:$0xff] }
 0x42f   : > { %v3600_v38 = vpack.c.bf16 %v3500_v27, %v3499_v8  ;;  %v3501_v8 = vld [vmem:[#allocation3 + $0xc0] sm:$0xff] }
 0x431   : > { %v2958_v57 = vpop.f32.mrf.mxu2  ;;  %v3321_v2 = vpop.f32.mrf.mxu1 }
 0x432   : > { %v2959_v26 = vadd.f32 %v2958_v57, %v6189_v37  ;;  %v6304_v56 = vadd.f32 %v3321_v2, %v6153_v4  ;;  %v6313_v4 = vpack.c.bf16 %v2333_v43, %v2332_v42  ;;  %v2335_v43 = vld [vmem:[#allocation3 + $0xf9] sm:$0xff]  ;;  %v2354_v42 = vld [vmem:[#allocation3 + $0x62] sm:$0xff] }
 0x434   : > { %v3048_v40 = vadd.f32 %v3047_v33, %v2959_v26 }
 0x435   : > { %v3285_v9 = vpop.f32.mrf.mxu0  ;;  %v3059_v1 = vpop.f32.mrf.mxu3 }
 0x436   : > { %v6306_v14 = vadd.f32 %v3280_v11, %v3048_v40  ;;  %v6316_v11 = vpack.c.bf16 %v2353_v63, %v2352_v47  ;;  %v2355_v47 = vld [vmem:[#allocation3 + $0x6a] sm:$0xff] }
 0x438   : > { %3937 = vmatmul.bf16.gmra.mxu0 %v6248_v46 }
 0x439   : > { %v2960_v7 = vpop.f32.mrf.mxu2  ;;  %v3324_v52 = vpop.f32.mrf.mxu1 }
 0x43a   : > { %v2961_v6 = vadd.f32 %v2960_v7, %v6200_v13  ;;  %v6311_v37 = vadd.f32 %v3324_v52, %v6159_v25  ;;  %v2334_v52 = vld [vmem:[#allocation3 + $0xf1] sm:$0xff] }
 0x43c   : > { %v3050_v33 = vadd.f32 %v3049_v5, %v2961_v6  ;;  %3363 = vmatmul.bf16.gmra.mxu1 %v6313_v4 }
 0x43d   : > { %v3287_v46 = vpop.f32.mrf.mxu0  ;;  %3858 = vmatmul.bf16.gmra.mxu3 %v3600_v38  ;;  %v3062_v5 = vpop.f32.mrf.mxu3 }
 0x43e   : > { %3422 = vmatmul.bf16.gmra.mxu2 %v6316_v11  ;;  %v6319_v23 = vadd.f32 %v3282_v31, %v3050_v33  ;;  %v5060_v33 = vld [vmem:[#allocation9 + $0x208] sm:$0xff] }
 0x43f   : > { %4009 = vmatpush.bf16.msra.mxu1 %v5060_v33 }
 0x441   : > { %v2963_v13 = vpop.f32.mrf.mxu2  ;;  %v3326_v21 = vpop.f32.mrf.mxu1 }
 0x442   : > { %v2964_v25 = vadd.f32 %v2963_v13, %v6208_v59  ;;  %v6323_v57 = vadd.f32 %v3326_v21, %v6167_v10  ;;  %v6332_v10 = vpack.c.bf16 %v2335_v43, %v2334_v52 }
 0x444   : > { %v3053_v2 = vadd.f32 %v3052_v22, %v2964_v25 }
 0x445   : > { %v3290_v26 = vpop.f32.mrf.mxu0  ;;  %v3064_v6 = vpop.f32.mrf.mxu3 }
 0x446   : > { %v6325_v40 = vadd.f32 %v3285_v9, %v3053_v2  ;;  %v6335_v9 = vpack.c.bf16 %v2355_v47, %v2354_v42  ;;  %v2336_v42 = vld [vmem:[#allocation3 + $0x109] sm:$0xff]  ;;  %v2356_v47 = vld [vmem:[#allocation3 + $0x7a] sm:$0xff] }
 0x448   : > { %3942 = vmatmul.bf16.gmra.mxu0 %v6265_v62  ;;  %v3502_v62 = vld [vmem:[#allocation3 + $0xc8] sm:$0xff] }
 0x449   : > { %v2965_v7 = vpop.f32.mrf.mxu2  ;;  %v3329_v31 = vpop.f32.mrf.mxu1 }
 0x44a   : > { %v2966_v63 = vadd.f32 %v2965_v7, %v6219_v32  ;;  %v6330_v59 = vadd.f32 %v3329_v31, %v6172_v17  ;;  %v3603_v32 = vpack.c.bf16 %v3502_v62, %v3501_v8  ;;  %v2337_v31 = vld [vmem:[#allocation3 + $0x111] sm:$0xff]  ;;  %v3504_v62 = vld [vmem:[#allocation3 + $0xe0] sm:$0xff] }
 0x44b   : > { %v3503_v8 = vld [vmem:[#allocation3 + $0xd8] sm:$0xff] }
 0x44c   : > { %v3055_v22 = vadd.f32 %v3054_v44, %v2966_v63  ;;  %3368 = vmatmul.bf16.gmra.mxu1 %v6332_v10  ;;  %v2357_v63 = vld [vmem:[#allocation3 + $0x82] sm:$0xff] }
 0x44d   : > { %v3292_v27 = vpop.f32.mrf.mxu0  ;;  %3863 = vmatmul.bf16.gmra.mxu3 %v3603_v32  ;;  %v3067_v25 = vpop.f32.mrf.mxu3 }
 0x44e   : > { %3427 = vmatmul.bf16.gmra.mxu2 %v6335_v9  ;;  %v6338_v38 = vadd.f32 %v3287_v46, %v3055_v22 }
 0x451   : > { %v2968_v17 = vpop.f32.mrf.mxu2  ;;  %v3331_v13 = vpop.f32.mrf.mxu1 }
 0x452   : > { %v2969_v21 = vadd.f32 %v2968_v17, %v6228_v24  ;;  %v6342_v44 = vadd.f32 %v3331_v13, %v6179_v36  ;;  %v6351_v36 = vpack.c.bf16 %v2337_v31, %v2336_v42  ;;  %v3606_v17 = vpack.c.bf16 %v3504_v62, %v3503_v8  ;;  %v5059_v62 = vld [vmem:[#allocation9 + $0x200] sm:$0xff]  ;;  %v3506_v8 = vld [vmem:[#allocation3 + $0xf8] sm:$0xff] }
 0x453   : > { %4010 = vmatpush.bf16.msra.mxu1 %v5059_v62  ;;  %v2361_v62 = vld [vmem:[#allocation3 + $0xb2] sm:$0xff] }
 0x454   : > { %v3058_v2 = vadd.f32 %v3057_v48, %v2969_v21 }
 0x455   : > { %v3295_v43 = vpop.f32.mrf.mxu0  ;;  %v3069_v33 = vpop.f32.mrf.mxu3 }
 0x456   : > { %v6344_v7 = vadd.f32 %v3290_v26, %v3058_v2  ;;  %v6354_v26 = vpack.c.bf16 %v2357_v63, %v2356_v47  ;;  %v2338_v47 = vld [vmem:[#allocation3 + $0x121] sm:$0xff]  ;;  %v2358_v63 = vld [vmem:[#allocation3 + $0x92] sm:$0xff] }
 0x458   : > { %3947 = vmatmul.bf16.gmra.mxu0 %v6279_v30 }
 0x459   : > { %v2970_v52 = vpop.f32.mrf.mxu2  ;;  %v3334_v46 = vpop.f32.mrf.mxu1 }
 0x45a   : > { %v2971_v22 = vadd.f32 %v2970_v52, %v6238_v15  ;;  %v6349_v24 = vadd.f32 %v3334_v46, %v6186_v45  ;;  %v2339_v46 = vld [vmem:[#allocation3 + $0x129] sm:$0xff] }
 0x45c   : > { %v3060_v48 = vadd.f32 %v3059_v1, %v2971_v22  ;;  %3373 = vmatmul.bf16.gmra.mxu1 %v6351_v36  ;;  %v2359_v22 = vld [vmem:[#allocation3 + $0x9a] sm:$0xff] }
 0x45d   : > { %v3297_v30 = vpop.f32.mrf.mxu0  ;;  %3868 = vmatmul.bf16.gmra.mxu3 %v3606_v17  ;;  %v3072_v2 = vpop.f32.mrf.mxu3 }
 0x45e   : > { %3432 = vmatmul.bf16.gmra.mxu2 %v6354_v26  ;;  %v6357_v32 = vadd.f32 %v3292_v27, %v3060_v48 }
 0x461   : > { %v2973_v15 = vpop.f32.mrf.mxu2  ;;  %v3336_v13 = vpop.f32.mrf.mxu1 }
 0x462   : > { %v2974_v45 = vadd.f32 %v2973_v15, %v6245_v39  ;;  %v6361_v21 = vadd.f32 %v3336_v13, %v6198_v0  ;;  %v6370_v0 = vpack.c.bf16 %v2339_v46, %v2338_v47  ;;  %v3505_v15 = vld [vmem:[#allocation3 + $0xf0] sm:$0xff]  ;;  %v2341_v47 = vld [vmem:[#allocation3 + $0x141] sm:$0xff] }
 0x464   : > { %v3063_v1 = vadd.f32 %v3062_v5, %v2974_v45 }
 0x465   : > { %v3300_v31 = vpop.f32.mrf.mxu0  ;;  %v3074_v17 = vpop.f32.mrf.mxu3 }
 0x466   : > { %v6363_v52 = vadd.f32 %v3295_v43, %v3063_v1  ;;  %v6373_v43 = vpack.c.bf16 %v2359_v22, %v2358_v63 }
 0x468   : > { %3952 = vmatmul.bf16.gmra.mxu0 %v6294_v18 }
 0x469   : > { %v2975_v42 = vpop.f32.mrf.mxu2  ;;  %v3339_v27 = vpop.f32.mrf.mxu1 }
 0x46a   : > { %v2976_v48 = vadd.f32 %v2975_v42, %v6255_v19  ;;  %v6368_v39 = vadd.f32 %v3339_v27, %v6205_v3  ;;  %v3609_v19 = vpack.c.bf16 %v3506_v8, %v3505_v15  ;;  %v3508_v15 = vld [vmem:[#allocation3 + $0x110] sm:$0xff] }
 0x46c   : > { %v3065_v5 = vadd.f32 %v3064_v6, %v2976_v48  ;;  %3378 = vmatmul.bf16.gmra.mxu1 %v6370_v0  ;;  %v2340_v48 = vld [vmem:[#allocation3 + $0x139] sm:$0xff] }
 0x46d   : > { %v3302_v18 = vpop.f32.mrf.mxu0  ;;  %3873 = vmatmul.bf16.gmra.mxu3 %v3609_v19  ;;  %v3507_v19 = vld [vmem:[#allocation3 + $0x108] sm:$0xff] }
 0x46e   : > { %3437 = vmatmul.bf16.gmra.mxu2 %v6373_v43  ;;  %v6376_v13 = vadd.f32 %v3297_v30, %v3065_v5  ;;  %v2360_v5 = vld [vmem:[#allocation3 + $0xaa] sm:$0xff] }
 0x470   : > { %v3834_v63 = vpop.f32.mrf.mxu3 }
 0x471   : > { %v2978_v3 = vpop.f32.mrf.mxu2  ;;  %v3341_v45 = vpop.f32.mrf.mxu1 }
 0x472   : > { %v2979_v6 = vadd.f32 %v2978_v3, %v6262_v12  ;;  %v6380_v1 = vadd.f32 %v3341_v45, %v6217_v54  ;;  %v6389_v54 = vpack.c.bf16 %v2341_v47, %v2340_v48  ;;  %v3612_v45 = vpack.c.bf16 %v3508_v15, %v3507_v19  ;;  %v2363_v15 = vld [vmem:[#allocation3 + $0xca] sm:$0xff] }
 0x474   : > { %v3068_v46 = vadd.f32 %v3067_v25, %v2979_v6 }
 0x475   : > { %v3305_v42 = vpop.f32.mrf.mxu0 }
 0x476   : > { %v6382_v27 = vadd.f32 %v3300_v31, %v3068_v46  ;;  %v6392_v31 = vpack.c.bf16 %v2361_v62, %v2360_v5  ;;  %v2343_v5 = vld [vmem:[#allocation3 + $0x159] sm:$0xff] }
 0x478   : > { %3957 = vmatmul.bf16.gmra.mxu0 %v6313_v4 }
 0x479   : > { %v2980_v22 = vpop.f32.mrf.mxu2  ;;  %v3344_v30 = vpop.f32.mrf.mxu1 }
 0x47a   : > { %v2981_v8 = vadd.f32 %v2980_v22, %v6270_v35  ;;  %v6387_v12 = vadd.f32 %v3344_v30, %v6225_v29 }
 0x47c   : > { %v3070_v25 = vadd.f32 %v3069_v33, %v2981_v8  ;;  %3383 = vmatmul.bf16.gmra.mxu1 %v6389_v54  ;;  %v3836_v33 = vpop.f32.mrf.mxu3  ;;  %v2342_v8 = vld [vmem:[#allocation3 + $0x151] sm:$0xff] }
 0x47d   : > { %v3307_v4 = vpop.f32.mrf.mxu0  ;;  %3878 = vmatmul.bf16.gmra.mxu3 %v3612_v45  ;;  %v6410_v19 = vpack.c.bf16 %v2343_v5, %v2342_v8  ;;  %v3510_v45 = vld [vmem:[#allocation3 + $0x128] sm:$0xff]  ;;  %v2345_v8 = vld [vmem:[#allocation3 + $0x171] sm:$0xff] }
 0x47e   : > { %3442 = vmatmul.bf16.gmra.mxu2 %v6392_v31  ;;  %v6395_v3 = vadd.f32 %v3302_v18, %v3070_v25  ;;  %v2362_v25 = vld [vmem:[#allocation3 + $0xc2] sm:$0xff] }
 0x481   : > { %v2983_v6 = vpop.f32.mrf.mxu2  ;;  %v3346_v35 = vpop.f32.mrf.mxu1 }
 0x482   : > { %v2984_v29 = vadd.f32 %v2983_v6, %v6276_v16  ;;  %v6399_v46 = vadd.f32 %v3346_v35, %v6236_v61  ;;  %v3509_v35 = vld [vmem:[#allocation3 + $0x120] sm:$0xff] }
 0x484   : > { %v3073_v47 = vadd.f32 %v3072_v2, %v2984_v29 }
 0x485   : > { %v3923_v22 = vpop.f32.mrf.mxu0 }
 0x486   : > { %v6401_v30 = vadd.f32 %v3923_v22, %v3834_v63  ;;  %v6403_v48 = vadd.f32 %v3305_v42, %v3073_v47  ;;  %v6413_v42 = vpack.c.bf16 %v2363_v15, %v2362_v25  ;;  %v3839_v63 = vpop.f32.mrf.mxu3  ;;  %v2344_v25 = vld [vmem:[#allocation3 + $0x169] sm:$0xff]  ;;  %v2364_v15 = vld [vmem:[#allocation3 + $0xda] sm:$0xff] }
 0x488   : > { %3962 = vmatmul.bf16.gmra.mxu0 %v6332_v10 }
 0x489   : > { %v2985_v18 = vpop.f32.mrf.mxu2  ;;  %v3349_v62 = vpop.f32.mrf.mxu1 }
 0x48a   : > { %v2986_v16 = vadd.f32 %v2985_v18, %v6284_v50  ;;  %v6408_v61 = vadd.f32 %v3349_v62, %v6242_v51  ;;  %v3615_v50 = vpack.c.bf16 %v3510_v45, %v3509_v35  ;;  %v3512_v45 = vld [vmem:[#allocation3 + $0x140] sm:$0xff]  ;;  %v3511_v35 = vld [vmem:[#allocation3 + $0x138] sm:$0xff] }
 0x48c   : > { %v3075_v2 = vadd.f32 %v3074_v17, %v2986_v16  ;;  %3388 = vmatmul.bf16.gmra.mxu1 %v6410_v19  ;;  %v2365_v16 = vld [vmem:[#allocation3 + $0xe2] sm:$0xff] }
 0x48d   : > { %v3925_v10 = vpop.f32.mrf.mxu0  ;;  %3883 = vmatmul.bf16.gmra.mxu3 %v3615_v50  ;;  %v3618_v50 = vpack.c.bf16 %v3512_v45, %v3511_v35 }
 0x48e   : > { %3447 = vmatmul.bf16.gmra.mxu2 %v6413_v42  ;;  %v6416_v6 = vadd.f32 %v3925_v10, %v3836_v33  ;;  %v6418_v29 = vadd.f32 %v3307_v4, %v3075_v2  ;;  %v3841_v62 = vpop.f32.mrf.mxu3 }
 0x491   : > { %v3351_v51 = vpop.f32.mrf.mxu1  ;;  %v3408_v47 = vpop.f32.mrf.mxu2 }
 0x492   : > { %v6421_v17 = vadd.f32 %v3351_v51, %v6253_v58  ;;  %v6424_v22 = vadd.f32 %v3408_v47, %v6292_v34  ;;  %v6435_v34 = vpack.c.bf16 %v2345_v8, %v2344_v25  ;;  %v2366_v25 = vld [vmem:[#allocation3 + $0xf2] sm:$0xff] }
 0x495   : > { %v3928_v5 = vpop.f32.mrf.mxu0 }
 0x496   : > { %v6426_v18 = vadd.f32 %v3928_v5, %v3839_v63  ;;  %v6438_v63 = vpack.c.bf16 %v2365_v16, %v2364_v15  ;;  %v3844_v51 = vpop.f32.mrf.mxu3  ;;  %v2367_v15 = vld [vmem:[#allocation3 + $0xfa] sm:$0xff] }
 0x498   : > { %3967 = vmatmul.bf16.gmra.mxu0 %v6351_v36 }
 0x499   : > { %v3354_v33 = vpop.f32.mrf.mxu1  ;;  %v3410_v4 = vpop.f32.mrf.mxu2 }
 0x49a   : > { %v6430_v2 = vadd.f32 %v3354_v33, %v6259_v53  ;;  %v6433_v58 = vadd.f32 %v3410_v4, %v6304_v56 }
 0x49c   : > { %3393 = vmatmul.bf16.gmra.mxu1 %v6435_v34 }
 0x49d   : > { %v3930_v10 = vpop.f32.mrf.mxu0  ;;  %3888 = vmatmul.bf16.gmra.mxu3 %v3618_v50  ;;  %v3513_v50 = vld [vmem:[#allocation3 + $0x150] sm:$0xff] }
 0x49e   : > { %3452 = vmatmul.bf16.gmra.mxu2 %v6438_v63  ;;  %v6441_v36 = vadd.f32 %v3930_v10, %v3841_v62  ;;  %v3514_v10 = vld [vmem:[#allocation3 + $0x158] sm:$0xff] }
 0x4a1   : > { %v3356_v53 = vpop.f32.mrf.mxu1  ;;  %v3413_v47 = vpop.f32.mrf.mxu2 }
 0x4a2   : > { %v6444_v56 = vadd.f32 %v3356_v53, %v6268_v60  ;;  %v6447_v5 = vadd.f32 %v3413_v47, %v6311_v37  ;;  %v3846_v60 = vpop.f32.mrf.mxu3  ;;  %v6459_v37 = vpack.c.bf16 %v2367_v15, %v2366_v25 }
 0x4a5   : > { %v3933_v8 = vpop.f32.mrf.mxu0 }
 0x4a6   : > { %v6449_v33 = vadd.f32 %v3933_v8, %v3844_v51  ;;  %v3621_v51 = vpack.c.bf16 %v3514_v10, %v3513_v50 }
 0x4a8   : > { %3972 = vmatmul.bf16.gmra.mxu0 %v6370_v0 }
 0x4a9   : > { %v3359_v4 = vpop.f32.mrf.mxu1  ;;  %v3415_v62 = vpop.f32.mrf.mxu2 }
 0x4aa   : > { %v6453_v16 = vadd.f32 %v3359_v4, %v6273_v20  ;;  %v6456_v45 = vadd.f32 %v3415_v62, %v6323_v57  ;;  %v2368_v4 = vld [vmem:[#allocation3 + $0x10a] sm:$0xff]  ;;  %v2369_v62 = vld [vmem:[#allocation3 + $0x112] sm:$0xff] }
 0x4ac   : > { %4011 = vmatmul.bf16.vlgmr.msra.gmra.mxu1 %v6297_v49 }
 0x4ad   : > { %v3935_v35 = vpop.f32.mrf.mxu0  ;;  %3893 = vmatmul.bf16.gmra.mxu3 %v3621_v51  ;;  %v2370_v51 = vld [vmem:[#allocation3 + $0x122] sm:$0xff] }
 0x4ae   : > { %3457 = vmatmul.bf16.gmra.mxu2 %v6459_v37  ;;  %v6462_v0 = vadd.f32 %v3935_v35, %v3846_v60  ;;  %v6478_v60 = vpack.c.bf16 %v2369_v62, %v2368_v4 }
 0x4b1   : > { %v3361_v53 = vpop.f32.mrf.mxu1  ;;  %v3418_v47 = vpop.f32.mrf.mxu2 }
 0x4b2   : > { %v6465_v20 = vadd.f32 %v3361_v53, %v6282_v28  ;;  %v6468_v57 = vadd.f32 %v3418_v47, %v6330_v59  ;;  %v3516_v28 = vld [vmem:[#allocation3 + $0x170] sm:$0xff]  ;;  %v3515_v59 = vld [vmem:[#allocation3 + $0x168] sm:$0xff] }
 0x4b3   : > { %v3624_v10 = vpack.c.bf16 %v3516_v28, %v3515_v59  ;;  %v2371_v53 = vld [vmem:[#allocation3 + $0x12a] sm:$0xff]  ;;  %v2372_v28 = vld [vmem:[#allocation3 + $0x13a] sm:$0xff] }
 0x4b8   : > { %3977 = vmatmul.bf16.gmra.mxu0 %v6389_v54 }
 0x4b9   : > { %v3364_v49 = vpop.f32.mrf.mxu1  ;;  %v3420_v8 = vpop.f32.mrf.mxu2 }
 0x4ba   : > { %v6472_v25 = vadd.f32 %v3364_v49, %v6287_v41  ;;  %v6475_v15 = vadd.f32 %v3420_v8, %v6342_v44  ;;  %v6495_v8 = vpack.c.bf16 %v2371_v53, %v2370_v51  ;;  %v2375_v51 = vld [vmem:[#allocation3 + $0x15a] sm:$0xff] }
 0x4bc   : > { %4016 = vmatmul.bf16.gmra.mxu1 %v6316_v11 }
 0x4bd   : > { %3898 = vmatmul.bf16.gmra.mxu3 %v3624_v10 }
 0x4be   : > { %3462 = vmatmul.bf16.gmra.mxu2 %v6478_v60 }
 0x4c1   : > { %v3366_v54 = vpop.f32.mrf.mxu1  ;;  %v3423_v35 = vpop.f32.mrf.mxu2 }
 0x4c2   : > { %v6482_v50 = vadd.f32 %v3366_v54, %v6300_v55  ;;  %v6485_v41 = vadd.f32 %v3423_v35, %v6349_v24  ;;  %v3518_v55 = vld [vmem:[#allocation3 + $0x188] sm:$0xff]  ;;  %v3517_v24 = vld [vmem:[#allocation3 + $0x180] sm:$0xff] }
 0x4c3   : > { %v3627_v4 = vpack.c.bf16 %v3518_v55, %v3517_v24  ;;  %v3549_v35 = vld [vmem:[#allocation3 + $0x181] sm:$0xff]  ;;  %v2376_v24 = vld [vmem:[#allocation3 + $0x16a] sm:$0xff] }
 0x4c8   : > { %3982 = vmatmul.bf16.gmra.mxu0 %v6410_v19 }
 0x4c9   : > { %v3369_v44 = vpop.f32.mrf.mxu1  ;;  %v3425_v11 = vpop.f32.mrf.mxu2 }
 0x4ca   : > { %v6489_v47 = vadd.f32 %v3369_v44, %v6306_v14  ;;  %v6492_v49 = vadd.f32 %v3425_v11, %v6361_v21  ;;  %v2373_v21 = vld [vmem:[#allocation3 + $0x142] sm:$0xff]  ;;  %v2374_v11 = vld [vmem:[#allocation3 + $0x152] sm:$0xff] }
 0x4cc   : > { %4021 = vmatmul.bf16.gmra.mxu1 %v6335_v9  ;;  %v6506_v9 = vpack.c.bf16 %v2373_v21, %v2372_v28 }
 0x4cd   : > { %3903 = vmatmul.bf16.gmra.mxu3 %v3627_v4  ;;  %v2377_v4 = vld [vmem:[#allocation3 + $0x172] sm:$0xff] }
 0x4ce   : > { %3467 = vmatmul.bf16.gmra.mxu2 %v6495_v8 }
 0x4d1   : > { %v3371_v19 = vpop.f32.mrf.mxu1 }
 0x4d2   : > { %v6499_v62 = vadd.f32 %v3371_v19, %v6319_v23  ;;  %v3550_v23 = vld [vmem:[#allocation3 + $0x189] sm:$0xff] }
 0x4d3   : > { %v3628_v44 = vpack.c.bf16 %v3550_v23, %v3549_v35  ;;  %v3849_v35 = vpop.f32.mrf.mxu3 }
 0x4d8   : > { %3987 = vmatmul.bf16.gmra.mxu0 %v6435_v34 }
 0x4d9   : > { %v3374_v14 = vpop.f32.mrf.mxu1 }
 0x4da   : > { %v6503_v59 = vadd.f32 %v3374_v14, %v6325_v40 }
 0x4dc   : > { %4026 = vmatmul.bf16.gmra.mxu1 %v6354_v26  ;;  %v6516_v26 = vpack.c.bf16 %v2375_v51, %v2374_v11 }
 0x4de   : > { %3472 = vmatmul.bf16.gmra.mxu2 %v6506_v9 }
 0x4e1   : > { %v3376_v10 = vpop.f32.mrf.mxu1 }
 0x4e2   : > { %v6510_v54 = vadd.f32 %v3376_v10, %v6338_v38 }
 0x4e8   : > { %3992 = vmatmul.bf16.gmra.mxu0 %v3628_v44 }
 0x4e9   : > { %v3379_v34 = vpop.f32.mrf.mxu1 }
 0x4ea   : > { %v6513_v40 = vadd.f32 %v3379_v34, %v6344_v7  ;;  %v6526_v7 = vpack.c.bf16 %v2377_v4, %v2376_v24  ;;  %v4124_v34 = vld [vmem:[%s5453_s30] sm:$0xff]  ;;  %v3428_v24 = vpop.f32.mrf.mxu2 }
 0x4ec   : > { %4031 = vmatmul.bf16.gmra.mxu1 %v6373_v43 }
 0x4ee   : > { %3477 = vmatmul.bf16.gmra.mxu2 %v6516_v26 }
 0x4f1   : > { %v3381_v53 = vpop.f32.mrf.mxu1 }
 0x4f2   : > { %v6520_v38 = vadd.f32 %v3381_v53, %v6357_v32 }
 0x4f9   : > { %v3384_v55 = vpop.f32.mrf.mxu1 }
 0x4fa   : > { %v6523_v19 = vadd.f32 %v3384_v55, %v6363_v52 }
 0x4fc   : > { %4036 = vmatmul.bf16.gmra.mxu1 %v6392_v31 }
 0x4fe   : > { %3482 = vmatmul.bf16.gmra.mxu2 %v6526_v7 }
 0x501   : > { %v3386_v43 = vpop.f32.mrf.mxu1 }
 0x502   : > { %v6530_v14 = vadd.f32 %v3386_v43, %v6376_v13 }
 0x509   : > { %v3389_v28 = vpop.f32.mrf.mxu1 }
 0x50a   : > { %v6533_v32 = vadd.f32 %v3389_v28, %v6382_v27  ;;  %v3938_v27 = vpop.f32.mrf.mxu0  ;;  %v4126_v28 = vld [vmem:[%s5453_s30 + $0x10] sm:$0xff] }
 0x50c   : > { %4041 = vmatmul.bf16.gmra.mxu1 %v6413_v42 }
 0x511   : > { %v3391_v21 = vpop.f32.mrf.mxu1 }
 0x512   : > { %v6537_v52 = vadd.f32 %v3391_v21, %v6395_v3  ;;  %v3940_v11 = vpop.f32.mrf.mxu0 }
 0x519   : > { %v3394_v31 = vpop.f32.mrf.mxu1 }
 0x51a   : > { %v6540_v10 = vadd.f32 %v3394_v31, %v6403_v48  ;;  %v3851_v48 = vpop.f32.mrf.mxu3  ;;  %v3943_v55 = vpop.f32.mrf.mxu0 }
 0x51c   : > { %4046 = vmatmul.bf16.gmra.mxu1 %v6438_v63 }
 0x521   : > { %v3396_v23 = vpop.f32.mrf.mxu1 }
 0x522   : > { %v6544_v13 = vadd.f32 %v3396_v23, %v6418_v29 }
 0x529   : > { %v4012_v44 = vpop.f32.mrf.mxu1 }
 0x52a   : > { %v4013_v42 = vadd.f32 %v4012_v44, %v6401_v30  ;;  %v4125_v30 = vld [vmem:[%s5453_s30 + $0x8] sm:$0xff] }
 0x52c   : > { %v4092_v3 = vadd.f32 %v4013_v42, %v6424_v22  ;;  %4051 = vmatmul.bf16.gmra.mxu1 %v6459_v37  ;;  %v3854_v37 = vpop.f32.mrf.mxu3  ;;  %v3430_v42 = vpop.f32.mrf.mxu2 }
 0x52e   : > { %v4156_v51 = vadd.f32 %v4124_v34, %v4092_v3  ;;  %v4127_v34 = vld [vmem:[%s5453_s30 + $0x18] sm:$0xff] }
 0x530   : > { %4188 = vst [vmem:[%s6552_s18] sm:$0xff] %v4156_v51 }
 0x531   : > { %v4014_v29 = vpop.f32.mrf.mxu1 }
 0x532   : > { %v4015_v63 = vadd.f32 %v4014_v29, %v6416_v6  ;;  %v4128_v29 = vld [vmem:[%s5453_s30 + $0x20] sm:$0xff] }
 0x534   : > { %v4093_v53 = vadd.f32 %v4015_v63, %v6433_v58  ;;  %v3945_v58 = vpop.f32.mrf.mxu0  ;;  %v3856_v23 = vpop.f32.mrf.mxu3 }
 0x536   : > { %v4157_v22 = vadd.f32 %v4125_v30, %v4093_v53 }
 0x538   : > { %4189 = vst [vmem:[%s6552_s18 + $0x8] sm:$0xff] %v4157_v22 }
 0x539   : > { %v4017_v4 = vpop.f32.mrf.mxu1 }
 0x53a   : > { %v4018_v43 = vadd.f32 %v4017_v4, %v6426_v18  ;;  %v4129_v4 = vld [vmem:[%s5453_s30 + $0x28] sm:$0xff] }
 0x53c   : > { %v4094_v21 = vadd.f32 %v4018_v43, %v6447_v5  ;;  %4056 = vmatmul.bf16.gmra.mxu1 %v6478_v60  ;;  %v6570_v60 = vpop.f32.mrf.mxu0  ;;  %v6572_v63 = vpop.f32.mrf.mxu3 }
 0x53e   : > { %v4158_v6 = vadd.f32 %v4126_v28, %v4094_v21 }
 0x540   : > { %4190 = vst [vmem:[%s6552_s18 + $0x10] sm:$0xff] %v4158_v6 }
 0x541   : > { %v4019_v31 = vpop.f32.mrf.mxu1 }
 0x542   : > { %v4020_v44 = vadd.f32 %v4019_v31, %v6441_v36  ;;  %v6576_v36 = vpop.f32.mrf.mxu2 }
 0x544   : > { %v4095_v3 = vadd.f32 %v4020_v44, %v6456_v45  ;;  %v6582_v43 = vpop.f32.mrf.mxu0  ;;  %v6584_v28 = vpop.f32.mrf.mxu3  ;;  %v4130_v44 = vld [vmem:[%s5453_s30 + $0x30] sm:$0xff] }
 0x546   : > { %v4159_v18 = vadd.f32 %v4127_v34, %v4095_v3  ;;  %v3941_v34 = vadd.f32 %v3940_v11, %v3851_v48 }
 0x548   : > { %4191 = vst [vmem:[%s6552_s18 + $0x18] sm:$0xff] %v4159_v18 }
 0x549   : > { %v4022_v51 = vpop.f32.mrf.mxu1 }
 0x54a   : > { %v4023_v5 = vadd.f32 %v4022_v51, %v6449_v33 }
 0x54c   : > { %v4096_v30 = vadd.f32 %v4023_v5, %v6468_v57  ;;  %4061 = vmatmul.bf16.gmra.mxu1 %v6495_v8  ;;  %v6586_v57 = vpop.f32.mrf.mxu2  ;;  %v3939_v8 = vadd.f32 %v3938_v27, %v3849_v35  ;;  %v3953_v3 = vpop.f32.mrf.mxu0  ;;  %v4131_v27 = vld [vmem:[%s5453_s30 + $0x38] sm:$0xff] }
 0x54d   : > { %v3864_v18 = vpop.f32.mrf.mxu3 }
 0x54e   : > { %v4160_v53 = vadd.f32 %v4128_v29, %v4096_v30 }
 0x550   : > { %4192 = vst [vmem:[%s6552_s18 + $0x20] sm:$0xff] %v4160_v53  ;;  %v3944_v53 = vadd.f32 %v3943_v55, %v3854_v37 }
 0x551   : > { %v4024_v45 = vpop.f32.mrf.mxu1 }
 0x552   : > { %v4025_v22 = vadd.f32 %v4024_v45, %v6462_v0 }
 0x554   : > { %v4097_v33 = vadd.f32 %v4025_v22, %v6475_v15  ;;  %v6593_v51 = vpop.f32.mrf.mxu2  ;;  %v3955_v45 = vpop.f32.mrf.mxu0 }
 0x555   : > { %v3866_v11 = vpop.f32.mrf.mxu3 }
 0x556   : > { %v4161_v21 = vadd.f32 %v4129_v4, %v4097_v33  ;;  %v4132_v4 = vld [vmem:[%s5453_s30 + $0x40] sm:$0xff] }
 0x558   : > { %4193 = vst [vmem:[%s6552_s18 + $0x28] sm:$0xff] %v4161_v21 }
 0x559   : > { %v4027_v6 = vpop.f32.mrf.mxu1 }
 0x55a   : > { %v4028_v31 = vadd.f32 %v4027_v6, %v3939_v8  ;;  %v3519_v8 = vld [vmem:[#allocation3 + $0x198] sm:$0xff] }
 0x55b   : > { %v5159_v6 = vld [vmem:[#allocation2 + $0x8] sm:$0xff] }
 0x55c   : > { %v4098_v0 = vadd.f32 %v4028_v31, %v6485_v41  ;;  %4066 = vmatmul.bf16.gmra.mxu1 %v6506_v9  ;;  %v3429_v9 = vadd.f32 %v3428_v24, %v6368_v39  ;;  %v3440_v22 = vpop.f32.mrf.mxu2  ;;  %v3946_v31 = vadd.f32 %v3945_v58, %v3856_v23  ;;  %v3431_v39 = vadd.f32 %v3430_v42, %v6380_v1  ;;  %v4133_v24 = vld [vmem:[%s5453_s30 + $0x48] sm:$0xff] }
 0x55d   : > { %v3949_v58 = vadd.f32 %v6570_v60, %v6572_v63  ;;  %v3434_v1 = vadd.f32 %v6576_v36, %v6387_v12  ;;  %v3436_v63 = vadd.f32 %v6586_v57, %v6399_v46  ;;  %v4135_v36 = vld [vmem:[%s5453_s30 + $0x58] sm:$0xff]  ;;  %v4136_v57 = vld [vmem:[%s5453_s30 + $0x60] sm:$0xff] }
 0x55e   : > { %v4162_v15 = vadd.f32 %v4130_v44, %v4098_v0  ;;  %v3958_v44 = vpop.f32.mrf.mxu0  ;;  %v3869_v0 = vpop.f32.mrf.mxu3 }
 0x560   : > { %4194 = vst [vmem:[%s6552_s18 + $0x30] sm:$0xff] %v4162_v15 }
 0x561   : > { %v4029_v5 = vpop.f32.mrf.mxu1 }
 0x562   : > { %v4030_v29 = vadd.f32 %v4029_v5, %v3941_v34  ;;  %v3551_v34 = vld [vmem:[#allocation3 + $0x199] sm:$0xff]  ;;  %v3552_v5 = vld [vmem:[#allocation3 + $0x1a1] sm:$0xff] }
 0x564   : > { %v4099_v35 = vadd.f32 %v4030_v29, %v6492_v49  ;;  %v3630_v49 = vpack.c.bf16 %v5159_v6, %v3519_v8  ;;  %v3631_v29 = vpack.c.bf16 %v3552_v5, %v3551_v34  ;;  %v3581_v8 = vld [vmem:[#allocation3 + $0x182] sm:$0xff]  ;;  %v3954_v6 = vadd.f32 %v3953_v3, %v3864_v18 }
 0x565   : > { %v3441_v3 = vadd.f32 %v3440_v22, %v6421_v17  ;;  %v4138_v17 = vld [vmem:[%s5453_s30 + $0x70] sm:$0xff] }
 0x566   : > { %v4163_v30 = vadd.f32 %v4131_v27, %v4099_v35  ;;  %3908 = vmatmul.bf16.gmra.mxu3 %v3630_v49  ;;  %3997 = vmatmul.bf16.gmra.mxu0 %v3631_v29  ;;  %v4134_v35 = vld [vmem:[%s5453_s30 + $0x50] sm:$0xff] }
 0x568   : > { %4195 = vst [vmem:[%s6552_s18 + $0x38] sm:$0xff] %v4163_v30 }
 0x569   : > { %v4032_v41 = vpop.f32.mrf.mxu1 }
 0x56a   : > { %v4033_v48 = vadd.f32 %v4032_v41, %v3944_v53  ;;  %v3960_v53 = vpop.f32.mrf.mxu0  ;;  %v3871_v41 = vpop.f32.mrf.mxu3 }
 0x56c   : > { %v4100_v33 = vadd.f32 %v4033_v48, %v3429_v9  ;;  %4071 = vmatmul.bf16.gmra.mxu1 %v6516_v26  ;;  %v3443_v26 = vpop.f32.mrf.mxu2 }
 0x56e   : > { %v4164_v21 = vadd.f32 %v4132_v4, %v4100_v33  ;;  %v3951_v4 = vadd.f32 %v6582_v43, %v6584_v28  ;;  %v3439_v43 = vadd.f32 %v6593_v51, %v6408_v61  ;;  %v3583_v61 = vld [vmem:[#allocation3 + $0x19a] sm:$0xff]  ;;  %v3584_v51 = vld [vmem:[#allocation3 + $0x1a2] sm:$0xff] }
 0x570   : > { %4196 = vst [vmem:[%s6552_s18 + $0x40] sm:$0xff] %v4164_v21 }
 0x571   : > { %v4034_v55 = vpop.f32.mrf.mxu1 }
 0x572   : > { %v4035_v37 = vadd.f32 %v4034_v55, %v3946_v31  ;;  %v3963_v49 = vpop.f32.mrf.mxu0  ;;  %v3874_v31 = vpop.f32.mrf.mxu3 }
 0x574   : > { %v4101_v15 = vadd.f32 %v4035_v37, %v3431_v39  ;;  %v3445_v48 = vpop.f32.mrf.mxu2 }
 0x576   : > { %v4165_v27 = vadd.f32 %v4133_v24, %v4101_v15  ;;  %v3956_v15 = vadd.f32 %v3955_v45, %v3866_v11  ;;  %v3444_v11 = vadd.f32 %v3443_v26, %v6430_v2 }
 0x578   : > { %4197 = vst [vmem:[%s6552_s18 + $0x48] sm:$0xff] %v4165_v27 }
 0x579   : > { %v4037_v23 = vpop.f32.mrf.mxu1 }
 0x57a   : > { %v4038_v42 = vadd.f32 %v4037_v23, %v3949_v58  ;;  %v3965_v18 = vpop.f32.mrf.mxu0  ;;  %v3876_v5 = vpop.f32.mrf.mxu3  ;;  %v4137_v58 = vld [vmem:[%s5453_s30 + $0x68] sm:$0xff] }
 0x57c   : > { %v4102_v30 = vadd.f32 %v4038_v42, %v3434_v1  ;;  %4076 = vmatmul.bf16.gmra.mxu1 %v6526_v7  ;;  %v3582_v7 = vld [vmem:[#allocation3 + $0x18a] sm:$0xff]  ;;  %v3448_v55 = vpop.f32.mrf.mxu2  ;;  %v3959_v42 = vadd.f32 %v3958_v44, %v3869_v0  ;;  %v3446_v44 = vadd.f32 %v3445_v48, %v6444_v56  ;;  %v3966_v56 = vadd.f32 %v3965_v18, %v3876_v5 }
 0x57d   : > { %v3629_v46 = vpack.c.bf16 %v3582_v7, %v3581_v8 }
 0x57e   : > { %v4166_v9 = vadd.f32 %v4134_v35, %v4102_v30  ;;  %v3632_v35 = vpack.c.bf16 %v3584_v51, %v3583_v61  ;;  %v4142_v61 = vld [vmem:[%s5453_s30 + $0x90] sm:$0xff] }
 0x580   : > { %4198 = vst [vmem:[%s6552_s18 + $0x50] sm:$0xff] %v4166_v9 }
 0x581   : > { %v4039_v60 = vpop.f32.mrf.mxu1 }
 0x582   : > { %v4040_v12 = vadd.f32 %v4039_v60, %v3951_v4  ;;  %v3968_v22 = vpop.f32.mrf.mxu0  ;;  %v3879_v9 = vpop.f32.mrf.mxu3 }
 0x584   : > { %v4103_v33 = vadd.f32 %v4040_v12, %v3436_v63  ;;  %v3450_v27 = vpop.f32.mrf.mxu2  ;;  %v3961_v12 = vadd.f32 %v3960_v53, %v3871_v41  ;;  %v4140_v41 = vld [vmem:[%s5453_s30 + $0x80] sm:$0xff] }
 0x586   : > { %v4167_v21 = vadd.f32 %v4135_v36, %v4103_v33  ;;  %v4139_v33 = vld [vmem:[%s5453_s30 + $0x78] sm:$0xff] }
 0x588   : > { %4199 = vst [vmem:[%s6552_s18 + $0x58] sm:$0xff] %v4167_v21 }
 0x589   : > { %v4042_v39 = vpop.f32.mrf.mxu1 }
 0x58a   : > { %v4043_v28 = vadd.f32 %v4042_v39, %v3954_v6  ;;  %v3970_v2 = vpop.f32.mrf.mxu0  ;;  %v3881_v26 = vpop.f32.mrf.mxu3  ;;  %v3964_v6 = vadd.f32 %v3963_v49, %v3874_v31  ;;  %v4141_v31 = vld [vmem:[%s5453_s30 + $0x88] sm:$0xff] }
 0x58c   : > { %v4104_v37 = vadd.f32 %v4043_v28, %v3439_v43  ;;  %4081 = vmatmul.bf16.gmra.mxu1 %v3629_v46  ;;  %v3453_v60 = vpop.f32.mrf.mxu2  ;;  %v3449_v43 = vadd.f32 %v3448_v55, %v6453_v16  ;;  %v3969_v16 = vadd.f32 %v3968_v22, %v3879_v9 }
 0x58e   : > { %v4168_v24 = vadd.f32 %v4136_v57, %v4104_v37 }
 0x590   : > { %4200 = vst [vmem:[%s6552_s18 + $0x60] sm:$0xff] %v4168_v24 }
 0x591   : > { %v4044_v34 = vpop.f32.mrf.mxu1 }
 0x592   : > { %v4045_v29 = vadd.f32 %v4044_v34, %v3956_v15  ;;  %v3973_v48 = vpop.f32.mrf.mxu0  ;;  %v3884_v57 = vpop.f32.mrf.mxu3  ;;  %v3451_v15 = vadd.f32 %v3450_v27, %v6465_v20  ;;  %v3971_v20 = vadd.f32 %v3970_v2, %v3881_v26 }
 0x593   : > { %v3974_v9 = vadd.f32 %v3973_v48, %v3884_v57  ;;  %v4146_v48 = vld [vmem:[%s5453_s30 + $0xb0] sm:$0xff] }
 0x594   : > { %v4105_v23 = vadd.f32 %v4045_v29, %v3441_v3  ;;  %v3455_v7 = vpop.f32.mrf.mxu2  ;;  %v3454_v29 = vadd.f32 %v3453_v60, %v6472_v25 }
 0x596   : > { %v4169_v1 = vadd.f32 %v4137_v58, %v4105_v23 }
 0x598   : > { %4201 = vst [vmem:[%s6552_s18 + $0x68] sm:$0xff] %v4169_v1 }
 0x599   : > { %v4047_v45 = vpop.f32.mrf.mxu1 }
 0x59a   : > { %v4048_v30 = vadd.f32 %v4047_v45, %v3959_v42  ;;  %v3975_v18 = vpop.f32.mrf.mxu0  ;;  %v3886_v5 = vpop.f32.mrf.mxu3  ;;  %v3456_v42 = vadd.f32 %v3455_v7, %v6482_v50  ;;  %v4143_v45 = vld [vmem:[%s5453_s30 + $0x98] sm:$0xff]  ;;  %v4145_v7 = vld [vmem:[%s5453_s30 + $0xa8] sm:$0xff] }
 0x59c   : > { %v4106_v4 = vadd.f32 %v4048_v30, %v3444_v11  ;;  %4086 = vmatmul.bf16.gmra.mxu1 %v3632_v35  ;;  %v3458_v37 = vpop.f32.mrf.mxu2 }
 0x59d   : > { %v3459_v60 = vadd.f32 %v3458_v37, %v6489_v47 }
 0x59e   : > { %v4170_v63 = vadd.f32 %v4138_v17, %v4106_v4 }
 0x5a0   : > { %4202 = vst [vmem:[%s6552_s18 + $0x70] sm:$0xff] %v4170_v63 }
 0x5a1   : > { %v4049_v36 = vpop.f32.mrf.mxu1 }
 0x5a2   : > { %v4050_v0 = vadd.f32 %v4049_v36, %v3961_v12  ;;  %v3978_v11 = vpop.f32.mrf.mxu0  ;;  %v3889_v30 = vpop.f32.mrf.mxu3  ;;  %v4144_v12 = vld [vmem:[%s5453_s30 + $0xa0] sm:$0xff] }
 0x5a3   : > { %v3979_v47 = vadd.f32 %v3978_v11, %v3889_v30  ;;  %v4149_v11 = vld [vmem:[%s5453_s30 + $0xc8] sm:$0xff] }
 0x5a4   : > { %v4107_v21 = vadd.f32 %v4050_v0, %v3446_v44  ;;  %v3460_v23 = vpop.f32.mrf.mxu2 }
 0x5a5   : > { %v3461_v26 = vadd.f32 %v3460_v23, %v6499_v62  ;;  %v4148_v23 = vld [vmem:[%s5453_s30 + $0xc0] sm:$0xff] }
 0x5a6   : > { %v4171_v8 = vadd.f32 %v4139_v33, %v4107_v21  ;;  %v3976_v21 = vadd.f32 %v3975_v18, %v3886_v5 }
 0x5a8   : > { %4203 = vst [vmem:[%s6552_s18 + $0x78] sm:$0xff] %v4171_v8 }
 0x5a9   : > { %v4052_v39 = vpop.f32.mrf.mxu1 }
 0x5aa   : > { %v4053_v53 = vadd.f32 %v4052_v39, %v3964_v6  ;;  %v3980_v44 = vpop.f32.mrf.mxu0  ;;  %v3891_v50 = vpop.f32.mrf.mxu3 }
 0x5ab   : > { %v3981_v62 = vadd.f32 %v3980_v44, %v3891_v50 }
 0x5ac   : > { %v4108_v28 = vadd.f32 %v4053_v53, %v3449_v43  ;;  %v3463_v17 = vpop.f32.mrf.mxu2 }
 0x5ae   : > { %v4172_v46 = vadd.f32 %v4140_v41, %v4108_v28 }
 0x5b0   : > { %4204 = vst [vmem:[%s6552_s18 + $0x80] sm:$0xff] %v4172_v46  ;;  %v3464_v46 = vadd.f32 %v3463_v17, %v6503_v59 }
 0x5b1   : > { %v4054_v24 = vpop.f32.mrf.mxu1 }
 0x5b2   : > { %v4055_v49 = vadd.f32 %v4054_v24, %v3966_v56  ;;  %v3983_v43 = vpop.f32.mrf.mxu0  ;;  %v3894_v53 = vpop.f32.mrf.mxu3 }
 0x5b3   : > { %v3984_v59 = vadd.f32 %v3983_v43, %v3894_v53 }
 0x5b4   : > { %v4109_v34 = vadd.f32 %v4055_v49, %v3451_v15  ;;  %v3465_v33 = vpop.f32.mrf.mxu2 }
 0x5b5   : > { %v3466_v15 = vadd.f32 %v3465_v33, %v6510_v54 }
 0x5b6   : > { %v4173_v3 = vadd.f32 %v4141_v31, %v4109_v34 }
 0x5b8   : > { %4205 = vst [vmem:[%s6552_s18 + $0x88] sm:$0xff] %v4173_v3 }
 0x5b9   : > { %v4057_v55 = vpop.f32.mrf.mxu1 }
 0x5ba   : > { %v4058_v58 = vadd.f32 %v4057_v55, %v3969_v16  ;;  %v3985_v49 = vpop.f32.mrf.mxu0  ;;  %v3896_v31 = vpop.f32.mrf.mxu3  ;;  %v4147_v16 = vld [vmem:[%s5453_s30 + $0xb8] sm:$0xff] }
 0x5bc   : > { %v4110_v51 = vadd.f32 %v4058_v58, %v3454_v29  ;;  %v3468_v41 = vpop.f32.mrf.mxu2 }
 0x5bd   : > { %v3469_v5 = vadd.f32 %v3468_v41, %v6513_v40 }
 0x5be   : > { %v4174_v1 = vadd.f32 %v4142_v61, %v4110_v51 }
 0x5c0   : > { %4206 = vst [vmem:[%s6552_s18 + $0x90] sm:$0xff] %v4174_v1 }
 0x5c1   : > { %v4059_v27 = vpop.f32.mrf.mxu1 }
 0x5c2   : > { %v4060_v35 = vadd.f32 %v4059_v27, %v3971_v20  ;;  %v3988_v61 = vpop.f32.mrf.mxu0  ;;  %v3899_v51 = vpop.f32.mrf.mxu3  ;;  %v3986_v27 = vadd.f32 %v3985_v49, %v3896_v31  ;;  %v4153_v49 = vld [vmem:[%s5453_s30 + $0xe8] sm:$0xff] }
 0x5c4   : > { %v4111_v25 = vadd.f32 %v4060_v35, %v3456_v42  ;;  %v3470_v3 = vpop.f32.mrf.mxu2 }
 0x5c5   : > { %v3471_v35 = vadd.f32 %v3470_v3, %v6520_v38 }
 0x5c6   : > { %v4175_v22 = vadd.f32 %v4143_v45, %v4111_v25 }
 0x5c8   : > { %4207 = vst [vmem:[%s6552_s18 + $0x98] sm:$0xff] %v4175_v22 }
 0x5c9   : > { %v4062_v4 = vpop.f32.mrf.mxu1 }
 0x5ca   : > { %v4063_v63 = vadd.f32 %v4062_v4, %v3974_v9  ;;  %v3990_v25 = vpop.f32.mrf.mxu0  ;;  %v3901_v40 = vpop.f32.mrf.mxu3  ;;  %v3989_v9 = vadd.f32 %v3988_v61, %v3899_v51 }
 0x5cb   : > { %v3991_v38 = vadd.f32 %v3990_v25, %v3901_v40 }
 0x5cc   : > { %v4112_v36 = vadd.f32 %v4063_v63, %v3459_v60  ;;  %v3473_v1 = vpop.f32.mrf.mxu2 }
 0x5cd   : > { %v3474_v60 = vadd.f32 %v3473_v1, %v6523_v19  ;;  %v4155_v1 = vld [vmem:[%s5453_s30 + $0xf8] sm:$0xff] }
 0x5ce   : > { %v4176_v0 = vadd.f32 %v4144_v12, %v4112_v36  ;;  %v4150_v12 = vld [vmem:[%s5453_s30 + $0xd0] sm:$0xff] }
 0x5d0   : > { %4208 = vst [vmem:[%s6552_s18 + $0xa0] sm:$0xff] %v4176_v0 }
 0x5d1   : > { %v4064_v2 = vpop.f32.mrf.mxu1 }
 0x5d2   : > { %v4065_v8 = vadd.f32 %v4064_v2, %v3976_v21  ;;  %v3993_v50 = vpop.f32.mrf.mxu0  ;;  %v3904_v0 = vpop.f32.mrf.mxu3 }
 0x5d3   : > { %v3994_v19 = vadd.f32 %v3993_v50, %v3904_v0 }
 0x5d4   : > { %v4113_v6 = vadd.f32 %v4065_v8, %v3461_v26  ;;  %v3475_v22 = vpop.f32.mrf.mxu2  ;;  %v4151_v8 = vld [vmem:[%s5453_s30 + $0xd8] sm:$0xff] }
 0x5d5   : > { %v3476_v2 = vadd.f32 %v3475_v22, %v6530_v14 }
 0x5d6   : > { %v4177_v39 = vadd.f32 %v4145_v7, %v4113_v6 }
 0x5d8   : > { %4209 = vst [vmem:[%s6552_s18 + $0xa8] sm:$0xff] %v4177_v39 }
 0x5d9   : > { %v4067_v28 = vpop.f32.mrf.mxu1 }
 0x5da   : > { %v4068_v56 = vadd.f32 %v4067_v28, %v3979_v47  ;;  %v3906_v43 = vpop.f32.mrf.mxu3  ;;  %v3995_v41 = vpop.f32.mrf.mxu0 }
 0x5db   : > { %v3996_v14 = vadd.f32 %v3995_v41, %v3906_v43 }
 0x5dc   : > { %v4114_v57 = vadd.f32 %v4068_v56, %v3464_v46  ;;  %v3478_v33 = vpop.f32.mrf.mxu2  ;;  %v4152_v46 = vld [vmem:[%s5453_s30 + $0xe0] sm:$0xff] }
 0x5dd   : > { %v3479_v47 = vadd.f32 %v3478_v33, %v6533_v32 }
 0x5de   : > { %v4178_v37 = vadd.f32 %v4146_v48, %v4114_v57 }
 0x5e0   : > { %4210 = vst [vmem:[%s6552_s18 + $0xb0] sm:$0xff] %v4178_v37 }
 0x5e1   : > { %v4069_v24 = vpop.f32.mrf.mxu1 }
 0x5e2   : > { %v4070_v34 = vadd.f32 %v4069_v24, %v3981_v62 }
 0x5e4   : > { %v4115_v55 = vadd.f32 %v4070_v34, %v3466_v15  ;;  %v3480_v28 = vpop.f32.mrf.mxu2  ;;  %v3998_v15 = vpop.f32.mrf.mxu0 }
 0x5e5   : > { %v3481_v37 = vadd.f32 %v3480_v28, %v6537_v52 }
 0x5e6   : > { %v4179_v29 = vadd.f32 %v4147_v16, %v4115_v55 }
 0x5e8   : > { %4211 = vst [vmem:[%s6552_s18 + $0xb8] sm:$0xff] %v4179_v29 }
 0x5e9   : > { %v4072_v18 = vpop.f32.mrf.mxu1  ;;  %v3909_v24 = vpop.f32.mrf.mxu3 }
 0x5ea   : > { %v4073_v58 = vadd.f32 %v4072_v18, %v3984_v59  ;;  %v3999_v34 = vadd.f32 %v3998_v15, %v3909_v24  ;;  %v4154_v59 = vld [vmem:[%s5453_s30 + $0xf0] sm:$0xff] }
 0x5ec   : > { %v4116_v54 = vadd.f32 %v4073_v58, %v3469_v5  ;;  %v3483_v31 = vpop.f32.mrf.mxu2  ;;  %v4000_v5 = vpop.f32.mrf.mxu0 }
 0x5ed   : > { %v3484_v55 = vadd.f32 %v3483_v31, %v6540_v10 }
 0x5ee   : > { %v4180_v20 = vadd.f32 %v4148_v23, %v4116_v54 }
 0x5f0   : > { %4212 = vst [vmem:[%s6552_s18 + $0xc0] sm:$0xff] %v4180_v20 }
 0x5f1   : > { %v4074_v42 = vpop.f32.mrf.mxu1  ;;  %v3911_v52 = vpop.f32.mrf.mxu3 }
 0x5f2   : > { %v4075_v45 = vadd.f32 %v4074_v42, %v3986_v27  ;;  %v4001_v61 = vadd.f32 %v4000_v5, %v3911_v52 }
 0x5f4   : > { %v4117_v30 = vadd.f32 %v4075_v45, %v3471_v35  ;;  %v3485_v23 = vpop.f32.mrf.mxu2 }
 0x5f5   : > { %v3486_v10 = vadd.f32 %v3485_v23, %v6544_v13 }
 0x5f6   : > { %v4181_v17 = vadd.f32 %v4149_v11, %v4117_v30 }
 0x5f8   : > { %4213 = vst [vmem:[%s6552_s18 + $0xc8] sm:$0xff] %v4181_v17 }
 0x5f9   : > { %v4077_v4 = vpop.f32.mrf.mxu1 }
 0x5fa   : > { %v4078_v63 = vadd.f32 %v4077_v4, %v3989_v9 }
 0x5fc   : > { %v4118_v36 = vadd.f32 %v4078_v63, %v3474_v60 }
 0x5fe   : > { %v4182_v44 = vadd.f32 %v4150_v12, %v4118_v36 }
 0x600   : > { %4214 = vst [vmem:[%s6552_s18 + $0xd0] sm:$0xff] %v4182_v44 }
 0x601   : > { %v4079_v21 = vpop.f32.mrf.mxu1 }
 0x602   : > { %v4080_v26 = vadd.f32 %v4079_v21, %v3991_v38 }
 0x604   : > { %v4119_v7 = vadd.f32 %v4080_v26, %v3476_v2 }
 0x606   : > { %v4183_v6 = vadd.f32 %v4151_v8, %v4119_v7 }
 0x608   : > { %4215 = vst [vmem:[%s6552_s18 + $0xd8] sm:$0xff] %v4183_v6 }
 0x609   : > { %v4082_v39 = vpop.f32.mrf.mxu1 }
 0x60a   : > { %v4083_v53 = vadd.f32 %v4082_v39, %v3994_v19 }
 0x60c   : > { %v4120_v56 = vadd.f32 %v4083_v53, %v3479_v47 }
 0x60e   : > { %v4184_v48 = vadd.f32 %v4152_v46, %v4120_v56 }
 0x610   : > { %4216 = vst [vmem:[%s6552_s18 + $0xe0] sm:$0xff] %v4184_v48 }
 0x611   : > { %v4084_v57 = vpop.f32.mrf.mxu1 }
 0x612   : > { %v4085_v62 = vadd.f32 %v4084_v57, %v3996_v14 }
 0x614   : > { %v4121_v32 = vadd.f32 %v4085_v62, %v3481_v37 }
 0x616   : > { %v4185_v3 = vadd.f32 %v4153_v49, %v4121_v32 }
 0x618   : > { %4217 = vst [vmem:[%s6552_s18 + $0xe8] sm:$0xff] %v4185_v3 }
 0x619   : > { %v4087_v16 = vpop.f32.mrf.mxu1 }
 0x61a   : > { %v4088_v29 = vadd.f32 %v4087_v16, %v3999_v34 }
 0x61c   : > { %v4122_v18 = vadd.f32 %v4088_v29, %v3484_v55 }
 0x61e   : > { %v4186_v58 = vadd.f32 %v4154_v59, %v4122_v18 }
 0x620   : > { %4218 = vst [vmem:[%s6552_s18 + $0xf0] sm:$0xff] %v4186_v58 }
 0x621   : > { %v4089_v51 = vpop.f32.mrf.mxu1 }
 0x622   : > { %v4090_v54 = vadd.f32 %v4089_v51, %v4001_v61 }
 0x624   : > { %v4123_v20 = vadd.f32 %v4090_v54, %v3486_v10 }
 0x626   : > { %v4187_v27 = vadd.f32 %v4155_v1, %v4123_v20 }
 0x628   : > { %4219 = vst [vmem:[%s6552_s18 + $0xf8] sm:$0xff] %v4187_v27 }
 0x629   : > { %5277 = shalt.err (!%p5274_p10)
}
 0x62a   : > { %s5329_s22 = smov 128   ;;  %s5330_s24 = smov 8  }
 0x62b   : > { %5094 = dma.vmem_to_hbm [thread:$0]  (%p5417_p3), %s4234_s29, 4096, %s4236_s4, %s4221_s16, %s5329_s22, %s5329_s22, %s5330_s24  }
 0x62c PF: > { %s4250_s25 = sand.u32 1, %s5308_s12   ;;  %p6758_p12 = scmp.ge.s32.totalorder %s5320_s15, 2 }
 0x62d   : > { %s4251_s30 = scalar_lea.sflag [#allocation6], %s4250_s25 }
 0x62e   : > { %p5108_p13 = pnand %p6758_p12, %p5386_p6 }
 0x630   : > { %p5109_p0 = pneg %p5108_p13 }
 0x632   : > { %5303 = dma.done.wait (%p5109_p0), %s4251_s30, 4096  }
 0x633   : > { %5305 = vsyncadd (%p5109_p0), %s4251_s30, 4294963200  ;;  %p17_p5 = scmp.ge.s32.totalorder %s5407_s6, 4   ;;  %s6759_s12 = smov %s5312_s13 }
 0x634   : > { %s6760_s13 = smov %s5316_s14  ;;  %s6761_s14 = smov %s5423_s10 }
 0x635   : > { %s6762_s15 = smov %s5407_s6  ;;  %19 = sbr.rel (!%p17_p5) target bundleno = 6 (0x6), region = 91 }
 0x63a   :  { %4257 = vsyncpa [#allocation5], 1 }
 0x63b   :  { %4259 = vsyncpa [#allocation5 + $0x1], 1 }
 0x63c   :  { %4260 = vsyncpa [#allocation8], 1 }
 0x63d   :  { %4261 = vsyncpa [#allocation6], 1 }
 0x63e   :  { %4263 = vsyncpa [#allocation6 + $0x1], 1 }

// kernel: tpu_custom_call.1
= control target key start
LH: loop header
LB: loop body
LE: loop exit
PB: predicated region body
PF: predicated region fallthrough
CT: control target
= control target key end

     0   :  { %8 = vsyncpa [#allocation5], 0  ;;  %s6713_s0 = inlined_call_operand.hbm [shape: f32[2,16,16,128], index: 0, kind: input, shape index: {}]   ;;  %s6714_s1 = inlined_call_operand.hbm [shape: bf16[1152,128], index: 1, kind: input, shape index: {}]   ;;  %s6715_s2 = inlined_call_operand.hbm [shape: bf16[1152,128], index: 2, kind: input, shape index: {}]   ;;  %s6716_s3 = inlined_call_operand.hbm [shape: f32[2,16,16,128], index: 3, kind: output, shape index: {}]  }
   0x1   :  { %10 = vsyncpa [#allocation5 + $0x1], 0 }
   0x2   :  { %11 = vsyncpa [#allocation8], 0 }
   0x3   :  { %12 = vsyncpa [#allocation6], 0 }
   0x4   :  { %14 = vsyncpa [#allocation6 + $0x1], 0  ;;  %s5351_s12 = smov 0   ;;  %s5353_s13 = smov 0  }
   0x5   :  { %s5355_s14 = smov 0   ;;  %s5357_s15 = smov 0  }
   0x6 LB: > { %s5372_s16 = sadd.s32 4294967295, %s5320_s15   ;;  %s4328_s17 = sadd.s32 4294967294, %s5320_s15   ;;  %s5320_s15 = sphi %s5357_s15, %s6762_s15   ;;  %s5316_s14 = sphi %s5355_s14, %s6761_s14   ;;  %s5312_s13 = sphi %s5353_s13, %s6760_s13   ;;  %s5308_s12 = sphi %s5351_s12, %s6759_s12  }
   0x7   : > { %p40_p0 = scmp.ne.s32.totalorder %s5312_s13, %s5308_s12  ;;  %p41_p1 = scmp.eq.s32.totalorder %s5372_s16, 0 }
   0x8   : > { %p106_p2 = scmp.eq.s32.totalorder %s5372_s16, 1  ;;  %p112_p3 = scmp.eq.s32.totalorder %s4328_s17, 1 }
   0x9   : > { %p5381_p4 = por %p41_p1, %p40_p0  ;;  %p4329_p5 = scmp.ge.s32.totalorder %s5320_s15, 1 }
   0xa   : > { %p5386_p6 = por %p112_p3, %p40_p0  ;;  %p119_p7 = scmp.lt.s32.totalorder %s5320_s15, 3 }
   0xb   : > { %s130_s22 = sshll.u32 %s6714_s1, 4  ;;  %s5322_s24 = smov [#allocation7]   ;;  %s131_s22 = int_to_ptr.hbm [resolvable:$true] %s130_s22 }
   0xc   : > { %p5394_p8 = pnand %p4329_p5, %p119_p7  ;;  %s132_s25 = sshll.u32 %s5322_s24, 4  ;;  %s133_s25 = int_to_ptr.vmem [resolvable:$true] %s132_s25 }
   0xd   : > { %s144_s28 = sshll.u32 %s6715_s2, 4  ;;  %s5323_s29 = smov 64   ;;  %s145_s28 = int_to_ptr.hbm [resolvable:$true] %s144_s28 }
   0xe   : > { %p5096_p9 = pneg %p5394_p8  ;;  %s5324_s30 = smov 4  }
   0xf   : > { %s5325_s4 = smov [#allocation9]   ;;  %s5407_s6 = sadd.s32 1, %s5320_s15  }
  0x10   : > { %p5097_p10 = pnand %p5096_p9, %p41_p1  ;;  %s146_s5 = sshll.u32 %s5325_s4, 4  ;;  %s147_s5 = int_to_ptr.vmem [resolvable:$true] %s146_s5 }
  0x11   : > { %s27_s7 = sadd.s32 1, %s5316_s14  ;;  %s24_s8 = ssub.s32 %s5320_s15, %s5407_s6 }
  0x12   : > { %5099 = dma.hbm_to_vmem [thread:$0]  (!%p5097_p10), %s131_s22, 9216, %s133_s25, [#allocation8], %s5323_s29, %s5323_s29, %s5324_s30  }
  0x13   : > { %5102 = dma.hbm_to_vmem [thread:$0]  (!%p5097_p10), %s145_s28, 9216, %s147_s5, [#allocation8], %s5323_s29, %s5323_s29, %s5324_s30  }
  0x14   : > { %p34_p12 = scmp.ne.s32.totalorder %s5316_s14, %s5312_s13  ;;  %p25_p13 = scmp.eq.s32.totalorder %s24_s8, 0 }
  0x15   : > { %p35_p0 = scmp.eq.s32.totalorder %s5320_s15, 0  ;;  %p5113_p5 = scmp.lt.s32.totalorder %s5320_s15, 2 }
  0x16   : > { %p5417_p3 = por %p106_p2, %p34_p12  ;;  %s160_s11 = sand.u32 1, %s5316_s14  }
  0x17   : > { %s5423_s10 = scalar_select %p25_p13, %s5316_s14, %s27_s7  }
  0x18   : > { %p36_p7 = por %p35_p0, %p34_p12  ;;  %s4333_s17 = sshll.u32 %s160_s11, 8 }
  0x19   : > { %s4922_s20 = sshll.u32 %s5320_s15, 8  ;;  %s164_s25 = scalar_lea.vmem [#allocation4], %s4333_s17 }
  0x1a   : > { %s169_s24 = scalar_lea.hbm %s6713_s0, %s4922_s20  ;;  %s172_s26 = sshll.u32 %s164_s25, 4  ;;  %s173_s26 = int_to_ptr.vmem [resolvable:$true] %s172_s26 }
  0x1b   : > { %s170_s27 = sshll.u32 %s169_s24, 4  ;;  %p5430_p2 = pnand %p5113_p5, %p36_p7  ;;  %s171_s27 = int_to_ptr.hbm [resolvable:$true] %s170_s27 }
  0x1c   : > { %s161_s29 = scalar_lea.sflag [#allocation5], %s160_s11  ;;  %s5220_s30 = sshra.s32 %s171_s27, 4  ;;  %s5221_s30 = int_to_ptr.hbm [resolvable:$true] %s5220_s30 }
  0x1d   : > { %s5222_s4 = scalar_lea.hbm %s5221_s30, 256  ;;  %p5224_p10 = pneg %p5430_p2 }
  0x1e   : > { %p5223_p9 = scmp.ne.s32.totalorder %s5221_s30, %s5222_s4  ;;  %s5227_s8 = scalar_lea.hbm %s6713_s0, 512 }
  0x1f   : > { %p5228_p0 = scmp.lt.s32.totalorder %s5221_s30, %s6713_s0  ;;  %p5229_p5 = scmp.lt.s32.totalorder %s5227_s8, %s5222_s4 }
  0x20   : > { %p5225_p12 = pnand %p5224_p10, %p5223_p9 }
  0x21   : > { %p5230_p7 = por %p5229_p5, %p5228_p0 }
  0x22   : > { %p5226_p13 = pneg %p5225_p12 }
  0x24   : > { %p5231_p11 = pnand %p5230_p7, %p5226_p13 }
  0x26   : > { %5234 = shalt.err (!%p5231_p11)
}
  0x27   : > { %s5326_s11 = smov 128   ;;  %s5327_s21 = smov 8  }
  0x28   : > { %5106 = dma.hbm_to_vmem [thread:$0]  (!%p5430_p2), %s171_s27, 4096, %s173_s26, %s161_s29, %s5326_s11, %s5326_s11, %s5327_s21  }
  0x29   : > { %184 = sbr.rel (%p5394_p8) target bundleno = 1580 (0x62c), region = 32 }
  0x2e   : > { %s5447_s22 = sand.u32 1, %s5312_s13  }
  0x2f   : > { %s4337_s24 = sshll.u32 %s5447_s22, 8  ;;  %s187_s25 = scalar_lea.sflag [#allocation5], %s5447_s22 }
  0x30   : > { %s5453_s30 = scalar_lea.vmem [#allocation4], %s4337_s24 }
  0x31   : > { %5295 = dma.done.wait (%p5381_p4), %s187_s25, 4096  }
  0x32   : > { %5297 = vsyncadd (%p5381_p4), %s187_s25, 4294963200 }
  0x33   : > { %5299 = dma.done.wait (%p41_p1), [#allocation8], 18432  }
  0x34   : > { %5301 = vsyncadd (%p41_p1), [#allocation8], 4294948864  ;;  %v5328_v0 = vmov 0.0   ;;  %v4954_v1 = vld [vmem:[#allocation7 + $0xf8] sm:$0xff]  ;;  %v4953_v3 = vld [vmem:[#allocation7 + $0xf0] sm:$0xff]  ;;  %s6552_s18 = scalar_lea.vmem [#allocation10], %s4337_s24 }
  0x35   : > { %232 = vst [vmem:[#allocation2 + $0x18] sm:$0x1] %v5328_v0  ;;  %v4962_v2 = vld [vmem:[#allocation7 + $0x138] sm:$0xff]  ;;  %903 = vmatpush.bf16.msra.mxu0 %v4954_v1  ;;  %5068 = vmatpush.bf16.msra.mxu2 %v4954_v1  ;;  %v4961_v4 = vld [vmem:[#allocation7 + $0x130] sm:$0xff]  ;;  %v5475_v5 = vld [vmem:[%s5453_s30] sm:$0xff]  ;;  %s5067_s23 = sshll.u32 %s5372_s16, 8 }
  0x36   : > { %224 = vst [vmem:[#allocation2] sm:$0xff] %v5328_v0  ;;  %992 = vmatpush.bf16.msra.mxu1 %v4962_v2  ;;  %5076 = vmatpush.bf16.msra.mxu3 %v4962_v2  ;;  %v5478_v6 = vld [vmem:[%s5453_s30 + $0x8] sm:$0xff]  ;;  %v4951_v9 = vld [vmem:[#allocation7 + $0xe0] sm:$0xff]  ;;  %v4950_v11 = vld [vmem:[#allocation7 + $0xd8] sm:$0xff]  ;;  %s4232_s28 = scalar_lea.hbm %s6716_s3, %s5067_s23  ;;  %s4233_s29 = sshll.u32 %s6552_s18, 4  ;;  %s4234_s29 = int_to_ptr.vmem [resolvable:$true] %s4233_s29 }
  0x37   : > { %225 = vst [vmem:[#allocation2 + $0x8] sm:$0xff] %v5328_v0  ;;  %v4952_v7 = vld [vmem:[#allocation7 + $0xe8] sm:$0xff]  ;;  %v4959_v10 = vld [vmem:[#allocation7 + $0x120] sm:$0xff]  ;;  %v4958_v12 = vld [vmem:[#allocation7 + $0x118] sm:$0xff]  ;;  %v5532_v24 = vpack.c.bf16 %v5478_v6, %v5475_v5  ;;  %s4235_s4 = sshll.u32 %s4232_s28, 4  ;;  %s4221_s16 = scalar_lea.sflag [#allocation6], %s5447_s22  ;;  %s4236_s4 = int_to_ptr.hbm [resolvable:$true] %s4235_s4 }
  0x38   : > { %226 = vst [vmem:[#allocation2 + $0x10] sm:$0xff] %v5328_v0  ;;  %v4960_v8 = vld [vmem:[#allocation7 + $0x128] sm:$0xff]  ;;  %v4949_v13 = vld [vmem:[#allocation7 + $0xd0] sm:$0xff]  ;;  %v4947_v17 = vld [vmem:[#allocation7 + $0xc0] sm:$0xff]  ;;  %s5264_s5 = sshra.s32 %s4236_s4, 4  ;;  %s5270_s20 = scalar_lea.hbm %s6716_s3, 512  ;;  %s5265_s5 = int_to_ptr.hbm [resolvable:$true] %s5264_s5 }
  0x39   : > { %228 = vst [vmem:[#allocation2 + $0x198] sm:$0xff] %v5328_v0  ;;  %904 = vmatpush.bf16.msra.mxu0 %v4953_v3  ;;  %5069 = vmatpush.bf16.msra.mxu2 %v4953_v3  ;;  %v4957_v14 = vld [vmem:[#allocation7 + $0x110] sm:$0xff]  ;;  %v4948_v15 = vld [vmem:[#allocation7 + $0xc8] sm:$0xff]  ;;  %v4955_v20 = vld [vmem:[#allocation7 + $0x100] sm:$0xff]  ;;  %s5266_s7 = scalar_lea.hbm %s5265_s5, 256  ;;  %p5271_p11 = scmp.lt.s32.totalorder %s5265_s5, %s6716_s3 }
  0x3a   : > { %229 = vst [vmem:[#allocation2 + $0x1a0] sm:$0xff] %v5328_v0  ;;  %993 = vmatpush.bf16.msra.mxu1 %v4961_v4  ;;  %5077 = vmatpush.bf16.msra.mxu3 %v4961_v4  ;;  %v4956_v16 = vld [vmem:[#allocation7 + $0x108] sm:$0xff]  ;;  %v326_v22 = vld [vmem:[%s5453_s30 + $0x80] sm:$0xff]  ;;  %v4970_v26 = vld [vmem:[#allocation7 + $0x178] sm:$0xff]  ;;  %p5267_p1 = scmp.ne.s32.totalorder %s5265_s5, %s5266_s7  ;;  %p5272_p2 = scmp.lt.s32.totalorder %s5270_s20, %s5266_s7 }
  0x3b   : > { %230 = vst [vmem:[#allocation2 + $0x1a8] sm:$0xff] %v5328_v0  ;;  %v327_v23 = vld [vmem:[%s5453_s30 + $0x88] sm:$0xff]  ;;  %v4930_v27 = vld [vmem:[#allocation7 + $0x38] sm:$0xff]  ;;  %v312_v29 = vld [vmem:[%s5453_s30 + $0x10] sm:$0xff] }
  0x3c   : > { %233 = vst [vmem:[#allocation2 + $0x30] sm:$0x1] %v5328_v0  ;;  %v688_v25 = vpack.c.bf16 %v327_v23, %v326_v22  ;;  %v4938_v28 = vld [vmem:[#allocation7 + $0x78] sm:$0xff]  ;;  %v328_v31 = vld [vmem:[%s5453_s30 + $0x90] sm:$0xff]  ;;  %v314_v39 = vld [vmem:[%s5453_s30 + $0x20] sm:$0xff]  ;;  %p5268_p4 = pnand %p5267_p1, %p5417_p3  ;;  %p5273_p9 = por %p5272_p2, %p5271_p11 }
  0x3d   : > { %234 = vst [vmem:[#allocation2 + $0x48] sm:$0x1] %v5328_v0  ;;  %905 = vmatpush.bf16.msra.mxu0 %v4952_v7  ;;  %5070 = vmatpush.bf16.msra.mxu2 %v4952_v7  ;;  %v313_v30 = vld [vmem:[%s5453_s30 + $0x18] sm:$0xff]  ;;  %v4969_v35 = vld [vmem:[#allocation7 + $0x170] sm:$0xff]  ;;  %v315_v40 = vld [vmem:[%s5453_s30 + $0x28] sm:$0xff] }
  0x3e   : > { %235 = vst [vmem:[#allocation2 + $0x60] sm:$0x1] %v5328_v0  ;;  %994 = vmatpush.bf16.msra.mxu1 %v4960_v8  ;;  %5078 = vmatpush.bf16.msra.mxu3 %v4960_v8  ;;  %v329_v32 = vld [vmem:[%s5453_s30 + $0x98] sm:$0xff]  ;;  %v5555_v33 = vpack.c.bf16 %v313_v30, %v312_v29  ;;  %v4929_v36 = vld [vmem:[#allocation7 + $0x30] sm:$0xff]  ;;  %v330_v42 = vld [vmem:[%s5453_s30 + $0xa0] sm:$0xff]  ;;  %v5576_v45 = vpack.c.bf16 %v315_v40, %v314_v39  ;;  %p5269_p8 = pneg %p5268_p4 }
  0x3f   : > { %236 = vst [vmem:[#allocation2 + $0x78] sm:$0x1] %v5328_v0  ;;  %v691_v34 = vpack.c.bf16 %v329_v32, %v328_v31  ;;  %v4937_v37 = vld [vmem:[#allocation7 + $0x70] sm:$0xff]  ;;  %v331_v43 = vld [vmem:[%s5453_s30 + $0xa8] sm:$0xff]  ;;  %v317_v51 = vld [vmem:[%s5453_s30 + $0x38] sm:$0xff] }
  0x40   : > { %237 = vst [vmem:[#allocation2 + $0x90] sm:$0x1] %v5328_v0  ;;  %v694_v46 = vpack.c.bf16 %v331_v43, %v330_v42  ;;  %v4968_v47 = vld [vmem:[#allocation7 + $0x168] sm:$0xff]  ;;  %v316_v50 = vld [vmem:[%s5453_s30 + $0x30] sm:$0xff]  ;;  %v333_v55 = vld [vmem:[%s5453_s30 + $0xb8] sm:$0xff]  ;;  %p5274_p10 = pnand %p5273_p9, %p5269_p8 }
  0x41   : > { %343 = vst [vmem:[#allocation2 + $0x19] sm:$0xff] %v5475_v5  ;;  %906 = vmatpush.bf16.msra.mxu0 %v4951_v9  ;;  %5071 = vmatpush.bf16.msra.mxu2 %v4951_v9  ;;  %v4928_v48 = vld [vmem:[#allocation7 + $0x28] sm:$0xff]  ;;  %v332_v53 = vld [vmem:[%s5453_s30 + $0xb0] sm:$0xff]  ;;  %v5586_v60 = vpack.c.bf16 %v317_v51, %v316_v50  ;;  %v4967_v62 = vld [vmem:[#allocation7 + $0x160] sm:$0xff] }
  0x42   : > { %344 = vst [vmem:[#allocation2 + $0x21] sm:$0xff] %v5478_v6  ;;  %995 = vmatpush.bf16.msra.mxu1 %v4959_v10  ;;  %5079 = vmatpush.bf16.msra.mxu3 %v4959_v10  ;;  %v4936_v49 = vld [vmem:[#allocation7 + $0x68] sm:$0xff]  ;;  %v697_v61 = vpack.c.bf16 %v333_v55, %v332_v53  ;;  %v4927_v63 = vld [vmem:[#allocation7 + $0x20] sm:$0xff] }
  0x43   : > { %238 = vst [vmem:[#allocation2 + $0xa8] sm:$0x1] %v5328_v0  ;;  %v318_v1 = vld [vmem:[%s5453_s30 + $0x40] sm:$0xff]  ;;  %v319_v2 = vld [vmem:[%s5453_s30 + $0x48] sm:$0xff] }
  0x44   : > { %239 = vst [vmem:[#allocation2 + $0xc0] sm:$0x1] %v5328_v0  ;;  %v334_v5 = vld [vmem:[%s5453_s30 + $0xc0] sm:$0xff]  ;;  %v335_v6 = vld [vmem:[%s5453_s30 + $0xc8] sm:$0xff] }
  0x45   : > { %240 = vst [vmem:[#allocation2 + $0xd8] sm:$0x1] %v5328_v0  ;;  %907 = vmatpush.bf16.msra.mxu0 %v4950_v11  ;;  %5072 = vmatpush.bf16.msra.mxu2 %v4950_v11  ;;  %v5596_v11 = vpack.c.bf16 %v319_v2, %v318_v1 }
  0x46   : > { %241 = vst [vmem:[#allocation2 + $0xf0] sm:$0x1] %v5328_v0  ;;  %996 = vmatpush.bf16.msra.mxu1 %v4958_v12  ;;  %5080 = vmatpush.bf16.msra.mxu3 %v4958_v12  ;;  %v700_v12 = vpack.c.bf16 %v335_v6, %v334_v5 }
  0x47   : > { %242 = vst [vmem:[#allocation2 + $0x108] sm:$0x1] %v5328_v0 }
  0x48   : > { %243 = vst [vmem:[#allocation2 + $0x120] sm:$0x1] %v5328_v0  ;;  %v567_v18 = vld [vmem:[#allocation2 + $0x18] sm:$0xff] }
  0x49   : > { %244 = vst [vmem:[#allocation2 + $0x138] sm:$0x1] %v5328_v0  ;;  %908 = vmatpush.bf16.msra.mxu0 %v4949_v13  ;;  %5073 = vmatpush.bf16.msra.mxu2 %v4949_v13  ;;  %v568_v19 = vld [vmem:[#allocation2 + $0x20] sm:$0xff]  ;;  %v4966_v13 = vld [vmem:[#allocation7 + $0x158] sm:$0xff] }
  0x4a   : > { %245 = vst [vmem:[#allocation2 + $0x150] sm:$0x1] %v5328_v0  ;;  %997 = vmatpush.bf16.msra.mxu1 %v4957_v14  ;;  %5081 = vmatpush.bf16.msra.mxu3 %v4957_v14  ;;  %v5504_v21 = vpack.c.bf16 %v568_v19, %v567_v18  ;;  %v4926_v14 = vld [vmem:[#allocation7 + $0x18] sm:$0xff] }
  0x4b   : > { %246 = vst [vmem:[#allocation2 + $0x168] sm:$0x1] %v5328_v0 }
  0x4c   : > { %247 = vst [vmem:[#allocation2 + $0x180] sm:$0x1] %v5328_v0 }
  0x4d   : > { %250 = vst [vmem:[#allocation2 + $0x29] sm:$0x1] %v5328_v0  ;;  %909 = vmatpush.bf16.msra.mxu0 %v4948_v15  ;;  %5074 = vmatpush.bf16.msra.mxu2 %v4948_v15  ;;  %v4934_v15 = vld [vmem:[#allocation7 + $0x58] sm:$0xff] }
  0x4e   : > { %251 = vst [vmem:[#allocation2 + $0x41] sm:$0x1] %v5328_v0  ;;  %998 = vmatpush.bf16.msra.mxu1 %v4956_v16  ;;  %5082 = vmatpush.bf16.msra.mxu3 %v4956_v16  ;;  %v320_v16 = vld [vmem:[%s5453_s30 + $0x50] sm:$0xff] }
  0x4f   : > { %252 = vst [vmem:[#allocation2 + $0x59] sm:$0x1] %v5328_v0 }
  0x50   : > { %253 = vst [vmem:[#allocation2 + $0x71] sm:$0x1] %v5328_v0 }
  0x51   : > { %254 = vst [vmem:[#allocation2 + $0x89] sm:$0x1] %v5328_v0  ;;  %910 = vmatpush.bf16.msra.mxu0 %v4947_v17  ;;  %5075 = vmatpush.bf16.msra.mxu2 %v4947_v17  ;;  %v321_v17 = vld [vmem:[%s5453_s30 + $0x58] sm:$0xff] }
  0x52   : > { %255 = vst [vmem:[#allocation2 + $0xa1] sm:$0x1] %v5328_v0  ;;  %999 = vmatpush.bf16.msra.mxu1 %v4955_v20  ;;  %5083 = vmatpush.bf16.msra.mxu3 %v4955_v20  ;;  %v336_v20 = vld [vmem:[%s5453_s30 + $0xd0] sm:$0xff] }
  0x53   : > { %256 = vst [vmem:[#allocation2 + $0xb9] sm:$0x1] %v5328_v0 }
  0x54   : > { %257 = vst [vmem:[#allocation2 + $0xd1] sm:$0x1] %v5328_v0  ;;  %911 = vmatmul.bf16.vlgmr.msra.gmra.mxu0 %v5504_v21 }
  0x55   : > { %258 = vst [vmem:[#allocation2 + $0xe9] sm:$0x1] %v5328_v0  ;;  %1000 = vmatmul.bf16.vlgmr.msra.gmra.mxu1 %v5532_v24  ;;  %1040 = vmatmul.bf16.vlgmr.msra.gmra.mxu3 %v688_v25 }
  0x56   : > { %259 = vst [vmem:[#allocation2 + $0x101] sm:$0x1] %v5328_v0  ;;  %1081 = vmatpush.bf16.msrb.mxu2 %v4970_v26  ;;  %1314 = vmatpush.bf16.msrb.mxu3 %v4930_v27 }
  0x57   : > { %260 = vst [vmem:[#allocation2 + $0x119] sm:$0x1] %v5328_v0  ;;  %1403 = vmatpush.bf16.msrb.mxu0 %v4938_v28  ;;  %v5606_v28 = vpack.c.bf16 %v321_v17, %v320_v16 }
  0x58   : > { %261 = vst [vmem:[#allocation2 + $0x131] sm:$0x1] %v5328_v0 }
  0x59   : > { %262 = vst [vmem:[#allocation2 + $0x149] sm:$0x1] %v5328_v0 }
  0x5a   : > { %263 = vst [vmem:[#allocation2 + $0x161] sm:$0x1] %v5328_v0  ;;  %1082 = vmatpush.bf16.msrb.mxu2 %v4969_v35  ;;  %1315 = vmatpush.bf16.msrb.mxu3 %v4929_v36  ;;  %v323_v35 = vld [vmem:[%s5453_s30 + $0x68] sm:$0xff] }
  0x5b   : > { %264 = vst [vmem:[#allocation2 + $0x179] sm:$0x1] %v5328_v0  ;;  %1404 = vmatpush.bf16.msrb.mxu0 %v4937_v37 }
  0x5c   : > { %265 = vst [vmem:[#allocation2 + $0x191] sm:$0x1] %v5328_v0 }
  0x5d   : > { %267 = vst [vmem:[#allocation3] sm:$0xff] %v5328_v0 }
  0x5e   : > { %268 = vst [vmem:[#allocation3 + $0x8] sm:$0xff] %v5328_v0  ;;  %1083 = vmatpush.bf16.msrb.mxu2 %v4968_v47  ;;  %1316 = vmatpush.bf16.msrb.mxu3 %v4928_v48  ;;  %v4964_v47 = vld [vmem:[#allocation7 + $0x148] sm:$0xff] }
  0x5f   : > { %269 = vst [vmem:[#allocation3 + $0x10] sm:$0xff] %v5328_v0  ;;  %1405 = vmatpush.bf16.msrb.mxu0 %v4936_v49  ;;  %v4924_v48 = vld [vmem:[#allocation7 + $0x8] sm:$0xff] }
  0x60   : > { %271 = vst [vmem:[#allocation3 + $0x198] sm:$0xff] %v5328_v0  ;;  %v4932_v49 = vld [vmem:[#allocation7 + $0x48] sm:$0xff] }
  0x61   : > { %272 = vst [vmem:[#allocation3 + $0x1a0] sm:$0xff] %v5328_v0 }
  0x62   : > { %273 = vst [vmem:[#allocation3 + $0x1a8] sm:$0xff] %v5328_v0  ;;  %1084 = vmatpush.bf16.msrb.mxu2 %v4967_v62  ;;  %1317 = vmatpush.bf16.msrb.mxu3 %v4927_v63 }
  0x63   : > { %275 = vst [vmem:[#allocation3 + $0x18] sm:$0x1] %v5328_v0 }
  0x64   : > { %276 = vst [vmem:[#allocation3 + $0x30] sm:$0x1] %v5328_v0 }
  0x65   : > { %277 = vst [vmem:[#allocation3 + $0x48] sm:$0x1] %v5328_v0  ;;  %1005 = vmatmul.bf16.gmra.mxu1 %v5555_v33  ;;  %1045 = vmatmul.bf16.gmra.mxu3 %v691_v34  ;;  %v322_v34 = vld [vmem:[%s5453_s30 + $0x60] sm:$0xff] }
  0x66   : > { %278 = vst [vmem:[#allocation3 + $0x60] sm:$0x1] %v5328_v0  ;;  %1085 = vmatpush.bf16.msrb.mxu2 %v4966_v13  ;;  %1318 = vmatpush.bf16.msrb.mxu3 %v4926_v14  ;;  %v4942_v14 = vld [vmem:[#allocation7 + $0x98] sm:$0xff] }
  0x67   : > { %279 = vst [vmem:[#allocation3 + $0x78] sm:$0x1] %v5328_v0 }
  0x68   : > { %280 = vst [vmem:[#allocation3 + $0x90] sm:$0x1] %v5328_v0 }
  0x69   : > { %281 = vst [vmem:[#allocation3 + $0xa8] sm:$0x1] %v5328_v0 }
  0x6a   : > { %282 = vst [vmem:[#allocation3 + $0xc0] sm:$0x1] %v5328_v0 }
  0x6b   : > { %283 = vst [vmem:[#allocation3 + $0xd8] sm:$0x1] %v5328_v0 }
  0x6c   : > { %284 = vst [vmem:[#allocation3 + $0xf0] sm:$0x1] %v5328_v0 }
  0x6d   : > { %285 = vst [vmem:[#allocation3 + $0x108] sm:$0x1] %v5328_v0 }
  0x6e   : > { %286 = vst [vmem:[#allocation3 + $0x120] sm:$0x1] %v5328_v0 }
  0x6f   : > { %287 = vst [vmem:[#allocation3 + $0x138] sm:$0x1] %v5328_v0 }
  0x70   : > { %288 = vst [vmem:[#allocation3 + $0x150] sm:$0x1] %v5328_v0 }
  0x71   : > { %289 = vst [vmem:[#allocation3 + $0x168] sm:$0x1] %v5328_v0 }
  0x72   : > { %290 = vst [vmem:[#allocation3 + $0x180] sm:$0x1] %v5328_v0 }
  0x73   : > { %293 = vst [vmem:[#allocation3 + $0x29] sm:$0x1] %v5328_v0 }
  0x74   : > { %294 = vst [vmem:[#allocation3 + $0x41] sm:$0x1] %v5328_v0 }
  0x75   : > { %295 = vst [vmem:[#allocation3 + $0x59] sm:$0x1] %v5328_v0  ;;  %1010 = vmatmul.bf16.gmra.mxu1 %v5576_v45  ;;  %1050 = vmatmul.bf16.gmra.mxu3 %v694_v46 }
  0x76   : > { %296 = vst [vmem:[#allocation3 + $0x71] sm:$0x1] %v5328_v0 }
  0x77   : > { %297 = vst [vmem:[#allocation3 + $0x89] sm:$0x1] %v5328_v0 }
  0x78   : > { %298 = vst [vmem:[#allocation3 + $0xa1] sm:$0x1] %v5328_v0 }
  0x79   : > { %299 = vst [vmem:[#allocation3 + $0xb9] sm:$0x1] %v5328_v0 }
  0x7a   : > { %300 = vst [vmem:[#allocation3 + $0xd1] sm:$0x1] %v5328_v0 }
  0x7b   : > { %301 = vst [vmem:[#allocation3 + $0xe9] sm:$0x1] %v5328_v0 }
  0x7c   : > { %302 = vst [vmem:[#allocation3 + $0x101] sm:$0x1] %v5328_v0 }
  0x7d   : > { %303 = vst [vmem:[#allocation3 + $0x119] sm:$0x1] %v5328_v0 }
  0x7e   : > { %304 = vst [vmem:[#allocation3 + $0x131] sm:$0x1] %v5328_v0 }
  0x7f   : > { %305 = vst [vmem:[#allocation3 + $0x149] sm:$0x1] %v5328_v0 }
  0x80   : > { %306 = vst [vmem:[#allocation3 + $0x161] sm:$0x1] %v5328_v0 }
  0x81   : > { %307 = vst [vmem:[#allocation3 + $0x179] sm:$0x1] %v5328_v0 }
  0x82   : > { %308 = vst [vmem:[#allocation3 + $0x191] sm:$0x1] %v5328_v0 }
  0x83   : > { %359 = vst [vmem:[#allocation2 + $0xd9] sm:$0xff] %v326_v22  ;;  %v337_v22 = vld [vmem:[%s5453_s30 + $0xd8] sm:$0xff] }
  0x84   : > { %360 = vst [vmem:[#allocation2 + $0xe1] sm:$0xff] %v327_v23 }
  0x85   : > { %231 = vst [vmem:[#allocation2] sm:$0x1] %v5328_v0  ;;  %1015 = vmatmul.bf16.gmra.mxu1 %v5586_v60  ;;  %1055 = vmatmul.bf16.gmra.mxu3 %v697_v61 }
  0x86   : > { %248 = vst [vmem:[#allocation2 + $0x198] sm:$0x1] %v5328_v0 }
  0x87   : > { %249 = vst [vmem:[#allocation2 + $0x11] sm:$0x1] %v5328_v0 }
  0x88   : > { %266 = vst [vmem:[#allocation2 + $0x1a9] sm:$0x1] %v5328_v0 }
  0x89   : > { %274 = vst [vmem:[#allocation3] sm:$0x1] %v5328_v0 }
  0x8a   : > { %v583_v38 = vld [vmem:[#allocation2 + $0xd8] sm:$0xff]  ;;  %291 = vst [vmem:[#allocation3 + $0x198] sm:$0x1] %v5328_v0 }
  0x8b   : > { %v584_v41 = vld [vmem:[#allocation2 + $0xe0] sm:$0xff]  ;;  %292 = vst [vmem:[#allocation3 + $0x11] sm:$0x1] %v5328_v0 }
  0x8c   : > { %v687_v44 = vpack.c.bf16 %v584_v41, %v583_v38  ;;  %309 = vst [vmem:[#allocation3 + $0x1a9] sm:$0x1] %v5328_v0  ;;  %v4935_v0 = vld [vmem:[#allocation7 + $0x60] sm:$0xff] }
  0x8d   : > { %345 = vst [vmem:[#allocation2 + $0x31] sm:$0xff] %v312_v29  ;;  %1406 = vmatpush.bf16.msrb.mxu0 %v4935_v0  ;;  %v703_v29 = vpack.c.bf16 %v337_v22, %v336_v20  ;;  %v338_v38 = vld [vmem:[%s5453_s30 + $0xe0] sm:$0xff] }
  0x8e   : > { %951 = vmatmul.bf16.vlgmr.msra.gmra.mxu2 %v687_v44  ;;  %346 = vst [vmem:[#allocation2 + $0x39] sm:$0xff] %v313_v30  ;;  %v4965_v30 = vld [vmem:[#allocation7 + $0x150] sm:$0xff]  ;;  %v5616_v44 = vpack.c.bf16 %v323_v35, %v322_v34 }
  0x8f   : > { %361 = vst [vmem:[#allocation2 + $0xf1] sm:$0xff] %v328_v31  ;;  %v4925_v31 = vld [vmem:[#allocation7 + $0x10] sm:$0xff]  ;;  %1086 = vmatpush.bf16.msrb.mxu2 %v4965_v30 }
  0x90   : > { %362 = vst [vmem:[#allocation2 + $0xf9] sm:$0xff] %v329_v32  ;;  %v4933_v32 = vld [vmem:[#allocation7 + $0x50] sm:$0xff]  ;;  %1319 = vmatpush.bf16.msrb.mxu3 %v4925_v31  ;;  %v4940_v31 = vld [vmem:[#allocation7 + $0x88] sm:$0xff] }
  0x91   : > { %347 = vst [vmem:[#allocation2 + $0x49] sm:$0xff] %v314_v39  ;;  %1407 = vmatpush.bf16.msrb.mxu0 %v4934_v15  ;;  %v339_v39 = vld [vmem:[%s5453_s30 + $0xe8] sm:$0xff] }
  0x92   : > { %348 = vst [vmem:[#allocation2 + $0x51] sm:$0xff] %v315_v40  ;;  %v706_v46 = vpack.c.bf16 %v339_v39, %v338_v38 }
  0x93   : > { %363 = vst [vmem:[#allocation2 + $0x109] sm:$0xff] %v330_v42  ;;  %1087 = vmatpush.bf16.msrb.mxu2 %v4964_v47 }
  0x94   : > { %v569_v52 = vld [vmem:[#allocation2 + $0x30] sm:$0xff]  ;;  %364 = vst [vmem:[#allocation2 + $0x111] sm:$0xff] %v331_v43  ;;  %1320 = vmatpush.bf16.msrb.mxu3 %v4924_v48  ;;  %v407_v48 = vld [vmem:[#allocation2 + $0x1] sm:$0xff] }
  0x95   : > { %v570_v54 = vld [vmem:[#allocation2 + $0x38] sm:$0xff]  ;;  %349 = vst [vmem:[#allocation2 + $0x61] sm:$0xff] %v316_v50  ;;  %1020 = vmatmul.bf16.gmra.mxu1 %v5596_v11  ;;  %1060 = vmatmul.bf16.gmra.mxu3 %v700_v12 }
  0x96   : > { %v5583_v56 = vpack.c.bf16 %v570_v54, %v569_v52  ;;  %350 = vst [vmem:[#allocation2 + $0x69] sm:$0xff] %v317_v51  ;;  %v585_v57 = vld [vmem:[#allocation2 + $0xf0] sm:$0xff]  ;;  %1408 = vmatpush.bf16.msrb.mxu0 %v4933_v32  ;;  %v4946_v50 = vld [vmem:[#allocation7 + $0xb8] sm:$0xff] }
  0x97   : > { %v586_v58 = vld [vmem:[#allocation2 + $0xf8] sm:$0xff]  ;;  %365 = vst [vmem:[#allocation2 + $0x121] sm:$0xff] %v332_v53  ;;  %v324_v51 = vld [vmem:[%s5453_s30 + $0x70] sm:$0xff]  ;;  %1492 = vmatpush.bf16.msrb.mxu1 %v4946_v50 }
  0x98   : > { %916 = vmatmul.bf16.gmra.mxu0 %v5583_v56  ;;  %366 = vst [vmem:[#allocation2 + $0x129] sm:$0xff] %v333_v55  ;;  %v690_v59 = vpack.c.bf16 %v586_v58, %v585_v57  ;;  %v571_v3 = vld [vmem:[#allocation2 + $0x48] sm:$0xff]  ;;  %v325_v52 = vld [vmem:[%s5453_s30 + $0x78] sm:$0xff]  ;;  %v340_v55 = vld [vmem:[%s5453_s30 + $0xf0] sm:$0xff] }
  0x99   : > { %351 = vst [vmem:[#allocation2 + $0x79] sm:$0xff] %v318_v1  ;;  %v572_v4 = vld [vmem:[#allocation2 + $0x50] sm:$0xff]  ;;  %v341_v57 = vld [vmem:[%s5453_s30 + $0xf8] sm:$0xff]  ;;  %v5626_v63 = vpack.c.bf16 %v325_v52, %v324_v51 }
  0x9a   : > { %352 = vst [vmem:[#allocation2 + $0x81] sm:$0xff] %v319_v2  ;;  %v5593_v7 = vpack.c.bf16 %v572_v4, %v571_v3  ;;  %v587_v8 = vld [vmem:[#allocation2 + $0x108] sm:$0xff]  ;;  %1409 = vmatpush.bf16.msrb.mxu0 %v4932_v49  ;;  %v709_v0 = vpack.c.bf16 %v341_v57, %v340_v55  ;;  %v4945_v1 = vld [vmem:[#allocation7 + $0xb0] sm:$0xff]  ;;  %v4963_v2 = vld [vmem:[#allocation7 + $0x140] sm:$0xff] }
  0x9b   : > { %367 = vst [vmem:[#allocation2 + $0x139] sm:$0xff] %v334_v5  ;;  %v588_v9 = vld [vmem:[#allocation2 + $0x110] sm:$0xff]  ;;  %v4923_v3 = vld [vmem:[#allocation7] sm:$0xff]  ;;  %1493 = vmatpush.bf16.msrb.mxu1 %v4945_v1  ;;  %v4944_v4 = vld [vmem:[#allocation7 + $0xa8] sm:$0xff]  ;;  %1088 = vmatpush.bf16.msrb.mxu2 %v4963_v2 }
  0x9c   : > { %368 = vst [vmem:[#allocation2 + $0x141] sm:$0xff] %v335_v6  ;;  %v693_v10 = vpack.c.bf16 %v588_v9, %v587_v8  ;;  %v573_v18 = vld [vmem:[#allocation2 + $0x60] sm:$0xff]  ;;  %1321 = vmatpush.bf16.msrb.mxu3 %v4923_v3  ;;  %v4994_v32 = vld [vmem:[#allocation7 + $0x238] sm:$0xff]  ;;  %v408_v49 = vld [vmem:[#allocation2 + $0x9] sm:$0xff] }
  0x9d   : > { %353 = vst [vmem:[#allocation2 + $0x91] sm:$0xff] %v320_v16  ;;  %v574_v19 = vld [vmem:[#allocation2 + $0x68] sm:$0xff]  ;;  %v4931_v5 = vld [vmem:[#allocation7 + $0x40] sm:$0xff]  ;;  %v4993_v3 = vld [vmem:[#allocation7 + $0x230] sm:$0xff] }
  0x9e   : > { %956 = vmatmul.bf16.gmra.mxu2 %v690_v59  ;;  %354 = vst [vmem:[#allocation2 + $0x99] sm:$0xff] %v321_v17  ;;  %v5603_v23 = vpack.c.bf16 %v574_v19, %v573_v18  ;;  %v589_v25 = vld [vmem:[#allocation2 + $0x120] sm:$0xff]  ;;  %1410 = vmatpush.bf16.msrb.mxu0 %v4931_v5 }
  0x9f   : > { %369 = vst [vmem:[#allocation2 + $0x151] sm:$0xff] %v336_v20  ;;  %v590_v26 = vld [vmem:[#allocation2 + $0x128] sm:$0xff]  ;;  %1494 = vmatpush.bf16.msrb.mxu1 %v4944_v4  ;;  %v4943_v9 = vld [vmem:[#allocation7 + $0xa0] sm:$0xff] }
  0xa0   : > { %370 = vst [vmem:[#allocation2 + $0x159] sm:$0xff] %v337_v22  ;;  %v696_v27 = vpack.c.bf16 %v590_v26, %v589_v25  ;;  %v575_v36 = vld [vmem:[#allocation2 + $0x78] sm:$0xff]  ;;  %v375_v18 = vld [vmem:[#allocation2] sm:$0xff]  ;;  %v4941_v22 = vld [vmem:[#allocation7 + $0x90] sm:$0xff] }
  0xa1   : > { %355 = vst [vmem:[#allocation2 + $0xa9] sm:$0xff] %v322_v34  ;;  %v576_v37 = vld [vmem:[#allocation2 + $0x80] sm:$0xff]  ;;  %v471_v20 = vpack.c.bf16 0.0, %v375_v18  ;;  %v4978_v25 = vld [vmem:[#allocation7 + $0x1b8] sm:$0xff] }
  0xa2   : > { %356 = vst [vmem:[#allocation2 + $0xb1] sm:$0xff] %v323_v35  ;;  %v5613_v40 = vpack.c.bf16 %v576_v37, %v575_v36  ;;  %v591_v41 = vld [vmem:[#allocation2 + $0x138] sm:$0xff]  ;;  %1918 = vmatpush.bf16.msra.mxu2 %v4978_v25  ;;  %v4939_v35 = vld [vmem:[#allocation7 + $0x80] sm:$0xff]  ;;  %2096 = vmatpush.bf16.msra.mxu0 %v4994_v32 }
  0xa3   : > { %371 = vst [vmem:[#allocation2 + $0x169] sm:$0xff] %v338_v38  ;;  %v592_v42 = vld [vmem:[#allocation2 + $0x140] sm:$0xff]  ;;  %1495 = vmatpush.bf16.msrb.mxu1 %v4943_v9  ;;  %v4986_v26 = vld [vmem:[#allocation7 + $0x1f8] sm:$0xff] }
  0xa4   : > { %372 = vst [vmem:[#allocation2 + $0x171] sm:$0xff] %v339_v39  ;;  %v699_v43 = vpack.c.bf16 %v592_v42, %v591_v41  ;;  %v577_v53 = vld [vmem:[#allocation2 + $0x90] sm:$0xff]  ;;  %2007 = vmatpush.bf16.msra.mxu3 %v4986_v26  ;;  %v439_v39 = vld [vmem:[#allocation2 + $0x2] sm:$0xff] }
  0xa5   : > { %1025 = vmatmul.bf16.gmra.mxu1 %v5606_v28  ;;  %1065 = vmatmul.bf16.gmra.mxu3 %v703_v29  ;;  %357 = vst [vmem:[#allocation2 + $0xc1] sm:$0xff] %v324_v51  ;;  %v578_v54 = vld [vmem:[#allocation2 + $0x98] sm:$0xff]  ;;  %v440_v41 = vld [vmem:[#allocation2 + $0xa] sm:$0xff] }
  0xa6   : > { %358 = vst [vmem:[#allocation2 + $0xc9] sm:$0xff] %v325_v52  ;;  %v5623_v58 = vpack.c.bf16 %v578_v54, %v577_v53  ;;  %v593_v59 = vld [vmem:[#allocation2 + $0x150] sm:$0xff]  ;;  %v473_v42 = vpack.c.bf16 %v440_v41, %v439_v39  ;;  %v472_v52 = vpack.c.bf16 %v408_v49, %v407_v48  ;;  %v631_v53 = vld [vmem:[#allocation2 + $0x1a] sm:$0xff]  ;;  %v632_v54 = vld [vmem:[#allocation2 + $0x22] sm:$0xff]  ;;  %2097 = vmatpush.bf16.msra.mxu0 %v4993_v3 }
  0xa7   : > { %373 = vst [vmem:[#allocation2 + $0x181] sm:$0xff] %v340_v55  ;;  %v594_v61 = vld [vmem:[#allocation2 + $0x158] sm:$0xff]  ;;  %1496 = vmatpush.bf16.msrb.mxu1 %v4942_v14  ;;  %v665_v55 = vpack.c.bf16 %v632_v54, %v631_v53  ;;  %v4976_v39 = vld [vmem:[#allocation7 + $0x1a8] sm:$0xff] }
  0xa8   : > { %921 = vmatmul.bf16.gmra.mxu0 %v5593_v7  ;;  %374 = vst [vmem:[#allocation2 + $0x189] sm:$0xff] %v341_v57  ;;  %v702_v62 = vpack.c.bf16 %v594_v61, %v593_v59  ;;  %v579_v6 = vld [vmem:[#allocation2 + $0xa8] sm:$0xff]  ;;  %v639_v3 = vld [vmem:[#allocation2 + $0x7a] sm:$0xff] }
  0xa9   : > { %v580_v8 = vld [vmem:[#allocation2 + $0xb0] sm:$0xff]  ;;  %v4984_v41 = vld [vmem:[#allocation7 + $0x1e8] sm:$0xff] }
  0xaa   : > { %v595_v12 = vld [vmem:[#allocation2 + $0x168] sm:$0xff] }
  0xab   : > { %v596_v13 = vld [vmem:[#allocation2 + $0x170] sm:$0xff]  ;;  %1497 = vmatpush.bf16.msrb.mxu1 %v4941_v22  ;;  %v637_v49 = vld [vmem:[#allocation2 + $0x62] sm:$0xff] }
  0xac   : > { %v705_v15 = vpack.c.bf16 %v596_v13, %v595_v12 }
  0xad   : > { %v582_v29 = vld [vmem:[#allocation2 + $0xc8] sm:$0xff] }
  0xae   : > { %961 = vmatmul.bf16.gmra.mxu2 %v693_v10  ;;  %v5629_v10 = vpack.c.bf16 %v580_v8, %v579_v6  ;;  %v597_v37 = vld [vmem:[#allocation2 + $0x180] sm:$0xff]  ;;  %v633_v6 = vld [vmem:[#allocation2 + $0x32] sm:$0xff] }
  0xaf   : > { %1498 = vmatpush.bf16.msrb.mxu1 %v4940_v31  ;;  %v598_v38 = vld [vmem:[#allocation2 + $0x188] sm:$0xff]  ;;  %v634_v8 = vld [vmem:[#allocation2 + $0x3a] sm:$0xff] }
  0xb0   : > { %v668_v12 = vpack.c.bf16 %v634_v8, %v633_v6 }
  0xb3   : > { %1499 = vmatpush.bf16.msrb.mxu1 %v4939_v35 }
  0xb5   : > { %1030 = vmatmul.bf16.gmra.mxu1 %v5616_v44  ;;  %1070 = vmatmul.bf16.gmra.mxu3 %v706_v46  ;;  %v708_v46 = vpack.c.bf16 %v598_v38, %v597_v37 }
  0xb8   : > { %926 = vmatmul.bf16.gmra.mxu0 %v5603_v23 }
  0xbe   : > { %966 = vmatmul.bf16.gmra.mxu2 %v696_v27  ;;  %v581_v27 = vld [vmem:[#allocation2 + $0xc0] sm:$0xff] }
  0xbf   : > { %v5636_v36 = vpack.c.bf16 %v582_v29, %v581_v27  ;;  %v635_v27 = vld [vmem:[#allocation2 + $0x4a] sm:$0xff] }
  0xc5   : > { %1035 = vmatmul.bf16.gmra.mxu1 %v5626_v63  ;;  %1075 = vmatmul.bf16.gmra.mxu3 %v709_v0  ;;  %v4985_v0 = vld [vmem:[#allocation7 + $0x1f0] sm:$0xff] }
  0xc6   : > { %2008 = vmatpush.bf16.msra.mxu3 %v4985_v0 }
  0xc8   : > { %931 = vmatmul.bf16.gmra.mxu0 %v5613_v40 }
  0xca   : > { %2009 = vmatpush.bf16.msra.mxu3 %v4984_v41 }
  0xce   : > { %971 = vmatmul.bf16.gmra.mxu2 %v699_v43 }
  0xd1   : > { %v912_v16 = vpop.f32.mrf.mxu0 }
  0xd2   : > { %v1001_v17 = vpop.f32.mrf.mxu1 }
  0xd3   : > { %v5632_v19 = vadd.f32 %v1001_v17, %v912_v16 }
  0xd5   : > { %1322 = vmatmul.bf16.vlgmr.msrb.gmra.mxu3 %v471_v20  ;;  %1500 = vmatmul.bf16.vlgmr.msrb.gmra.mxu1 %v473_v42 }
  0xd8   : > { %936 = vmatmul.bf16.gmra.mxu0 %v5623_v58  ;;  %v1041_v30 = vpop.f32.mrf.mxu3 }
  0xd9   : > { %v5640_v59 = vpop.f32.mrf.mxu0 }
  0xda   : > { %v5634_v34 = vpop.f32.mrf.mxu1 }
  0xde   : > { %976 = vmatmul.bf16.gmra.mxu2 %v702_v62  ;;  %v4977_v62 = vld [vmem:[#allocation7 + $0x1b0] sm:$0xff] }
  0xdf   : > { %1919 = vmatpush.bf16.msra.mxu2 %v4977_v62 }
  0xe0   : > { %v1043_v43 = vpop.f32.mrf.mxu3 }
  0xe2   : > { %v1006_v47 = vpop.f32.mrf.mxu1 }
  0xe3   : > { %1920 = vmatpush.bf16.msra.mxu2 %v4976_v39 }
  0xe5   : > { %1327 = vmatmul.bf16.gmra.mxu3 %v5504_v21  ;;  %1505 = vmatmul.bf16.gmra.mxu1 %v665_v55 }
  0xe8   : > { %941 = vmatmul.bf16.gmra.mxu0 %v5629_v10  ;;  %v1046_v50 = vpop.f32.mrf.mxu3 }
  0xea   : > { %v1008_v51 = vpop.f32.mrf.mxu1 }
  0xee   : > { %981 = vmatmul.bf16.gmra.mxu2 %v705_v15 }
  0xf0   : > { %v1048_v57 = vpop.f32.mrf.mxu3 }
  0xf2   : > { %v1011_v61 = vpop.f32.mrf.mxu1 }
  0xf5   : > { %1332 = vmatmul.bf16.gmra.mxu3 %v5583_v56  ;;  %1510 = vmatmul.bf16.gmra.mxu1 %v668_v12 }
  0xf8   : > { %946 = vmatmul.bf16.gmra.mxu0 %v5636_v36  ;;  %v1051_v2 = vpop.f32.mrf.mxu3 }
  0xfa   : > { %v1013_v4 = vpop.f32.mrf.mxu1 }
  0xfe   : > { %986 = vmatmul.bf16.gmra.mxu2 %v708_v46  ;;  %v4992_v46 = vld [vmem:[#allocation7 + $0x228] sm:$0xff] }
  0xff   : > { %2098 = vmatpush.bf16.msra.mxu0 %v4992_v46 }
 0x100   : > { %v1053_v56 = vpop.f32.mrf.mxu3 }
 0x102   : > { %v1016_v15 = vpop.f32.mrf.mxu1 }
 0x105   : > { %1337 = vmatmul.bf16.gmra.mxu3 %v5593_v7 }
 0x108   : > { %1411 = vmatmul.bf16.vlgmr.msrb.gmra.mxu0 %v472_v52  ;;  %v1056_v22 = vpop.f32.mrf.mxu3 }
 0x10a   : > { %v1018_v25 = vpop.f32.mrf.mxu1 }
 0x10e   : > { %1089 = vmatmul.bf16.vlgmr.msrb.gmra.mxu2 %v665_v55 }
 0x110   : > { %v1058_v35 = vpop.f32.mrf.mxu3 }
 0x111   : > { %v952_v21 = vpop.f32.mrf.mxu2 }
 0x112   : > { %v5643_v1 = vadd.f32 %v1041_v30, %v952_v21  ;;  %v1021_v37 = vpop.f32.mrf.mxu1 }
 0x115   : > { %v917_v5 = vpop.f32.mrf.mxu0  ;;  %1342 = vmatmul.bf16.gmra.mxu3 %v5603_v23 }
 0x116   : > { %v5645_v9 = vadd.f32 %v1006_v47, %v917_v5 }
 0x118   : > { %1416 = vmatmul.bf16.gmra.mxu0 %v5532_v24  ;;  %v636_v24 = vld [vmem:[#allocation2 + $0x52] sm:$0xff] }
 0x119   : > { %v954_v13 = vpop.f32.mrf.mxu2  ;;  %v671_v30 = vpack.c.bf16 %v636_v24, %v635_v27  ;;  %v641_v24 = vld [vmem:[#allocation2 + $0x92] sm:$0xff] }
 0x11a   : > { %v5648_v14 = vadd.f32 %v1043_v43, %v954_v13  ;;  %v1023_v47 = vpop.f32.mrf.mxu1 }
 0x11b   : > { %1515 = vmatmul.bf16.gmra.mxu1 %v671_v30 }
 0x11d   : > { %v919_v16 = vpop.f32.mrf.mxu0 }
 0x11e   : > { %1094 = vmatmul.bf16.gmra.mxu2 %v668_v12  ;;  %v5650_v17 = vadd.f32 %v1008_v51, %v919_v16  ;;  %v4983_v16 = vld [vmem:[#allocation7 + $0x1e0] sm:$0xff] }
 0x11f   : > { %2010 = vmatpush.bf16.msra.mxu3 %v4983_v16 }
 0x121   : > { %v957_v18 = vpop.f32.mrf.mxu2 }
 0x122   : > { %v5653_v20 = vadd.f32 %v1046_v50, %v957_v18  ;;  %v638_v50 = vld [vmem:[#allocation2 + $0x6a] sm:$0xff] }
 0x123   : > { %v674_v52 = vpack.c.bf16 %v638_v50, %v637_v49  ;;  %v643_v49 = vld [vmem:[#allocation2 + $0xaa] sm:$0xff]  ;;  %v644_v50 = vld [vmem:[#allocation2 + $0xb2] sm:$0xff] }
 0x125   : > { %v922_v26 = vpop.f32.mrf.mxu0  ;;  %1347 = vmatmul.bf16.gmra.mxu3 %v5613_v40 }
 0x126   : > { %v5655_v29 = vadd.f32 %v1011_v61, %v922_v26  ;;  %v4991_v26 = vld [vmem:[#allocation7 + $0x220] sm:$0xff] }
 0x127   : > { %2099 = vmatpush.bf16.msra.mxu0 %v4991_v26 }
 0x128   : > { %1421 = vmatmul.bf16.gmra.mxu0 %v5555_v33  ;;  %v1061_v33 = vpop.f32.mrf.mxu3 }
 0x129   : > { %v959_v31 = vpop.f32.mrf.mxu2 }
 0x12a   : > { %v5658_v32 = vadd.f32 %v1048_v57, %v959_v31  ;;  %v1026_v57 = vpop.f32.mrf.mxu1 }
 0x12b   : > { %1520 = vmatmul.bf16.gmra.mxu1 %v674_v52 }
 0x12d   : > { %v924_v7 = vpop.f32.mrf.mxu0 }
 0x12e   : > { %1099 = vmatmul.bf16.gmra.mxu2 %v671_v30  ;;  %v5660_v38 = vadd.f32 %v1013_v4, %v924_v7  ;;  %v640_v4 = vld [vmem:[#allocation2 + $0x82] sm:$0xff]  ;;  %v642_v30 = vld [vmem:[#allocation2 + $0x9a] sm:$0xff] }
 0x12f   : > { %v677_v6 = vpack.c.bf16 %v640_v4, %v639_v3 }
 0x130   : > { %v1063_v23 = vpop.f32.mrf.mxu3 }
 0x131   : > { %v962_v42 = vpop.f32.mrf.mxu2 }
 0x132   : > { %v5663_v43 = vadd.f32 %v1051_v2, %v962_v42  ;;  %v1028_v5 = vpop.f32.mrf.mxu1 }
 0x135   : > { %v927_v48 = vpop.f32.mrf.mxu0  ;;  %1352 = vmatmul.bf16.gmra.mxu3 %v5623_v58 }
 0x136   : > { %v5665_v51 = vadd.f32 %v1016_v15, %v927_v48  ;;  %v4975_v15 = vld [vmem:[#allocation7 + $0x1a0] sm:$0xff] }
 0x137   : > { %1921 = vmatpush.bf16.msra.mxu2 %v4975_v15 }
 0x138   : > { %1426 = vmatmul.bf16.gmra.mxu0 %v5576_v45  ;;  %v1066_v21 = vpop.f32.mrf.mxu3 }
 0x139   : > { %v964_v53 = vpop.f32.mrf.mxu2 }
 0x13a   : > { %v5668_v54 = vadd.f32 %v1053_v56, %v964_v53  ;;  %v683_v53 = vpack.c.bf16 %v644_v50, %v643_v49 }
 0x13b   : > { %1525 = vmatmul.bf16.gmra.mxu1 %v677_v6 }
 0x13d   : > { %v929_v55 = vpop.f32.mrf.mxu0 }
 0x13e   : > { %1104 = vmatmul.bf16.gmra.mxu2 %v674_v52  ;;  %v5670_v61 = vadd.f32 %v1018_v25, %v929_v55 }
 0x140   : > { %v1068_v13 = vpop.f32.mrf.mxu3 }
 0x141   : > { %v967_v62 = vpop.f32.mrf.mxu2 }
 0x142   : > { %v5673_v0 = vadd.f32 %v1056_v22, %v967_v62  ;;  %v1031_v22 = vpop.f32.mrf.mxu1 }
 0x145   : > { %v932_v2 = vpop.f32.mrf.mxu0  ;;  %1357 = vmatmul.bf16.gmra.mxu3 %v5629_v10 }
 0x146   : > { %v5675_v45 = vadd.f32 %v1021_v37, %v932_v2  ;;  %v4982_v2 = vld [vmem:[#allocation7 + $0x1d8] sm:$0xff] }
 0x147   : > { %2011 = vmatpush.bf16.msra.mxu3 %v4982_v2  ;;  %v396_v2 = vld [vmem:[#allocation2 + $0xf8] sm:$0xff] }
 0x148   : > { %1431 = vmatmul.bf16.gmra.mxu0 %v5586_v60  ;;  %v1071_v60 = vpop.f32.mrf.mxu3 }
 0x149   : > { %v969_v8 = vpop.f32.mrf.mxu2 }
 0x14a   : > { %v5678_v12 = vadd.f32 %v1058_v35, %v969_v8  ;;  %v680_v35 = vpack.c.bf16 %v642_v30, %v641_v24  ;;  %v1033_v39 = vpop.f32.mrf.mxu1 }
 0x14c   : > { %1530 = vmatmul.bf16.gmra.mxu1 %v680_v35 }
 0x14d   : > { %v934_v56 = vpop.f32.mrf.mxu0 }
 0x14e   : > { %1109 = vmatmul.bf16.gmra.mxu2 %v677_v6  ;;  %v5680_v40 = vadd.f32 %v1023_v47, %v934_v56  ;;  %v4990_v6 = vld [vmem:[#allocation7 + $0x218] sm:$0xff]  ;;  %v646_v56 = vld [vmem:[#allocation2 + $0xca] sm:$0xff] }
 0x14f   : > { %2100 = vmatpush.bf16.msra.mxu0 %v4990_v6  ;;  %v4981_v6 = vld [vmem:[#allocation7 + $0x1d0] sm:$0xff] }
 0x150   : > { %v1073_v58 = vpop.f32.mrf.mxu3  ;;  %2012 = vmatpush.bf16.msra.mxu3 %v4981_v6 }
 0x151   : > { %v972_v18 = vpop.f32.mrf.mxu2 }
 0x152   : > { %v5683_v25 = vadd.f32 %v1061_v33, %v972_v18 }
 0x155   : > { %v937_v27 = vpop.f32.mrf.mxu0  ;;  %1362 = vmatmul.bf16.gmra.mxu3 %v5636_v36 }
 0x156   : > { %v5685_v31 = vadd.f32 %v1026_v57, %v937_v27  ;;  %v393_v27 = vld [vmem:[#allocation2 + $0xd8] sm:$0xff] }
 0x158   : > { %1436 = vmatmul.bf16.gmra.mxu0 %v5596_v11  ;;  %v1076_v47 = vpop.f32.mrf.mxu3  ;;  %v1036_v11 = vpop.f32.mrf.mxu1 }
 0x159   : > { %v974_v37 = vpop.f32.mrf.mxu2 }
 0x15a   : > { %v5688_v7 = vadd.f32 %v1063_v23, %v974_v37 }
 0x15c   : > { %1535 = vmatmul.bf16.gmra.mxu1 %v683_v53 }
 0x15d   : > { %v939_v41 = vpop.f32.mrf.mxu0 }
 0x15e   : > { %1114 = vmatmul.bf16.gmra.mxu2 %v680_v35  ;;  %v5690_v42 = vadd.f32 %v1028_v5, %v939_v41 }
 0x160   : > { %v1078_v57 = vpop.f32.mrf.mxu3  ;;  %v1038_v3 = vpop.f32.mrf.mxu1 }
 0x161   : > { %v977_v33 = vpop.f32.mrf.mxu2 }
 0x162   : > { %v5693_v46 = vadd.f32 %v1066_v21, %v977_v33  ;;  %v4974_v21 = vld [vmem:[#allocation7 + $0x198] sm:$0xff] }
 0x163   : > { %1922 = vmatpush.bf16.msra.mxu2 %v4974_v21  ;;  %v5026_v21 = vld [vmem:[#allocation9 + $0xf8] sm:$0xff] }
 0x164   : > { %2810 = vmatpush.bf16.msra.mxu1 %v5026_v21 }
 0x165   : > { %v942_v48 = vpop.f32.mrf.mxu0 }
 0x166   : > { %v5695_v52 = vadd.f32 %v1031_v22, %v942_v48  ;;  %v648_v48 = vld [vmem:[#allocation2 + $0xe2] sm:$0xff] }
 0x168   : > { %1441 = vmatmul.bf16.gmra.mxu0 %v5606_v28  ;;  %v1323_v28 = vpop.f32.mrf.mxu3  ;;  %v1501_v16 = vpop.f32.mrf.mxu1 }
 0x169   : > { %v979_v23 = vpop.f32.mrf.mxu2 }
 0x16a   : > { %v5698_v55 = vadd.f32 %v1068_v13, %v979_v23  ;;  %v645_v13 = vld [vmem:[#allocation2 + $0xc2] sm:$0xff] }
 0x16b   : > { %v686_v18 = vpack.c.bf16 %v646_v56, %v645_v13  ;;  %v426_v13 = vld [vmem:[#allocation2 + $0xe1] sm:$0xff] }
 0x16d   : > { %v944_v62 = vpop.f32.mrf.mxu0  ;;  %1540 = vmatmul.bf16.gmra.mxu1 %v686_v18 }
 0x16e   : > { %1119 = vmatmul.bf16.gmra.mxu2 %v683_v53  ;;  %v5700_v10 = vadd.f32 %v1033_v39, %v944_v62  ;;  %v395_v62 = vld [vmem:[#allocation2 + $0xf0] sm:$0xff] }
 0x170   : > { %v1325_v36 = vpop.f32.mrf.mxu3  ;;  %v1503_v37 = vpop.f32.mrf.mxu1 }
 0x171   : > { %v982_v4 = vpop.f32.mrf.mxu2 }
 0x172   : > { %v5703_v5 = vadd.f32 %v1071_v60, %v982_v4  ;;  %v394_v60 = vld [vmem:[#allocation2 + $0xe0] sm:$0xff]  ;;  %v4973_v4 = vld [vmem:[#allocation7 + $0x190] sm:$0xff] }
 0x173   : > { %v5710_v30 = vpack.c.bf16 %v394_v60, %v393_v27  ;;  %1923 = vmatpush.bf16.msra.mxu2 %v4973_v4  ;;  %v4989_v60 = vld [vmem:[#allocation7 + $0x210] sm:$0xff]  ;;  %v397_v4 = vld [vmem:[#allocation2 + $0x108] sm:$0xff] }
 0x174   : > { %2101 = vmatpush.bf16.msra.mxu0 %v4989_v60 }
 0x175   : > { %v947_v8 = vpop.f32.mrf.mxu0  ;;  %1367 = vmatmul.bf16.gmra.mxu3 %v5710_v30 }
 0x176   : > { %v5705_v15 = vadd.f32 %v1036_v11, %v947_v8 }
 0x178   : > { %1446 = vmatmul.bf16.gmra.mxu0 %v5616_v44  ;;  %v1328_v44 = vpop.f32.mrf.mxu3  ;;  %v5717_v49 = vpop.f32.mrf.mxu1 }
 0x179   : > { %v984_v22 = vpop.f32.mrf.mxu2 }
 0x17a   : > { %v5708_v26 = vadd.f32 %v1073_v58, %v984_v22  ;;  %v647_v58 = vld [vmem:[#allocation2 + $0xda] sm:$0xff] }
 0x17b   : > { %v689_v50 = vpack.c.bf16 %v648_v48, %v647_v58  ;;  %v650_v58 = vld [vmem:[#allocation2 + $0xfa] sm:$0xff] }
 0x17d   : > { %v949_v24 = vpop.f32.mrf.mxu0  ;;  %1545 = vmatmul.bf16.gmra.mxu1 %v689_v50 }
 0x17e   : > { %1124 = vmatmul.bf16.gmra.mxu2 %v686_v18  ;;  %v5712_v35 = vadd.f32 %v1038_v3, %v949_v24  ;;  %v5724_v3 = vpack.c.bf16 %v396_v2, %v395_v62 }
 0x180   : > { %v5722_v23 = vpop.f32.mrf.mxu3  ;;  %v5727_v8 = vpop.f32.mrf.mxu1 }
 0x181   : > { %v987_v39 = vpop.f32.mrf.mxu2 }
 0x182   : > { %v5715_v41 = vadd.f32 %v1076_v47, %v987_v39  ;;  %v649_v39 = vld [vmem:[#allocation2 + $0xf2] sm:$0xff] }
 0x183   : > { %v692_v21 = vpack.c.bf16 %v650_v58, %v649_v39 }
 0x185   : > { %v1412_v33 = vpop.f32.mrf.mxu0  ;;  %1372 = vmatmul.bf16.gmra.mxu3 %v5724_v3 }
 0x188   : > { %1451 = vmatmul.bf16.gmra.mxu0 %v5626_v63  ;;  %v5730_v18 = vpop.f32.mrf.mxu3 }
 0x189   : > { %v989_v11 = vpop.f32.mrf.mxu2 }
 0x18a   : > { %v5720_v53 = vadd.f32 %v1078_v57, %v989_v11  ;;  %v425_v57 = vld [vmem:[#allocation2 + $0xd9] sm:$0xff]  ;;  %v1004_v11 = vadd.f32 %v5634_v34, %v5640_v59 }
 0x18b   : > { %v5732_v27 = vpack.c.bf16 %v426_v13, %v425_v57 }
 0x18d   : > { %v1414_v47 = vpop.f32.mrf.mxu0  ;;  %1550 = vmatmul.bf16.gmra.mxu1 %v692_v21 }
 0x18e   : > { %1129 = vmatmul.bf16.gmra.mxu2 %v689_v50  ;;  %v5734_v50 = vpop.f32.mrf.mxu1 }
 0x190   : > { %v5741_v2 = vpop.f32.mrf.mxu3 }
 0x191   : > { %v1090_v63 = vpop.f32.mrf.mxu2 }
 0x192   : > { %v1091_v56 = vadd.f32 %v1090_v63, %v5632_v19  ;;  %v398_v63 = vld [vmem:[#allocation2 + $0x110] sm:$0xff] }
 0x193   : > { %v5743_v57 = vpack.c.bf16 %v398_v63, %v397_v4 }
 0x194   : > { %v1324_v22 = vadd.f32 %v1323_v28, %v1091_v56  ;;  %v427_v56 = vld [vmem:[#allocation2 + $0xf1] sm:$0xff] }
 0x195   : > { %v1417_v24 = vpop.f32.mrf.mxu0  ;;  %1377 = vmatmul.bf16.gmra.mxu3 %v5743_v57 }
 0x196   : > { %v1413_v48 = vadd.f32 %v1412_v33, %v1324_v22  ;;  %v5746_v34 = vpop.f32.mrf.mxu1  ;;  %v428_v22 = vld [vmem:[#allocation2 + $0xf9] sm:$0xff] }
 0x197   : > { %v5753_v58 = vpack.c.bf16 %v428_v22, %v427_v56  ;;  %v4972_v22 = vld [vmem:[#allocation7 + $0x188] sm:$0xff] }
 0x198   : > { %v5738_v62 = vadd.f32 %v1501_v16, %v1413_v48  ;;  %1456 = vmatmul.bf16.gmra.mxu0 %v5732_v27  ;;  %v5751_v39 = vpop.f32.mrf.mxu3  ;;  %1924 = vmatpush.bf16.msra.mxu2 %v4972_v22 }
 0x199   : > { %v1092_v19 = vpop.f32.mrf.mxu2 }
 0x19a   : > { %v1093_v28 = vadd.f32 %v1092_v19, %v1004_v11  ;;  %v651_v11 = vld [vmem:[#allocation2 + $0x10a] sm:$0xff] }
 0x19c   : > { %v1326_v6 = vadd.f32 %v1325_v36, %v1093_v28 }
 0x19d   : > { %v1419_v33 = vpop.f32.mrf.mxu0 }
 0x19e   : > { %1134 = vmatmul.bf16.gmra.mxu2 %v692_v21  ;;  %v1415_v13 = vadd.f32 %v1414_v47, %v1326_v6  ;;  %v652_v21 = vld [vmem:[#allocation2 + $0x112] sm:$0xff]  ;;  %v5755_v19 = vpop.f32.mrf.mxu1 }
 0x1a0   : > { %v5748_v59 = vadd.f32 %v1503_v37, %v1415_v13  ;;  %v695_v37 = vpack.c.bf16 %v652_v21, %v651_v11  ;;  %v5762_v6 = vpop.f32.mrf.mxu3  ;;  %v5025_v13 = vld [vmem:[#allocation9 + $0xf0] sm:$0xff] }
 0x1a1   : > { %v1095_v16 = vpop.f32.mrf.mxu2  ;;  %2811 = vmatpush.bf16.msra.mxu1 %v5025_v13  ;;  %v429_v11 = vld [vmem:[#allocation2 + $0x109] sm:$0xff]  ;;  %v430_v21 = vld [vmem:[#allocation2 + $0x111] sm:$0xff] }
 0x1a2   : > { %v1096_v60 = vadd.f32 %v1095_v16, %v5645_v9  ;;  %1555 = vmatmul.bf16.gmra.mxu1 %v695_v37  ;;  %v400_v16 = vld [vmem:[#allocation2 + $0x128] sm:$0xff] }
 0x1a3   : > { %v654_v13 = vld [vmem:[#allocation2 + $0x12a] sm:$0xff] }
 0x1a4   : > { %v1329_v36 = vadd.f32 %v1328_v44, %v1096_v60  ;;  %v399_v44 = vld [vmem:[#allocation2 + $0x120] sm:$0xff]  ;;  %v4980_v60 = vld [vmem:[#allocation7 + $0x1c8] sm:$0xff] }
 0x1a5   : > { %v1422_v48 = vpop.f32.mrf.mxu0  ;;  %v5765_v56 = vpack.c.bf16 %v400_v16, %v399_v44  ;;  %2013 = vmatpush.bf16.msra.mxu3 %v4980_v60 }
 0x1a6   : > { %v1418_v47 = vadd.f32 %v1417_v24, %v1329_v36  ;;  %v5768_v36 = vpop.f32.mrf.mxu1 }
 0x1a7   : > { %1382 = vmatmul.bf16.gmra.mxu3 %v5765_v56 }
 0x1a8   : > { %v5758_v28 = vadd.f32 %v5717_v49, %v1418_v47  ;;  %1461 = vmatmul.bf16.gmra.mxu0 %v5753_v58 }
 0x1a9   : > { %v1097_v4 = vpop.f32.mrf.mxu2 }
 0x1aa   : > { %v1098_v9 = vadd.f32 %v1097_v4, %v5650_v17  ;;  %v5774_v4 = vpop.f32.mrf.mxu3 }
 0x1ac   : > { %v1331_v63 = vadd.f32 %v5722_v23, %v1098_v9  ;;  %v4988_v9 = vld [vmem:[#allocation7 + $0x208] sm:$0xff] }
 0x1ad   : > { %v1424_v24 = vpop.f32.mrf.mxu0  ;;  %2102 = vmatpush.bf16.msra.mxu0 %v4988_v9 }
 0x1ae   : > { %1139 = vmatmul.bf16.gmra.mxu2 %v695_v37  ;;  %v1420_v49 = vadd.f32 %v1419_v33, %v1331_v63  ;;  %v5777_v37 = vpack.c.bf16 %v430_v21, %v429_v11  ;;  %v653_v63 = vld [vmem:[#allocation2 + $0x122] sm:$0xff] }
 0x1af   : > { %v698_v22 = vpack.c.bf16 %v654_v13, %v653_v63  ;;  %v402_v21 = vld [vmem:[#allocation2 + $0x140] sm:$0xff]  ;;  %v432_v13 = vld [vmem:[#allocation2 + $0x129] sm:$0xff] }
 0x1b0   : > { %v5771_v17 = vadd.f32 %v5727_v8, %v1420_v49  ;;  %v5779_v8 = vpop.f32.mrf.mxu1  ;;  %v431_v63 = vld [vmem:[#allocation2 + $0x121] sm:$0xff] }
 0x1b1   : > { %v1100_v23 = vpop.f32.mrf.mxu2 }
 0x1b2   : > { %v1101_v47 = vadd.f32 %v1100_v23, %v5655_v29  ;;  %1560 = vmatmul.bf16.gmra.mxu1 %v698_v22  ;;  %v401_v23 = vld [vmem:[#allocation2 + $0x138] sm:$0xff] }
 0x1b4   : > { %v1334_v33 = vadd.f32 %v5730_v18, %v1101_v47  ;;  %v5786_v18 = vpop.f32.mrf.mxu3  ;;  %v5789_v47 = vpack.c.bf16 %v402_v21, %v401_v23  ;;  %v656_v23 = vld [vmem:[#allocation2 + $0x142] sm:$0xff] }
 0x1b5   : > { %v1427_v44 = vpop.f32.mrf.mxu0 }
 0x1b6   : > { %v1423_v16 = vadd.f32 %v1422_v48, %v1334_v33 }
 0x1b7   : > { %1387 = vmatmul.bf16.gmra.mxu3 %v5789_v47 }
 0x1b8   : > { %v5782_v49 = vadd.f32 %v5734_v50, %v1423_v16  ;;  %1466 = vmatmul.bf16.gmra.mxu0 %v5777_v37  ;;  %v5792_v50 = vpop.f32.mrf.mxu1 }
 0x1b9   : > { %v1102_v29 = vpop.f32.mrf.mxu2  ;;  %6724 = vst [vmem:[#allocation14_spill] sm:$0xff] %v5792_v50 }
 0x1ba   : > { %v1103_v60 = vadd.f32 %v1102_v29, %v5660_v38 }
 0x1bc   : > { %v1336_v11 = vadd.f32 %v5741_v2, %v1103_v60  ;;  %v5798_v29 = vpop.f32.mrf.mxu3  ;;  %v5801_v60 = vpack.c.bf16 %v432_v13, %v431_v63  ;;  %v5024_v13 = vld [vmem:[#allocation9 + $0xe8] sm:$0xff] }
 0x1bd   : > { %v1429_v48 = vpop.f32.mrf.mxu0  ;;  %2812 = vmatpush.bf16.msra.mxu1 %v5024_v13 }
 0x1be   : > { %1144 = vmatmul.bf16.gmra.mxu2 %v698_v22  ;;  %v1425_v33 = vadd.f32 %v1424_v24, %v1336_v11  ;;  %v655_v24 = vld [vmem:[#allocation2 + $0x13a] sm:$0xff] }
 0x1c0   : > { %v5795_v9 = vadd.f32 %v5746_v34, %v1425_v33  ;;  %v5803_v21 = vpop.f32.mrf.mxu1  ;;  %v701_v33 = vpack.c.bf16 %v656_v23, %v655_v24  ;;  %v4971_v24 = vld [vmem:[#allocation7 + $0x180] sm:$0xff] }
 0x1c1   : > { %v1105_v38 = vpop.f32.mrf.mxu2  ;;  %v4979_v23 = vld [vmem:[#allocation7 + $0x1c0] sm:$0xff]  ;;  %1925 = vmatpush.bf16.msra.mxu2 %v4971_v24 }
 0x1c2   : > { %v1106_v16 = vadd.f32 %v1105_v38, %v5665_v51  ;;  %1565 = vmatmul.bf16.gmra.mxu1 %v701_v33  ;;  %2014 = vmatpush.bf16.msra.mxu3 %v4979_v23 }
 0x1c4   : > { %v1339_v2 = vadd.f32 %v5751_v39, %v1106_v16  ;;  %v5810_v38 = vpop.f32.mrf.mxu3  ;;  %v403_v39 = vld [vmem:[#allocation2 + $0x150] sm:$0xff]  ;;  %v404_v16 = vld [vmem:[#allocation2 + $0x158] sm:$0xff] }
 0x1c5   : > { %v1432_v22 = vpop.f32.mrf.mxu0 }
 0x1c6   : > { %v1428_v11 = vadd.f32 %v1427_v44, %v1339_v2  ;;  %v5813_v2 = vpack.c.bf16 %v404_v16, %v403_v39 }
 0x1c8   : > { %v5806_v34 = vadd.f32 %v5755_v19, %v1428_v11  ;;  %1471 = vmatmul.bf16.gmra.mxu0 %v5801_v60  ;;  %6726 = vst [vmem:[#allocation16_spill] sm:$0xff] %v5813_v2  ;;  %1392 = vmatmul.bf16.gmra.mxu3 %v5813_v2  ;;  %v5816_v11 = vpop.f32.mrf.mxu1  ;;  %v657_v2 = vld [vmem:[#allocation2 + $0x152] sm:$0xff] }
 0x1c9   : > { %v1107_v50 = vpop.f32.mrf.mxu2  ;;  %6727 = vst [vmem:[#allocation17_spill] sm:$0xff] %v5816_v11 }
 0x1ca   : > { %6725 = vst [vmem:[#allocation15_spill] sm:$0xff] %v5806_v34  ;;  %v1108_v51 = vadd.f32 %v1107_v50, %v5670_v61  ;;  %v433_v50 = vld [vmem:[#allocation2 + $0x139] sm:$0xff] }
 0x1cb   : > { %v658_v34 = vld [vmem:[#allocation2 + $0x15a] sm:$0xff] }
 0x1cc   : > { %v1341_v63 = vadd.f32 %v5762_v6, %v1108_v51  ;;  %v434_v51 = vld [vmem:[#allocation2 + $0x141] sm:$0xff]  ;;  %v1353_v16 = vpop.f32.mrf.mxu3  ;;  %v704_v24 = vpack.c.bf16 %v658_v34, %v657_v2  ;;  %v435_v2 = vld [vmem:[#allocation2 + $0x151] sm:$0xff] }
 0x1cd   : > { %v1434_v44 = vpop.f32.mrf.mxu0 }
 0x1ce   : > { %1149 = vmatmul.bf16.gmra.mxu2 %v701_v33  ;;  %v1430_v19 = vadd.f32 %v1429_v48, %v1341_v63  ;;  %v5823_v33 = vpack.c.bf16 %v434_v51, %v433_v50  ;;  %v4987_v63 = vld [vmem:[#allocation7 + $0x200] sm:$0xff]  ;;  %v406_v51 = vld [vmem:[#allocation2 + $0x170] sm:$0xff] }
 0x1cf   : > { %2103 = vmatpush.bf16.msra.mxu0 %v4987_v63 }
 0x1d0   : > { %v5819_v61 = vadd.f32 %v5768_v36, %v1430_v19  ;;  %v1531_v36 = vpop.f32.mrf.mxu1 }
 0x1d1   : > { %v1110_v6 = vpop.f32.mrf.mxu2 }
 0x1d2   : > { %6728 = vst [vmem:[#allocation18_spill] sm:$0xff] %v5819_v61  ;;  %v1111_v39 = vadd.f32 %v1110_v6, %v5675_v45  ;;  %1570 = vmatmul.bf16.gmra.mxu1 %v704_v24 }
 0x1d4   : > { %v1344_v48 = vadd.f32 %v5774_v4, %v1111_v39  ;;  %v1355_v6 = vpop.f32.mrf.mxu3  ;;  %v405_v4 = vld [vmem:[#allocation2 + $0x168] sm:$0xff] }
 0x1d5   : > { %v1437_v13 = vpop.f32.mrf.mxu0  ;;  %v5831_v61 = vpack.c.bf16 %v406_v51, %v405_v4  ;;  %v660_v4 = vld [vmem:[#allocation2 + $0x172] sm:$0xff] }
 0x1d6   : > { %v1433_v11 = vadd.f32 %v1432_v22, %v1344_v48 }
 0x1d7   : > { %6730 = vst [vmem:[#allocation20_spill] sm:$0xff] %v5831_v61 }
 0x1d8   : > { %v5826_v19 = vadd.f32 %v5779_v8, %v1433_v11  ;;  %1476 = vmatmul.bf16.gmra.mxu0 %v5823_v33  ;;  %1397 = vmatmul.bf16.gmra.mxu3 %v5831_v61  ;;  %v5836_v8 = vpop.f32.mrf.mxu1  ;;  %v436_v11 = vld [vmem:[#allocation2 + $0x159] sm:$0xff] }
 0x1d9   : > { %v1112_v23 = vpop.f32.mrf.mxu2  ;;  %6732 = vst [vmem:[#allocation22_spill] sm:$0xff] %v5836_v8 }
 0x1da   : > { %6729 = vst [vmem:[#allocation19_spill] sm:$0xff] %v5826_v19  ;;  %v1113_v45 = vadd.f32 %v1112_v23, %v5680_v40  ;;  %v661_v19 = vld [vmem:[#allocation2 + $0x182] sm:$0xff] }
 0x1dc   : > { %v1346_v50 = vadd.f32 %v5786_v18, %v1113_v45  ;;  %v1358_v48 = vpop.f32.mrf.mxu3  ;;  %v5840_v18 = vpack.c.bf16 %v436_v11, %v435_v2  ;;  %v659_v45 = vld [vmem:[#allocation2 + $0x16a] sm:$0xff]  ;;  %v5023_v2 = vld [vmem:[#allocation9 + $0xe0] sm:$0xff] }
 0x1dd   : > { %v1439_v39 = vpop.f32.mrf.mxu0  ;;  %v707_v51 = vpack.c.bf16 %v660_v4, %v659_v45  ;;  %v1615_v11 = vld [vmem:[#allocation2 + $0x39] sm:$0xff]  ;;  %2813 = vmatpush.bf16.msra.mxu1 %v5023_v2  ;;  %v437_v45 = vld [vmem:[#allocation2 + $0x169] sm:$0xff]  ;;  %v438_v4 = vld [vmem:[#allocation2 + $0x171] sm:$0xff] }
 0x1de   : > { %1154 = vmatmul.bf16.gmra.mxu2 %v704_v24  ;;  %v5833_v22 = vadd.f32 %v1434_v44, %v1346_v50 }
 0x1e0   : > { %6731 = vst [vmem:[#allocation21_spill] sm:$0xff] %v5833_v22  ;;  %v1536_v44 = vpop.f32.mrf.mxu1 }
 0x1e1   : > { %v1115_v34 = vpop.f32.mrf.mxu2 }
 0x1e2   : > { %v1116_v40 = vadd.f32 %v1115_v34, %v5685_v31  ;;  %1575 = vmatmul.bf16.gmra.mxu1 %v707_v51  ;;  %v1614_v34 = vld [vmem:[#allocation2 + $0x31] sm:$0xff] }
 0x1e3   : > { %v1679_v22 = vpack.c.bf16 %v1615_v11, %v1614_v34  ;;  %v662_v34 = vld [vmem:[#allocation2 + $0x18a] sm:$0xff] }
 0x1e4   : > { %v1349_v63 = vadd.f32 %v5798_v29, %v1116_v40  ;;  %v1360_v31 = vpop.f32.mrf.mxu3  ;;  %v710_v2 = vpack.c.bf16 %v662_v34, %v661_v19 }
 0x1e5   : > { %v1442_v23 = vpop.f32.mrf.mxu0 }
 0x1e6   : > { %v1438_v24 = vadd.f32 %v1437_v13, %v1349_v63 }
 0x1e8   : > { %v5843_v50 = vadd.f32 %v5803_v21, %v1438_v24  ;;  %1481 = vmatmul.bf16.gmra.mxu0 %v5840_v18  ;;  %2015 = vmatmul.bf16.vlgmr.msra.gmra.mxu3 %v1679_v22  ;;  %v5850_v21 = vpop.f32.mrf.mxu1 }
 0x1e9   : > { %v1117_v8 = vpop.f32.mrf.mxu2  ;;  %6735 = vst [vmem:[#allocation25_spill] sm:$0xff] %v5850_v21  ;;  %v1616_v21 = vld [vmem:[#allocation2 + $0x49] sm:$0xff] }
 0x1ea   : > { %6733 = vst [vmem:[#allocation23_spill] sm:$0xff] %v5843_v50  ;;  %v1118_v61 = vadd.f32 %v1117_v8, %v5690_v42  ;;  %v5853_v50 = vpack.c.bf16 %v438_v4, %v437_v45 }
 0x1ec   : > { %v1351_v29 = vadd.f32 %v5810_v38, %v1118_v61  ;;  %v1363_v8 = vpop.f32.mrf.mxu3 }
 0x1ed   : > { %v1444_v40 = vpop.f32.mrf.mxu0 }
 0x1ee   : > { %1159 = vmatmul.bf16.gmra.mxu2 %v707_v51  ;;  %v5848_v13 = vadd.f32 %v1439_v39, %v1351_v29 }
 0x1f0   : > { %6734 = vst [vmem:[#allocation24_spill] sm:$0xff] %v5848_v13  ;;  %v1541_v22 = vpop.f32.mrf.mxu1 }
 0x1f1   : > { %v1120_v63 = vpop.f32.mrf.mxu2 }
 0x1f2   : > { %v1121_v42 = vadd.f32 %v1120_v63, %v5695_v52  ;;  %v1617_v63 = vld [vmem:[#allocation2 + $0x51] sm:$0xff] }
 0x1f3   : > { %v1682_v45 = vpack.c.bf16 %v1617_v63, %v1616_v21  ;;  %v1618_v63 = vld [vmem:[#allocation2 + $0x61] sm:$0xff] }
 0x1f4   : > { %v1354_v24 = vadd.f32 %v1353_v16, %v1121_v42  ;;  %v1365_v11 = vpop.f32.mrf.mxu3  ;;  %v1647_v42 = vld [vmem:[#allocation2 + $0x3a] sm:$0xff] }
 0x1f5   : > { %v1447_v38 = vpop.f32.mrf.mxu0 }
 0x1f6   : > { %v1443_v61 = vadd.f32 %v1442_v23, %v1354_v24 }
 0x1f8   : > { %v5855_v51 = vadd.f32 %v1531_v36, %v1443_v61  ;;  %1486 = vmatmul.bf16.gmra.mxu0 %v5853_v50  ;;  %2020 = vmatmul.bf16.gmra.mxu3 %v1682_v45  ;;  %v1646_v36 = vld [vmem:[#allocation2 + $0x32] sm:$0xff] }
 0x1f9   : > { %v1122_v39 = vpop.f32.mrf.mxu2  ;;  %v1680_v19 = vpack.c.bf16 %v1647_v42, %v1646_v36  ;;  %v1649_v42 = vld [vmem:[#allocation2 + $0x52] sm:$0xff] }
 0x1fa   : > { %6736 = vst [vmem:[#allocation26_spill] sm:$0xff] %v5855_v51  ;;  %v1123_v29 = vadd.f32 %v1122_v39, %v5700_v10  ;;  %v5862_v51 = vpop.f32.mrf.mxu1 }
 0x1fb   : > { %6738 = vst [vmem:[#allocation28_spill] sm:$0xff] %v5862_v51 }
 0x1fc   : > { %v1356_v52 = vadd.f32 %v1355_v6, %v1123_v29  ;;  %v1368_v61 = vpop.f32.mrf.mxu3  ;;  %v1582_v6 = vld [vmem:[#allocation2 + $0x30] sm:$0xff]  ;;  %v1583_v29 = vld [vmem:[#allocation2 + $0x38] sm:$0xff] }
 0x1fd   : > { %v1449_v16 = vpop.f32.mrf.mxu0 }
 0x1fe   : > { %1164 = vmatmul.bf16.gmra.mxu2 %v710_v2  ;;  %v5859_v4 = vadd.f32 %v1444_v40, %v1356_v52  ;;  %v1678_v2 = vpack.c.bf16 %v1583_v29, %v1582_v6  ;;  %v1584_v6 = vld [vmem:[#allocation2 + $0x48] sm:$0xff]  ;;  %v1585_v29 = vld [vmem:[#allocation2 + $0x50] sm:$0xff] }
 0x200   : > { %6737 = vst [vmem:[#allocation27_spill] sm:$0xff] %v5859_v4 }
 0x201   : > { %v1125_v23 = vpop.f32.mrf.mxu2 }
 0x202   : > { %v1126_v24 = vadd.f32 %v1125_v23, %v5705_v15  ;;  %v5022_v15 = vld [vmem:[#allocation9 + $0xd8] sm:$0xff]  ;;  %v1619_v23 = vld [vmem:[#allocation2 + $0x69] sm:$0xff]  ;;  %v1546_v51 = vpop.f32.mrf.mxu1 }
 0x203   : > { %2814 = vmatpush.bf16.msra.mxu1 %v5022_v15  ;;  %v1620_v15 = vld [vmem:[#allocation2 + $0x79] sm:$0xff] }
 0x204   : > { %v1359_v10 = vadd.f32 %v1358_v48, %v1126_v24  ;;  %v1370_v52 = vpop.f32.mrf.mxu3  ;;  %v1685_v48 = vpack.c.bf16 %v1619_v23, %v1618_v63  ;;  %v1681_v63 = vpack.c.bf16 %v1585_v29, %v1584_v6  ;;  %v1586_v29 = vld [vmem:[#allocation2 + $0x60] sm:$0xff] }
 0x205   : > { %v1452_v34 = vpop.f32.mrf.mxu0 }
 0x206   : > { %v1448_v39 = vadd.f32 %v1447_v38, %v1359_v10  ;;  %v1648_v38 = vld [vmem:[#allocation2 + $0x4a] sm:$0xff] }
 0x208   : > { %v5864_v13 = vadd.f32 %v1536_v44, %v1448_v39  ;;  %2104 = vmatmul.bf16.vlgmr.msra.gmra.mxu0 %v1680_v19  ;;  %2025 = vmatmul.bf16.gmra.mxu3 %v1685_v48  ;;  %v1683_v19 = vpack.c.bf16 %v1649_v42, %v1648_v38  ;;  %v1650_v38 = vld [vmem:[#allocation2 + $0x62] sm:$0xff]  ;;  %v1651_v42 = vld [vmem:[#allocation2 + $0x6a] sm:$0xff] }
 0x209   : > { %v1127_v40 = vpop.f32.mrf.mxu2 }
 0x20a   : > { %v1128_v21 = vadd.f32 %v1127_v40, %v5712_v35  ;;  %v5870_v40 = vpop.f32.mrf.mxu1 }
 0x20c   : > { %v1361_v45 = vadd.f32 %v1360_v31, %v1128_v21  ;;  %v1373_v35 = vpop.f32.mrf.mxu3 }
 0x20d   : > { %v1454_v4 = vpop.f32.mrf.mxu0 }
 0x20e   : > { %1926 = vmatmul.bf16.vlgmr.msra.gmra.mxu2 %v1678_v2  ;;  %v5867_v36 = vadd.f32 %v1449_v16, %v1361_v45 }
 0x211   : > { %v1130_v44 = vpop.f32.mrf.mxu2 }
 0x212   : > { %v1131_v24 = vadd.f32 %v1130_v44, %v5643_v1  ;;  %v1621_v1 = vld [vmem:[#allocation2 + $0x81] sm:$0xff] }
 0x214   : > { %v1364_v10 = vadd.f32 %v1363_v8, %v1131_v24  ;;  %v1375_v45 = vpop.f32.mrf.mxu3  ;;  %v1688_v8 = vpack.c.bf16 %v1621_v1, %v1620_v15  ;;  %v1622_v1 = vld [vmem:[#allocation2 + $0x91] sm:$0xff] }
 0x215   : > { %v1457_v39 = vpop.f32.mrf.mxu0 }
 0x216   : > { %v1453_v31 = vadd.f32 %v1452_v34, %v1364_v10 }
 0x218   : > { %v5872_v21 = vadd.f32 %v1541_v22, %v1453_v31  ;;  %2109 = vmatmul.bf16.gmra.mxu0 %v1683_v19  ;;  %2030 = vmatmul.bf16.gmra.mxu3 %v1688_v8  ;;  %v1551_v22 = vpop.f32.mrf.mxu1 }
 0x219   : > { %v1132_v16 = vpop.f32.mrf.mxu2 }
 0x21a   : > { %v1133_v2 = vadd.f32 %v1132_v16, %v5648_v14  ;;  %v1686_v14 = vpack.c.bf16 %v1651_v42, %v1650_v38  ;;  %v1652_v42 = vld [vmem:[#allocation2 + $0x7a] sm:$0xff] }
 0x21c   : > { %v1366_v23 = vadd.f32 %v1365_v11, %v1133_v2  ;;  %v1378_v10 = vpop.f32.mrf.mxu3  ;;  %v1587_v11 = vld [vmem:[#allocation2 + $0x68] sm:$0xff] }
 0x21d   : > { %v1459_v48 = vpop.f32.mrf.mxu0 }
 0x21e   : > { %1931 = vmatmul.bf16.gmra.mxu2 %v1681_v63  ;;  %v5875_v44 = vadd.f32 %v1454_v4, %v1366_v23  ;;  %v1684_v63 = vpack.c.bf16 %v1587_v11, %v1586_v29 }
 0x220   : > { %v5881_v23 = vpop.f32.mrf.mxu1 }
 0x221   : > { %v1135_v34 = vpop.f32.mrf.mxu2  ;;  %6739 = vst [vmem:[#allocation29_spill] sm:$0xff] %v5881_v23 }
 0x222   : > { %v1136_v24 = vadd.f32 %v1135_v34, %v5653_v20  ;;  %v5021_v20 = vld [vmem:[#allocation9 + $0xd0] sm:$0xff]  ;;  %v1623_v34 = vld [vmem:[#allocation2 + $0x99] sm:$0xff] }
 0x223   : > { %v1691_v38 = vpack.c.bf16 %v1623_v34, %v1622_v1  ;;  %2815 = vmatpush.bf16.msra.mxu1 %v5021_v20  ;;  %v1624_v20 = vld [vmem:[#allocation2 + $0xa9] sm:$0xff] }
 0x224   : > { %v1369_v19 = vadd.f32 %v1368_v61, %v1136_v24  ;;  %v1380_v15 = vpop.f32.mrf.mxu3  ;;  %v1653_v24 = vld [vmem:[#allocation2 + $0x82] sm:$0xff] }
 0x225   : > { %v1462_v31 = vpop.f32.mrf.mxu0 }
 0x226   : > { %v1458_v6 = vadd.f32 %v1457_v39, %v1369_v19 }
 0x228   : > { %v5878_v16 = vadd.f32 %v1546_v51, %v1458_v6  ;;  %2114 = vmatmul.bf16.gmra.mxu0 %v1686_v14  ;;  %2035 = vmatmul.bf16.gmra.mxu3 %v1691_v38  ;;  %v1689_v6 = vpack.c.bf16 %v1653_v24, %v1652_v42  ;;  %v1556_v11 = vpop.f32.mrf.mxu1  ;;  %v1625_v38 = vld [vmem:[#allocation2 + $0xb1] sm:$0xff]  ;;  %v1655_v24 = vld [vmem:[#allocation2 + $0x9a] sm:$0xff] }
 0x229   : > { %v1137_v2 = vpop.f32.mrf.mxu2 }
 0x22a   : > { %v1138_v4 = vadd.f32 %v1137_v2, %v5658_v32  ;;  %v1588_v2 = vld [vmem:[#allocation2 + $0x78] sm:$0xff] }
 0x22c   : > { %v1371_v8 = vadd.f32 %v1370_v52, %v1138_v4  ;;  %v1383_v19 = vpop.f32.mrf.mxu3  ;;  %v1589_v4 = vld [vmem:[#allocation2 + $0x80] sm:$0xff] }
 0x22d   : > { %v1464_v61 = vpop.f32.mrf.mxu0  ;;  %v1687_v1 = vpack.c.bf16 %v1589_v4, %v1588_v2  ;;  %v1591_v4 = vld [vmem:[#allocation2 + $0x98] sm:$0xff] }
 0x22e   : > { %1936 = vmatmul.bf16.gmra.mxu2 %v1684_v63  ;;  %v5883_v39 = vadd.f32 %v1459_v48, %v1371_v8 }
 0x230   : > { %v5891_v42 = vpop.f32.mrf.mxu1 }
 0x231   : > { %v1140_v51 = vpop.f32.mrf.mxu2  ;;  %6740 = vst [vmem:[#allocation30_spill] sm:$0xff] %v5891_v42  ;;  %v5020_v42 = vld [vmem:[#allocation9 + $0xc8] sm:$0xff] }
 0x232   : > { %v1141_v32 = vadd.f32 %v1140_v51, %v5663_v43  ;;  %v1694_v51 = vpack.c.bf16 %v1625_v38, %v1624_v20  ;;  %v1626_v38 = vld [vmem:[#allocation2 + $0xc1] sm:$0xff]  ;;  %2816 = vmatpush.bf16.msra.mxu1 %v5020_v42 }
 0x234   : > { %v1374_v14 = vadd.f32 %v1373_v35, %v1141_v32  ;;  %v1385_v8 = vpop.f32.mrf.mxu3 }
 0x235   : > { %v1467_v29 = vpop.f32.mrf.mxu0 }
 0x236   : > { %v1463_v52 = vadd.f32 %v1462_v31, %v1374_v14 }
 0x238   : > { %v5886_v23 = vadd.f32 %v1551_v22, %v1463_v52  ;;  %2119 = vmatmul.bf16.gmra.mxu0 %v1689_v6  ;;  %2040 = vmatmul.bf16.gmra.mxu3 %v1694_v51  ;;  %v1654_v22 = vld [vmem:[#allocation2 + $0x92] sm:$0xff] }
 0x239   : > { %v1142_v48 = vpop.f32.mrf.mxu2  ;;  %v1692_v6 = vpack.c.bf16 %v1655_v24, %v1654_v22  ;;  %v1657_v24 = vld [vmem:[#allocation2 + $0xb2] sm:$0xff] }
 0x23a   : > { %v1143_v63 = vadd.f32 %v1142_v48, %v5668_v54 }
 0x23c   : > { %v1376_v34 = vadd.f32 %v1375_v45, %v1143_v63  ;;  %v1388_v14 = vpop.f32.mrf.mxu3  ;;  %v1590_v45 = vld [vmem:[#allocation2 + $0x90] sm:$0xff]  ;;  %v1561_v63 = vpop.f32.mrf.mxu1 }
 0x23d   : > { %v1469_v43 = vpop.f32.mrf.mxu0  ;;  %v1690_v20 = vpack.c.bf16 %v1591_v4, %v1590_v45  ;;  %v1592_v4 = vld [vmem:[#allocation2 + $0xa8] sm:$0xff] }
 0x23e   : > { %1941 = vmatmul.bf16.gmra.mxu2 %v1687_v1  ;;  %v5889_v35 = vadd.f32 %v1464_v61, %v1376_v34 }
 0x241   : > { %v1145_v31 = vpop.f32.mrf.mxu2 }
 0x242   : > { %v1146_v32 = vadd.f32 %v1145_v31, %v5673_v0  ;;  %v1627_v0 = vld [vmem:[#allocation2 + $0xc9] sm:$0xff] }
 0x244   : > { %v1379_v54 = vadd.f32 %v1378_v10, %v1146_v32  ;;  %v1390_v34 = vpop.f32.mrf.mxu3  ;;  %v1697_v10 = vpack.c.bf16 %v1627_v0, %v1626_v38 }
 0x245   : > { %v1472_v52 = vpop.f32.mrf.mxu0 }
 0x246   : > { %v1468_v2 = vadd.f32 %v1467_v29, %v1379_v54 }
 0x248   : > { %v5894_v48 = vadd.f32 %v1556_v11, %v1468_v2  ;;  %2124 = vmatmul.bf16.gmra.mxu0 %v1692_v6  ;;  %2045 = vmatmul.bf16.gmra.mxu3 %v1697_v10  ;;  %v1656_v11 = vld [vmem:[#allocation2 + $0xaa] sm:$0xff] }
 0x249   : > { %v1147_v61 = vpop.f32.mrf.mxu2  ;;  %v1695_v2 = vpack.c.bf16 %v1657_v24, %v1656_v11 }
 0x24a   : > { %v1148_v1 = vadd.f32 %v1147_v61, %v5678_v12  ;;  %v5900_v12 = vpop.f32.mrf.mxu1  ;;  %v1593_v61 = vld [vmem:[#allocation2 + $0xb0] sm:$0xff] }
 0x24c   : > { %v1381_v51 = vadd.f32 %v1380_v15, %v1148_v1  ;;  %v1393_v54 = vpop.f32.mrf.mxu3 }
 0x24d   : > { %v1474_v31 = vpop.f32.mrf.mxu0 }
 0x24e   : > { %1946 = vmatmul.bf16.gmra.mxu2 %v1690_v20  ;;  %v5897_v22 = vadd.f32 %v1469_v43, %v1381_v51  ;;  %v1693_v20 = vpack.c.bf16 %v1593_v61, %v1592_v4 }
 0x251   : > { %v1150_v29 = vpop.f32.mrf.mxu2 }
 0x252   : > { %v1151_v32 = vadd.f32 %v1150_v29, %v5683_v25  ;;  %v1566_v25 = vpop.f32.mrf.mxu1  ;;  %v1659_v29 = vld [vmem:[#allocation2 + $0xca] sm:$0xff] }
 0x254   : > { %v1384_v6 = vadd.f32 %v1383_v19, %v1151_v32  ;;  %v1395_v38 = vpop.f32.mrf.mxu3 }
 0x255   : > { %v1477_v15 = vpop.f32.mrf.mxu0 }
 0x256   : > { %v1473_v45 = vadd.f32 %v1472_v52, %v1384_v6  ;;  %v1658_v52 = vld [vmem:[#allocation2 + $0xc2] sm:$0xff] }
 0x257   : > { %v1698_v32 = vpack.c.bf16 %v1659_v29, %v1658_v52 }
 0x258   : > { %v5902_v1 = vadd.f32 %v1561_v63, %v1473_v45  ;;  %2129 = vmatmul.bf16.gmra.mxu0 %v1695_v2  ;;  %2050 = vmatmul.bf16.gmra.mxu3 %v5732_v27  ;;  %v1594_v2 = vld [vmem:[#allocation2 + $0xc0] sm:$0xff]  ;;  %v1595_v45 = vld [vmem:[#allocation2 + $0xc8] sm:$0xff] }
 0x259   : > { %v1152_v43 = vpop.f32.mrf.mxu2  ;;  %v1696_v61 = vpack.c.bf16 %v1595_v45, %v1594_v2 }
 0x25a   : > { %v1153_v42 = vadd.f32 %v1152_v43, %v5688_v7 }
 0x25c   : > { %v1386_v51 = vadd.f32 %v1385_v8, %v1153_v42  ;;  %v1398_v11 = vpop.f32.mrf.mxu3  ;;  %v5909_v8 = vpop.f32.mrf.mxu1 }
 0x25d   : > { %v1479_v0 = vpop.f32.mrf.mxu0 }
 0x25e   : > { %1951 = vmatmul.bf16.gmra.mxu2 %v1693_v20  ;;  %v5905_v10 = vadd.f32 %v1474_v31, %v1386_v51  ;;  %v5019_v20 = vld [vmem:[#allocation9 + $0xc0] sm:$0xff] }
 0x25f   : > { %2817 = vmatpush.bf16.msra.mxu1 %v5019_v20 }
 0x261   : > { %v1155_v19 = vpop.f32.mrf.mxu2 }
 0x262   : > { %v1156_v63 = vadd.f32 %v1155_v19, %v5693_v46  ;;  %v1660_v19 = vld [vmem:[#allocation2 + $0xda] sm:$0xff] }
 0x264   : > { %v1389_v24 = vadd.f32 %v1388_v14, %v1156_v63  ;;  %v1400_v43 = vpop.f32.mrf.mxu3  ;;  %v1571_v51 = vpop.f32.mrf.mxu1 }
 0x265   : > { %v1482_v6 = vpop.f32.mrf.mxu0 }
 0x266   : > { %v1478_v7 = vadd.f32 %v1477_v15, %v1389_v24 }
 0x268   : > { %v5911_v4 = vadd.f32 %v1566_v25, %v1478_v7  ;;  %2134 = vmatmul.bf16.gmra.mxu0 %v1698_v32  ;;  %2055 = vmatmul.bf16.gmra.mxu3 %v5753_v58  ;;  %v1661_v25 = vld [vmem:[#allocation2 + $0xe2] sm:$0xff] }
 0x269   : > { %v1157_v31 = vpop.f32.mrf.mxu2 }
 0x26a   : > { %v1158_v27 = vadd.f32 %v1157_v31, %v5698_v55  ;;  %v1701_v55 = vpack.c.bf16 %v1661_v25, %v1660_v19 }
 0x26c   : > { %v1391_v42 = vadd.f32 %v1390_v34, %v1158_v27  ;;  %v2016_v29 = vpop.f32.mrf.mxu3  ;;  %v5921_v45 = vpop.f32.mrf.mxu1 }
 0x26d   : > { %v1484_v46 = vpop.f32.mrf.mxu0 }
 0x26e   : > { %1956 = vmatmul.bf16.gmra.mxu2 %v1696_v61  ;;  %v5914_v14 = vadd.f32 %v1479_v0, %v1391_v42 }
 0x271   : > { %v1160_v15 = vpop.f32.mrf.mxu2 }
 0x272   : > { %v1161_v52 = vadd.f32 %v1160_v15, %v5703_v5 }
 0x274   : > { %v1394_v63 = vadd.f32 %v1393_v54, %v1161_v52  ;;  %v2018_v2 = vpop.f32.mrf.mxu3  ;;  %v1662_v54 = vld [vmem:[#allocation2 + $0xf2] sm:$0xff] }
 0x275   : > { %v1487_v24 = vpop.f32.mrf.mxu0  ;;  %v5034_v52 = vld [vmem:[#allocation9 + $0x138] sm:$0xff] }
 0x276   : > { %v1483_v32 = vadd.f32 %v1482_v6, %v1394_v63  ;;  %v1663_v6 = vld [vmem:[#allocation2 + $0xfa] sm:$0xff]  ;;  %2899 = vmatpush.bf16.msrb.mxu2 %v5034_v52 }
 0x277   : > { %v1704_v15 = vpack.c.bf16 %v1663_v6, %v1662_v54 }
 0x278   : > { %v5918_v34 = vadd.f32 %v1571_v51, %v1483_v32  ;;  %2139 = vmatmul.bf16.gmra.mxu0 %v1701_v55  ;;  %2060 = vmatmul.bf16.gmra.mxu3 %v5777_v37  ;;  %v1665_v32 = vld [vmem:[#allocation2 + $0x112] sm:$0xff] }
 0x279   : > { %v1162_v7 = vpop.f32.mrf.mxu2 }
 0x27a   : > { %v1163_v0 = vadd.f32 %v1162_v7, %v5708_v26  ;;  %v1576_v26 = vpop.f32.mrf.mxu1 }
 0x27c   : > { %v1396_v58 = vadd.f32 %v1395_v38, %v1163_v0  ;;  %v2021_v42 = vpop.f32.mrf.mxu3  ;;  %v5002_v0 = vld [vmem:[#allocation9 + $0x38] sm:$0xff] }
 0x27d   : > { %v1489_v31 = vpop.f32.mrf.mxu0  ;;  %3221 = vmatpush.bf16.msrb.mxu0 %v5002_v0  ;;  %v5033_v0 = vld [vmem:[#allocation9 + $0x130] sm:$0xff] }
 0x27e   : > { %1961 = vmatmul.bf16.gmra.mxu2 %v5710_v30  ;;  %v5924_v27 = vadd.f32 %v1484_v46, %v1396_v58  ;;  %v5042_v46 = vld [vmem:[#allocation9 + $0x178] sm:$0xff] }
 0x27f   : > { %2988 = vmatpush.bf16.msrb.mxu3 %v5042_v46  ;;  %v5010_v58 = vld [vmem:[#allocation9 + $0x78] sm:$0xff]  ;;  %2900 = vmatpush.bf16.msrb.mxu2 %v5033_v0 }
 0x280   : > { %3310 = vmatpush.bf16.msrb.mxu1 %v5010_v58 }
 0x281   : > { %v1165_v5 = vpop.f32.mrf.mxu2 }
 0x282   : > { %v1166_v61 = vadd.f32 %v1165_v5, %v5715_v41 }
 0x284   : > { %v1399_v20 = vadd.f32 %v1398_v11, %v1166_v61  ;;  %v2023_v37 = vpop.f32.mrf.mxu3 }
 0x285   : > { %v2105_v51 = vpop.f32.mrf.mxu0 }
 0x286   : > { %v1488_v19 = vadd.f32 %v1487_v24, %v1399_v20  ;;  %v1664_v24 = vld [vmem:[#allocation2 + $0x10a] sm:$0xff] }
 0x287   : > { %v1707_v54 = vpack.c.bf16 %v1665_v32, %v1664_v24 }
 0x288   : > { %v5928_v25 = vadd.f32 %v1576_v26, %v1488_v19  ;;  %2144 = vmatmul.bf16.gmra.mxu0 %v1704_v15  ;;  %2065 = vmatmul.bf16.gmra.mxu3 %v5801_v60  ;;  %v1666_v19 = vld [vmem:[#allocation2 + $0x122] sm:$0xff] }
 0x289   : > { %v1167_v38 = vpop.f32.mrf.mxu2 }
 0x28a   : > { %v1168_v30 = vadd.f32 %v1167_v38, %v5720_v53  ;;  %v1667_v38 = vld [vmem:[#allocation2 + $0x12a] sm:$0xff] }
 0x28c   : > { %v1401_v63 = vadd.f32 %v1400_v43, %v1168_v30  ;;  %v2026_v53 = vpop.f32.mrf.mxu3 }
 0x28d   : > { %v2107_v55 = vpop.f32.mrf.mxu0 }
 0x28e   : > { %1966 = vmatmul.bf16.gmra.mxu2 %v5724_v3  ;;  %v5932_v41 = vadd.f32 %v1489_v31, %v1401_v63 }
 0x291   : > { %v1927_v11 = vpop.f32.mrf.mxu2 }
 0x292   : > { %v2017_v7 = vadd.f32 %v2016_v29, %v1927_v11 }
 0x294   : > { %v2106_v5 = vadd.f32 %v2105_v51, %v2017_v7  ;;  %v2028_v60 = vpop.f32.mrf.mxu3  ;;  %v5041_v7 = vld [vmem:[#allocation9 + $0x170] sm:$0xff] }
 0x295   : > { %v2110_v43 = vpop.f32.mrf.mxu0  ;;  %2989 = vmatpush.bf16.msrb.mxu3 %v5041_v7 }
 0x296   : > { %v2185_v6 = vadd.f32 %v2106_v5, %v5738_v62 }
 0x298   : > { %v2217_v61 = vmax.f32 %v2185_v6, 0.0  ;;  %2149 = vmatmul.bf16.gmra.mxu0 %v1707_v54  ;;  %2070 = vmatmul.bf16.gmra.mxu3 %v5823_v33  ;;  %v1669_v6 = vld [vmem:[#allocation2 + $0x142] sm:$0xff] }
 0x299   : > { %v1929_v3 = vpop.f32.mrf.mxu2 }
 0x29a   : > { %2250 = vst [vmem:[#allocation3 + $0x19] sm:$0xff] %v2217_v61  ;;  %v2019_v31 = vadd.f32 %v2018_v2, %v1929_v3  ;;  %v1710_v2 = vpack.c.bf16 %v1667_v38, %v1666_v19  ;;  %v5001_v3 = vld [vmem:[#allocation9 + $0x30] sm:$0xff] }
 0x29b   : > { %3222 = vmatpush.bf16.msrb.mxu0 %v5001_v3  ;;  %v1642_v3 = vld [vmem:[#allocation2 + $0x181] sm:$0xff] }
 0x29c   : > { %v2108_v20 = vadd.f32 %v2107_v55, %v2019_v31  ;;  %v2031_v30 = vpop.f32.mrf.mxu3  ;;  %v5009_v31 = vld [vmem:[#allocation9 + $0x70] sm:$0xff] }
 0x29d   : > { %v2112_v15 = vpop.f32.mrf.mxu0  ;;  %3311 = vmatpush.bf16.msrb.mxu1 %v5009_v31 }
 0x29e   : > { %v2186_v29 = vadd.f32 %v2108_v20, %v5748_v59  ;;  %1971 = vmatmul.bf16.gmra.mxu2 %v5743_v57 }
 0x2a0   : > { %v2218_v26 = vmax.f32 %v2186_v29, 0.0 }
 0x2a1   : > { %v1932_v51 = vpop.f32.mrf.mxu2  ;;  %v2474_v57 = vld [vmem:[#allocation3 + $0x18] sm:$0xff] }
 0x2a2   : > { %2251 = vst [vmem:[#allocation3 + $0x21] sm:$0xff] %v2218_v26  ;;  %v2022_v62 = vadd.f32 %v2021_v42, %v1932_v51  ;;  %v5939_v46 = vpack.c.bf16 %v2218_v26, %v2217_v61 }
 0x2a4   : > { %v2111_v52 = vadd.f32 %v2110_v43, %v2022_v62  ;;  %v2033_v42 = vpop.f32.mrf.mxu3 }
 0x2a5   : > { %v2115_v63 = vpop.f32.mrf.mxu0 }
 0x2a6   : > { %v2187_v55 = vadd.f32 %v2111_v52, %v5758_v28 }
 0x2a8   : > { %v2219_v11 = vmax.f32 %v2187_v55, 0.0  ;;  %2154 = vmatmul.bf16.gmra.mxu0 %v1710_v2  ;;  %2075 = vmatmul.bf16.gmra.mxu3 %v5840_v18 }
 0x2a9   : > { %v1934_v59 = vpop.f32.mrf.mxu2  ;;  %v2475_v24 = vld [vmem:[#allocation3 + $0x20] sm:$0xff] }
 0x2aa   : > { %2252 = vst [vmem:[#allocation3 + $0x31] sm:$0xff] %v2219_v11  ;;  %v2024_v33 = vadd.f32 %v2023_v37, %v1934_v59  ;;  %v5942_v32 = vpack.c.bf16 %v2475_v24, %v2474_v57  ;;  %v1668_v37 = vld [vmem:[#allocation2 + $0x13a] sm:$0xff]  ;;  %v1670_v59 = vld [vmem:[#allocation2 + $0x152] sm:$0xff] }
 0x2ab   : > { %v1713_v26 = vpack.c.bf16 %v1669_v6, %v1668_v37  ;;  %v1671_v57 = vld [vmem:[#allocation2 + $0x15a] sm:$0xff]  ;;  %v5040_v6 = vld [vmem:[#allocation9 + $0x168] sm:$0xff] }
 0x2ac   : > { %v2113_v58 = vadd.f32 %v2112_v15, %v2024_v33  ;;  %2818 = vmatmul.bf16.vlgmr.msra.gmra.mxu1 %v5942_v32  ;;  %v2036_v20 = vpop.f32.mrf.mxu3  ;;  %v1716_v0 = vpack.c.bf16 %v1671_v57, %v1670_v59  ;;  %2990 = vmatpush.bf16.msrb.mxu3 %v5040_v6 }
 0x2ad   : > { %v2117_v5 = vpop.f32.mrf.mxu0 }
 0x2ae   : > { %v2188_v28 = vadd.f32 %v2113_v58, %v5771_v17  ;;  %1976 = vmatmul.bf16.gmra.mxu2 %v5765_v56 }
 0x2b0   : > { %v2220_v54 = vmax.f32 %v2188_v28, 0.0 }
 0x2b1   : > { %v1937_v43 = vpop.f32.mrf.mxu2  ;;  %v2476_v19 = vld [vmem:[#allocation3 + $0x30] sm:$0xff] }
 0x2b2   : > { %2253 = vst [vmem:[#allocation3 + $0x39] sm:$0xff] %v2220_v54  ;;  %v2027_v61 = vadd.f32 %v2026_v53, %v1937_v43  ;;  %v5948_v15 = vpack.c.bf16 %v2220_v54, %v2219_v11 }
 0x2b4   : > { %v2116_v29 = vadd.f32 %v2115_v63, %v2027_v61  ;;  %v5953_v52 = vpop.f32.mrf.mxu3 }
 0x2b5   : > { %v2120_v17 = vpop.f32.mrf.mxu0 }
 0x2b6   : > { %v2189_v56 = vadd.f32 %v2116_v29, %v5782_v49  ;;  %v1643_v29 = vld [vmem:[#allocation2 + $0x189] sm:$0xff] }
 0x2b8   : > { %v2221_v51 = vmax.f32 %v2189_v56, 0.0  ;;  %2159 = vmatmul.bf16.gmra.mxu0 %v1713_v26  ;;  %2080 = vmatmul.bf16.gmra.mxu3 %v5853_v50  ;;  %v6742_v56 = vld [vmem:[#allocation18_spill] sm:$0xff] }
 0x2b9   : > { %v1939_v18 = vpop.f32.mrf.mxu2  ;;  %v2477_v38 = vld [vmem:[#allocation3 + $0x38] sm:$0xff] }
 0x2ba   : > { %2254 = vst [vmem:[#allocation3 + $0x49] sm:$0xff] %v2221_v51  ;;  %v2029_v62 = vadd.f32 %v2028_v60, %v1939_v18  ;;  %v5951_v53 = vpack.c.bf16 %v2477_v38, %v2476_v19  ;;  %v6743_v18 = vld [vmem:[#allocation16_spill] sm:$0xff] }
 0x2bb   : > { %v1672_v38 = vld [vmem:[#allocation2 + $0x16a] sm:$0xff] }
 0x2bc   : > { %v2118_v2 = vadd.f32 %v2117_v5, %v2029_v62  ;;  %2823 = vmatmul.bf16.gmra.mxu1 %v5951_v53  ;;  %v5959_v24 = vpop.f32.mrf.mxu3  ;;  %v6741_v5 = vld [vmem:[#allocation15_spill] sm:$0xff]  ;;  %v1673_v62 = vld [vmem:[#allocation2 + $0x172] sm:$0xff] }
 0x2bd   : > { %v2122_v63 = vpop.f32.mrf.mxu0  ;;  %v1719_v57 = vpack.c.bf16 %v1673_v62, %v1672_v38  ;;  %v6747_v62 = vld [vmem:[#allocation20_spill] sm:$0xff] }
 0x2be   : > { %v2190_v55 = vadd.f32 %v2118_v2, %v5795_v9  ;;  %1981 = vmatmul.bf16.gmra.mxu2 %v5789_v47 }
 0x2c0   : > { %v2222_v49 = vmax.f32 %v2190_v55, 0.0  ;;  %v5000_v55 = vld [vmem:[#allocation9 + $0x28] sm:$0xff] }
 0x2c1   : > { %v1942_v11 = vpop.f32.mrf.mxu2  ;;  %v2478_v54 = vld [vmem:[#allocation3 + $0x48] sm:$0xff]  ;;  %3223 = vmatpush.bf16.msrb.mxu0 %v5000_v55  ;;  %v1674_v55 = vld [vmem:[#allocation2 + $0x182] sm:$0xff] }
 0x2c2   : > { %2255 = vst [vmem:[#allocation3 + $0x51] sm:$0xff] %v2222_v49  ;;  %v2032_v60 = vadd.f32 %v2031_v30, %v1942_v11  ;;  %v5961_v33 = vpack.c.bf16 %v2222_v49, %v2221_v51  ;;  %v5032_v30 = vld [vmem:[#allocation9 + $0x128] sm:$0xff] }
 0x2c3   : > { %2901 = vmatpush.bf16.msrb.mxu2 %v5032_v30  ;;  %v1644_v30 = vld [vmem:[#allocation2 + $0x199] sm:$0xff] }
 0x2c4   : > { %v2121_v7 = vadd.f32 %v2120_v17, %v2032_v60  ;;  %v5966_v61 = vpop.f32.mrf.mxu3  ;;  %v1721_v17 = vpack.c.bf16 %v1643_v29, %v1642_v3  ;;  %v1645_v3 = vld [vmem:[#allocation2 + $0x1a1] sm:$0xff] }
 0x2c5   : > { %v2125_v58 = vpop.f32.mrf.mxu0  ;;  %v6746_v29 = vld [vmem:[#allocation14_spill] sm:$0xff] }
 0x2c6   : > { %v2191_v28 = vadd.f32 %v2121_v7, %v6741_v5  ;;  %v6744_v7 = vld [vmem:[#allocation19_spill] sm:$0xff] }
 0x2c8   : > { %v2223_v9 = vmax.f32 %v2191_v28, 0.0  ;;  %2164 = vmatmul.bf16.gmra.mxu0 %v1716_v0  ;;  %2085 = vmatmul.bf16.gmra.mxu3 %v1721_v17 }
 0x2c9   : > { %v1944_v47 = vpop.f32.mrf.mxu2  ;;  %v2479_v50 = vld [vmem:[#allocation3 + $0x50] sm:$0xff] }
 0x2ca   : > { %2256 = vst [vmem:[#allocation3 + $0x61] sm:$0xff] %v2223_v9  ;;  %v2034_v43 = vadd.f32 %v2033_v42, %v1944_v47  ;;  %v5964_v37 = vpack.c.bf16 %v2479_v50, %v2478_v54  ;;  %v5031_v50 = vld [vmem:[#allocation9 + $0x120] sm:$0xff] }
 0x2cb   : > { %2902 = vmatpush.bf16.msrb.mxu2 %v5031_v50 }
 0x2cc   : > { %v2123_v31 = vadd.f32 %v2122_v63, %v2034_v43  ;;  %2828 = vmatmul.bf16.gmra.mxu1 %v5964_v37  ;;  %v5008_v63 = vld [vmem:[#allocation9 + $0x68] sm:$0xff]  ;;  %v5971_v49 = vpop.f32.mrf.mxu3 }
 0x2cd   : > { %v2127_v26 = vpop.f32.mrf.mxu0  ;;  %3312 = vmatpush.bf16.msrb.mxu1 %v5008_v63 }
 0x2ce   : > { %v2192_v51 = vadd.f32 %v2123_v31, %v6742_v56  ;;  %1986 = vmatmul.bf16.gmra.mxu2 %v6743_v18  ;;  %v6745_v31 = vld [vmem:[#allocation21_spill] sm:$0xff] }
 0x2cf   : > { %v1524_v17 = vadd.f32 %v6746_v29, %v6745_v31  ;;  %v1610_v29 = vld [vmem:[#allocation2 + $0x180] sm:$0xff] }
 0x2d0   : > { %v2224_v42 = vmax.f32 %v2192_v51, 0.0  ;;  %v1724_v51 = vpack.c.bf16 %v1645_v3, %v1644_v30  ;;  %v4996_v30 = vld [vmem:[#allocation9 + $0x8] sm:$0xff] }
 0x2d1   : > { %v1947_v19 = vpop.f32.mrf.mxu2  ;;  %v2480_v28 = vld [vmem:[#allocation3 + $0x60] sm:$0xff]  ;;  %v6748_v3 = vld [vmem:[#allocation23_spill] sm:$0xff] }
 0x2d2   : > { %2257 = vst [vmem:[#allocation3 + $0x69] sm:$0xff] %v2224_v42  ;;  %v2037_v2 = vadd.f32 %v2036_v20, %v1947_v19  ;;  %v5973_v11 = vpack.c.bf16 %v2224_v42, %v2223_v9  ;;  %v5039_v20 = vld [vmem:[#allocation9 + $0x160] sm:$0xff]  ;;  %v5030_v42 = vld [vmem:[#allocation9 + $0x118] sm:$0xff] }
 0x2d3   : > { %2991 = vmatpush.bf16.msrb.mxu3 %v5039_v20  ;;  %v4998_v19 = vld [vmem:[#allocation9 + $0x18] sm:$0xff]  ;;  %2903 = vmatpush.bf16.msrb.mxu2 %v5030_v42  ;;  %v5035_v42 = vld [vmem:[#allocation9 + $0x140] sm:$0xff] }
 0x2d4   : > { %v2126_v59 = vadd.f32 %v2125_v58, %v2037_v2  ;;  %v5979_v9 = vpop.f32.mrf.mxu3  ;;  %v4999_v58 = vld [vmem:[#allocation9 + $0x20] sm:$0xff] }
 0x2d5   : > { %v2130_v60 = vpop.f32.mrf.mxu0  ;;  %3224 = vmatpush.bf16.msrb.mxu0 %v4999_v58  ;;  %v5036_v58 = vld [vmem:[#allocation9 + $0x148] sm:$0xff] }
 0x2d6   : > { %v2193_v0 = vadd.f32 %v2126_v59, %v6744_v7  ;;  %v1675_v59 = vld [vmem:[#allocation2 + $0x18a] sm:$0xff] }
 0x2d7   : > { %v1722_v50 = vpack.c.bf16 %v1675_v59, %v1674_v55  ;;  %v2538_v55 = vld [vmem:[#allocation3 + $0x1a] sm:$0xff] }
 0x2d8   : > { %v2225_v5 = vmax.f32 %v2193_v0, 0.0  ;;  %2169 = vmatmul.bf16.gmra.mxu0 %v1719_v57  ;;  %2090 = vmatmul.bf16.gmra.mxu3 %v1724_v51  ;;  %v5037_v57 = vld [vmem:[#allocation9 + $0x150] sm:$0xff] }
 0x2d9   : > { %v1949_v47 = vpop.f32.mrf.mxu2  ;;  %v2481_v54 = vld [vmem:[#allocation3 + $0x68] sm:$0xff]  ;;  %3225 = vmatpush.bf16.msrb.mxu0 %v4998_v19  ;;  %v6749_v59 = vld [vmem:[#allocation24_spill] sm:$0xff] }
 0x2da   : > { %2258 = vst [vmem:[#allocation3 + $0x79] sm:$0xff] %v2225_v5  ;;  %v2039_v43 = vadd.f32 %v5953_v52, %v1949_v47  ;;  %v5977_v6 = vpack.c.bf16 %v2481_v54, %v2480_v28  ;;  %v5038_v52 = vld [vmem:[#allocation9 + $0x158] sm:$0xff]  ;;  %v4997_v28 = vld [vmem:[#allocation9 + $0x10] sm:$0xff] }
 0x2db   : > { %2992 = vmatpush.bf16.msrb.mxu3 %v5038_v52 }
 0x2dc   : > { %v2128_v56 = vadd.f32 %v2127_v26, %v2039_v43  ;;  %2833 = vmatmul.bf16.gmra.mxu1 %v5977_v6  ;;  %v5029_v26 = vld [vmem:[#allocation9 + $0x110] sm:$0xff]  ;;  %v5986_v0 = vpop.f32.mrf.mxu3  ;;  %v5028_v43 = vld [vmem:[#allocation9 + $0x108] sm:$0xff] }
 0x2dd   : > { %v2132_v18 = vpop.f32.mrf.mxu0  ;;  %2904 = vmatpush.bf16.msrb.mxu2 %v5029_v26  ;;  %3226 = vmatpush.bf16.msrb.mxu0 %v4997_v28  ;;  %v6750_v26 = vld [vmem:[#allocation17_spill] sm:$0xff] }
 0x2de   : > { %v2194_v38 = vadd.f32 %v2128_v56, %v1524_v17  ;;  %1991 = vmatmul.bf16.gmra.mxu2 %v6747_v62  ;;  %v1611_v17 = vld [vmem:[#allocation2 + $0x188] sm:$0xff] }
 0x2df   : > { %2993 = vmatpush.bf16.msrb.mxu3 %v5037_v57  ;;  %v1529_v57 = vadd.f32 %v6750_v26, %v6749_v59  ;;  %v5158_v59 = vld [vmem:[#allocation2 + $0x8] sm:$0xff] }
 0x2e0   : > { %v2226_v2 = vmax.f32 %v2194_v38, 0.0  ;;  %v1720_v38 = vpack.c.bf16 %v1611_v17, %v1610_v29 }
 0x2e1   : > { %v1952_v63 = vpop.f32.mrf.mxu2  ;;  %2905 = vmatpush.bf16.msrb.mxu2 %v5028_v43  ;;  %v2482_v56 = vld [vmem:[#allocation3 + $0x78] sm:$0xff]  ;;  %3227 = vmatpush.bf16.msrb.mxu0 %v4996_v30 }
 0x2e2   : > { %2259 = vst [vmem:[#allocation3 + $0x81] sm:$0xff] %v2226_v2  ;;  %v2042_v7 = vadd.f32 %v5959_v24, %v1952_v63  ;;  %v5988_v47 = vpack.c.bf16 %v2226_v2, %v2225_v5  ;;  %v4995_v2 = vld [vmem:[#allocation9] sm:$0xff]  ;;  %v2539_v63 = vld [vmem:[#allocation3 + $0x22] sm:$0xff] }
 0x2e3   : > { %2994 = vmatpush.bf16.msrb.mxu3 %v5036_v58  ;;  %v1676_v58 = vld [vmem:[#allocation2 + $0x19a] sm:$0xff]  ;;  %v1677_v30 = vld [vmem:[#allocation2 + $0x1a2] sm:$0xff] }
 0x2e4   : > { %v2131_v54 = vadd.f32 %v2130_v60, %v2042_v7  ;;  %v5027_v60 = vld [vmem:[#allocation9 + $0x100] sm:$0xff]  ;;  %v5994_v62 = vpop.f32.mrf.mxu3 }
 0x2e5   : > { %v2135_v20 = vpop.f32.mrf.mxu0  ;;  %2906 = vmatpush.bf16.msrb.mxu2 %v5027_v60  ;;  %3228 = vmatpush.bf16.msrb.mxu0 %v4995_v2 }
 0x2e6   : > { %v2195_v31 = vadd.f32 %v2131_v54, %v6748_v3  ;;  %v2572_v54 = vpack.c.bf16 %v2539_v63, %v2538_v55 }
 0x2e7   : > { %2995 = vmatpush.bf16.msrb.mxu3 %v5035_v42  ;;  %v1612_v42 = vld [vmem:[#allocation2 + $0x198] sm:$0xff] }
 0x2e8   : > { %v2227_v24 = vmax.f32 %v2195_v31, 0.0  ;;  %2174 = vmatmul.bf16.gmra.mxu0 %v1722_v50  ;;  %v5007_v31 = vld [vmem:[#allocation9 + $0x60] sm:$0xff] }
 0x2e9   : > { %v1954_v5 = vpop.f32.mrf.mxu2  ;;  %v2483_v51 = vld [vmem:[#allocation3 + $0x80] sm:$0xff]  ;;  %3313 = vmatpush.bf16.msrb.mxu1 %v5007_v31 }
 0x2ea   : > { %2260 = vst [vmem:[#allocation3 + $0x91] sm:$0xff] %v2227_v24  ;;  %v2044_v52 = vadd.f32 %v5966_v61, %v1954_v5  ;;  %v5992_v19 = vpack.c.bf16 %v2483_v51, %v2482_v56  ;;  %2996 = vmatmul.bf16.vlgmr.msrb.gmra.mxu3 %v2572_v54  ;;  %v1725_v56 = vpack.c.bf16 %v1677_v30, %v1676_v58  ;;  %v6751_v51 = vld [vmem:[#allocation26_spill] sm:$0xff]  ;;  %v2282_v31 = vld [vmem:[#allocation3] sm:$0xff] }
 0x2eb   : > { %v6753_v54 = vld [vmem:[#allocation22_spill] sm:$0xff] }
 0x2ec   : > { %v2133_v7 = vadd.f32 %v2132_v18, %v2044_v52  ;;  %2838 = vmatmul.bf16.gmra.mxu1 %v5992_v19  ;;  %v2056_v29 = vpop.f32.mrf.mxu3 }
 0x2ed   : > { %v2137_v28 = vpop.f32.mrf.mxu0 }
 0x2ee   : > { %v2196_v61 = vadd.f32 %v2133_v7, %v1529_v57  ;;  %1996 = vmatmul.bf16.gmra.mxu2 %v1720_v38  ;;  %v2541_v57 = vld [vmem:[#allocation3 + $0x3a] sm:$0xff] }
 0x2ef   : > { %v6752_v7 = vld [vmem:[#allocation27_spill] sm:$0xff] }
 0x2f0   : > { %v2228_v50 = vmax.f32 %v2196_v61, 0.0  ;;  %v1534_v61 = vadd.f32 %v6753_v54, %v6752_v7  ;;  %v2543_v54 = vld [vmem:[#allocation3 + $0x52] sm:$0xff] }
 0x2f1   : > { %v1957_v43 = vpop.f32.mrf.mxu2  ;;  %v2484_v2 = vld [vmem:[#allocation3 + $0x90] sm:$0xff] }
 0x2f2   : > { %2261 = vst [vmem:[#allocation3 + $0x99] sm:$0xff] %v2228_v50  ;;  %v2047_v3 = vadd.f32 %v5971_v49, %v1957_v43  ;;  %v6000_v17 = vpack.c.bf16 %v2228_v50, %v2227_v24  ;;  %v1723_v24 = vpack.c.bf16 %v5158_v59, %v1612_v42  ;;  %v2378_v42 = vpack.c.bf16 %v5158_v59, %v2282_v31 }
 0x2f4   : > { %v2136_v18 = vadd.f32 %v2135_v20, %v2047_v3  ;;  %v2058_v26 = vpop.f32.mrf.mxu3  ;;  %v2540_v20 = vld [vmem:[#allocation3 + $0x32] sm:$0xff] }
 0x2f5   : > { %v2140_v5 = vpop.f32.mrf.mxu0  ;;  %v2575_v58 = vpack.c.bf16 %v2541_v57, %v2540_v20 }
 0x2f6   : > { %v2197_v60 = vadd.f32 %v2136_v18, %v6751_v51 }
 0x2f8   : > { %v2229_v52 = vmax.f32 %v2197_v60, 0.0  ;;  %2179 = vmatmul.bf16.gmra.mxu0 %v1725_v56 }
 0x2f9   : > { %v1959_v38 = vpop.f32.mrf.mxu2  ;;  %v2485_v55 = vld [vmem:[#allocation3 + $0x98] sm:$0xff] }
 0x2fa   : > { %2262 = vst [vmem:[#allocation3 + $0xa9] sm:$0xff] %v2229_v52  ;;  %v2049_v63 = vadd.f32 %v5979_v9, %v1959_v38  ;;  %v6004_v49 = vpack.c.bf16 %v2485_v55, %v2484_v2  ;;  %3001 = vmatmul.bf16.gmra.mxu3 %v2575_v58 }
 0x2fc   : > { %v2138_v50 = vadd.f32 %v2137_v28, %v2049_v63  ;;  %2843 = vmatmul.bf16.gmra.mxu1 %v6004_v49  ;;  %v2061_v56 = vpop.f32.mrf.mxu3 }
 0x2fd   : > { %v2142_v43 = vpop.f32.mrf.mxu0 }
 0x2fe   : > { %v2198_v30 = vadd.f32 %v2138_v50, %v1534_v61  ;;  %2001 = vmatmul.bf16.gmra.mxu2 %v1723_v24 }
 0x300   : > { %v2230_v3 = vmax.f32 %v2198_v30, 0.0 }
 0x301   : > { %v1962_v9 = vpop.f32.mrf.mxu2  ;;  %v2486_v63 = vld [vmem:[#allocation3 + $0xa8] sm:$0xff] }
 0x302   : > { %2263 = vst [vmem:[#allocation3 + $0xb1] sm:$0xff] %v2230_v3  ;;  %v2052_v18 = vadd.f32 %v5986_v0, %v1962_v9  ;;  %v6010_v51 = vpack.c.bf16 %v2230_v3, %v2229_v52  ;;  %v2542_v0 = vld [vmem:[#allocation3 + $0x4a] sm:$0xff] }
 0x303   : > { %v6754_v52 = vld [vmem:[#allocation25_spill] sm:$0xff]  ;;  %v2578_v61 = vpack.c.bf16 %v2543_v54, %v2542_v0 }
 0x304   : > { %v2141_v60 = vadd.f32 %v2140_v5, %v2052_v18  ;;  %v2063_v7 = vpop.f32.mrf.mxu3  ;;  %v1539_v5 = vadd.f32 %v6754_v52, %v5867_v36  ;;  %v5006_v3 = vld [vmem:[#allocation9 + $0x58] sm:$0xff] }
 0x305   : > { %v2145_v38 = vpop.f32.mrf.mxu0  ;;  %3314 = vmatpush.bf16.msrb.mxu1 %v5006_v3 }
 0x306   : > { %v2199_v28 = vadd.f32 %v2141_v60, %v5864_v13 }
 0x308   : > { %v2231_v2 = vmax.f32 %v2199_v28, 0.0  ;;  %3229 = vmatmul.bf16.vlgmr.msrb.gmra.mxu0 %v2378_v42 }
 0x309   : > { %v1964_v55 = vpop.f32.mrf.mxu2  ;;  %v2487_v24 = vld [vmem:[#allocation3 + $0xb0] sm:$0xff] }
 0x30a   : > { %2264 = vst [vmem:[#allocation3 + $0xc1] sm:$0xff] %v2231_v2  ;;  %v2054_v20 = vadd.f32 %v5994_v62, %v1964_v55  ;;  %v6014_v57 = vpack.c.bf16 %v2487_v24, %v2486_v63  ;;  %3006 = vmatmul.bf16.gmra.mxu3 %v2578_v61  ;;  %v2544_v24 = vld [vmem:[#allocation3 + $0x62] sm:$0xff] }
 0x30c   : > { %v2143_v59 = vadd.f32 %v2142_v43, %v2054_v20  ;;  %2848 = vmatmul.bf16.gmra.mxu1 %v6014_v57  ;;  %v2066_v9 = vpop.f32.mrf.mxu3  ;;  %v2545_v20 = vld [vmem:[#allocation3 + $0x6a] sm:$0xff] }
 0x30d   : > { %v2147_v13 = vpop.f32.mrf.mxu0  ;;  %v2581_v54 = vpack.c.bf16 %v2545_v20, %v2544_v24 }
 0x30e   : > { %v2200_v50 = vadd.f32 %v2143_v59, %v1539_v5  ;;  %2907 = vmatmul.bf16.vlgmr.msrb.gmra.mxu2 %v5939_v46  ;;  %v6030_v5 = vpop.f32.mrf.mxu1 }
 0x310   : > { %v2232_v58 = vmax.f32 %v2200_v50, 0.0 }
 0x311   : > { %v1967_v30 = vpop.f32.mrf.mxu2  ;;  %v2488_v28 = vld [vmem:[#allocation3 + $0xc0] sm:$0xff] }
 0x312   : > { %2265 = vst [vmem:[#allocation3 + $0xc9] sm:$0xff] %v2232_v58  ;;  %v2057_v62 = vadd.f32 %v2056_v29, %v1967_v30  ;;  %v6020_v31 = vpack.c.bf16 %v2232_v58, %v2231_v2  ;;  %v6755_v2 = vld [vmem:[#allocation28_spill] sm:$0xff] }
 0x314   : > { %v2146_v18 = vadd.f32 %v2145_v38, %v2057_v62  ;;  %v2068_v29 = vpop.f32.mrf.mxu3  ;;  %v1544_v38 = vadd.f32 %v6755_v2, %v5875_v44 }
 0x315   : > { %v2150_v36 = vpop.f32.mrf.mxu0 }
 0x316   : > { %v2201_v43 = vadd.f32 %v2146_v18, %v5872_v21 }
 0x318   : > { %v2233_v60 = vmax.f32 %v2201_v43, 0.0  ;;  %3234 = vmatmul.bf16.gmra.mxu0 %v5942_v32 }
 0x319   : > { %v1969_v42 = vpop.f32.mrf.mxu2  ;;  %v2489_v46 = vld [vmem:[#allocation3 + $0xc8] sm:$0xff] }
 0x31a   : > { %2266 = vst [vmem:[#allocation3 + $0xd9] sm:$0xff] %v2233_v60  ;;  %v2059_v55 = vadd.f32 %v2058_v26, %v1969_v42  ;;  %v6024_v63 = vpack.c.bf16 %v2489_v46, %v2488_v28  ;;  %3011 = vmatmul.bf16.gmra.mxu3 %v2581_v54  ;;  %v2546_v28 = vld [vmem:[#allocation3 + $0x7a] sm:$0xff] }
 0x31c   : > { %v2148_v0 = vadd.f32 %v2147_v13, %v2059_v55  ;;  %2853 = vmatmul.bf16.gmra.mxu1 %v6024_v63  ;;  %v2071_v61 = vpop.f32.mrf.mxu3 }
 0x31d   : > { %v2152_v21 = vpop.f32.mrf.mxu0 }
 0x31e   : > { %v2202_v52 = vadd.f32 %v2148_v0, %v1544_v38  ;;  %2912 = vmatmul.bf16.gmra.mxu2 %v5948_v15  ;;  %v5005_v38 = vld [vmem:[#allocation9 + $0x50] sm:$0xff] }
 0x31f   : > { %3315 = vmatpush.bf16.msrb.mxu1 %v5005_v38 }
 0x320   : > { %v2234_v32 = vmax.f32 %v2202_v52, 0.0 }
 0x321   : > { %v1972_v26 = vpop.f32.mrf.mxu2  ;;  %v2490_v15 = vld [vmem:[#allocation3 + $0xd8] sm:$0xff] }
 0x322   : > { %2267 = vst [vmem:[#allocation3 + $0xe1] sm:$0xff] %v2234_v32  ;;  %v2062_v59 = vadd.f32 %v2061_v56, %v1972_v26  ;;  %v6032_v50 = vpack.c.bf16 %v2234_v32, %v2233_v60  ;;  %v2547_v60 = vld [vmem:[#allocation3 + $0x82] sm:$0xff] }
 0x324   : > { %v2151_v58 = vadd.f32 %v2150_v36, %v2062_v59  ;;  %v2073_v56 = vpop.f32.mrf.mxu3  ;;  %v1549_v36 = vadd.f32 %v5870_v40, %v5883_v39 }
 0x325   : > { %v2155_v44 = vpop.f32.mrf.mxu0 }
 0x326   : > { %v2203_v13 = vadd.f32 %v2151_v58, %v5878_v16 }
 0x328   : > { %v2235_v30 = vmax.f32 %v2203_v13, 0.0  ;;  %3239 = vmatmul.bf16.gmra.mxu0 %v5951_v53  ;;  %v2584_v53 = vpack.c.bf16 %v2547_v60, %v2546_v28 }
 0x329   : > { %v1974_v62 = vpop.f32.mrf.mxu2  ;;  %v6036_v3 = vpop.f32.mrf.mxu1  ;;  %v2491_v18 = vld [vmem:[#allocation3 + $0xe0] sm:$0xff] }
 0x32a   : > { %2268 = vst [vmem:[#allocation3 + $0xf1] sm:$0xff] %v2235_v30  ;;  %v2064_v43 = vadd.f32 %v2063_v7, %v1974_v62  ;;  %v6038_v42 = vpack.c.bf16 %v2491_v18, %v2490_v15  ;;  %3016 = vmatmul.bf16.gmra.mxu3 %v2584_v53  ;;  %v2549_v62 = vld [vmem:[#allocation3 + $0x9a] sm:$0xff] }
 0x32c   : > { %v2153_v46 = vadd.f32 %v2152_v21, %v2064_v43  ;;  %2858 = vmatmul.bf16.gmra.mxu1 %v6038_v42  ;;  %v2076_v0 = vpop.f32.mrf.mxu3 }
 0x32d   : > { %v2157_v16 = vpop.f32.mrf.mxu0 }
 0x32e   : > { %v2204_v55 = vadd.f32 %v2153_v46, %v1549_v36  ;;  %2917 = vmatmul.bf16.gmra.mxu2 %v5961_v33 }
 0x330   : > { %v2236_v24 = vmax.f32 %v2204_v55, 0.0 }
 0x331   : > { %v1977_v20 = vpop.f32.mrf.mxu2  ;;  %v6044_v7 = vpop.f32.mrf.mxu1  ;;  %v2492_v26 = vld [vmem:[#allocation3 + $0xf0] sm:$0xff] }
 0x332   : > { %2269 = vst [vmem:[#allocation3 + $0xf9] sm:$0xff] %v2236_v24  ;;  %v2067_v2 = vadd.f32 %v2066_v9, %v1977_v20  ;;  %v6046_v54 = vpack.c.bf16 %v2236_v24, %v2235_v30  ;;  %v2548_v30 = vld [vmem:[#allocation3 + $0x92] sm:$0xff] }
 0x334   : > { %v2156_v40 = vadd.f32 %v2155_v44, %v2067_v2  ;;  %v2078_v13 = vpop.f32.mrf.mxu3  ;;  %v6756_v44 = vld [vmem:[#allocation29_spill] sm:$0xff] }
 0x335   : > { %v2160_v39 = vpop.f32.mrf.mxu0  ;;  %v1554_v15 = vadd.f32 %v6756_v44, %v5889_v35 }
 0x336   : > { %v2205_v21 = vadd.f32 %v2156_v40, %v5886_v23 }
 0x338   : > { %v2237_v52 = vmax.f32 %v2205_v21, 0.0  ;;  %3244 = vmatmul.bf16.gmra.mxu0 %v5964_v37  ;;  %v2587_v37 = vpack.c.bf16 %v2549_v62, %v2548_v30 }
 0x339   : > { %v1979_v33 = vpop.f32.mrf.mxu2  ;;  %v6050_v32 = vpop.f32.mrf.mxu1  ;;  %v2493_v59 = vld [vmem:[#allocation3 + $0xf8] sm:$0xff] }
 0x33a   : > { %2270 = vst [vmem:[#allocation3 + $0x109] sm:$0xff] %v2237_v52  ;;  %v2069_v58 = vadd.f32 %v2068_v29, %v1979_v33  ;;  %v6052_v9 = vpack.c.bf16 %v2493_v59, %v2492_v26  ;;  %3021 = vmatmul.bf16.gmra.mxu3 %v2587_v37  ;;  %v2550_v33 = vld [vmem:[#allocation3 + $0xaa] sm:$0xff] }
 0x33c   : > { %v2158_v18 = vadd.f32 %v2157_v16, %v2069_v58  ;;  %2863 = vmatmul.bf16.gmra.mxu1 %v6052_v9  ;;  %v2081_v46 = vpop.f32.mrf.mxu3 }
 0x33d   : > { %v2162_v23 = vpop.f32.mrf.mxu0 }
 0x33e   : > { %v2206_v43 = vadd.f32 %v2158_v18, %v1554_v15  ;;  %2922 = vmatmul.bf16.gmra.mxu2 %v5973_v11  ;;  %v5004_v15 = vld [vmem:[#allocation9 + $0x48] sm:$0xff] }
 0x33f   : > { %3316 = vmatpush.bf16.msrb.mxu1 %v5004_v15 }
 0x340   : > { %v2238_v28 = vmax.f32 %v2206_v43, 0.0 }
 0x341   : > { %v1982_v60 = vpop.f32.mrf.mxu2  ;;  %v6058_v29 = vpop.f32.mrf.mxu1  ;;  %v2494_v11 = vld [vmem:[#allocation3 + $0x108] sm:$0xff] }
 0x342   : > { %2271 = vst [vmem:[#allocation3 + $0x111] sm:$0xff] %v2238_v28  ;;  %v2072_v36 = vadd.f32 %v2071_v61, %v1982_v60  ;;  %v6060_v53 = vpack.c.bf16 %v2238_v28, %v2237_v52  ;;  %v2551_v52 = vld [vmem:[#allocation3 + $0xb2] sm:$0xff] }
 0x344   : > { %v2161_v55 = vadd.f32 %v2160_v39, %v2072_v36  ;;  %v2083_v61 = vpop.f32.mrf.mxu3  ;;  %v6757_v39 = vld [vmem:[#allocation30_spill] sm:$0xff] }
 0x345   : > { %v2165_v35 = vpop.f32.mrf.mxu0  ;;  %v1559_v26 = vadd.f32 %v6757_v39, %v5897_v22 }
 0x346   : > { %v2207_v16 = vadd.f32 %v2161_v55, %v5894_v48 }
 0x348   : > { %v2239_v24 = vmax.f32 %v2207_v16, 0.0  ;;  %3249 = vmatmul.bf16.gmra.mxu0 %v5977_v6  ;;  %v2590_v6 = vpack.c.bf16 %v2551_v52, %v2550_v33 }
 0x349   : > { %v1984_v20 = vpop.f32.mrf.mxu2  ;;  %v6064_v2 = vpop.f32.mrf.mxu1  ;;  %v2495_v38 = vld [vmem:[#allocation3 + $0x110] sm:$0xff] }
 0x34a   : > { %2272 = vst [vmem:[#allocation3 + $0x121] sm:$0xff] %v2239_v24  ;;  %v2074_v40 = vadd.f32 %v2073_v56, %v1984_v20  ;;  %v6066_v21 = vpack.c.bf16 %v2495_v38, %v2494_v11  ;;  %3026 = vmatmul.bf16.gmra.mxu3 %v2590_v6  ;;  %v2553_v11 = vld [vmem:[#allocation3 + $0xca] sm:$0xff] }
 0x34c   : > { %v2163_v59 = vadd.f32 %v2162_v23, %v2074_v40  ;;  %2868 = vmatmul.bf16.gmra.mxu1 %v6066_v21  ;;  %v2086_v18 = vpop.f32.mrf.mxu3 }
 0x34d   : > { %v2167_v48 = vpop.f32.mrf.mxu0 }
 0x34e   : > { %v2208_v58 = vadd.f32 %v2163_v59, %v1559_v26  ;;  %2927 = vmatmul.bf16.gmra.mxu2 %v5988_v47 }
 0x350   : > { %v2240_v30 = vmax.f32 %v2208_v58, 0.0 }
 0x351   : > { %v1987_v62 = vpop.f32.mrf.mxu2  ;;  %v6072_v56 = vpop.f32.mrf.mxu1  ;;  %v2496_v36 = vld [vmem:[#allocation3 + $0x120] sm:$0xff] }
 0x352   : > { %2273 = vst [vmem:[#allocation3 + $0x129] sm:$0xff] %v2240_v30  ;;  %v2077_v44 = vadd.f32 %v2076_v0, %v1987_v62  ;;  %v6074_v37 = vpack.c.bf16 %v2240_v30, %v2239_v24  ;;  %v2552_v24 = vld [vmem:[#allocation3 + $0xc2] sm:$0xff] }
 0x354   : > { %v2166_v22 = vadd.f32 %v2165_v35, %v2077_v44  ;;  %v2088_v20 = vpop.f32.mrf.mxu3  ;;  %v1564_v35 = vadd.f32 %v5900_v12, %v5905_v10 }
 0x355   : > { %v2170_v23 = vpop.f32.mrf.mxu0 }
 0x356   : > { %v2209_v43 = vadd.f32 %v2166_v22, %v5902_v1  ;;  %v2554_v22 = vld [vmem:[#allocation3 + $0xda] sm:$0xff] }
 0x358   : > { %v2241_v28 = vmax.f32 %v2209_v43, 0.0  ;;  %3254 = vmatmul.bf16.gmra.mxu0 %v5992_v19  ;;  %v2593_v19 = vpack.c.bf16 %v2553_v11, %v2552_v24  ;;  %v2555_v43 = vld [vmem:[#allocation3 + $0xe2] sm:$0xff]  ;;  %v5003_v24 = vld [vmem:[#allocation9 + $0x40] sm:$0xff] }
 0x359   : > { %v1989_v47 = vpop.f32.mrf.mxu2  ;;  %v6078_v60 = vpop.f32.mrf.mxu1  ;;  %v2497_v55 = vld [vmem:[#allocation3 + $0x128] sm:$0xff]  ;;  %3317 = vmatpush.bf16.msrb.mxu1 %v5003_v24 }
 0x35a   : > { %2274 = vst [vmem:[#allocation3 + $0x139] sm:$0xff] %v2241_v28  ;;  %v2079_v16 = vadd.f32 %v2078_v13, %v1989_v47  ;;  %v6080_v0 = vpack.c.bf16 %v2497_v55, %v2496_v36  ;;  %3031 = vmatmul.bf16.gmra.mxu3 %v2593_v19 }
 0x35c   : > { %v2168_v38 = vadd.f32 %v2167_v48, %v2079_v16  ;;  %2873 = vmatmul.bf16.gmra.mxu1 %v6080_v0  ;;  %v2091_v26 = vpop.f32.mrf.mxu3 }
 0x35d   : > { %v2172_v1 = vpop.f32.mrf.mxu0 }
 0x35e   : > { %v2210_v40 = vadd.f32 %v2168_v38, %v1564_v35  ;;  %2932 = vmatmul.bf16.gmra.mxu2 %v6000_v17 }
 0x360   : > { %v2242_v33 = vmax.f32 %v2210_v40, 0.0 }
 0x361   : > { %v1992_v52 = vpop.f32.mrf.mxu2  ;;  %v6086_v13 = vpop.f32.mrf.mxu1  ;;  %v2498_v17 = vld [vmem:[#allocation3 + $0x138] sm:$0xff] }
 0x362   : > { %2275 = vst [vmem:[#allocation3 + $0x141] sm:$0xff] %v2242_v33  ;;  %v2082_v39 = vadd.f32 %v2081_v46, %v1992_v52  ;;  %v6088_v59 = vpack.c.bf16 %v2242_v33, %v2241_v28  ;;  %v2596_v28 = vpack.c.bf16 %v2555_v43, %v2554_v22 }
 0x364   : > { %v2171_v6 = vadd.f32 %v2170_v23, %v2082_v39  ;;  %v6096_v46 = vpop.f32.mrf.mxu3  ;;  %v1569_v23 = vadd.f32 %v5909_v8, %v5914_v14 }
 0x365   : > { %v2175_v12 = vpop.f32.mrf.mxu0 }
 0x366   : > { %v2211_v10 = vadd.f32 %v2171_v6, %v5911_v4  ;;  %v2556_v6 = vld [vmem:[#allocation3 + $0xf2] sm:$0xff] }
 0x368   : > { %v2243_v48 = vmax.f32 %v2211_v10, 0.0  ;;  %3259 = vmatmul.bf16.gmra.mxu0 %v6004_v49  ;;  %v1574_v10 = vadd.f32 %v5921_v45, %v5924_v27  ;;  %v5050_v27 = vld [vmem:[#allocation9 + $0x1b8] sm:$0xff] }
 0x369   : > { %v1994_v58 = vpop.f32.mrf.mxu2  ;;  %v6092_v30 = vpop.f32.mrf.mxu1  ;;  %v2499_v62 = vld [vmem:[#allocation3 + $0x140] sm:$0xff]  ;;  %3825 = vmatpush.bf16.msra.mxu3 %v5050_v27  ;;  %v2561_v27 = vld [vmem:[#allocation3 + $0x12a] sm:$0xff] }
 0x36a   : > { %2276 = vst [vmem:[#allocation3 + $0x151] sm:$0xff] %v2243_v48  ;;  %v2084_v44 = vadd.f32 %v2083_v61, %v1994_v58  ;;  %v6094_v15 = vpack.c.bf16 %v2499_v62, %v2498_v17  ;;  %3036 = vmatmul.bf16.gmra.mxu3 %v2596_v28 }
 0x36c   : > { %v2173_v4 = vadd.f32 %v2172_v1, %v2084_v44  ;;  %2878 = vmatmul.bf16.gmra.mxu1 %v6094_v15 }
 0x36d   : > { %v2177_v49 = vpop.f32.mrf.mxu0  ;;  %v6104_v11 = vpop.f32.mrf.mxu3 }
 0x36e   : > { %v2212_v47 = vadd.f32 %v2173_v4, %v1569_v23  ;;  %2937 = vmatmul.bf16.gmra.mxu2 %v6010_v51  ;;  %v5018_v23 = vld [vmem:[#allocation9 + $0xb8] sm:$0xff] }
 0x36f   : > { %3399 = vmatpush.bf16.msra.mxu2 %v5018_v23 }
 0x370   : > { %v2244_v36 = vmax.f32 %v2212_v47, 0.0 }
 0x371   : > { %v1997_v61 = vpop.f32.mrf.mxu2  ;;  %v6102_v55 = vpop.f32.mrf.mxu1  ;;  %v2500_v40 = vld [vmem:[#allocation3 + $0x150] sm:$0xff] }
 0x372   : > { %2277 = vst [vmem:[#allocation3 + $0x159] sm:$0xff] %v2244_v36  ;;  %v2087_v16 = vadd.f32 %v2086_v18, %v1997_v61  ;;  %v6106_v35 = vpack.c.bf16 %v2244_v36, %v2243_v48 }
 0x374   : > { %v2176_v8 = vadd.f32 %v2175_v12, %v2087_v16  ;;  %v2557_v12 = vld [vmem:[#allocation3 + $0xfa] sm:$0xff] }
 0x375   : > { %v2180_v14 = vpop.f32.mrf.mxu0  ;;  %v6114_v39 = vpop.f32.mrf.mxu3  ;;  %v2599_v48 = vpack.c.bf16 %v2557_v12, %v2556_v6 }
 0x376   : > { %v2213_v38 = vadd.f32 %v2176_v8, %v5918_v34  ;;  %v2558_v8 = vld [vmem:[#allocation3 + $0x10a] sm:$0xff] }
 0x378   : > { %v2245_v1 = vmax.f32 %v2213_v38, 0.0  ;;  %3264 = vmatmul.bf16.gmra.mxu0 %v6014_v57 }
 0x379   : > { %v1999_v51 = vpop.f32.mrf.mxu2  ;;  %v6110_v19 = vpop.f32.mrf.mxu1  ;;  %v2501_v33 = vld [vmem:[#allocation3 + $0x158] sm:$0xff] }
 0x37a   : > { %2278 = vst [vmem:[#allocation3 + $0x169] sm:$0xff] %v2245_v1  ;;  %v2089_v18 = vadd.f32 %v2088_v20, %v1999_v51  ;;  %v6112_v52 = vpack.c.bf16 %v2501_v33, %v2500_v40  ;;  %3041 = vmatmul.bf16.gmra.mxu3 %v2599_v48 }
 0x37c   : > { %v2178_v34 = vadd.f32 %v2177_v49, %v2089_v18  ;;  %2883 = vmatmul.bf16.gmra.mxu1 %v6112_v52 }
 0x37d   : > { %v2182_v57 = vpop.f32.mrf.mxu0  ;;  %v6122_v22 = vpop.f32.mrf.mxu3 }
 0x37e   : > { %v2214_v58 = vadd.f32 %v2178_v34, %v1574_v10  ;;  %2942 = vmatmul.bf16.gmra.mxu2 %v6020_v31 }
 0x380   : > { %v2246_v17 = vmax.f32 %v2214_v58, 0.0 }
 0x381   : > { %v2002_v20 = vpop.f32.mrf.mxu2  ;;  %v6120_v62 = vpop.f32.mrf.mxu1  ;;  %v2502_v36 = vld [vmem:[#allocation3 + $0x168] sm:$0xff] }
 0x382   : > { %2279 = vst [vmem:[#allocation3 + $0x171] sm:$0xff] %v2246_v17  ;;  %v2092_v44 = vadd.f32 %v2091_v26, %v2002_v20  ;;  %v6124_v43 = vpack.c.bf16 %v2246_v17, %v2245_v1  ;;  %v5066_v1 = vld [vmem:[#allocation9 + $0x238] sm:$0xff] }
 0x383   : > { %4003 = vmatpush.bf16.msra.mxu1 %v5066_v1 }
 0x384   : > { %v2181_v45 = vadd.f32 %v2180_v14, %v2092_v44  ;;  %v2559_v14 = vld [vmem:[#allocation3 + $0x112] sm:$0xff] }
 0x385   : > { %v3230_v4 = vpop.f32.mrf.mxu0  ;;  %v6133_v24 = vpop.f32.mrf.mxu3  ;;  %v2602_v40 = vpack.c.bf16 %v2559_v14, %v2558_v8  ;;  %v2315_v14 = vld [vmem:[#allocation3 + $0x9] sm:$0xff] }
 0x386   : > { %v2215_v49 = vadd.f32 %v2181_v45, %v5928_v25  ;;  %v1579_v25 = vadd.f32 %v6030_v5, %v5932_v41 }
 0x388   : > { %v2247_v31 = vmax.f32 %v2215_v49, 0.0  ;;  %3269 = vmatmul.bf16.gmra.mxu0 %v6024_v63  ;;  %v5058_v63 = vld [vmem:[#allocation9 + $0x1f8] sm:$0xff] }
 0x389   : > { %v2004_v28 = vpop.f32.mrf.mxu2  ;;  %v6128_v47 = vpop.f32.mrf.mxu1  ;;  %v2503_v26 = vld [vmem:[#allocation3 + $0x170] sm:$0xff]  ;;  %3914 = vmatpush.bf16.msra.mxu0 %v5058_v63 }
 0x38a   : > { %2280 = vst [vmem:[#allocation3 + $0x181] sm:$0xff] %v2247_v31  ;;  %v2094_v61 = vadd.f32 %v6096_v46, %v2004_v28  ;;  %v6131_v16 = vpack.c.bf16 %v2503_v26, %v2502_v36  ;;  %3046 = vmatmul.bf16.gmra.mxu3 %v2602_v40  ;;  %v5049_v26 = vld [vmem:[#allocation9 + $0x1b0] sm:$0xff] }
 0x38b   : > { %3826 = vmatpush.bf16.msra.mxu3 %v5049_v26 }
 0x38c   : > { %v2183_v38 = vadd.f32 %v2182_v57, %v2094_v61  ;;  %2888 = vmatmul.bf16.gmra.mxu1 %v6131_v16  ;;  %v5017_v61 = vld [vmem:[#allocation9 + $0xb0] sm:$0xff] }
 0x38d   : > { %v3232_v51 = vpop.f32.mrf.mxu0  ;;  %v3007_v5 = vpop.f32.mrf.mxu3  ;;  %3400 = vmatpush.bf16.msra.mxu2 %v5017_v61 }
 0x38e   : > { %v2216_v33 = vadd.f32 %v2183_v38, %v1579_v25  ;;  %2947 = vmatmul.bf16.gmra.mxu2 %v6032_v50 }
 0x390   : > { %v2248_v46 = vmax.f32 %v2216_v33, 0.0  ;;  %v5057_v33 = vld [vmem:[#allocation9 + $0x1f0] sm:$0xff] }
 0x391   : > { %v6139_v18 = vpop.f32.mrf.mxu1  ;;  %v2908_v6 = vpop.f32.mrf.mxu2  ;;  %v2504_v58 = vld [vmem:[#allocation3 + $0x180] sm:$0xff]  ;;  %3915 = vmatpush.bf16.msra.mxu0 %v5057_v33  ;;  %v2567_v33 = vld [vmem:[#allocation3 + $0x172] sm:$0xff] }
 0x392   : > { %2281 = vst [vmem:[#allocation3 + $0x189] sm:$0xff] %v2248_v46  ;;  %v2909_v41 = vadd.f32 %v2908_v6, %v6036_v3  ;;  %v6142_v12 = vpack.c.bf16 %v2248_v46, %v2247_v31  ;;  %v2560_v3 = vld [vmem:[#allocation3 + $0x122] sm:$0xff] }
 0x393   : > { %v2605_v49 = vpack.c.bf16 %v2561_v27, %v2560_v3  ;;  %v5065_v46 = vld [vmem:[#allocation9 + $0x230] sm:$0xff] }
 0x394   : > { %v2998_v10 = vadd.f32 %v6104_v11, %v2909_v41  ;;  %4004 = vmatpush.bf16.msra.mxu1 %v5065_v46  ;;  %v2316_v3 = vld [vmem:[#allocation3 + $0x19] sm:$0xff] }
 0x395   : > { %v3235_v34 = vpop.f32.mrf.mxu0  ;;  %v3009_v45 = vpop.f32.mrf.mxu3 }
 0x396   : > { %v6145_v57 = vadd.f32 %v3230_v4, %v2998_v10 }
 0x398   : > { %3274 = vmatmul.bf16.gmra.mxu0 %v6038_v42 }
 0x399   : > { %v6148_v50 = vpop.f32.mrf.mxu1  ;;  %v2910_v48 = vpop.f32.mrf.mxu2  ;;  %v2505_v17 = vld [vmem:[#allocation3 + $0x188] sm:$0xff] }
 0x39a   : > { %v2911_v20 = vadd.f32 %v2910_v48, %v6044_v7  ;;  %v2615_v44 = vpack.c.bf16 %v2505_v17, %v2504_v58  ;;  %3051 = vmatmul.bf16.gmra.mxu3 %v2605_v49  ;;  %v2564_v49 = vld [vmem:[#allocation3 + $0x152] sm:$0xff] }
 0x39c   : > { %v3000_v23 = vadd.f32 %v6114_v39, %v2911_v20  ;;  %2893 = vmatmul.bf16.gmra.mxu1 %v2615_v44  ;;  %v2314_v39 = vld [vmem:[#allocation3 + $0x1] sm:$0xff] }
 0x39d   : > { %v3237_v11 = vpop.f32.mrf.mxu0  ;;  %v3012_v7 = vpop.f32.mrf.mxu3  ;;  %v2317_v20 = vld [vmem:[#allocation3 + $0x21] sm:$0xff] }
 0x39e   : > { %2952 = vmatmul.bf16.gmra.mxu2 %v6046_v54  ;;  %v6153_v4 = vadd.f32 %v3232_v51, %v3000_v23  ;;  %v2379_v54 = vpack.c.bf16 %v2315_v14, %v2314_v39  ;;  %v2562_v51 = vld [vmem:[#allocation3 + $0x13a] sm:$0xff]  ;;  %v2382_v23 = vpack.c.bf16 %v2317_v20, %v2316_v3 }
 0x39f   : > { %v5048_v39 = vld [vmem:[#allocation9 + $0x1a8] sm:$0xff] }
 0x3a0   : > { %v5016_v14 = vld [vmem:[#allocation9 + $0xa8] sm:$0xff]  ;;  %3827 = vmatpush.bf16.msra.mxu3 %v5048_v39 }
 0x3a1   : > { %v6155_v42 = vpop.f32.mrf.mxu1  ;;  %v2913_v31 = vpop.f32.mrf.mxu2  ;;  %3401 = vmatpush.bf16.msra.mxu2 %v5016_v14  ;;  %v5046_v14 = vld [vmem:[#allocation9 + $0x198] sm:$0xff] }
 0x3a2   : > { %v2914_v28 = vadd.f32 %v2913_v31, %v6050_v32  ;;  %v2565_v31 = vld [vmem:[#allocation3 + $0x15a] sm:$0xff] }
 0x3a4   : > { %v3003_v36 = vadd.f32 %v6122_v22, %v2914_v28  ;;  %v2563_v22 = vld [vmem:[#allocation3 + $0x142] sm:$0xff] }
 0x3a5   : > { %v3240_v8 = vpop.f32.mrf.mxu0  ;;  %v3014_v1 = vpop.f32.mrf.mxu3  ;;  %v2608_v41 = vpack.c.bf16 %v2563_v22, %v2562_v51  ;;  %v2318_v51 = vld [vmem:[#allocation3 + $0x31] sm:$0xff] }
 0x3a6   : > { %v6159_v25 = vadd.f32 %v3235_v34, %v3003_v36 }
 0x3a8   : > { %3279 = vmatmul.bf16.gmra.mxu0 %v6052_v9 }
 0x3a9   : > { %v6162_v38 = vpop.f32.mrf.mxu1  ;;  %v2915_v63 = vpop.f32.mrf.mxu2 }
 0x3aa   : > { %v2916_v32 = vadd.f32 %v2915_v63, %v6058_v29  ;;  %3056 = vmatmul.bf16.gmra.mxu3 %v2608_v41  ;;  %v2319_v63 = vld [vmem:[#allocation3 + $0x39] sm:$0xff] }
 0x3ab   : > { %v5064_v41 = vld [vmem:[#allocation9 + $0x228] sm:$0xff] }
 0x3ac   : > { %v3005_v40 = vadd.f32 %v6133_v24, %v2916_v32  ;;  %3318 = vmatmul.bf16.vlgmr.msrb.gmra.mxu1 %v2379_v54 }
 0x3ad   : > { %v3242_v6 = vpop.f32.mrf.mxu0  ;;  %v3017_v48 = vpop.f32.mrf.mxu3  ;;  %4005 = vmatpush.bf16.msra.mxu1 %v5064_v41  ;;  %v5044_v41 = vld [vmem:[#allocation9 + $0x188] sm:$0xff] }
 0x3ae   : > { %2957 = vmatmul.bf16.gmra.mxu2 %v6060_v53  ;;  %v6167_v10 = vadd.f32 %v3237_v11, %v3005_v40 }
 0x3b1   : > { %v6169_v9 = vpop.f32.mrf.mxu1  ;;  %v2918_v29 = vpop.f32.mrf.mxu2 }
 0x3b2   : > { %v2919_v34 = vadd.f32 %v2918_v29, %v6064_v2 }
 0x3b4   : > { %v3008_v58 = vadd.f32 %v3007_v5, %v2919_v34  ;;  %v2611_v5 = vpack.c.bf16 %v2565_v31, %v2564_v49  ;;  %v2320_v49 = vld [vmem:[#allocation3 + $0x49] sm:$0xff] }
 0x3b5   : > { %v3245_v24 = vpop.f32.mrf.mxu0  ;;  %v3019_v11 = vpop.f32.mrf.mxu3 }
 0x3b6   : > { %v6172_v17 = vadd.f32 %v3240_v8, %v3008_v58 }
 0x3b8   : > { %3284 = vmatmul.bf16.gmra.mxu0 %v6066_v21 }
 0x3b9   : > { %v6175_v44 = vpop.f32.mrf.mxu1  ;;  %v2920_v53 = vpop.f32.mrf.mxu2 }
 0x3ba   : > { %v2921_v27 = vadd.f32 %v2920_v53, %v6072_v56  ;;  %3061 = vmatmul.bf16.gmra.mxu3 %v2611_v5  ;;  %v2569_v5 = vld [vmem:[#allocation3 + $0x18a] sm:$0xff] }
 0x3bc   : > { %v3010_v28 = vadd.f32 %v3009_v45, %v2921_v27  ;;  %3323 = vmatmul.bf16.gmra.mxu1 %v2382_v23  ;;  %v2321_v27 = vld [vmem:[#allocation3 + $0x51] sm:$0xff] }
 0x3bd   : > { %v3247_v2 = vpop.f32.mrf.mxu0  ;;  %v6184_v8 = vpop.f32.mrf.mxu3 }
 0x3be   : > { %2962 = vmatmul.bf16.gmra.mxu2 %v6074_v37  ;;  %v6179_v36 = vadd.f32 %v3242_v6, %v3010_v28  ;;  %v5056_v6 = vld [vmem:[#allocation9 + $0x1e8] sm:$0xff]  ;;  %v6211_v28 = vpack.c.bf16 %v2321_v27, %v2320_v49  ;;  %v2322_v27 = vld [vmem:[#allocation3 + $0x61] sm:$0xff] }
 0x3bf   : > { %3916 = vmatpush.bf16.msra.mxu0 %v5056_v6 }
 0x3c1   : > { %v6181_v21 = vpop.f32.mrf.mxu1  ;;  %v2923_v26 = vpop.f32.mrf.mxu2 }
 0x3c2   : > { %v2924_v61 = vadd.f32 %v2923_v26, %v6078_v60  ;;  %v6192_v60 = vpack.c.bf16 %v2319_v63, %v2318_v51  ;;  %v5054_v63 = vld [vmem:[#allocation9 + $0x1d8] sm:$0xff] }
 0x3c4   : > { %v3013_v56 = vadd.f32 %v3012_v7, %v2924_v61  ;;  %v2566_v7 = vld [vmem:[#allocation3 + $0x16a] sm:$0xff] }
 0x3c5   : > { %v3250_v54 = vpop.f32.mrf.mxu0  ;;  %v6194_v40 = vpop.f32.mrf.mxu3  ;;  %v2614_v34 = vpack.c.bf16 %v2567_v33, %v2566_v7  ;;  %v5047_v61 = vld [vmem:[#allocation9 + $0x1a0] sm:$0xff]  ;;  %v5013_v7 = vld [vmem:[#allocation9 + $0x90] sm:$0xff] }
 0x3c6   : > { %v6186_v45 = vadd.f32 %v3245_v24, %v3013_v56  ;;  %v5055_v56 = vld [vmem:[#allocation9 + $0x1e0] sm:$0xff]  ;;  %3828 = vmatpush.bf16.msra.mxu3 %v5047_v61  ;;  %v5045_v33 = vld [vmem:[#allocation9 + $0x190] sm:$0xff] }
 0x3c7   : > { %3917 = vmatpush.bf16.msra.mxu0 %v5055_v56 }
 0x3c8   : > { %3289 = vmatmul.bf16.gmra.mxu0 %v6080_v0 }
 0x3c9   : > { %v6189_v37 = vpop.f32.mrf.mxu1  ;;  %v2925_v32 = vpop.f32.mrf.mxu2 }
 0x3ca   : > { %v2926_v22 = vadd.f32 %v2925_v32, %v6086_v13  ;;  %3066 = vmatmul.bf16.gmra.mxu3 %v2614_v34  ;;  %v2323_v34 = vld [vmem:[#allocation3 + $0x69] sm:$0xff] }
 0x3cb   : > { %3829 = vmatpush.bf16.msra.mxu3 %v5046_v14  ;;  %3918 = vmatpush.bf16.msra.mxu0 %v5054_v63 }
 0x3cc   : > { %v3015_v46 = vadd.f32 %v3014_v1, %v2926_v22  ;;  %3328 = vmatmul.bf16.gmra.mxu1 %v6192_v60 }
 0x3cd   : > { %v3252_v29 = vpop.f32.mrf.mxu0  ;;  %v6203_v20 = vpop.f32.mrf.mxu3 }
 0x3ce   : > { %2967 = vmatmul.bf16.gmra.mxu2 %v6088_v59  ;;  %v6198_v0 = vadd.f32 %v3247_v2, %v3015_v46  ;;  %v5053_v46 = vld [vmem:[#allocation9 + $0x1d0] sm:$0xff] }
 0x3cf   : > { %3830 = vmatpush.bf16.msra.mxu3 %v5045_v33  ;;  %3919 = vmatpush.bf16.msra.mxu0 %v5053_v46 }
 0x3d1   : > { %v6200_v13 = vpop.f32.mrf.mxu1  ;;  %v2928_v58 = vpop.f32.mrf.mxu2 }
 0x3d2   : > { %v2929_v24 = vadd.f32 %v2928_v58, %v6092_v30  ;;  %v2568_v30 = vld [vmem:[#allocation3 + $0x182] sm:$0xff]  ;;  %v5012_v58 = vld [vmem:[#allocation9 + $0x88] sm:$0xff] }
 0x3d3   : > { %3831 = vmatpush.bf16.msra.mxu3 %v5044_v41 }
 0x3d4   : > { %v3018_v1 = vadd.f32 %v3017_v48, %v2929_v24  ;;  %v5015_v48 = vld [vmem:[#allocation9 + $0xa0] sm:$0xff] }
 0x3d5   : > { %v3255_v53 = vpop.f32.mrf.mxu0  ;;  %v6213_v2 = vpop.f32.mrf.mxu3  ;;  %3402 = vmatpush.bf16.msra.mxu2 %v5015_v48  ;;  %v5063_v48 = vld [vmem:[#allocation9 + $0x220] sm:$0xff] }
 0x3d6   : > { %v6205_v3 = vadd.f32 %v3250_v54, %v3018_v1  ;;  %4006 = vmatpush.bf16.msra.mxu1 %v5063_v48 }
 0x3d8   : > { %3294 = vmatmul.bf16.gmra.mxu0 %v6094_v15  ;;  %v2617_v15 = vpack.c.bf16 %v2569_v5, %v2568_v30  ;;  %v5011_v30 = vld [vmem:[#allocation9 + $0x80] sm:$0xff] }
 0x3d9   : > { %v6208_v59 = vpop.f32.mrf.mxu1  ;;  %v2930_v23 = vpop.f32.mrf.mxu2  ;;  %v5043_v5 = vld [vmem:[#allocation9 + $0x180] sm:$0xff] }
 0x3da   : > { %v2931_v31 = vadd.f32 %v2930_v23, %v6102_v55  ;;  %v5014_v55 = vld [vmem:[#allocation9 + $0x98] sm:$0xff]  ;;  %3071 = vmatmul.bf16.gmra.mxu3 %v2617_v15  ;;  %v6231_v23 = vpack.c.bf16 %v2323_v34, %v2322_v27 }
 0x3db   : > { %3403 = vmatpush.bf16.msra.mxu2 %v5014_v55  ;;  %3832 = vmatpush.bf16.msra.mxu3 %v5043_v5  ;;  %v2347_v5 = vld [vmem:[#allocation3 + $0xa] sm:$0xff] }
 0x3dc   : > { %v3020_v26 = vadd.f32 %v3019_v11, %v2931_v31  ;;  %3333 = vmatmul.bf16.gmra.mxu1 %v6211_v28 }
 0x3dd   : > { %v3257_v39 = vpop.f32.mrf.mxu0  ;;  %v6222_v22 = vpop.f32.mrf.mxu3 }
 0x3de   : > { %2972 = vmatmul.bf16.gmra.mxu2 %v6106_v35  ;;  %v6217_v54 = vadd.f32 %v3252_v29, %v3020_v26 }
 0x3df   : > { %3404 = vmatpush.bf16.msra.mxu2 %v5013_v7  ;;  %v2324_v7 = vld [vmem:[#allocation3 + $0x79] sm:$0xff] }
 0x3e1   : > { %v6219_v32 = vpop.f32.mrf.mxu1  ;;  %v2933_v11 = vpop.f32.mrf.mxu2 }
 0x3e2   : > { %v2934_v51 = vadd.f32 %v2933_v11, %v6110_v19  ;;  %v5052_v19 = vld [vmem:[#allocation9 + $0x1c8] sm:$0xff] }
 0x3e3   : > { %3405 = vmatpush.bf16.msra.mxu2 %v5012_v58  ;;  %3920 = vmatpush.bf16.msra.mxu0 %v5052_v19 }
 0x3e4   : > { %v3023_v35 = vadd.f32 %v6184_v8, %v2934_v51 }
 0x3e5   : > { %v3260_v6 = vpop.f32.mrf.mxu0  ;;  %v3034_v49 = vpop.f32.mrf.mxu3 }
 0x3e6   : > { %v6225_v29 = vadd.f32 %v3255_v53, %v3023_v35  ;;  %v3490_v53 = vld [vmem:[#allocation3 + $0x38] sm:$0xff] }
 0x3e7   : > { %3406 = vmatpush.bf16.msra.mxu2 %v5011_v30  ;;  %v2346_v30 = vld [vmem:[#allocation3 + $0x2] sm:$0xff] }
 0x3e8   : > { %3299 = vmatmul.bf16.gmra.mxu0 %v6112_v52  ;;  %v5051_v52 = vld [vmem:[#allocation9 + $0x1c0] sm:$0xff] }
 0x3e9   : > { %v6228_v24 = vpop.f32.mrf.mxu1  ;;  %v2935_v1 = vpop.f32.mrf.mxu2  ;;  %3921 = vmatpush.bf16.msra.mxu0 %v5051_v52 }
 0x3ea   : > { %v2936_v8 = vadd.f32 %v2935_v1, %v6120_v62  ;;  %v3489_v62 = vld [vmem:[#allocation3 + $0x30] sm:$0xff] }
 0x3eb   : > { %v3585_v56 = vpack.c.bf16 %v3490_v53, %v3489_v62 }
 0x3ec   : > { %v3025_v31 = vadd.f32 %v6194_v40, %v2936_v8  ;;  %3338 = vmatmul.bf16.gmra.mxu1 %v6231_v23 }
 0x3ed   : > { %v3262_v26 = vpop.f32.mrf.mxu0  ;;  %3833 = vmatmul.bf16.vlgmr.msra.gmra.mxu3 %v3585_v56  ;;  %v3037_v55 = vpop.f32.mrf.mxu3 }
 0x3ee   : > { %2977 = vmatmul.bf16.gmra.mxu2 %v6124_v43  ;;  %v6236_v61 = vadd.f32 %v3257_v39, %v3025_v31  ;;  %v2325_v43 = vld [vmem:[#allocation3 + $0x81] sm:$0xff]  ;;  %v2327_v31 = vld [vmem:[#allocation3 + $0x99] sm:$0xff] }
 0x3ef   : > { %v6248_v46 = vpack.c.bf16 %v2325_v43, %v2324_v7 }
 0x3f1   : > { %v6238_v15 = vpop.f32.mrf.mxu1  ;;  %v2938_v40 = vpop.f32.mrf.mxu2 }
 0x3f2   : > { %v2939_v14 = vadd.f32 %v2938_v40, %v6128_v47 }
 0x3f4   : > { %v3028_v63 = vadd.f32 %v6203_v20, %v2939_v14  ;;  %v3492_v20 = vld [vmem:[#allocation3 + $0x50] sm:$0xff]  ;;  %v3494_v14 = vld [vmem:[#allocation3 + $0x68] sm:$0xff] }
 0x3f5   : > { %v3265_v11 = vpop.f32.mrf.mxu0  ;;  %v3039_v41 = vpop.f32.mrf.mxu3 }
 0x3f6   : > { %v6242_v51 = vadd.f32 %v3260_v6, %v3028_v63  ;;  %v3491_v6 = vld [vmem:[#allocation3 + $0x48] sm:$0xff] }
 0x3f8   : > { %3304 = vmatmul.bf16.gmra.mxu0 %v6131_v16  ;;  %v3588_v16 = vpack.c.bf16 %v3492_v20, %v3491_v6  ;;  %v2329_v6 = vld [vmem:[#allocation3 + $0xb1] sm:$0xff] }
 0x3f9   : > { %v6245_v39 = vpop.f32.mrf.mxu1  ;;  %v2940_v35 = vpop.f32.mrf.mxu2 }
 0x3fa   : > { %v2941_v33 = vadd.f32 %v2940_v35, %v6139_v18 }
 0x3fc   : > { %v3030_v47 = vadd.f32 %v6213_v2, %v2941_v33  ;;  %3343 = vmatmul.bf16.gmra.mxu1 %v6248_v46 }
 0x3fd   : > { %v3267_v34 = vpop.f32.mrf.mxu0  ;;  %3838 = vmatmul.bf16.gmra.mxu3 %v3588_v16  ;;  %v3042_v27 = vpop.f32.mrf.mxu3 }
 0x3fe   : > { %2982 = vmatmul.bf16.gmra.mxu2 %v6142_v12  ;;  %v6253_v58 = vadd.f32 %v3262_v26, %v3030_v47  ;;  %v2326_v26 = vld [vmem:[#allocation3 + $0x91] sm:$0xff] }
 0x3ff   : > { %v6265_v62 = vpack.c.bf16 %v2327_v31, %v2326_v26  ;;  %v3495_v26 = vld [vmem:[#allocation3 + $0x78] sm:$0xff] }
 0x401   : > { %v6255_v19 = vpop.f32.mrf.mxu1  ;;  %v2943_v1 = vpop.f32.mrf.mxu2 }
 0x402   : > { %v2944_v18 = vadd.f32 %v2943_v1, %v6148_v50  ;;  %v2380_v50 = vpack.c.bf16 %v2347_v5, %v2346_v30 }
 0x404   : > { %v3033_v8 = vadd.f32 %v6222_v22, %v2944_v18  ;;  %v5062_v22 = vld [vmem:[#allocation9 + $0x218] sm:$0xff]  ;;  %v2348_v18 = vld [vmem:[#allocation3 + $0x1a] sm:$0xff] }
 0x405   : > { %v3270_v2 = vpop.f32.mrf.mxu0  ;;  %v3044_v56 = vpop.f32.mrf.mxu3  ;;  %4007 = vmatpush.bf16.msra.mxu1 %v5062_v22 }
 0x406   : > { %v6259_v53 = vadd.f32 %v3265_v11, %v3033_v8  ;;  %v3493_v11 = vld [vmem:[#allocation3 + $0x60] sm:$0xff] }
 0x407   : > { %v3591_v43 = vpack.c.bf16 %v3494_v14, %v3493_v11  ;;  %v2349_v8 = vld [vmem:[#allocation3 + $0x22] sm:$0xff] }
 0x408   : > { %3922 = vmatmul.bf16.vlgmr.msra.gmra.mxu0 %v6192_v60 }
 0x409   : > { %v6262_v12 = vpop.f32.mrf.mxu1  ;;  %v2945_v52 = vpop.f32.mrf.mxu2 }
 0x40a   : > { %v2946_v48 = vadd.f32 %v2945_v52, %v6155_v42 }
 0x40c   : > { %v3035_v40 = vadd.f32 %v3034_v49, %v2946_v48  ;;  %3348 = vmatmul.bf16.gmra.mxu1 %v6265_v62 }
 0x40d   : > { %v3272_v63 = vpop.f32.mrf.mxu0  ;;  %3843 = vmatmul.bf16.gmra.mxu3 %v3591_v43  ;;  %v3047_v33 = vpop.f32.mrf.mxu3  ;;  %v2331_v43 = vld [vmem:[#allocation3 + $0xc9] sm:$0xff] }
 0x40e   : > { %3407 = vmatmul.bf16.vlgmr.msra.gmra.mxu2 %v2380_v50  ;;  %v6268_v60 = vadd.f32 %v3267_v34, %v3035_v40  ;;  %v2328_v34 = vld [vmem:[#allocation3 + $0xa9] sm:$0xff] }
 0x40f   : > { %v6279_v30 = vpack.c.bf16 %v2329_v6, %v2328_v34  ;;  %v2351_v6 = vld [vmem:[#allocation3 + $0x3a] sm:$0xff] }
 0x411   : > { %v6270_v35 = vpop.f32.mrf.mxu1  ;;  %v2948_v7 = vpop.f32.mrf.mxu2 }
 0x412   : > { %v2949_v42 = vadd.f32 %v2948_v7, %v6162_v38 }
 0x414   : > { %v3038_v47 = vadd.f32 %v3037_v55, %v2949_v42  ;;  %v2383_v55 = vpack.c.bf16 %v2349_v8, %v2348_v18  ;;  %v5061_v8 = vld [vmem:[#allocation9 + $0x210] sm:$0xff] }
 0x415   : > { %v3275_v49 = vpop.f32.mrf.mxu0  ;;  %v3049_v5 = vpop.f32.mrf.mxu3  ;;  %4008 = vmatpush.bf16.msra.mxu1 %v5061_v8  ;;  %v3499_v8 = vld [vmem:[#allocation3 + $0xa8] sm:$0xff] }
 0x416   : > { %v6273_v20 = vadd.f32 %v3270_v2, %v3038_v47  ;;  %v3496_v2 = vld [vmem:[#allocation3 + $0x80] sm:$0xff] }
 0x417   : > { %v3594_v48 = vpack.c.bf16 %v3496_v2, %v3495_v26  ;;  %v2330_v47 = vld [vmem:[#allocation3 + $0xc1] sm:$0xff] }
 0x418   : > { %3927 = vmatmul.bf16.gmra.mxu0 %v6211_v28  ;;  %v6294_v18 = vpack.c.bf16 %v2331_v43, %v2330_v47  ;;  %v2333_v43 = vld [vmem:[#allocation3 + $0xe1] sm:$0xff]  ;;  %v2352_v47 = vld [vmem:[#allocation3 + $0x4a] sm:$0xff] }
 0x419   : > { %v6276_v16 = vpop.f32.mrf.mxu1  ;;  %v2950_v1 = vpop.f32.mrf.mxu2 }
 0x41a   : > { %v2951_v31 = vadd.f32 %v2950_v1, %v6169_v9 }
 0x41c   : > { %v3040_v38 = vadd.f32 %v3039_v41, %v2951_v31  ;;  %3353 = vmatmul.bf16.gmra.mxu1 %v6279_v30 }
 0x41d   : > { %v3277_v52 = vpop.f32.mrf.mxu0  ;;  %3848 = vmatmul.bf16.gmra.mxu3 %v3594_v48  ;;  %v3052_v22 = vpop.f32.mrf.mxu3 }
 0x41e   : > { %3412 = vmatmul.bf16.gmra.mxu2 %v2383_v55  ;;  %v6282_v28 = vadd.f32 %v3272_v63, %v3040_v38  ;;  %v2350_v63 = vld [vmem:[#allocation3 + $0x32] sm:$0xff] }
 0x41f   : > { %v3497_v38 = vld [vmem:[#allocation3 + $0x90] sm:$0xff] }
 0x421   : > { %v6284_v50 = vpop.f32.mrf.mxu1  ;;  %v2953_v40 = vpop.f32.mrf.mxu2 }
 0x422   : > { %v2954_v9 = vadd.f32 %v2953_v40, %v6175_v44 }
 0x424   : > { %v3043_v14 = vadd.f32 %v3042_v27, %v2954_v9 }
 0x425   : > { %v3280_v11 = vpop.f32.mrf.mxu0  ;;  %v3054_v44 = vpop.f32.mrf.mxu3 }
 0x426   : > { %v6287_v41 = vadd.f32 %v3275_v49, %v3043_v14  ;;  %v6297_v49 = vpack.c.bf16 %v2351_v6, %v2350_v63  ;;  %v2353_v63 = vld [vmem:[#allocation3 + $0x52] sm:$0xff] }
 0x428   : > { %3932 = vmatmul.bf16.gmra.mxu0 %v6231_v23  ;;  %v3498_v23 = vld [vmem:[#allocation3 + $0x98] sm:$0xff] }
 0x429   : > { %v2955_v7 = vpop.f32.mrf.mxu2  ;;  %v3319_v42 = vpop.f32.mrf.mxu1 }
 0x42a   : > { %v2956_v1 = vadd.f32 %v2955_v7, %v6181_v21  ;;  %v6292_v34 = vadd.f32 %v3319_v42, %v6145_v57  ;;  %v3597_v21 = vpack.c.bf16 %v3498_v23, %v3497_v38  ;;  %v2332_v42 = vld [vmem:[#allocation3 + $0xd9] sm:$0xff] }
 0x42c   : > { %v3045_v27 = vadd.f32 %v3044_v56, %v2956_v1  ;;  %3358 = vmatmul.bf16.gmra.mxu1 %v6294_v18 }
 0x42d   : > { %v3282_v31 = vpop.f32.mrf.mxu0  ;;  %3853 = vmatmul.bf16.gmra.mxu3 %v3597_v21  ;;  %v3057_v48 = vpop.f32.mrf.mxu3 }
 0x42e   : > { %3417 = vmatmul.bf16.gmra.mxu2 %v6297_v49  ;;  %v6300_v55 = vadd.f32 %v3277_v52, %v3045_v27  ;;  %v3500_v27 = vld [vmem:[#allocation3 + $0xb0] sm:$0xff] }
 0x42f   : > { %v3600_v38 = vpack.c.bf16 %v3500_v27, %v3499_v8  ;;  %v3501_v8 = vld [vmem:[#allocation3 + $0xc0] sm:$0xff] }
 0x431   : > { %v2958_v57 = vpop.f32.mrf.mxu2  ;;  %v3321_v2 = vpop.f32.mrf.mxu1 }
 0x432   : > { %v2959_v26 = vadd.f32 %v2958_v57, %v6189_v37  ;;  %v6304_v56 = vadd.f32 %v3321_v2, %v6153_v4  ;;  %v6313_v4 = vpack.c.bf16 %v2333_v43, %v2332_v42  ;;  %v2335_v43 = vld [vmem:[#allocation3 + $0xf9] sm:$0xff]  ;;  %v2354_v42 = vld [vmem:[#allocation3 + $0x62] sm:$0xff] }
 0x434   : > { %v3048_v40 = vadd.f32 %v3047_v33, %v2959_v26 }
 0x435   : > { %v3285_v9 = vpop.f32.mrf.mxu0  ;;  %v3059_v1 = vpop.f32.mrf.mxu3 }
 0x436   : > { %v6306_v14 = vadd.f32 %v3280_v11, %v3048_v40  ;;  %v6316_v11 = vpack.c.bf16 %v2353_v63, %v2352_v47  ;;  %v2355_v47 = vld [vmem:[#allocation3 + $0x6a] sm:$0xff] }
 0x438   : > { %3937 = vmatmul.bf16.gmra.mxu0 %v6248_v46 }
 0x439   : > { %v2960_v7 = vpop.f32.mrf.mxu2  ;;  %v3324_v52 = vpop.f32.mrf.mxu1 }
 0x43a   : > { %v2961_v6 = vadd.f32 %v2960_v7, %v6200_v13  ;;  %v6311_v37 = vadd.f32 %v3324_v52, %v6159_v25  ;;  %v2334_v52 = vld [vmem:[#allocation3 + $0xf1] sm:$0xff] }
 0x43c   : > { %v3050_v33 = vadd.f32 %v3049_v5, %v2961_v6  ;;  %3363 = vmatmul.bf16.gmra.mxu1 %v6313_v4 }
 0x43d   : > { %v3287_v46 = vpop.f32.mrf.mxu0  ;;  %3858 = vmatmul.bf16.gmra.mxu3 %v3600_v38  ;;  %v3062_v5 = vpop.f32.mrf.mxu3 }
 0x43e   : > { %3422 = vmatmul.bf16.gmra.mxu2 %v6316_v11  ;;  %v6319_v23 = vadd.f32 %v3282_v31, %v3050_v33  ;;  %v5060_v33 = vld [vmem:[#allocation9 + $0x208] sm:$0xff] }
 0x43f   : > { %4009 = vmatpush.bf16.msra.mxu1 %v5060_v33 }
 0x441   : > { %v2963_v13 = vpop.f32.mrf.mxu2  ;;  %v3326_v21 = vpop.f32.mrf.mxu1 }
 0x442   : > { %v2964_v25 = vadd.f32 %v2963_v13, %v6208_v59  ;;  %v6323_v57 = vadd.f32 %v3326_v21, %v6167_v10  ;;  %v6332_v10 = vpack.c.bf16 %v2335_v43, %v2334_v52 }
 0x444   : > { %v3053_v2 = vadd.f32 %v3052_v22, %v2964_v25 }
 0x445   : > { %v3290_v26 = vpop.f32.mrf.mxu0  ;;  %v3064_v6 = vpop.f32.mrf.mxu3 }
 0x446   : > { %v6325_v40 = vadd.f32 %v3285_v9, %v3053_v2  ;;  %v6335_v9 = vpack.c.bf16 %v2355_v47, %v2354_v42  ;;  %v2336_v42 = vld [vmem:[#allocation3 + $0x109] sm:$0xff]  ;;  %v2356_v47 = vld [vmem:[#allocation3 + $0x7a] sm:$0xff] }
 0x448   : > { %3942 = vmatmul.bf16.gmra.mxu0 %v6265_v62  ;;  %v3502_v62 = vld [vmem:[#allocation3 + $0xc8] sm:$0xff] }
 0x449   : > { %v2965_v7 = vpop.f32.mrf.mxu2  ;;  %v3329_v31 = vpop.f32.mrf.mxu1 }
 0x44a   : > { %v2966_v63 = vadd.f32 %v2965_v7, %v6219_v32  ;;  %v6330_v59 = vadd.f32 %v3329_v31, %v6172_v17  ;;  %v3603_v32 = vpack.c.bf16 %v3502_v62, %v3501_v8  ;;  %v2337_v31 = vld [vmem:[#allocation3 + $0x111] sm:$0xff]  ;;  %v3504_v62 = vld [vmem:[#allocation3 + $0xe0] sm:$0xff] }
 0x44b   : > { %v3503_v8 = vld [vmem:[#allocation3 + $0xd8] sm:$0xff] }
 0x44c   : > { %v3055_v22 = vadd.f32 %v3054_v44, %v2966_v63  ;;  %3368 = vmatmul.bf16.gmra.mxu1 %v6332_v10  ;;  %v2357_v63 = vld [vmem:[#allocation3 + $0x82] sm:$0xff] }
 0x44d   : > { %v3292_v27 = vpop.f32.mrf.mxu0  ;;  %3863 = vmatmul.bf16.gmra.mxu3 %v3603_v32  ;;  %v3067_v25 = vpop.f32.mrf.mxu3 }
 0x44e   : > { %3427 = vmatmul.bf16.gmra.mxu2 %v6335_v9  ;;  %v6338_v38 = vadd.f32 %v3287_v46, %v3055_v22 }
 0x451   : > { %v2968_v17 = vpop.f32.mrf.mxu2  ;;  %v3331_v13 = vpop.f32.mrf.mxu1 }
 0x452   : > { %v2969_v21 = vadd.f32 %v2968_v17, %v6228_v24  ;;  %v6342_v44 = vadd.f32 %v3331_v13, %v6179_v36  ;;  %v6351_v36 = vpack.c.bf16 %v2337_v31, %v2336_v42  ;;  %v3606_v17 = vpack.c.bf16 %v3504_v62, %v3503_v8  ;;  %v5059_v62 = vld [vmem:[#allocation9 + $0x200] sm:$0xff]  ;;  %v3506_v8 = vld [vmem:[#allocation3 + $0xf8] sm:$0xff] }
 0x453   : > { %4010 = vmatpush.bf16.msra.mxu1 %v5059_v62  ;;  %v2361_v62 = vld [vmem:[#allocation3 + $0xb2] sm:$0xff] }
 0x454   : > { %v3058_v2 = vadd.f32 %v3057_v48, %v2969_v21 }
 0x455   : > { %v3295_v43 = vpop.f32.mrf.mxu0  ;;  %v3069_v33 = vpop.f32.mrf.mxu3 }
 0x456   : > { %v6344_v7 = vadd.f32 %v3290_v26, %v3058_v2  ;;  %v6354_v26 = vpack.c.bf16 %v2357_v63, %v2356_v47  ;;  %v2338_v47 = vld [vmem:[#allocation3 + $0x121] sm:$0xff]  ;;  %v2358_v63 = vld [vmem:[#allocation3 + $0x92] sm:$0xff] }
 0x458   : > { %3947 = vmatmul.bf16.gmra.mxu0 %v6279_v30 }
 0x459   : > { %v2970_v52 = vpop.f32.mrf.mxu2  ;;  %v3334_v46 = vpop.f32.mrf.mxu1 }
 0x45a   : > { %v2971_v22 = vadd.f32 %v2970_v52, %v6238_v15  ;;  %v6349_v24 = vadd.f32 %v3334_v46, %v6186_v45  ;;  %v2339_v46 = vld [vmem:[#allocation3 + $0x129] sm:$0xff] }
 0x45c   : > { %v3060_v48 = vadd.f32 %v3059_v1, %v2971_v22  ;;  %3373 = vmatmul.bf16.gmra.mxu1 %v6351_v36  ;;  %v2359_v22 = vld [vmem:[#allocation3 + $0x9a] sm:$0xff] }
 0x45d   : > { %v3297_v30 = vpop.f32.mrf.mxu0  ;;  %3868 = vmatmul.bf16.gmra.mxu3 %v3606_v17  ;;  %v3072_v2 = vpop.f32.mrf.mxu3 }
 0x45e   : > { %3432 = vmatmul.bf16.gmra.mxu2 %v6354_v26  ;;  %v6357_v32 = vadd.f32 %v3292_v27, %v3060_v48 }
 0x461   : > { %v2973_v15 = vpop.f32.mrf.mxu2  ;;  %v3336_v13 = vpop.f32.mrf.mxu1 }
 0x462   : > { %v2974_v45 = vadd.f32 %v2973_v15, %v6245_v39  ;;  %v6361_v21 = vadd.f32 %v3336_v13, %v6198_v0  ;;  %v6370_v0 = vpack.c.bf16 %v2339_v46, %v2338_v47  ;;  %v3505_v15 = vld [vmem:[#allocation3 + $0xf0] sm:$0xff]  ;;  %v2341_v47 = vld [vmem:[#allocation3 + $0x141] sm:$0xff] }
 0x464   : > { %v3063_v1 = vadd.f32 %v3062_v5, %v2974_v45 }
 0x465   : > { %v3300_v31 = vpop.f32.mrf.mxu0  ;;  %v3074_v17 = vpop.f32.mrf.mxu3 }
 0x466   : > { %v6363_v52 = vadd.f32 %v3295_v43, %v3063_v1  ;;  %v6373_v43 = vpack.c.bf16 %v2359_v22, %v2358_v63 }
 0x468   : > { %3952 = vmatmul.bf16.gmra.mxu0 %v6294_v18 }
 0x469   : > { %v2975_v42 = vpop.f32.mrf.mxu2  ;;  %v3339_v27 = vpop.f32.mrf.mxu1 }
 0x46a   : > { %v2976_v48 = vadd.f32 %v2975_v42, %v6255_v19  ;;  %v6368_v39 = vadd.f32 %v3339_v27, %v6205_v3  ;;  %v3609_v19 = vpack.c.bf16 %v3506_v8, %v3505_v15  ;;  %v3508_v15 = vld [vmem:[#allocation3 + $0x110] sm:$0xff] }
 0x46c   : > { %v3065_v5 = vadd.f32 %v3064_v6, %v2976_v48  ;;  %3378 = vmatmul.bf16.gmra.mxu1 %v6370_v0  ;;  %v2340_v48 = vld [vmem:[#allocation3 + $0x139] sm:$0xff] }
 0x46d   : > { %v3302_v18 = vpop.f32.mrf.mxu0  ;;  %3873 = vmatmul.bf16.gmra.mxu3 %v3609_v19  ;;  %v3507_v19 = vld [vmem:[#allocation3 + $0x108] sm:$0xff] }
 0x46e   : > { %3437 = vmatmul.bf16.gmra.mxu2 %v6373_v43  ;;  %v6376_v13 = vadd.f32 %v3297_v30, %v3065_v5  ;;  %v2360_v5 = vld [vmem:[#allocation3 + $0xaa] sm:$0xff] }
 0x470   : > { %v3834_v63 = vpop.f32.mrf.mxu3 }
 0x471   : > { %v2978_v3 = vpop.f32.mrf.mxu2  ;;  %v3341_v45 = vpop.f32.mrf.mxu1 }
 0x472   : > { %v2979_v6 = vadd.f32 %v2978_v3, %v6262_v12  ;;  %v6380_v1 = vadd.f32 %v3341_v45, %v6217_v54  ;;  %v6389_v54 = vpack.c.bf16 %v2341_v47, %v2340_v48  ;;  %v3612_v45 = vpack.c.bf16 %v3508_v15, %v3507_v19  ;;  %v2363_v15 = vld [vmem:[#allocation3 + $0xca] sm:$0xff] }
 0x474   : > { %v3068_v46 = vadd.f32 %v3067_v25, %v2979_v6 }
 0x475   : > { %v3305_v42 = vpop.f32.mrf.mxu0 }
 0x476   : > { %v6382_v27 = vadd.f32 %v3300_v31, %v3068_v46  ;;  %v6392_v31 = vpack.c.bf16 %v2361_v62, %v2360_v5  ;;  %v2343_v5 = vld [vmem:[#allocation3 + $0x159] sm:$0xff] }
 0x478   : > { %3957 = vmatmul.bf16.gmra.mxu0 %v6313_v4 }
 0x479   : > { %v2980_v22 = vpop.f32.mrf.mxu2  ;;  %v3344_v30 = vpop.f32.mrf.mxu1 }
 0x47a   : > { %v2981_v8 = vadd.f32 %v2980_v22, %v6270_v35  ;;  %v6387_v12 = vadd.f32 %v3344_v30, %v6225_v29 }
 0x47c   : > { %v3070_v25 = vadd.f32 %v3069_v33, %v2981_v8  ;;  %3383 = vmatmul.bf16.gmra.mxu1 %v6389_v54  ;;  %v3836_v33 = vpop.f32.mrf.mxu3  ;;  %v2342_v8 = vld [vmem:[#allocation3 + $0x151] sm:$0xff] }
 0x47d   : > { %v3307_v4 = vpop.f32.mrf.mxu0  ;;  %3878 = vmatmul.bf16.gmra.mxu3 %v3612_v45  ;;  %v6410_v19 = vpack.c.bf16 %v2343_v5, %v2342_v8  ;;  %v3510_v45 = vld [vmem:[#allocation3 + $0x128] sm:$0xff]  ;;  %v2345_v8 = vld [vmem:[#allocation3 + $0x171] sm:$0xff] }
 0x47e   : > { %3442 = vmatmul.bf16.gmra.mxu2 %v6392_v31  ;;  %v6395_v3 = vadd.f32 %v3302_v18, %v3070_v25  ;;  %v2362_v25 = vld [vmem:[#allocation3 + $0xc2] sm:$0xff] }
 0x481   : > { %v2983_v6 = vpop.f32.mrf.mxu2  ;;  %v3346_v35 = vpop.f32.mrf.mxu1 }
 0x482   : > { %v2984_v29 = vadd.f32 %v2983_v6, %v6276_v16  ;;  %v6399_v46 = vadd.f32 %v3346_v35, %v6236_v61  ;;  %v3509_v35 = vld [vmem:[#allocation3 + $0x120] sm:$0xff] }
 0x484   : > { %v3073_v47 = vadd.f32 %v3072_v2, %v2984_v29 }
 0x485   : > { %v3923_v22 = vpop.f32.mrf.mxu0 }
 0x486   : > { %v6401_v30 = vadd.f32 %v3923_v22, %v3834_v63  ;;  %v6403_v48 = vadd.f32 %v3305_v42, %v3073_v47  ;;  %v6413_v42 = vpack.c.bf16 %v2363_v15, %v2362_v25  ;;  %v3839_v63 = vpop.f32.mrf.mxu3  ;;  %v2344_v25 = vld [vmem:[#allocation3 + $0x169] sm:$0xff]  ;;  %v2364_v15 = vld [vmem:[#allocation3 + $0xda] sm:$0xff] }
 0x488   : > { %3962 = vmatmul.bf16.gmra.mxu0 %v6332_v10 }
 0x489   : > { %v2985_v18 = vpop.f32.mrf.mxu2  ;;  %v3349_v62 = vpop.f32.mrf.mxu1 }
 0x48a   : > { %v2986_v16 = vadd.f32 %v2985_v18, %v6284_v50  ;;  %v6408_v61 = vadd.f32 %v3349_v62, %v6242_v51  ;;  %v3615_v50 = vpack.c.bf16 %v3510_v45, %v3509_v35  ;;  %v3512_v45 = vld [vmem:[#allocation3 + $0x140] sm:$0xff]  ;;  %v3511_v35 = vld [vmem:[#allocation3 + $0x138] sm:$0xff] }
 0x48c   : > { %v3075_v2 = vadd.f32 %v3074_v17, %v2986_v16  ;;  %3388 = vmatmul.bf16.gmra.mxu1 %v6410_v19  ;;  %v2365_v16 = vld [vmem:[#allocation3 + $0xe2] sm:$0xff] }
 0x48d   : > { %v3925_v10 = vpop.f32.mrf.mxu0  ;;  %3883 = vmatmul.bf16.gmra.mxu3 %v3615_v50  ;;  %v3618_v50 = vpack.c.bf16 %v3512_v45, %v3511_v35 }
 0x48e   : > { %3447 = vmatmul.bf16.gmra.mxu2 %v6413_v42  ;;  %v6416_v6 = vadd.f32 %v3925_v10, %v3836_v33  ;;  %v6418_v29 = vadd.f32 %v3307_v4, %v3075_v2  ;;  %v3841_v62 = vpop.f32.mrf.mxu3 }
 0x491   : > { %v3351_v51 = vpop.f32.mrf.mxu1  ;;  %v3408_v47 = vpop.f32.mrf.mxu2 }
 0x492   : > { %v6421_v17 = vadd.f32 %v3351_v51, %v6253_v58  ;;  %v6424_v22 = vadd.f32 %v3408_v47, %v6292_v34  ;;  %v6435_v34 = vpack.c.bf16 %v2345_v8, %v2344_v25  ;;  %v2366_v25 = vld [vmem:[#allocation3 + $0xf2] sm:$0xff] }
 0x495   : > { %v3928_v5 = vpop.f32.mrf.mxu0 }
 0x496   : > { %v6426_v18 = vadd.f32 %v3928_v5, %v3839_v63  ;;  %v6438_v63 = vpack.c.bf16 %v2365_v16, %v2364_v15  ;;  %v3844_v51 = vpop.f32.mrf.mxu3  ;;  %v2367_v15 = vld [vmem:[#allocation3 + $0xfa] sm:$0xff] }
 0x498   : > { %3967 = vmatmul.bf16.gmra.mxu0 %v6351_v36 }
 0x499   : > { %v3354_v33 = vpop.f32.mrf.mxu1  ;;  %v3410_v4 = vpop.f32.mrf.mxu2 }
 0x49a   : > { %v6430_v2 = vadd.f32 %v3354_v33, %v6259_v53  ;;  %v6433_v58 = vadd.f32 %v3410_v4, %v6304_v56 }
 0x49c   : > { %3393 = vmatmul.bf16.gmra.mxu1 %v6435_v34 }
 0x49d   : > { %v3930_v10 = vpop.f32.mrf.mxu0  ;;  %3888 = vmatmul.bf16.gmra.mxu3 %v3618_v50  ;;  %v3513_v50 = vld [vmem:[#allocation3 + $0x150] sm:$0xff] }
 0x49e   : > { %3452 = vmatmul.bf16.gmra.mxu2 %v6438_v63  ;;  %v6441_v36 = vadd.f32 %v3930_v10, %v3841_v62  ;;  %v3514_v10 = vld [vmem:[#allocation3 + $0x158] sm:$0xff] }
 0x4a1   : > { %v3356_v53 = vpop.f32.mrf.mxu1  ;;  %v3413_v47 = vpop.f32.mrf.mxu2 }
 0x4a2   : > { %v6444_v56 = vadd.f32 %v3356_v53, %v6268_v60  ;;  %v6447_v5 = vadd.f32 %v3413_v47, %v6311_v37  ;;  %v3846_v60 = vpop.f32.mrf.mxu3  ;;  %v6459_v37 = vpack.c.bf16 %v2367_v15, %v2366_v25 }
 0x4a5   : > { %v3933_v8 = vpop.f32.mrf.mxu0 }
 0x4a6   : > { %v6449_v33 = vadd.f32 %v3933_v8, %v3844_v51  ;;  %v3621_v51 = vpack.c.bf16 %v3514_v10, %v3513_v50 }
 0x4a8   : > { %3972 = vmatmul.bf16.gmra.mxu0 %v6370_v0 }
 0x4a9   : > { %v3359_v4 = vpop.f32.mrf.mxu1  ;;  %v3415_v62 = vpop.f32.mrf.mxu2 }
 0x4aa   : > { %v6453_v16 = vadd.f32 %v3359_v4, %v6273_v20  ;;  %v6456_v45 = vadd.f32 %v3415_v62, %v6323_v57  ;;  %v2368_v4 = vld [vmem:[#allocation3 + $0x10a] sm:$0xff]  ;;  %v2369_v62 = vld [vmem:[#allocation3 + $0x112] sm:$0xff] }
 0x4ac   : > { %4011 = vmatmul.bf16.vlgmr.msra.gmra.mxu1 %v6297_v49 }
 0x4ad   : > { %v3935_v35 = vpop.f32.mrf.mxu0  ;;  %3893 = vmatmul.bf16.gmra.mxu3 %v3621_v51  ;;  %v2370_v51 = vld [vmem:[#allocation3 + $0x122] sm:$0xff] }
 0x4ae   : > { %3457 = vmatmul.bf16.gmra.mxu2 %v6459_v37  ;;  %v6462_v0 = vadd.f32 %v3935_v35, %v3846_v60  ;;  %v6478_v60 = vpack.c.bf16 %v2369_v62, %v2368_v4 }
 0x4b1   : > { %v3361_v53 = vpop.f32.mrf.mxu1  ;;  %v3418_v47 = vpop.f32.mrf.mxu2 }
 0x4b2   : > { %v6465_v20 = vadd.f32 %v3361_v53, %v6282_v28  ;;  %v6468_v57 = vadd.f32 %v3418_v47, %v6330_v59  ;;  %v3516_v28 = vld [vmem:[#allocation3 + $0x170] sm:$0xff]  ;;  %v3515_v59 = vld [vmem:[#allocation3 + $0x168] sm:$0xff] }
 0x4b3   : > { %v3624_v10 = vpack.c.bf16 %v3516_v28, %v3515_v59  ;;  %v2371_v53 = vld [vmem:[#allocation3 + $0x12a] sm:$0xff]  ;;  %v2372_v28 = vld [vmem:[#allocation3 + $0x13a] sm:$0xff] }
 0x4b8   : > { %3977 = vmatmul.bf16.gmra.mxu0 %v6389_v54 }
 0x4b9   : > { %v3364_v49 = vpop.f32.mrf.mxu1  ;;  %v3420_v8 = vpop.f32.mrf.mxu2 }
 0x4ba   : > { %v6472_v25 = vadd.f32 %v3364_v49, %v6287_v41  ;;  %v6475_v15 = vadd.f32 %v3420_v8, %v6342_v44  ;;  %v6495_v8 = vpack.c.bf16 %v2371_v53, %v2370_v51  ;;  %v2375_v51 = vld [vmem:[#allocation3 + $0x15a] sm:$0xff] }
 0x4bc   : > { %4016 = vmatmul.bf16.gmra.mxu1 %v6316_v11 }
 0x4bd   : > { %3898 = vmatmul.bf16.gmra.mxu3 %v3624_v10 }
 0x4be   : > { %3462 = vmatmul.bf16.gmra.mxu2 %v6478_v60 }
 0x4c1   : > { %v3366_v54 = vpop.f32.mrf.mxu1  ;;  %v3423_v35 = vpop.f32.mrf.mxu2 }
 0x4c2   : > { %v6482_v50 = vadd.f32 %v3366_v54, %v6300_v55  ;;  %v6485_v41 = vadd.f32 %v3423_v35, %v6349_v24  ;;  %v3518_v55 = vld [vmem:[#allocation3 + $0x188] sm:$0xff]  ;;  %v3517_v24 = vld [vmem:[#allocation3 + $0x180] sm:$0xff] }
 0x4c3   : > { %v3627_v4 = vpack.c.bf16 %v3518_v55, %v3517_v24  ;;  %v3549_v35 = vld [vmem:[#allocation3 + $0x181] sm:$0xff]  ;;  %v2376_v24 = vld [vmem:[#allocation3 + $0x16a] sm:$0xff] }
 0x4c8   : > { %3982 = vmatmul.bf16.gmra.mxu0 %v6410_v19 }
 0x4c9   : > { %v3369_v44 = vpop.f32.mrf.mxu1  ;;  %v3425_v11 = vpop.f32.mrf.mxu2 }
 0x4ca   : > { %v6489_v47 = vadd.f32 %v3369_v44, %v6306_v14  ;;  %v6492_v49 = vadd.f32 %v3425_v11, %v6361_v21  ;;  %v2373_v21 = vld [vmem:[#allocation3 + $0x142] sm:$0xff]  ;;  %v2374_v11 = vld [vmem:[#allocation3 + $0x152] sm:$0xff] }
 0x4cc   : > { %4021 = vmatmul.bf16.gmra.mxu1 %v6335_v9  ;;  %v6506_v9 = vpack.c.bf16 %v2373_v21, %v2372_v28 }
 0x4cd   : > { %3903 = vmatmul.bf16.gmra.mxu3 %v3627_v4  ;;  %v2377_v4 = vld [vmem:[#allocation3 + $0x172] sm:$0xff] }
 0x4ce   : > { %3467 = vmatmul.bf16.gmra.mxu2 %v6495_v8 }
 0x4d1   : > { %v3371_v19 = vpop.f32.mrf.mxu1 }
 0x4d2   : > { %v6499_v62 = vadd.f32 %v3371_v19, %v6319_v23  ;;  %v3550_v23 = vld [vmem:[#allocation3 + $0x189] sm:$0xff] }
 0x4d3   : > { %v3628_v44 = vpack.c.bf16 %v3550_v23, %v3549_v35  ;;  %v3849_v35 = vpop.f32.mrf.mxu3 }
 0x4d8   : > { %3987 = vmatmul.bf16.gmra.mxu0 %v6435_v34 }
 0x4d9   : > { %v3374_v14 = vpop.f32.mrf.mxu1 }
 0x4da   : > { %v6503_v59 = vadd.f32 %v3374_v14, %v6325_v40 }
 0x4dc   : > { %4026 = vmatmul.bf16.gmra.mxu1 %v6354_v26  ;;  %v6516_v26 = vpack.c.bf16 %v2375_v51, %v2374_v11 }
 0x4de   : > { %3472 = vmatmul.bf16.gmra.mxu2 %v6506_v9 }
 0x4e1   : > { %v3376_v10 = vpop.f32.mrf.mxu1 }
 0x4e2   : > { %v6510_v54 = vadd.f32 %v3376_v10, %v6338_v38 }
 0x4e8   : > { %3992 = vmatmul.bf16.gmra.mxu0 %v3628_v44 }
 0x4e9   : > { %v3379_v34 = vpop.f32.mrf.mxu1 }
 0x4ea   : > { %v6513_v40 = vadd.f32 %v3379_v34, %v6344_v7  ;;  %v6526_v7 = vpack.c.bf16 %v2377_v4, %v2376_v24  ;;  %v4124_v34 = vld [vmem:[%s5453_s30] sm:$0xff]  ;;  %v3428_v24 = vpop.f32.mrf.mxu2 }
 0x4ec   : > { %4031 = vmatmul.bf16.gmra.mxu1 %v6373_v43 }
 0x4ee   : > { %3477 = vmatmul.bf16.gmra.mxu2 %v6516_v26 }
 0x4f1   : > { %v3381_v53 = vpop.f32.mrf.mxu1 }
 0x4f2   : > { %v6520_v38 = vadd.f32 %v3381_v53, %v6357_v32 }
 0x4f9   : > { %v3384_v55 = vpop.f32.mrf.mxu1 }
 0x4fa   : > { %v6523_v19 = vadd.f32 %v3384_v55, %v6363_v52 }
 0x4fc   : > { %4036 = vmatmul.bf16.gmra.mxu1 %v6392_v31 }
 0x4fe   : > { %3482 = vmatmul.bf16.gmra.mxu2 %v6526_v7 }
 0x501   : > { %v3386_v43 = vpop.f32.mrf.mxu1 }
 0x502   : > { %v6530_v14 = vadd.f32 %v3386_v43, %v6376_v13 }
 0x509   : > { %v3389_v28 = vpop.f32.mrf.mxu1 }
 0x50a   : > { %v6533_v32 = vadd.f32 %v3389_v28, %v6382_v27  ;;  %v3938_v27 = vpop.f32.mrf.mxu0  ;;  %v4126_v28 = vld [vmem:[%s5453_s30 + $0x10] sm:$0xff] }
 0x50c   : > { %4041 = vmatmul.bf16.gmra.mxu1 %v6413_v42 }
 0x511   : > { %v3391_v21 = vpop.f32.mrf.mxu1 }
 0x512   : > { %v6537_v52 = vadd.f32 %v3391_v21, %v6395_v3  ;;  %v3940_v11 = vpop.f32.mrf.mxu0 }
 0x519   : > { %v3394_v31 = vpop.f32.mrf.mxu1 }
 0x51a   : > { %v6540_v10 = vadd.f32 %v3394_v31, %v6403_v48  ;;  %v3851_v48 = vpop.f32.mrf.mxu3  ;;  %v3943_v55 = vpop.f32.mrf.mxu0 }
 0x51c   : > { %4046 = vmatmul.bf16.gmra.mxu1 %v6438_v63 }
 0x521   : > { %v3396_v23 = vpop.f32.mrf.mxu1 }
 0x522   : > { %v6544_v13 = vadd.f32 %v3396_v23, %v6418_v29 }
 0x529   : > { %v4012_v44 = vpop.f32.mrf.mxu1 }
 0x52a   : > { %v4013_v42 = vadd.f32 %v4012_v44, %v6401_v30  ;;  %v4125_v30 = vld [vmem:[%s5453_s30 + $0x8] sm:$0xff] }
 0x52c   : > { %v4092_v3 = vadd.f32 %v4013_v42, %v6424_v22  ;;  %4051 = vmatmul.bf16.gmra.mxu1 %v6459_v37  ;;  %v3854_v37 = vpop.f32.mrf.mxu3  ;;  %v3430_v42 = vpop.f32.mrf.mxu2 }
 0x52e   : > { %v4156_v51 = vadd.f32 %v4124_v34, %v4092_v3  ;;  %v4127_v34 = vld [vmem:[%s5453_s30 + $0x18] sm:$0xff] }
 0x530   : > { %4188 = vst [vmem:[%s6552_s18] sm:$0xff] %v4156_v51 }
 0x531   : > { %v4014_v29 = vpop.f32.mrf.mxu1 }
 0x532   : > { %v4015_v63 = vadd.f32 %v4014_v29, %v6416_v6  ;;  %v4128_v29 = vld [vmem:[%s5453_s30 + $0x20] sm:$0xff] }
 0x534   : > { %v4093_v53 = vadd.f32 %v4015_v63, %v6433_v58  ;;  %v3945_v58 = vpop.f32.mrf.mxu0  ;;  %v3856_v23 = vpop.f32.mrf.mxu3 }
 0x536   : > { %v4157_v22 = vadd.f32 %v4125_v30, %v4093_v53 }
 0x538   : > { %4189 = vst [vmem:[%s6552_s18 + $0x8] sm:$0xff] %v4157_v22 }
 0x539   : > { %v4017_v4 = vpop.f32.mrf.mxu1 }
 0x53a   : > { %v4018_v43 = vadd.f32 %v4017_v4, %v6426_v18  ;;  %v4129_v4 = vld [vmem:[%s5453_s30 + $0x28] sm:$0xff] }
 0x53c   : > { %v4094_v21 = vadd.f32 %v4018_v43, %v6447_v5  ;;  %4056 = vmatmul.bf16.gmra.mxu1 %v6478_v60  ;;  %v6570_v60 = vpop.f32.mrf.mxu0  ;;  %v6572_v63 = vpop.f32.mrf.mxu3 }
 0x53e   : > { %v4158_v6 = vadd.f32 %v4126_v28, %v4094_v21 }
 0x540   : > { %4190 = vst [vmem:[%s6552_s18 + $0x10] sm:$0xff] %v4158_v6 }
 0x541   : > { %v4019_v31 = vpop.f32.mrf.mxu1 }
 0x542   : > { %v4020_v44 = vadd.f32 %v4019_v31, %v6441_v36  ;;  %v6576_v36 = vpop.f32.mrf.mxu2 }
 0x544   : > { %v4095_v3 = vadd.f32 %v4020_v44, %v6456_v45  ;;  %v6582_v43 = vpop.f32.mrf.mxu0  ;;  %v6584_v28 = vpop.f32.mrf.mxu3  ;;  %v4130_v44 = vld [vmem:[%s5453_s30 + $0x30] sm:$0xff] }
 0x546   : > { %v4159_v18 = vadd.f32 %v4127_v34, %v4095_v3  ;;  %v3941_v34 = vadd.f32 %v3940_v11, %v3851_v48 }
 0x548   : > { %4191 = vst [vmem:[%s6552_s18 + $0x18] sm:$0xff] %v4159_v18 }
 0x549   : > { %v4022_v51 = vpop.f32.mrf.mxu1 }
 0x54a   : > { %v4023_v5 = vadd.f32 %v4022_v51, %v6449_v33 }
 0x54c   : > { %v4096_v30 = vadd.f32 %v4023_v5, %v6468_v57  ;;  %4061 = vmatmul.bf16.gmra.mxu1 %v6495_v8  ;;  %v6586_v57 = vpop.f32.mrf.mxu2  ;;  %v3939_v8 = vadd.f32 %v3938_v27, %v3849_v35  ;;  %v3953_v3 = vpop.f32.mrf.mxu0  ;;  %v4131_v27 = vld [vmem:[%s5453_s30 + $0x38] sm:$0xff] }
 0x54d   : > { %v3864_v18 = vpop.f32.mrf.mxu3 }
 0x54e   : > { %v4160_v53 = vadd.f32 %v4128_v29, %v4096_v30 }
 0x550   : > { %4192 = vst [vmem:[%s6552_s18 + $0x20] sm:$0xff] %v4160_v53  ;;  %v3944_v53 = vadd.f32 %v3943_v55, %v3854_v37 }
 0x551   : > { %v4024_v45 = vpop.f32.mrf.mxu1 }
 0x552   : > { %v4025_v22 = vadd.f32 %v4024_v45, %v6462_v0 }
 0x554   : > { %v4097_v33 = vadd.f32 %v4025_v22, %v6475_v15  ;;  %v6593_v51 = vpop.f32.mrf.mxu2  ;;  %v3955_v45 = vpop.f32.mrf.mxu0 }
 0x555   : > { %v3866_v11 = vpop.f32.mrf.mxu3 }
 0x556   : > { %v4161_v21 = vadd.f32 %v4129_v4, %v4097_v33  ;;  %v4132_v4 = vld [vmem:[%s5453_s30 + $0x40] sm:$0xff] }
 0x558   : > { %4193 = vst [vmem:[%s6552_s18 + $0x28] sm:$0xff] %v4161_v21 }
 0x559   : > { %v4027_v6 = vpop.f32.mrf.mxu1 }
 0x55a   : > { %v4028_v31 = vadd.f32 %v4027_v6, %v3939_v8  ;;  %v3519_v8 = vld [vmem:[#allocation3 + $0x198] sm:$0xff] }
 0x55b   : > { %v5159_v6 = vld [vmem:[#allocation2 + $0x8] sm:$0xff] }
 0x55c   : > { %v4098_v0 = vadd.f32 %v4028_v31, %v6485_v41  ;;  %4066 = vmatmul.bf16.gmra.mxu1 %v6506_v9  ;;  %v3429_v9 = vadd.f32 %v3428_v24, %v6368_v39  ;;  %v3440_v22 = vpop.f32.mrf.mxu2  ;;  %v3946_v31 = vadd.f32 %v3945_v58, %v3856_v23  ;;  %v3431_v39 = vadd.f32 %v3430_v42, %v6380_v1  ;;  %v4133_v24 = vld [vmem:[%s5453_s30 + $0x48] sm:$0xff] }
 0x55d   : > { %v3949_v58 = vadd.f32 %v6570_v60, %v6572_v63  ;;  %v3434_v1 = vadd.f32 %v6576_v36, %v6387_v12  ;;  %v3436_v63 = vadd.f32 %v6586_v57, %v6399_v46  ;;  %v4135_v36 = vld [vmem:[%s5453_s30 + $0x58] sm:$0xff]  ;;  %v4136_v57 = vld [vmem:[%s5453_s30 + $0x60] sm:$0xff] }
 0x55e   : > { %v4162_v15 = vadd.f32 %v4130_v44, %v4098_v0  ;;  %v3958_v44 = vpop.f32.mrf.mxu0  ;;  %v3869_v0 = vpop.f32.mrf.mxu3 }
 0x560   : > { %4194 = vst [vmem:[%s6552_s18 + $0x30] sm:$0xff] %v4162_v15 }
 0x561   : > { %v4029_v5 = vpop.f32.mrf.mxu1 }
 0x562   : > { %v4030_v29 = vadd.f32 %v4029_v5, %v3941_v34  ;;  %v3551_v34 = vld [vmem:[#allocation3 + $0x199] sm:$0xff]  ;;  %v3552_v5 = vld [vmem:[#allocation3 + $0x1a1] sm:$0xff] }
 0x564   : > { %v4099_v35 = vadd.f32 %v4030_v29, %v6492_v49  ;;  %v3630_v49 = vpack.c.bf16 %v5159_v6, %v3519_v8  ;;  %v3631_v29 = vpack.c.bf16 %v3552_v5, %v3551_v34  ;;  %v3581_v8 = vld [vmem:[#allocation3 + $0x182] sm:$0xff]  ;;  %v3954_v6 = vadd.f32 %v3953_v3, %v3864_v18 }
 0x565   : > { %v3441_v3 = vadd.f32 %v3440_v22, %v6421_v17  ;;  %v4138_v17 = vld [vmem:[%s5453_s30 + $0x70] sm:$0xff] }
 0x566   : > { %v4163_v30 = vadd.f32 %v4131_v27, %v4099_v35  ;;  %3908 = vmatmul.bf16.gmra.mxu3 %v3630_v49  ;;  %3997 = vmatmul.bf16.gmra.mxu0 %v3631_v29  ;;  %v4134_v35 = vld [vmem:[%s5453_s30 + $0x50] sm:$0xff] }
 0x568   : > { %4195 = vst [vmem:[%s6552_s18 + $0x38] sm:$0xff] %v4163_v30 }
 0x569   : > { %v4032_v41 = vpop.f32.mrf.mxu1 }
 0x56a   : > { %v4033_v48 = vadd.f32 %v4032_v41, %v3944_v53  ;;  %v3960_v53 = vpop.f32.mrf.mxu0  ;;  %v3871_v41 = vpop.f32.mrf.mxu3 }
 0x56c   : > { %v4100_v33 = vadd.f32 %v4033_v48, %v3429_v9  ;;  %4071 = vmatmul.bf16.gmra.mxu1 %v6516_v26  ;;  %v3443_v26 = vpop.f32.mrf.mxu2 }
 0x56e   : > { %v4164_v21 = vadd.f32 %v4132_v4, %v4100_v33  ;;  %v3951_v4 = vadd.f32 %v6582_v43, %v6584_v28  ;;  %v3439_v43 = vadd.f32 %v6593_v51, %v6408_v61  ;;  %v3583_v61 = vld [vmem:[#allocation3 + $0x19a] sm:$0xff]  ;;  %v3584_v51 = vld [vmem:[#allocation3 + $0x1a2] sm:$0xff] }
 0x570   : > { %4196 = vst [vmem:[%s6552_s18 + $0x40] sm:$0xff] %v4164_v21 }
 0x571   : > { %v4034_v55 = vpop.f32.mrf.mxu1 }
 0x572   : > { %v4035_v37 = vadd.f32 %v4034_v55, %v3946_v31  ;;  %v3963_v49 = vpop.f32.mrf.mxu0  ;;  %v3874_v31 = vpop.f32.mrf.mxu3 }
 0x574   : > { %v4101_v15 = vadd.f32 %v4035_v37, %v3431_v39  ;;  %v3445_v48 = vpop.f32.mrf.mxu2 }
 0x576   : > { %v4165_v27 = vadd.f32 %v4133_v24, %v4101_v15  ;;  %v3956_v15 = vadd.f32 %v3955_v45, %v3866_v11  ;;  %v3444_v11 = vadd.f32 %v3443_v26, %v6430_v2 }
 0x578   : > { %4197 = vst [vmem:[%s6552_s18 + $0x48] sm:$0xff] %v4165_v27 }
 0x579   : > { %v4037_v23 = vpop.f32.mrf.mxu1 }
 0x57a   : > { %v4038_v42 = vadd.f32 %v4037_v23, %v3949_v58  ;;  %v3965_v18 = vpop.f32.mrf.mxu0  ;;  %v3876_v5 = vpop.f32.mrf.mxu3  ;;  %v4137_v58 = vld [vmem:[%s5453_s30 + $0x68] sm:$0xff] }
 0x57c   : > { %v4102_v30 = vadd.f32 %v4038_v42, %v3434_v1  ;;  %4076 = vmatmul.bf16.gmra.mxu1 %v6526_v7  ;;  %v3582_v7 = vld [vmem:[#allocation3 + $0x18a] sm:$0xff]  ;;  %v3448_v55 = vpop.f32.mrf.mxu2  ;;  %v3959_v42 = vadd.f32 %v3958_v44, %v3869_v0  ;;  %v3446_v44 = vadd.f32 %v3445_v48, %v6444_v56  ;;  %v3966_v56 = vadd.f32 %v3965_v18, %v3876_v5 }
 0x57d   : > { %v3629_v46 = vpack.c.bf16 %v3582_v7, %v3581_v8 }
 0x57e   : > { %v4166_v9 = vadd.f32 %v4134_v35, %v4102_v30  ;;  %v3632_v35 = vpack.c.bf16 %v3584_v51, %v3583_v61  ;;  %v4142_v61 = vld [vmem:[%s5453_s30 + $0x90] sm:$0xff] }
 0x580   : > { %4198 = vst [vmem:[%s6552_s18 + $0x50] sm:$0xff] %v4166_v9 }
 0x581   : > { %v4039_v60 = vpop.f32.mrf.mxu1 }
 0x582   : > { %v4040_v12 = vadd.f32 %v4039_v60, %v3951_v4  ;;  %v3968_v22 = vpop.f32.mrf.mxu0  ;;  %v3879_v9 = vpop.f32.mrf.mxu3 }
 0x584   : > { %v4103_v33 = vadd.f32 %v4040_v12, %v3436_v63  ;;  %v3450_v27 = vpop.f32.mrf.mxu2  ;;  %v3961_v12 = vadd.f32 %v3960_v53, %v3871_v41  ;;  %v4140_v41 = vld [vmem:[%s5453_s30 + $0x80] sm:$0xff] }
 0x586   : > { %v4167_v21 = vadd.f32 %v4135_v36, %v4103_v33  ;;  %v4139_v33 = vld [vmem:[%s5453_s30 + $0x78] sm:$0xff] }
 0x588   : > { %4199 = vst [vmem:[%s6552_s18 + $0x58] sm:$0xff] %v4167_v21 }
 0x589   : > { %v4042_v39 = vpop.f32.mrf.mxu1 }
 0x58a   : > { %v4043_v28 = vadd.f32 %v4042_v39, %v3954_v6  ;;  %v3970_v2 = vpop.f32.mrf.mxu0  ;;  %v3881_v26 = vpop.f32.mrf.mxu3  ;;  %v3964_v6 = vadd.f32 %v3963_v49, %v3874_v31  ;;  %v4141_v31 = vld [vmem:[%s5453_s30 + $0x88] sm:$0xff] }
 0x58c   : > { %v4104_v37 = vadd.f32 %v4043_v28, %v3439_v43  ;;  %4081 = vmatmul.bf16.gmra.mxu1 %v3629_v46  ;;  %v3453_v60 = vpop.f32.mrf.mxu2  ;;  %v3449_v43 = vadd.f32 %v3448_v55, %v6453_v16  ;;  %v3969_v16 = vadd.f32 %v3968_v22, %v3879_v9 }
 0x58e   : > { %v4168_v24 = vadd.f32 %v4136_v57, %v4104_v37 }
 0x590   : > { %4200 = vst [vmem:[%s6552_s18 + $0x60] sm:$0xff] %v4168_v24 }
 0x591   : > { %v4044_v34 = vpop.f32.mrf.mxu1 }
 0x592   : > { %v4045_v29 = vadd.f32 %v4044_v34, %v3956_v15  ;;  %v3973_v48 = vpop.f32.mrf.mxu0  ;;  %v3884_v57 = vpop.f32.mrf.mxu3  ;;  %v3451_v15 = vadd.f32 %v3450_v27, %v6465_v20  ;;  %v3971_v20 = vadd.f32 %v3970_v2, %v3881_v26 }
 0x593   : > { %v3974_v9 = vadd.f32 %v3973_v48, %v3884_v57  ;;  %v4146_v48 = vld [vmem:[%s5453_s30 + $0xb0] sm:$0xff] }
 0x594   : > { %v4105_v23 = vadd.f32 %v4045_v29, %v3441_v3  ;;  %v3455_v7 = vpop.f32.mrf.mxu2  ;;  %v3454_v29 = vadd.f32 %v3453_v60, %v6472_v25 }
 0x596   : > { %v4169_v1 = vadd.f32 %v4137_v58, %v4105_v23 }
 0x598   : > { %4201 = vst [vmem:[%s6552_s18 + $0x68] sm:$0xff] %v4169_v1 }
 0x599   : > { %v4047_v45 = vpop.f32.mrf.mxu1 }
 0x59a   : > { %v4048_v30 = vadd.f32 %v4047_v45, %v3959_v42  ;;  %v3975_v18 = vpop.f32.mrf.mxu0  ;;  %v3886_v5 = vpop.f32.mrf.mxu3  ;;  %v3456_v42 = vadd.f32 %v3455_v7, %v6482_v50  ;;  %v4143_v45 = vld [vmem:[%s5453_s30 + $0x98] sm:$0xff]  ;;  %v4145_v7 = vld [vmem:[%s5453_s30 + $0xa8] sm:$0xff] }
 0x59c   : > { %v4106_v4 = vadd.f32 %v4048_v30, %v3444_v11  ;;  %4086 = vmatmul.bf16.gmra.mxu1 %v3632_v35  ;;  %v3458_v37 = vpop.f32.mrf.mxu2 }
 0x59d   : > { %v3459_v60 = vadd.f32 %v3458_v37, %v6489_v47 }
 0x59e   : > { %v4170_v63 = vadd.f32 %v4138_v17, %v4106_v4 }
 0x5a0   : > { %4202 = vst [vmem:[%s6552_s18 + $0x70] sm:$0xff] %v4170_v63 }
 0x5a1   : > { %v4049_v36 = vpop.f32.mrf.mxu1 }
 0x5a2   : > { %v4050_v0 = vadd.f32 %v4049_v36, %v3961_v12  ;;  %v3978_v11 = vpop.f32.mrf.mxu0  ;;  %v3889_v30 = vpop.f32.mrf.mxu3  ;;  %v4144_v12 = vld [vmem:[%s5453_s30 + $0xa0] sm:$0xff] }
 0x5a3   : > { %v3979_v47 = vadd.f32 %v3978_v11, %v3889_v30  ;;  %v4149_v11 = vld [vmem:[%s5453_s30 + $0xc8] sm:$0xff] }
 0x5a4   : > { %v4107_v21 = vadd.f32 %v4050_v0, %v3446_v44  ;;  %v3460_v23 = vpop.f32.mrf.mxu2 }
 0x5a5   : > { %v3461_v26 = vadd.f32 %v3460_v23, %v6499_v62  ;;  %v4148_v23 = vld [vmem:[%s5453_s30 + $0xc0] sm:$0xff] }
 0x5a6   : > { %v4171_v8 = vadd.f32 %v4139_v33, %v4107_v21  ;;  %v3976_v21 = vadd.f32 %v3975_v18, %v3886_v5 }
 0x5a8   : > { %4203 = vst [vmem:[%s6552_s18 + $0x78] sm:$0xff] %v4171_v8 }
 0x5a9   : > { %v4052_v39 = vpop.f32.mrf.mxu1 }
 0x5aa   : > { %v4053_v53 = vadd.f32 %v4052_v39, %v3964_v6  ;;  %v3980_v44 = vpop.f32.mrf.mxu0  ;;  %v3891_v50 = vpop.f32.mrf.mxu3 }
 0x5ab   : > { %v3981_v62 = vadd.f32 %v3980_v44, %v3891_v50 }
 0x5ac   : > { %v4108_v28 = vadd.f32 %v4053_v53, %v3449_v43  ;;  %v3463_v17 = vpop.f32.mrf.mxu2 }
 0x5ae   : > { %v4172_v46 = vadd.f32 %v4140_v41, %v4108_v28 }
 0x5b0   : > { %4204 = vst [vmem:[%s6552_s18 + $0x80] sm:$0xff] %v4172_v46  ;;  %v3464_v46 = vadd.f32 %v3463_v17, %v6503_v59 }
 0x5b1   : > { %v4054_v24 = vpop.f32.mrf.mxu1 }
 0x5b2   : > { %v4055_v49 = vadd.f32 %v4054_v24, %v3966_v56  ;;  %v3983_v43 = vpop.f32.mrf.mxu0  ;;  %v3894_v53 = vpop.f32.mrf.mxu3 }
 0x5b3   : > { %v3984_v59 = vadd.f32 %v3983_v43, %v3894_v53 }
 0x5b4   : > { %v4109_v34 = vadd.f32 %v4055_v49, %v3451_v15  ;;  %v3465_v33 = vpop.f32.mrf.mxu2 }
 0x5b5   : > { %v3466_v15 = vadd.f32 %v3465_v33, %v6510_v54 }
 0x5b6   : > { %v4173_v3 = vadd.f32 %v4141_v31, %v4109_v34 }
 0x5b8   : > { %4205 = vst [vmem:[%s6552_s18 + $0x88] sm:$0xff] %v4173_v3 }
 0x5b9   : > { %v4057_v55 = vpop.f32.mrf.mxu1 }
 0x5ba   : > { %v4058_v58 = vadd.f32 %v4057_v55, %v3969_v16  ;;  %v3985_v49 = vpop.f32.mrf.mxu0  ;;  %v3896_v31 = vpop.f32.mrf.mxu3  ;;  %v4147_v16 = vld [vmem:[%s5453_s30 + $0xb8] sm:$0xff] }
 0x5bc   : > { %v4110_v51 = vadd.f32 %v4058_v58, %v3454_v29  ;;  %v3468_v41 = vpop.f32.mrf.mxu2 }
 0x5bd   : > { %v3469_v5 = vadd.f32 %v3468_v41, %v6513_v40 }
 0x5be   : > { %v4174_v1 = vadd.f32 %v4142_v61, %v4110_v51 }
 0x5c0   : > { %4206 = vst [vmem:[%s6552_s18 + $0x90] sm:$0xff] %v4174_v1 }
 0x5c1   : > { %v4059_v27 = vpop.f32.mrf.mxu1 }
 0x5c2   : > { %v4060_v35 = vadd.f32 %v4059_v27, %v3971_v20  ;;  %v3988_v61 = vpop.f32.mrf.mxu0  ;;  %v3899_v51 = vpop.f32.mrf.mxu3  ;;  %v3986_v27 = vadd.f32 %v3985_v49, %v3896_v31  ;;  %v4153_v49 = vld [vmem:[%s5453_s30 + $0xe8] sm:$0xff] }
 0x5c4   : > { %v4111_v25 = vadd.f32 %v4060_v35, %v3456_v42  ;;  %v3470_v3 = vpop.f32.mrf.mxu2 }
 0x5c5   : > { %v3471_v35 = vadd.f32 %v3470_v3, %v6520_v38 }
 0x5c6   : > { %v4175_v22 = vadd.f32 %v4143_v45, %v4111_v25 }
 0x5c8   : > { %4207 = vst [vmem:[%s6552_s18 + $0x98] sm:$0xff] %v4175_v22 }
 0x5c9   : > { %v4062_v4 = vpop.f32.mrf.mxu1 }
 0x5ca   : > { %v4063_v63 = vadd.f32 %v4062_v4, %v3974_v9  ;;  %v3990_v25 = vpop.f32.mrf.mxu0  ;;  %v3901_v40 = vpop.f32.mrf.mxu3  ;;  %v3989_v9 = vadd.f32 %v3988_v61, %v3899_v51 }
 0x5cb   : > { %v3991_v38 = vadd.f32 %v3990_v25, %v3901_v40 }
 0x5cc   : > { %v4112_v36 = vadd.f32 %v4063_v63, %v3459_v60  ;;  %v3473_v1 = vpop.f32.mrf.mxu2 }
 0x5cd   : > { %v3474_v60 = vadd.f32 %v3473_v1, %v6523_v19  ;;  %v4155_v1 = vld [vmem:[%s5453_s30 + $0xf8] sm:$0xff] }
 0x5ce   : > { %v4176_v0 = vadd.f32 %v4144_v12, %v4112_v36  ;;  %v4150_v12 = vld [vmem:[%s5453_s30 + $0xd0] sm:$0xff] }
 0x5d0   : > { %4208 = vst [vmem:[%s6552_s18 + $0xa0] sm:$0xff] %v4176_v0 }
 0x5d1   : > { %v4064_v2 = vpop.f32.mrf.mxu1 }
 0x5d2   : > { %v4065_v8 = vadd.f32 %v4064_v2, %v3976_v21  ;;  %v3993_v50 = vpop.f32.mrf.mxu0  ;;  %v3904_v0 = vpop.f32.mrf.mxu3 }
 0x5d3   : > { %v3994_v19 = vadd.f32 %v3993_v50, %v3904_v0 }
 0x5d4   : > { %v4113_v6 = vadd.f32 %v4065_v8, %v3461_v26  ;;  %v3475_v22 = vpop.f32.mrf.mxu2  ;;  %v4151_v8 = vld [vmem:[%s5453_s30 + $0xd8] sm:$0xff] }
 0x5d5   : > { %v3476_v2 = vadd.f32 %v3475_v22, %v6530_v14 }
 0x5d6   : > { %v4177_v39 = vadd.f32 %v4145_v7, %v4113_v6 }
 0x5d8   : > { %4209 = vst [vmem:[%s6552_s18 + $0xa8] sm:$0xff] %v4177_v39 }
 0x5d9   : > { %v4067_v28 = vpop.f32.mrf.mxu1 }
 0x5da   : > { %v4068_v56 = vadd.f32 %v4067_v28, %v3979_v47  ;;  %v3906_v43 = vpop.f32.mrf.mxu3  ;;  %v3995_v41 = vpop.f32.mrf.mxu0 }
 0x5db   : > { %v3996_v14 = vadd.f32 %v3995_v41, %v3906_v43 }
 0x5dc   : > { %v4114_v57 = vadd.f32 %v4068_v56, %v3464_v46  ;;  %v3478_v33 = vpop.f32.mrf.mxu2  ;;  %v4152_v46 = vld [vmem:[%s5453_s30 + $0xe0] sm:$0xff] }
 0x5dd   : > { %v3479_v47 = vadd.f32 %v3478_v33, %v6533_v32 }
 0x5de   : > { %v4178_v37 = vadd.f32 %v4146_v48, %v4114_v57 }
 0x5e0   : > { %4210 = vst [vmem:[%s6552_s18 + $0xb0] sm:$0xff] %v4178_v37 }
 0x5e1   : > { %v4069_v24 = vpop.f32.mrf.mxu1 }
 0x5e2   : > { %v4070_v34 = vadd.f32 %v4069_v24, %v3981_v62 }
 0x5e4   : > { %v4115_v55 = vadd.f32 %v4070_v34, %v3466_v15  ;;  %v3480_v28 = vpop.f32.mrf.mxu2  ;;  %v3998_v15 = vpop.f32.mrf.mxu0 }
 0x5e5   : > { %v3481_v37 = vadd.f32 %v3480_v28, %v6537_v52 }
 0x5e6   : > { %v4179_v29 = vadd.f32 %v4147_v16, %v4115_v55 }
 0x5e8   : > { %4211 = vst [vmem:[%s6552_s18 + $0xb8] sm:$0xff] %v4179_v29 }
 0x5e9   : > { %v4072_v18 = vpop.f32.mrf.mxu1  ;;  %v3909_v24 = vpop.f32.mrf.mxu3 }
 0x5ea   : > { %v4073_v58 = vadd.f32 %v4072_v18, %v3984_v59  ;;  %v3999_v34 = vadd.f32 %v3998_v15, %v3909_v24  ;;  %v4154_v59 = vld [vmem:[%s5453_s30 + $0xf0] sm:$0xff] }
 0x5ec   : > { %v4116_v54 = vadd.f32 %v4073_v58, %v3469_v5  ;;  %v3483_v31 = vpop.f32.mrf.mxu2  ;;  %v4000_v5 = vpop.f32.mrf.mxu0 }
 0x5ed   : > { %v3484_v55 = vadd.f32 %v3483_v31, %v6540_v10 }
 0x5ee   : > { %v4180_v20 = vadd.f32 %v4148_v23, %v4116_v54 }
 0x5f0   : > { %4212 = vst [vmem:[%s6552_s18 + $0xc0] sm:$0xff] %v4180_v20 }
 0x5f1   : > { %v4074_v42 = vpop.f32.mrf.mxu1  ;;  %v3911_v52 = vpop.f32.mrf.mxu3 }
 0x5f2   : > { %v4075_v45 = vadd.f32 %v4074_v42, %v3986_v27  ;;  %v4001_v61 = vadd.f32 %v4000_v5, %v3911_v52 }
 0x5f4   : > { %v4117_v30 = vadd.f32 %v4075_v45, %v3471_v35  ;;  %v3485_v23 = vpop.f32.mrf.mxu2 }
 0x5f5   : > { %v3486_v10 = vadd.f32 %v3485_v23, %v6544_v13 }
 0x5f6   : > { %v4181_v17 = vadd.f32 %v4149_v11, %v4117_v30 }
 0x5f8   : > { %4213 = vst [vmem:[%s6552_s18 + $0xc8] sm:$0xff] %v4181_v17 }
 0x5f9   : > { %v4077_v4 = vpop.f32.mrf.mxu1 }
 0x5fa   : > { %v4078_v63 = vadd.f32 %v4077_v4, %v3989_v9 }
 0x5fc   : > { %v4118_v36 = vadd.f32 %v4078_v63, %v3474_v60 }
 0x5fe   : > { %v4182_v44 = vadd.f32 %v4150_v12, %v4118_v36 }
 0x600   : > { %4214 = vst [vmem:[%s6552_s18 + $0xd0] sm:$0xff] %v4182_v44 }
 0x601   : > { %v4079_v21 = vpop.f32.mrf.mxu1 }
 0x602   : > { %v4080_v26 = vadd.f32 %v4079_v21, %v3991_v38 }
 0x604   : > { %v4119_v7 = vadd.f32 %v4080_v26, %v3476_v2 }
 0x606   : > { %v4183_v6 = vadd.f32 %v4151_v8, %v4119_v7 }
 0x608   : > { %4215 = vst [vmem:[%s6552_s18 + $0xd8] sm:$0xff] %v4183_v6 }
 0x609   : > { %v4082_v39 = vpop.f32.mrf.mxu1 }
 0x60a   : > { %v4083_v53 = vadd.f32 %v4082_v39, %v3994_v19 }
 0x60c   : > { %v4120_v56 = vadd.f32 %v4083_v53, %v3479_v47 }
 0x60e   : > { %v4184_v48 = vadd.f32 %v4152_v46, %v4120_v56 }
 0x610   : > { %4216 = vst [vmem:[%s6552_s18 + $0xe0] sm:$0xff] %v4184_v48 }
 0x611   : > { %v4084_v57 = vpop.f32.mrf.mxu1 }
 0x612   : > { %v4085_v62 = vadd.f32 %v4084_v57, %v3996_v14 }
 0x614   : > { %v4121_v32 = vadd.f32 %v4085_v62, %v3481_v37 }
 0x616   : > { %v4185_v3 = vadd.f32 %v4153_v49, %v4121_v32 }
 0x618   : > { %4217 = vst [vmem:[%s6552_s18 + $0xe8] sm:$0xff] %v4185_v3 }
 0x619   : > { %v4087_v16 = vpop.f32.mrf.mxu1 }
 0x61a   : > { %v4088_v29 = vadd.f32 %v4087_v16, %v3999_v34 }
 0x61c   : > { %v4122_v18 = vadd.f32 %v4088_v29, %v3484_v55 }
 0x61e   : > { %v4186_v58 = vadd.f32 %v4154_v59, %v4122_v18 }
 0x620   : > { %4218 = vst [vmem:[%s6552_s18 + $0xf0] sm:$0xff] %v4186_v58 }
 0x621   : > { %v4089_v51 = vpop.f32.mrf.mxu1 }
 0x622   : > { %v4090_v54 = vadd.f32 %v4089_v51, %v4001_v61 }
 0x624   : > { %v4123_v20 = vadd.f32 %v4090_v54, %v3486_v10 }
 0x626   : > { %v4187_v27 = vadd.f32 %v4155_v1, %v4123_v20 }
 0x628   : > { %4219 = vst [vmem:[%s6552_s18 + $0xf8] sm:$0xff] %v4187_v27 }
 0x629   : > { %5277 = shalt.err (!%p5274_p10)
}
 0x62a   : > { %s5329_s22 = smov 128   ;;  %s5330_s24 = smov 8  }
 0x62b   : > { %5094 = dma.vmem_to_hbm [thread:$0]  (%p5417_p3), %s4234_s29, 4096, %s4236_s4, %s4221_s16, %s5329_s22, %s5329_s22, %s5330_s24  }
 0x62c PF: > { %s4250_s25 = sand.u32 1, %s5308_s12   ;;  %p6758_p12 = scmp.ge.s32.totalorder %s5320_s15, 2 }
 0x62d   : > { %s4251_s30 = scalar_lea.sflag [#allocation6], %s4250_s25 }
 0x62e   : > { %p5108_p13 = pnand %p6758_p12, %p5386_p6 }
 0x630   : > { %p5109_p0 = pneg %p5108_p13 }
 0x632   : > { %5303 = dma.done.wait (%p5109_p0), %s4251_s30, 4096  }
 0x633   : > { %5305 = vsyncadd (%p5109_p0), %s4251_s30, 4294963200  ;;  %p17_p5 = scmp.ge.s32.totalorder %s5407_s6, 4   ;;  %s6759_s12 = smov %s5312_s13 }
 0x634   : > { %s6760_s13 = smov %s5316_s14  ;;  %s6761_s14 = smov %s5423_s10 }
 0x635   : > { %s6762_s15 = smov %s5407_s6  ;;  %19 = sbr.rel (!%p17_p5) target bundleno = 6 (0x6), region = 91 }
 0x63a   :  { %4257 = vsyncpa [#allocation5], 1 }
 0x63b   :  { %4259 = vsyncpa [#allocation5 + $0x1], 1 }
 0x63c   :  { %4260 = vsyncpa [#allocation8], 1 }
 0x63d   :  { %4261 = vsyncpa [#allocation6], 1 }
 0x63e   :  { %4263 = vsyncpa [#allocation6 + $0x1], 1 }

</bundles_post_ra>
